<compile_context>
chip_gen: v7x
topology: tpu7x:2x2x1
jax: 0.10.0
libtpu: 0.0.40
codegen_flags: <defaults>
</compile_context>

<pallas_src>
import jax
import jax.numpy as jnp
from jax import lax
from jax.experimental import pallas as pl
from jax.experimental.pallas import tpu as pltpu

LANE = 128            # per-gate hidden block / label dim pad to this
BATCH_TILE = 16       # bf16 sublane packing height; minimum batch block
MAX_TIME_CHUNK = 32   # time steps projected per grid step (constant VMEM)


def _round_up(x: int, m: int) -> int:
    return (x + m - 1) // m * m


def _cdiv(a: int, b: int) -> int:
    return (a + b - 1) // b


# ---------------------------------------------------------------------------
# Pallas kernel factory: chunked bidirectional LSTM + max-pool + classifier
# ---------------------------------------------------------------------------
def _make_kernel(Tc: int, Hp: int, T_real: int, T_pad: int):
    G = 4 * Hp
    needs_mask = (T_pad != T_real)   # static: only compiled in when T % Tc != 0

    def kernel(x_f_ref,      # (Tc, Bb, E)   bf16   forward chunk t
               x_b_ref,      # (Tc, Bb, E)   bf16   chunk n_tc-1-t (for bwd dir)
               w_ih_ref,     # (E, 2G)       bf16   [fwd | bwd], gates [i f g o]
               w_hh_ref,     # (2Hp, 2G)     bf16   blockdiag(W_hh_f, W_hh_b)
               b_ref,        # (1, 2G)       f32    fused b_ih + b_hh, [fwd|bwd]
               w_c_ref,      # (2Hp, Lp)     bf16
               b_c_ref,      # (1, Lp)       f32
               out_ref,      # (Bb, Lp)      f32
               xg_f_ref,     # scratch (Tc*Bb, G) bf16
               xg_b_ref,     # scratch (Tc*Bb, G) bf16
               h_ref,        # scratch (Bb, 2Hp)  bf16  (persists across chunks)
               c_ref,        # scratch (Bb, 2Hp)  f32
               m_f_ref,      # scratch (Bb, Hp)   f32   running max, fwd
               m_b_ref):     # scratch (Bb, Hp)   f32   running max, bwd
        t = pl.program_id(1)
        _, Bb, E = x_f_ref.shape

        # ---- init persistent state at the first time chunk of this block ----
        @pl.when(t == 0)
        def _():
            h_ref[...] = jnp.zeros_like(h_ref)
            c_ref[...] = jnp.zeros_like(c_ref)
            m_f_ref[...] = jnp.full_like(m_f_ref, -jnp.inf)
            m_b_ref[...] = jnp.full_like(m_b_ref, -jnp.inf)

        # ---- Stage 1: chunked input projection (bf16 scratch, no bias) ------
        # TODO(synk): ping-pong the projection of chunk t+1 under the
        # recurrence of chunk t for full overlap; currently only the x DMA of
        # the next chunk is overlapped by the standard BlockSpec pipeline.
        x_f = x_f_ref[...].reshape(Tc * Bb, E)
        x_b = x_b_ref[...].reshape(Tc * Bb, E)
        xg_f_ref[...] = jnp.dot(
            x_f, w_ih_ref[:, :G],
            preferred_element_type=jnp.float32).astype(jnp.bfloat16)
        xg_b_ref[...] = jnp.dot(
            x_b, w_ih_ref[:, G:],
            preferred_element_type=jnp.float32).astype(jnp.bfloat16)

        # ---- Stage 2: fused fwd/bwd recurrence over this chunk --------------
        bias = b_ref[...]                    # (1, 2G) f32
        t_base = t * Tc                      # global step counter base

        def cell(gates, c):
            i = jax.nn.sigmoid(gates[:, 0 * Hp:1 * Hp])   # lane-aligned slices
            f = jax.nn.sigmoid(gates[:, 1 * Hp:2 * Hp])
            g = jnp.tanh(gates[:, 2 * Hp:3 * Hp])
            o = jax.nn.sigmoid(gates[:, 3 * Hp:4 * Hp])
            c_new = f * c + i * g
            h_new = o * jnp.tanh(c_new)
            return h_new, c_new

        def step(j, carry):
            h_cat, c_f, c_b = carry          # (Bb,2Hp) bf16, (Bb,Hp) f32 x2
            # One block-diagonal MXU matmul covers both directions (K = 2*Hp).
            gall = jnp.dot(h_cat, w_hh_ref[...],
                           preferred_element_type=jnp.float32) + bias
            off_f = pl.multiple_of(j * Bb, Bb)
            off_b = pl.multiple_of((Tc - 1 - j) * Bb, Bb)
            g_f = gall[:, :G] + xg_f_ref[pl.ds(off_f, Bb), :]   # bf16 -> f32
            g_b = gall[:, G:] + xg_b_ref[pl.ds(off_b, Bb), :]

            h_f, c_f_new = cell(g_f, c_f)
            h_b, c_b_new = cell(g_b, c_b)

            if needs_mask:
                # Padded tail steps: forward must not pool them; backward must
                # neither pool them nor let them perturb its initial state.
                s = t_base + j
                valid_f = s < T_real
                valid_b = s >= (T_pad - T_real)
                m_f_ref[...] = jnp.where(
                    valid_f, jnp.maximum(m_f_ref[...], h_f), m_f_ref[...])
                m_b_ref[...] = jnp.where(
                    valid_b, jnp.maximum(m_b_ref[...], h_b), m_b_ref[...])
                h_f_bf = jnp.where(valid_f, h_f.astype(jnp.bfloat16),
                                   h_cat[:, :Hp])
                h_b_bf = jnp.where(valid_b, h_b.astype(jnp.bfloat16),
                                   h_cat[:, Hp:])
                c_f_new = jnp.where(valid_f, c_f_new, c_f)
                c_b_new = jnp.where(valid_b, c_b_new, c_b)
            else:
                m_f_ref[...] = jnp.maximum(m_f_ref[...], h_f)
                m_b_ref[...] = jnp.maximum(m_b_ref[...], h_b)
                h_f_bf = h_f.astype(jnp.bfloat16)
                h_b_bf = h_b.astype(jnp.bfloat16)

            h_cat_new = jnp.concatenate([h_f_bf, h_b_bf], axis=1)
            return h_cat_new, c_f_new, c_b_new

        carry0 = (h_ref[...], c_ref[:, :Hp], c_ref[:, Hp:])
        unroll = True if Tc <= 8 else 2
        h_cat, c_f, c_b = lax.fori_loop(0, Tc, step, carry0, unroll=unroll)
        h_ref[...] = h_cat
        c_ref[:, :Hp] = c_f
        c_ref[:, Hp:] = c_b

        # ---- Stage 3: classifier at the last chunk (pooling done in-loop) ---
        @pl.when(t == pl.num_programs(1) - 1)
        def _():
            logits = jnp.dot(m_f_ref[...].astype(jnp.bfloat16), w_c_ref[:Hp, :],
                             preferred_element_type=jnp.float32)
            logits = logits + jnp.dot(m_b_ref[...].astype(jnp.bfloat16),
                                      w_c_ref[Hp:, :],
                                      preferred_element_type=jnp.float32)
            out_ref[...] = (logits + b_c_ref[...]).astype(out_ref.dtype)

    return kernel


# ---------------------------------------------------------------------------
# Parameter construction / repacking
# ---------------------------------------------------------------------------
def init_torch_params(key, vocab_size, embedding_dim, hidden_dim, num_labels,
                      pad_idx=0):
    """Parameters in PyTorch layout (nn.Embedding / nn.LSTM / nn.Linear)."""
    E, H, L = embedding_dim, hidden_dim, num_labels
    ks = jax.random.split(key, 11)
    s = 1.0 / (H ** 0.5)

    def u(k, shape, scale):
        return scale * jax.random.normal(k, shape, jnp.float32)

    emb = 0.1 * jax.random.normal(ks[0], (vocab_size, E), jnp.float32)
    emb = emb.at[pad_idx].set(0.0)                    # padding_idx -> zero row
    return {
        "embedding": emb,
        "w_ih_f": u(ks[1], (4 * H, E), s), "w_hh_f": u(ks[2], (4 * H, H), s),
        "b_ih_f": u(ks[3], (4 * H,), s),   "b_hh_f": u(ks[4], (4 * H,), s),
        "w_ih_b": u(ks[5], (4 * H, E), s), "w_hh_b": u(ks[6], (4 * H, H), s),
        "b_ih_b": u(ks[7], (4 * H,), s),   "b_hh_b": u(ks[8], (4 * H,), s),
        "w_c": u(ks[9], (L, 2 * H), 1.0 / ((2 * H) ** 0.5)),
        "b_c": u(ks[10], (L,), 0.1),
    }


def prepare_params(tp):
    """Repack PyTorch-layout params into the kernel's padded / bf16 layout.

    Gate order [i, f, g, o].  Each gate's hidden block is zero-padded from H
    to Hp (multiple of 128); padded gate columns get zero weights & biases so
    padded h/c stay exactly 0 through the recurrence (no semantics change).
    W_hh is packed block-diagonally so one matmul serves both directions.
    """
    H = tp["w_hh_f"].shape[1]
    E = tp["w_ih_f"].shape[1]
    L = tp["w_c"].shape[0]
    Hp = _round_up(H, LANE)
    Lp = _round_up(L, LANE)
    G = 4 * Hp

    def pack_ih(w):               # (4H, E) -> (E, G), gate-blocked, padded
        w4 = w.reshape(4, H, E)
        p = jnp.zeros((4, Hp, E), jnp.float32).at[:, :H, :].set(w4)
        return jnp.transpose(p, (2, 0, 1)).reshape(E, G)

    def pack_hh(w):               # (4H, H) -> (Hp, G)
        w4 = w.reshape(4, H, H)
        p = jnp.zeros((4, Hp, Hp), jnp.float32).at[:, :H, :H].set(w4)
        return jnp.transpose(p, (2, 0, 1)).reshape(Hp, G)

    def pack_b(b_ih, b_hh):       # -> (1, G), b_ih + b_hh fused
        b = (b_ih + b_hh).reshape(4, H)
        return jnp.zeros((4, Hp), jnp.float32).at[:, :H].set(b).reshape(1, G)

    w_hh_bd = jnp.zeros((2 * Hp, 2 * G), jnp.float32)
    w_hh_bd = w_hh_bd.at[:Hp, :G].set(pack_hh(tp["w_hh_f"]))
    w_hh_bd = w_hh_bd.at[Hp:, G:].set(pack_hh(tp["w_hh_b"]))

    w_c = jnp.zeros((2 * Hp, Lp), jnp.float32)
    w_c = w_c.at[:H, :L].set(tp["w_c"][:, :H].T)          # forward half
    w_c = w_c.at[Hp:Hp + H, :L].set(tp["w_c"][:, H:].T)   # backward half
    b_c = jnp.zeros((1, Lp), jnp.float32).at[0, :L].set(tp["b_c"])

    return {
        "embedding": tp["embedding"].astype(jnp.bfloat16),
        "w_ih": jnp.concatenate(
            [pack_ih(tp["w_ih_f"]), pack_ih(tp["w_ih_b"])], axis=1
        ).astype(jnp.bfloat16),                                   # (E, 2G)
        "w_hh_bd": w_hh_bd.astype(jnp.bfloat16),                  # (2Hp, 2G)
        "b": jnp.concatenate(
            [pack_b(tp["b_ih_f"], tp["b_hh_f"]),
             pack_b(tp["b_ih_b"], tp["b_hh_b"])], axis=1),        # (1, 2G) f32
        "w_c": w_c.astype(jnp.bfloat16),                          # (2Hp, Lp)
        "b_c": b_c,                                               # (1, Lp) f32
        "num_labels": L,
        "hidden_pad": Hp,
    }


# ---------------------------------------------------------------------------
# Forward wrapper
# ---------------------------------------------------------------------------
def lstm_model_forward(input_ids, params):
    """input_ids: (B, T) int32 -> logits (B, num_labels) f32."""
    emb = params["embedding"]                         # (V, E) bf16
    B, T = input_ids.shape
    E = emb.shape[1]
    Hp = params["hidden_pad"]
    G = 4 * Hp
    Lp = params["b_c"].shape[1]
    L = params["num_labels"]

    # Time-major gather straight from the table (no post-gather transpose).
    # TODO(synk): fuse the gather into the kernel (scalar-prefetch ids + DMA
    # row gather) when E >= 128; at E=32 rows are too narrow for efficient DMA.
    x_tbe = emb[input_ids.T]                          # (T, B, E) bf16

    # Batch blocking: >=2 grid blocks whenever B >= 32 so the "parallel" axis
    # can be split across both TensorCores on v7x; otherwise one packed block.
    if B >= 32:
        Bb = min(LANE, _round_up(_cdiv(B, 2), BATCH_TILE))
    else:
        Bb = _round_up(max(B, BATCH_TILE), BATCH_TILE)
    B_pad = _round_up(B, Bb)
    n_blocks = B_pad // Bb

    # Time chunking: constant VMEM footprint regardless of T.
    Tc = T if T <= MAX_TIME_CHUNK else MAX_TIME_CHUNK
    n_tc = _cdiv(T, Tc)
    T_pad = n_tc * Tc

    if B_pad != B or T_pad != T:
        x_tbe = jnp.pad(x_tbe, ((0, T_pad - T), (0, B_pad - B), (0, 0)))

    kernel = _make_kernel(Tc, Hp, T, T_pad)

    # VMEM accounting (lane-padded) with a generation-aware ceiling.
    Ep = _round_up(E, LANE)
    x_block = Tc * Bb * Ep * 2                        # one bf16 x chunk
    xg_bytes = 2 * Tc * Bb * G * 2                    # bf16 scratches
    w_bytes = (E * 2 * G + 2 * Hp * 2 * G + 2 * Hp * Lp) * 2 + (2 * G + Lp) * 4
    state_bytes = Bb * 2 * Hp * (2 + 4) + 2 * Bb * Hp * 4
    out_bytes = 2 * Bb * Lp * 4
    need = 2 * 2 * x_block + xg_bytes + 2 * w_bytes + state_bytes + out_bytes
    try:
        cap = pltpu.get_tpu_info().vmem_capacity_bytes
    except Exception:
        cap = 64 << 20
    vmem_limit = int(min(max(int(need * 1.25), 32 << 20), int(0.85 * cap)))

    def _const_spec(shape):
        # Grid-invariant operands: single-buffer if the API supports it
        # (saves a few hundred KiB of VMEM; falls back to default buffering).
        idx = lambda b, t, _n=len(shape): (0,) * _n
        try:
            return pl.BlockSpec(shape, idx, pipeline_mode=pl.Buffered(1))
        except Exception:
            return pl.BlockSpec(shape, idx)

    out = pl.pallas_call(
        kernel,
        out_shape=jax.ShapeDtypeStruct((B_pad, Lp), jnp.float32),
        grid=(n_blocks, n_tc),
        in_specs=[
            pl.BlockSpec((Tc, Bb, E), lambda b, t: (t, b, 0)),            # x fwd
            pl.BlockSpec((Tc, Bb, E), lambda b, t: (n_tc - 1 - t, b, 0)),  # x bwd
            _const_spec((E, 2 * G)),           # W_ih (both directions)
            _const_spec((2 * Hp, 2 * G)),      # block-diagonal W_hh
            _const_spec((1, 2 * G)),           # fused biases
            _const_spec((2 * Hp, Lp)),         # classifier W
            _const_spec((1, Lp)),              # classifier b
        ],
        out_specs=pl.BlockSpec((Bb, Lp), lambda b, t: (b, 0)),
        scratch_shapes=[
            pltpu.VMEM((Tc * Bb, G), jnp.bfloat16),   # xg fwd
            pltpu.VMEM((Tc * Bb, G), jnp.bfloat16),   # xg bwd
            pltpu.VMEM((Bb, 2 * Hp), jnp.bfloat16),   # h state
            pltpu.VMEM((Bb, 2 * Hp), jnp.float32),    # c state
            pltpu.VMEM((Bb, Hp), jnp.float32),        # running max fwd
            pltpu.VMEM((Bb, Hp), jnp.float32),        # running max bwd
        ],
        compiler_params=pltpu.CompilerParams(
            dimension_semantics=("parallel", "arbitrary"),
            vmem_limit_bytes=vmem_limit),
    )(x_tbe, x_tbe, params["w_ih"], params["w_hh_bd"], params["b"],
      params["w_c"], params["b_c"])

    return out[:B, :L]


# ---------------------------------------------------------------------------
# Pure-JAX reference (PyTorch semantics; same bf16 matmul-operand quantization)
# ---------------------------------------------------------------------------
def _reference_forward(input_ids, tp):
    H = tp["w_hh_f"].shape[1]
    B = input_ids.shape[0]
    emb = tp["embedding"].astype(jnp.bfloat16)
    xs = emb[input_ids.T]                                   # (T, B, E) bf16

    def run_dir(seq, w_ih, w_hh, b_ih, b_hh):
        wi = w_ih.T.astype(jnp.bfloat16)                    # (E, 4H)
        wh = w_hh.T.astype(jnp.bfloat16)                    # (H, 4H)
        b = (b_ih + b_hh)[None, :]

        def step(carry, x_t):
            h, c = carry
            gates = (jnp.dot(x_t, wi, preferred_element_type=jnp.float32)
                     + jnp.dot(h.astype(jnp.bfloat16), wh,
                               preferred_element_type=jnp.float32) + b)
            i = jax.nn.sigmoid(gates[:, 0 * H:1 * H])
            f = jax.nn.sigmoid(gates[:, 1 * H:2 * H])
            g = jnp.tanh(gates[:, 2 * H:3 * H])
            o = jax.nn.sigmoid(gates[:, 3 * H:4 * H])
            c = f * c + i * g
            h = o * jnp.tanh(c)
            return (h, c), h

        h0 = jnp.zeros((B, H), jnp.float32)
        _, hs = lax.scan(step, (h0, h0), seq)
        return hs                                           # (T, B, H)

    hs_f = run_dir(xs, tp["w_ih_f"], tp["w_hh_f"], tp["b_ih_f"], tp["b_hh_f"])
    hs_b = run_dir(xs[::-1], tp["w_ih_b"], tp["w_hh_b"],
                   tp["b_ih_b"], tp["b_hh_b"])[::-1]
    pooled = jnp.max(jnp.concatenate([hs_f, hs_b], axis=-1), axis=0)  # (B, 2H)
    return (jnp.dot(pooled.astype(jnp.bfloat16),
                    tp["w_c"].T.astype(jnp.bfloat16),
                    preferred_element_type=jnp.float32) + tp["b_c"][None, :])


if __name__ == "__main__":
    # Small shapes consistent with the module's forward.
    VOCAB, E, H, LABELS = 50, 32, 32, 6

    pkey, dkey = jax.random.split(jax.random.PRNGKey(0))
    torch_params = init_torch_params(pkey, VOCAB, E, H, LABELS)
    params = prepare_params(torch_params)

    # Case 1: single batch block, single time chunk.
    # Case 2: exercises time chunking + tail masking + multi-block batch axis.
    for (B, T) in [(4, 8), (32, 40)]:
        ids_key = jax.random.fold_in(dkey, T)
        input_ids = jax.random.randint(ids_key, (B, T), 0, VOCAB,
                                       dtype=jnp.int32)
        logits = jax.block_until_ready(lstm_model_forward(input_ids, params))
        ref = _reference_forward(input_ids, torch_params)
        assert logits.shape == (B, LABELS)
        max_err = float(jnp.max(jnp.abs(logits - ref)))
        # Tolerance covers the extra bf16 storage quantization of the input
        # projection (xg scratch is bf16; everything else matches reference).
        assert jnp.allclose(logits, ref, atol=4e-3, rtol=4e-3), (
            f"B={B} T={T}: mismatch vs reference (max abs err {max_err})")
    print("KERNEL_OK")
</pallas_src>

<mosaic_0001>
module attributes {stable_mosaic.version = 11 : i64} {
  func.func @kernel(%arg0: i32, %arg1: i32, %arg2: memref<8x16x32xbf16, #tpu.memory_space<vmem>>, %arg3: memref<8x16x32xbf16, #tpu.memory_space<vmem>>, %arg4: memref<32x1024xbf16, #tpu.memory_space<vmem>>, %arg5: memref<256x1024xbf16, #tpu.memory_space<vmem>>, %arg6: memref<1x1024xf32, #tpu.memory_space<vmem>>, %arg7: memref<256x128xbf16, #tpu.memory_space<vmem>>, %arg8: memref<1x128xf32, #tpu.memory_space<vmem>>, %arg9: memref<16x128xf32, #tpu.memory_space<vmem>>, %arg10: memref<128x512xbf16, #tpu.memory_space<vmem>>, %arg11: memref<128x512xbf16, #tpu.memory_space<vmem>>, %arg12: memref<16x256xbf16, #tpu.memory_space<vmem>>, %arg13: memref<16x256xf32, #tpu.memory_space<vmem>>, %arg14: memref<16x128xf32, #tpu.memory_space<vmem>>, %arg15: memref<16x128xf32, #tpu.memory_space<vmem>>) attributes {dimension_semantics = [#tpu.dimension_semantics<parallel>, #tpu.dimension_semantics<arbitrary>], iteration_bounds = array<i64: 1, 1>, scalar_prefetch = 0 : i64, scratch_operands = 6 : i64, tpu.core_type = #tpu.core_type<tc>, window_params = [{transform_indices = @transform_0, window_bounds = array<i64: 8, 16, 32>}, {transform_indices = @transform_1, window_bounds = array<i64: 8, 16, 32>}, {pipeline_mode = #tpu.pipeline_mode<synchronous>, transform_indices = @transform_2, window_bounds = array<i64: 32, 1024>}, {pipeline_mode = #tpu.pipeline_mode<synchronous>, transform_indices = @transform_3, window_bounds = array<i64: 256, 1024>}, {pipeline_mode = #tpu.pipeline_mode<synchronous>, transform_indices = @transform_4, window_bounds = array<i64: 1, 1024>}, {pipeline_mode = #tpu.pipeline_mode<synchronous>, transform_indices = @transform_5, window_bounds = array<i64: 256, 128>}, {pipeline_mode = #tpu.pipeline_mode<synchronous>, transform_indices = @transform_6, window_bounds = array<i64: 1, 128>}, {transform_indices = @transform_7, window_bounds = array<i64: 16, 128>}]} {
    %c0_i32 = arith.constant 0 : i32
    %0 = arith.cmpi eq, %arg1, %c0_i32 : i32
    %1 = arith.extui %0 : i1 to i32
    %c0_i32_0 = arith.constant 0 : i32
    %2 = arith.cmpi ne, %1, %c0_i32_0 : i32
    scf.if %2 {
      %cst_205 = arith.constant 0.000000e+00 : bf16
      %649 = vector.broadcast %cst_205 : bf16 to vector<16x256xbf16>
      %c0_206 = arith.constant 0 : index
      %c0_207 = arith.constant 0 : index
      %650 = vector.load %arg12[%c0_206, %c0_207] : memref<16x256xbf16, #tpu.memory_space<vmem>>, vector<16x256xbf16>
      tpu.vector_store %arg12[%c0_206, %c0_207], %649 {strides = array<i32>} : memref<16x256xbf16, #tpu.memory_space<vmem>>, vector<16x256xbf16>,
      %cst_208 = arith.constant 0.000000e+00 : f32
      %651 = vector.broadcast %cst_208 : f32 to vector<16x256xf32>
      %c0_209 = arith.constant 0 : index
      %c0_210 = arith.constant 0 : index
      %652 = vector.load %arg13[%c0_209, %c0_210] : memref<16x256xf32, #tpu.memory_space<vmem>>, vector<16x256xf32>
      tpu.vector_store %arg13[%c0_209, %c0_210], %651 {strides = array<i32>} : memref<16x256xf32, #tpu.memory_space<vmem>>, vector<16x256xf32>,
      %cst_211 = arith.constant 0xFF800000 : f32
      %653 = vector.broadcast %cst_211 : f32 to vector<16x128xf32>
      %c0_212 = arith.constant 0 : index
      %c0_213 = arith.constant 0 : index
      %654 = vector.load %arg14[%c0_212, %c0_213] : memref<16x128xf32, #tpu.memory_space<vmem>>, vector<16x128xf32>
      tpu.vector_store %arg14[%c0_212, %c0_213], %653 {strides = array<i32>} : memref<16x128xf32, #tpu.memory_space<vmem>>, vector<16x128xf32>,
      %cst_214 = arith.constant 0xFF800000 : f32
      %655 = vector.broadcast %cst_214 : f32 to vector<16x128xf32>
      %c0_215 = arith.constant 0 : index
      %c0_216 = arith.constant 0 : index
      %656 = vector.load %arg15[%c0_215, %c0_216] : memref<16x128xf32, #tpu.memory_space<vmem>>, vector<16x128xf32>
      tpu.vector_store %arg15[%c0_215, %c0_216], %655 {strides = array<i32>} : memref<16x128xf32, #tpu.memory_space<vmem>>, vector<16x128xf32>,
    } else {
    }
    %c0 = arith.constant 0 : index
    %c0_1 = arith.constant 0 : index
    %c0_2 = arith.constant 0 : index
    %3 = vector.load %arg2[%c0, %c0_1, %c0_2] : memref<8x16x32xbf16, #tpu.memory_space<vmem>>, vector<8x16x32xbf16>
    %4 = vector.shape_cast %3 : vector<8x16x32xbf16> to vector<128x32xbf16>
    %c0_3 = arith.constant 0 : index
    %c0_4 = arith.constant 0 : index
    %c0_5 = arith.constant 0 : index
    %5 = vector.load %arg3[%c0_3, %c0_4, %c0_5] : memref<8x16x32xbf16, #tpu.memory_space<vmem>>, vector<8x16x32xbf16>
    %6 = vector.shape_cast %5 : vector<8x16x32xbf16> to vector<128x32xbf16>
    %c0_6 = arith.constant 0 : index
    %c0_7 = arith.constant 0 : index
    %7 = vector.load %arg4[%c0_6, %c0_7] : memref<32x1024xbf16, #tpu.memory_space<vmem>>, vector<32x512xbf16>
    %cst = arith.constant dense<0.000000e+00> : vector<128x512xf32>
    %8 = tpu.matmul %4, %7, %cst {dimension_numbers = #tpu.dot_dimension_numbers<[1], [0], [0], [1], [0, 0, 1, 1], [], []>} : vector<128x32xbf16>, vector<32x512xbf16>, vector<128x512xf32> -> vector<128x512xf32>
    %9 = arith.truncf %8 : vector<128x512xf32> to vector<128x512xbf16>
    %c0_8 = arith.constant 0 : index
    %c0_9 = arith.constant 0 : index
    %10 = vector.load %arg10[%c0_8, %c0_9] : memref<128x512xbf16, #tpu.memory_space<vmem>>, vector<128x512xbf16>
    tpu.vector_store %arg10[%c0_8, %c0_9], %9 {strides = array<i32>} : memref<128x512xbf16, #tpu.memory_space<vmem>>, vector<128x512xbf16>,
    %c0_10 = arith.constant 0 : index
    %c512 = arith.constant 512 : index
    %11 = vector.load %arg4[%c0_10, %c512] : memref<32x1024xbf16, #tpu.memory_space<vmem>>, vector<32x512xbf16>
    %cst_11 = arith.constant dense<0.000000e+00> : vector<128x512xf32>
    %12 = tpu.matmul %6, %11, %cst_11 {dimension_numbers = #tpu.dot_dimension_numbers<[1], [0], [0], [1], [0, 0, 1, 1], [], []>} : vector<128x32xbf16>, vector<32x512xbf16>, vector<128x512xf32> -> vector<128x512xf32>
    %13 = arith.truncf %12 : vector<128x512xf32> to vector<128x512xbf16>
    %c0_12 = arith.constant 0 : index
    %c0_13 = arith.constant 0 : index
    %14 = vector.load %arg11[%c0_12, %c0_13] : memref<128x512xbf16, #tpu.memory_space<vmem>>, vector<128x512xbf16>
    tpu.vector_store %arg11[%c0_12, %c0_13], %13 {strides = array<i32>} : memref<128x512xbf16, #tpu.memory_space<vmem>>, vector<128x512xbf16>,
    %c0_14 = arith.constant 0 : index
    %c0_15 = arith.constant 0 : index
    %15 = vector.load %arg6[%c0_14, %c0_15] : memref<1x1024xf32, #tpu.memory_space<vmem>>, vector<1x1024xf32>
    %c0_16 = arith.constant 0 : index
    %c0_17 = arith.constant 0 : index
    %16 = vector.load %arg12[%c0_16, %c0_17] : memref<16x256xbf16, #tpu.memory_space<vmem>>, vector<16x256xbf16>
    %c0_18 = arith.constant 0 : index
    %c0_19 = arith.constant 0 : index
    %17 = vector.load %arg13[%c0_18, %c0_19] : memref<16x256xf32, #tpu.memory_space<vmem>>, vector<16x128xf32>
    %c0_20 = arith.constant 0 : index
    %c128 = arith.constant 128 : index
    %18 = vector.load %arg13[%c0_20, %c128] : memref<16x256xf32, #tpu.memory_space<vmem>>, vector<16x128xf32>
    %c0_i32_21 = arith.constant 0 : i32
    %c0_22 = arith.constant 0 : index
    %c0_23 = arith.constant 0 : index
    %19 = vector.load %arg5[%c0_22, %c0_23] : memref<256x1024xbf16, #tpu.memory_space<vmem>>, vector<256x1024xbf16>
    %cst_24 = arith.constant dense<0.000000e+00> : vector<16x1024xf32>
    %20 = tpu.matmul %16, %19, %cst_24 {dimension_numbers = #tpu.dot_dimension_numbers<[1], [0], [0], [1], [0, 0, 1, 1], [], []>} : vector<16x256xbf16>, vector<256x1024xbf16>, vector<16x1024xf32> -> vector<16x1024xf32>
    %21 = vector.broadcast %15 : vector<1x1024xf32> to vector<16x1024xf32>
    %22 = arith.addf %20, %21 : vector<16x1024xf32>
    %c16_i32 = arith.constant 16 : i32
    %23 = arith.muli %c0_i32_21, %c16_i32 : i32
    %24 = tpu.assume_multiple %23, 16 : i32
    %c7_i32 = arith.constant 7 : i32
    %25 = arith.subi %c7_i32, %c0_i32_21 : i32
    %c16_i32_25 = arith.constant 16 : i32
    %26 = arith.muli %25, %c16_i32_25 : i32
    %27 = tpu.assume_multiple %26, 16 : i32
    %28 = vector.extract_strided_slice %22 {offsets = [0, 0], sizes = [16, 512], strides = [1, 1]} : vector<16x1024xf32> to vector<16x512xf32>
    %29 = arith.index_cast %24 : i32 to index
    %c0_26 = arith.constant 0 : index
    %30 = vector.load %arg10[%29, %c0_26] : memref<128x512xbf16, #tpu.memory_space<vmem>>, vector<16x512xbf16>
    %31 = arith.extf %30 : vector<16x512xbf16> to vector<16x512xf32>
    %32 = arith.addf %28, %31 : vector<16x512xf32>
    %33 = vector.extract_strided_slice %22 {offsets = [0, 512], sizes = [16, 512], strides = [1, 1]} : vector<16x1024xf32> to vector<16x512xf32>
    %34 = arith.index_cast %27 : i32 to index
    %c0_27 = arith.constant 0 : index
    %35 = vector.load %arg11[%34, %c0_27] : memref<128x512xbf16, #tpu.memory_space<vmem>>, vector<16x512xbf16>
    %36 = arith.extf %35 : vector<16x512xbf16> to vector<16x512xf32>
    %37 = arith.addf %33, %36 : vector<16x512xf32>
    %38 = vector.extract_strided_slice %32 {offsets = [0, 0], sizes = [16, 128], strides = [1, 1]} : vector<16x512xf32> to vector<16x128xf32>
    %39 = arith.negf %38 : vector<16x128xf32>
    %40 = math.exp %39 : vector<16x128xf32>
    %cst_28 = arith.constant 1.000000e+00 : f32
    %41 = vector.broadcast %cst_28 : f32 to vector<16x128xf32>
    %42 = arith.addf %41, %40 : vector<16x128xf32>
    %43 = arith.divf %41, %42 : vector<16x128xf32>
    %44 = vector.extract_strided_slice %32 {offsets = [0, 128], sizes = [16, 128], strides = [1, 1]} : vector<16x512xf32> to vector<16x128xf32>
    %45 = arith.negf %44 : vector<16x128xf32>
    %46 = math.exp %45 : vector<16x128xf32>
    %cst_29 = arith.constant 1.000000e+00 : f32
    %47 = vector.broadcast %cst_29 : f32 to vector<16x128xf32>
    %48 = arith.addf %47, %46 : vector<16x128xf32>
    %49 = arith.divf %47, %48 : vector<16x128xf32>
    %50 = vector.extract_strided_slice %32 {offsets = [0, 256], sizes = [16, 128], strides = [1, 1]} : vector<16x512xf32> to vector<16x128xf32>
    %51 = math.tanh %50 : vector<16x128xf32>
    %52 = vector.extract_strided_slice %32 {offsets = [0, 384], sizes = [16, 128], strides = [1, 1]} : vector<16x512xf32> to vector<16x128xf32>
    %53 = arith.negf %52 : vector<16x128xf32>
    %54 = math.exp %53 : vector<16x128xf32>
    %cst_30 = arith.constant 1.000000e+00 : f32
    %55 = vector.broadcast %cst_30 : f32 to vector<16x128xf32>
    %56 = arith.addf %55, %54 : vector<16x128xf32>
    %57 = arith.divf %55, %56 : vector<16x128xf32>
    %58 = arith.mulf %49, %17 : vector<16x128xf32>
    %59 = arith.mulf %43, %51 : vector<16x128xf32>
    %60 = arith.addf %58, %59 : vector<16x128xf32>
    %61 = math.tanh %60 : vector<16x128xf32>
    %62 = arith.mulf %57, %61 : vector<16x128xf32>
    %63 = vector.extract_strided_slice %37 {offsets = [0, 0], sizes = [16, 128], strides = [1, 1]} : vector<16x512xf32> to vector<16x128xf32>
    %64 = arith.negf %63 : vector<16x128xf32>
    %65 = math.exp %64 : vector<16x128xf32>
    %cst_31 = arith.constant 1.000000e+00 : f32
    %66 = vector.broadcast %cst_31 : f32 to vector<16x128xf32>
    %67 = arith.addf %66, %65 : vector<16x128xf32>
    %68 = arith.divf %66, %67 : vector<16x128xf32>
    %69 = vector.extract_strided_slice %37 {offsets = [0, 128], sizes = [16, 128], strides = [1, 1]} : vector<16x512xf32> to vector<16x128xf32>
    %70 = arith.negf %69 : vector<16x128xf32>
    %71 = math.exp %70 : vector<16x128xf32>
    %cst_32 = arith.constant 1.000000e+00 : f32
    %72 = vector.broadcast %cst_32 : f32 to vector<16x128xf32>
    %73 = arith.addf %72, %71 : vector<16x128xf32>
    %74 = arith.divf %72, %73 : vector<16x128xf32>
    %75 = vector.extract_strided_slice %37 {offsets = [0, 256], sizes = [16, 128], strides = [1, 1]} : vector<16x512xf32> to vector<16x128xf32>
    %76 = math.tanh %75 : vector<16x128xf32>
    %77 = vector.extract_strided_slice %37 {offsets = [0, 384], sizes = [16, 128], strides = [1, 1]} : vector<16x512xf32> to vector<16x128xf32>
    %78 = arith.negf %77 : vector<16x128xf32>
    %79 = math.exp %78 : vector<16x128xf32>
    %cst_33 = arith.constant 1.000000e+00 : f32
    %80 = vector.broadcast %cst_33 : f32 to vector<16x128xf32>
    %81 = arith.addf %80, %79 : vector<16x128xf32>
    %82 = arith.divf %80, %81 : vector<16x128xf32>
    %83 = arith.mulf %74, %18 : vector<16x128xf32>
    %84 = arith.mulf %68, %76 : vector<16x128xf32>
    %85 = arith.addf %83, %84 : vector<16x128xf32>
    %86 = math.tanh %85 : vector<16x128xf32>
    %87 = arith.mulf %82, %86 : vector<16x128xf32>
    %c0_34 = arith.constant 0 : index
    %c0_35 = arith.constant 0 : index
    %88 = vector.load %arg14[%c0_34, %c0_35] : memref<16x128xf32, #tpu.memory_space<vmem>>, vector<16x128xf32>
    %89 = arith.maximumf %88, %62 : vector<16x128xf32>
    %c0_36 = arith.constant 0 : index
    %c0_37 = arith.constant 0 : index
    %90 = vector.load %arg14[%c0_36, %c0_37] : memref<16x128xf32, #tpu.memory_space<vmem>>, vector<16x128xf32>
    tpu.vector_store %arg14[%c0_36, %c0_37], %89 {strides = array<i32>} : memref<16x128xf32, #tpu.memory_space<vmem>>, vector<16x128xf32>,
    %c0_38 = arith.constant 0 : index
    %c0_39 = arith.constant 0 : index
    %91 = vector.load %arg15[%c0_38, %c0_39] : memref<16x128xf32, #tpu.memory_space<vmem>>, vector<16x128xf32>
    %92 = arith.maximumf %91, %87 : vector<16x128xf32>
    %c0_40 = arith.constant 0 : index
    %c0_41 = arith.constant 0 : index
    %93 = vector.load %arg15[%c0_40, %c0_41] : memref<16x128xf32, #tpu.memory_space<vmem>>, vector<16x128xf32>
    tpu.vector_store %arg15[%c0_40, %c0_41], %92 {strides = array<i32>} : memref<16x128xf32, #tpu.memory_space<vmem>>, vector<16x128xf32>,
    %94 = arith.truncf %62 : vector<16x128xf32> to vector<16x128xbf16>
    %95 = arith.truncf %87 : vector<16x128xf32> to vector<16x128xbf16>
    %96 = tpu.concatenate %94, %95 in 1 : vector<16x128xbf16>, vector<16x128xbf16> -> vector<16x256xbf16>
    %c1_i32 = arith.constant 1 : i32
    %c0_42 = arith.constant 0 : index
    %c0_43 = arith.constant 0 : index
    %97 = vector.load %arg5[%c0_42, %c0_43] : memref<256x1024xbf16, #tpu.memory_space<vmem>>, vector<256x1024xbf16>
    %cst_44 = arith.constant dense<0.000000e+00> : vector<16x1024xf32>
    %98 = tpu.matmul %96, %97, %cst_44 {dimension_numbers = #tpu.dot_dimension_numbers<[1], [0], [0], [1], [0, 0, 1, 1], [], []>} : vector<16x256xbf16>, vector<256x1024xbf16>, vector<16x1024xf32> -> vector<16x1024xf32>
    %99 = vector.broadcast %15 : vector<1x1024xf32> to vector<16x1024xf32>
    %100 = arith.addf %98, %99 : vector<16x1024xf32>
    %c16_i32_45 = arith.constant 16 : i32
    %101 = arith.muli %c1_i32, %c16_i32_45 : i32
    %102 = tpu.assume_multiple %101, 16 : i32
    %c7_i32_46 = arith.constant 7 : i32
    %103 = arith.subi %c7_i32_46, %c1_i32 : i32
    %c16_i32_47 = arith.constant 16 : i32
    %104 = arith.muli %103, %c16_i32_47 : i32
    %105 = tpu.assume_multiple %104, 16 : i32
    %106 = vector.extract_strided_slice %100 {offsets = [0, 0], sizes = [16, 512], strides = [1, 1]} : vector<16x1024xf32> to vector<16x512xf32>
    %107 = arith.index_cast %102 : i32 to index
    %c0_48 = arith.constant 0 : index
    %108 = vector.load %arg10[%107, %c0_48] : memref<128x512xbf16, #tpu.memory_space<vmem>>, vector<16x512xbf16>
    %109 = arith.extf %108 : vector<16x512xbf16> to vector<16x512xf32>
    %110 = arith.addf %106, %109 : vector<16x512xf32>
    %111 = vector.extract_strided_slice %100 {offsets = [0, 512], sizes = [16, 512], strides = [1, 1]} : vector<16x1024xf32> to vector<16x512xf32>
    %112 = arith.index_cast %105 : i32 to index
    %c0_49 = arith.constant 0 : index
    %113 = vector.load %arg11[%112, %c0_49] : memref<128x512xbf16, #tpu.memory_space<vmem>>, vector<16x512xbf16>
    %114 = arith.extf %113 : vector<16x512xbf16> to vector<16x512xf32>
    %115 = arith.addf %111, %114 : vector<16x512xf32>
    %116 = vector.extract_strided_slice %110 {offsets = [0, 0], sizes = [16, 128], strides = [1, 1]} : vector<16x512xf32> to vector<16x128xf32>
    %117 = arith.negf %116 : vector<16x128xf32>
    %118 = math.exp %117 : vector<16x128xf32>
    %cst_50 = arith.constant 1.000000e+00 : f32
    %119 = vector.broadcast %cst_50 : f32 to vector<16x128xf32>
    %120 = arith.addf %119, %118 : vector<16x128xf32>
    %121 = arith.divf %119, %120 : vector<16x128xf32>
    %122 = vector.extract_strided_slice %110 {offsets = [0, 128], sizes = [16, 128], strides = [1, 1]} : vector<16x512xf32> to vector<16x128xf32>
    %123 = arith.negf %122 : vector<16x128xf32>
    %124 = math.exp %123 : vector<16x128xf32>
    %cst_51 = arith.constant 1.000000e+00 : f32
    %125 = vector.broadcast %cst_51 : f32 to vector<16x128xf32>
    %126 = arith.addf %125, %124 : vector<16x128xf32>
    %127 = arith.divf %125, %126 : vector<16x128xf32>
    %128 = vector.extract_strided_slice %110 {offsets = [0, 256], sizes = [16, 128], strides = [1, 1]} : vector<16x512xf32> to vector<16x128xf32>
    %129 = math.tanh %128 : vector<16x128xf32>
    %130 = vector.extract_strided_slice %110 {offsets = [0, 384], sizes = [16, 128], strides = [1, 1]} : vector<16x512xf32> to vector<16x128xf32>
    %131 = arith.negf %130 : vector<16x128xf32>
    %132 = math.exp %131 : vector<16x128xf32>
    %cst_52 = arith.constant 1.000000e+00 : f32
    %133 = vector.broadcast %cst_52 : f32 to vector<16x128xf32>
    %134 = arith.addf %133, %132 : vector<16x128xf32>
    %135 = arith.divf %133, %134 : vector<16x128xf32>
    %136 = arith.mulf %127, %60 : vector<16x128xf32>
    %137 = arith.mulf %121, %129 : vector<16x128xf32>
    %138 = arith.addf %136, %137 : vector<16x128xf32>
    %139 = math.tanh %138 : vector<16x128xf32>
    %140 = arith.mulf %135, %139 : vector<16x128xf32>
    %141 = vector.extract_strided_slice %115 {offsets = [0, 0], sizes = [16, 128], strides = [1, 1]} : vector<16x512xf32> to vector<16x128xf32>
    %142 = arith.negf %141 : vector<16x128xf32>
    %143 = math.exp %142 : vector<16x128xf32>
    %cst_53 = arith.constant 1.000000e+00 : f32
    %144 = vector.broadcast %cst_53 : f32 to vector<16x128xf32>
    %145 = arith.addf %144, %143 : vector<16x128xf32>
    %146 = arith.divf %144, %145 : vector<16x128xf32>
    %147 = vector.extract_strided_slice %115 {offsets = [0, 128], sizes = [16, 128], strides = [1, 1]} : vector<16x512xf32> to vector<16x128xf32>
    %148 = arith.negf %147 : vector<16x128xf32>
    %149 = math.exp %148 : vector<16x128xf32>
    %cst_54 = arith.constant 1.000000e+00 : f32
    %150 = vector.broadcast %cst_54 : f32 to vector<16x128xf32>
    %151 = arith.addf %150, %149 : vector<16x128xf32>
    %152 = arith.divf %150, %151 : vector<16x128xf32>
    %153 = vector.extract_strided_slice %115 {offsets = [0, 256], sizes = [16, 128], strides = [1, 1]} : vector<16x512xf32> to vector<16x128xf32>
    %154 = math.tanh %153 : vector<16x128xf32>
    %155 = vector.extract_strided_slice %115 {offsets = [0, 384], sizes = [16, 128], strides = [1, 1]} : vector<16x512xf32> to vector<16x128xf32>
    %156 = arith.negf %155 : vector<16x128xf32>
    %157 = math.exp %156 : vector<16x128xf32>
    %cst_55 = arith.constant 1.000000e+00 : f32
    %158 = vector.broadcast %cst_55 : f32 to vector<16x128xf32>
    %159 = arith.addf %158, %157 : vector<16x128xf32>
    %160 = arith.divf %158, %159 : vector<16x128xf32>
    %161 = arith.mulf %152, %85 : vector<16x128xf32>
    %162 = arith.mulf %146, %154 : vector<16x128xf32>
    %163 = arith.addf %161, %162 : vector<16x128xf32>
    %164 = math.tanh %163 : vector<16x128xf32>
    %165 = arith.mulf %160, %164 : vector<16x128xf32>
    %c0_56 = arith.constant 0 : index
    %c0_57 = arith.constant 0 : index
    %166 = vector.load %arg14[%c0_56, %c0_57] : memref<16x128xf32, #tpu.memory_space<vmem>>, vector<16x128xf32>
    %167 = arith.maximumf %166, %140 : vector<16x128xf32>
    %c0_58 = arith.constant 0 : index
    %c0_59 = arith.constant 0 : index
    %168 = vector.load %arg14[%c0_58, %c0_59] : memref<16x128xf32, #tpu.memory_space<vmem>>, vector<16x128xf32>
    tpu.vector_store %arg14[%c0_58, %c0_59], %167 {strides = array<i32>} : memref<16x128xf32, #tpu.memory_space<vmem>>, vector<16x128xf32>,
    %c0_60 = arith.constant 0 : index
    %c0_61 = arith.constant 0 : index
    %169 = vector.load %arg15[%c0_60, %c0_61] : memref<16x128xf32, #tpu.memory_space<vmem>>, vector<16x128xf32>
    %170 = arith.maximumf %169, %165 : vector<16x128xf32>
    %c0_62 = arith.constant 0 : index
    %c0_63 = arith.constant 0 : index
    %171 = vector.load %arg15[%c0_62, %c0_63] : memref<16x128xf32, #tpu.memory_space<vmem>>, vector<16x128xf32>
    tpu.vector_store %arg15[%c0_62, %c0_63], %170 {strides = array<i32>} : memref<16x128xf32, #tpu.memory_space<vmem>>, vector<16x128xf32>,
    %172 = arith.truncf %140 : vector<16x128xf32> to vector<16x128xbf16>
    %173 = arith.truncf %165 : vector<16x128xf32> to vector<16x128xbf16>
    %174 = tpu.concatenate %172, %173 in 1 : vector<16x128xbf16>, vector<16x128xbf16> -> vector<16x256xbf16>
    %c2_i32 = arith.constant 2 : i32
    %c0_64 = arith.constant 0 : index
    %c0_65 = arith.constant 0 : index
    %175 = vector.load %arg5[%c0_64, %c0_65] : memref<256x1024xbf16, #tpu.memory_space<vmem>>, vector<256x1024xbf16>
    %cst_66 = arith.constant dense<0.000000e+00> : vector<16x1024xf32>
    %176 = tpu.matmul %174, %175, %cst_66 {dimension_numbers = #tpu.dot_dimension_numbers<[1], [0], [0], [1], [0, 0, 1, 1], [], []>} : vector<16x256xbf16>, vector<256x1024xbf16>, vector<16x1024xf32> -> vector<16x1024xf32>
    %177 = vector.broadcast %15 : vector<1x1024xf32> to vector<16x1024xf32>
    %178 = arith.addf %176, %177 : vector<16x1024xf32>
    %c16_i32_67 = arith.constant 16 : i32
    %179 = arith.muli %c2_i32, %c16_i32_67 : i32
    %180 = tpu.assume_multiple %179, 16 : i32
    %c7_i32_68 = arith.constant 7 : i32
    %181 = arith.subi %c7_i32_68, %c2_i32 : i32
    %c16_i32_69 = arith.constant 16 : i32
    %182 = arith.muli %181, %c16_i32_69 : i32
    %183 = tpu.assume_multiple %182, 16 : i32
    %184 = vector.extract_strided_slice %178 {offsets = [0, 0], sizes = [16, 512], strides = [1, 1]} : vector<16x1024xf32> to vector<16x512xf32>
    %185 = arith.index_cast %180 : i32 to index
    %c0_70 = arith.constant 0 : index
    %186 = vector.load %arg10[%185, %c0_70] : memref<128x512xbf16, #tpu.memory_space<vmem>>, vector<16x512xbf16>
    %187 = arith.extf %186 : vector<16x512xbf16> to vector<16x512xf32>
    %188 = arith.addf %184, %187 : vector<16x512xf32>
    %189 = vector.extract_strided_slice %178 {offsets = [0, 512], sizes = [16, 512], strides = [1, 1]} : vector<16x1024xf32> to vector<16x512xf32>
    %190 = arith.index_cast %183 : i32 to index
    %c0_71 = arith.constant 0 : index
    %191 = vector.load %arg11[%190, %c0_71] : memref<128x512xbf16, #tpu.memory_space<vmem>>, vector<16x512xbf16>
    %192 = arith.extf %191 : vector<16x512xbf16> to vector<16x512xf32>
    %193 = arith.addf %189, %192 : vector<16x512xf32>
    %194 = vector.extract_strided_slice %188 {offsets = [0, 0], sizes = [16, 128], strides = [1, 1]} : vector<16x512xf32> to vector<16x128xf32>
    %195 = arith.negf %194 : vector<16x128xf32>
    %196 = math.exp %195 : vector<16x128xf32>
    %cst_72 = arith.constant 1.000000e+00 : f32
    %197 = vector.broadcast %cst_72 : f32 to vector<16x128xf32>
    %198 = arith.addf %197, %196 : vector<16x128xf32>
    %199 = arith.divf %197, %198 : vector<16x128xf32>
    %200 = vector.extract_strided_slice %188 {offsets = [0, 128], sizes = [16, 128], strides = [1, 1]} : vector<16x512xf32> to vector<16x128xf32>
    %201 = arith.negf %200 : vector<16x128xf32>
    %202 = math.exp %201 : vector<16x128xf32>
    %cst_73 = arith.constant 1.000000e+00 : f32
    %203 = vector.broadcast %cst_73 : f32 to vector<16x128xf32>
    %204 = arith.addf %203, %202 : vector<16x128xf32>
    %205 = arith.divf %203, %204 : vector<16x128xf32>
    %206 = vector.extract_strided_slice %188 {offsets = [0, 256], sizes = [16, 128], strides = [1, 1]} : vector<16x512xf32> to vector<16x128xf32>
    %207 = math.tanh %206 : vector<16x128xf32>
    %208 = vector.extract_strided_slice %188 {offsets = [0, 384], sizes = [16, 128], strides = [1, 1]} : vector<16x512xf32> to vector<16x128xf32>
    %209 = arith.negf %208 : vector<16x128xf32>
    %210 = math.exp %209 : vector<16x128xf32>
    %cst_74 = arith.constant 1.000000e+00 : f32
    %211 = vector.broadcast %cst_74 : f32 to vector<16x128xf32>
    %212 = arith.addf %211, %210 : vector<16x128xf32>
    %213 = arith.divf %211, %212 : vector<16x128xf32>
    %214 = arith.mulf %205, %138 : vector<16x128xf32>
    %215 = arith.mulf %199, %207 : vector<16x128xf32>
    %216 = arith.addf %214, %215 : vector<16x128xf32>
    %217 = math.tanh %216 : vector<16x128xf32>
    %218 = arith.mulf %213, %217 : vector<16x128xf32>
    %219 = vector.extract_strided_slice %193 {offsets = [0, 0], sizes = [16, 128], strides = [1, 1]} : vector<16x512xf32> to vector<16x128xf32>
    %220 = arith.negf %219 : vector<16x128xf32>
    %221 = math.exp %220 : vector<16x128xf32>
    %cst_75 = arith.constant 1.000000e+00 : f32
    %222 = vector.broadcast %cst_75 : f32 to vector<16x128xf32>
    %223 = arith.addf %222, %221 : vector<16x128xf32>
    %224 = arith.divf %222, %223 : vector<16x128xf32>
    %225 = vector.extract_strided_slice %193 {offsets = [0, 128], sizes = [16, 128], strides = [1, 1]} : vector<16x512xf32> to vector<16x128xf32>
    %226 = arith.negf %225 : vector<16x128xf32>
    %227 = math.exp %226 : vector<16x128xf32>
    %cst_76 = arith.constant 1.000000e+00 : f32
    %228 = vector.broadcast %cst_76 : f32 to vector<16x128xf32>
    %229 = arith.addf %228, %227 : vector<16x128xf32>
    %230 = arith.divf %228, %229 : vector<16x128xf32>
    %231 = vector.extract_strided_slice %193 {offsets = [0, 256], sizes = [16, 128], strides = [1, 1]} : vector<16x512xf32> to vector<16x128xf32>
    %232 = math.tanh %231 : vector<16x128xf32>
    %233 = vector.extract_strided_slice %193 {offsets = [0, 384], sizes = [16, 128], strides = [1, 1]} : vector<16x512xf32> to vector<16x128xf32>
    %234 = arith.negf %233 : vector<16x128xf32>
    %235 = math.exp %234 : vector<16x128xf32>
    %cst_77 = arith.constant 1.000000e+00 : f32
    %236 = vector.broadcast %cst_77 : f32 to vector<16x128xf32>
    %237 = arith.addf %236, %235 : vector<16x128xf32>
    %238 = arith.divf %236, %237 : vector<16x128xf32>
    %239 = arith.mulf %230, %163 : vector<16x128xf32>
    %240 = arith.mulf %224, %232 : vector<16x128xf32>
    %241 = arith.addf %239, %240 : vector<16x128xf32>
    %242 = math.tanh %241 : vector<16x128xf32>
    %243 = arith.mulf %238, %242 : vector<16x128xf32>
    %c0_78 = arith.constant 0 : index
    %c0_79 = arith.constant 0 : index
    %244 = vector.load %arg14[%c0_78, %c0_79] : memref<16x128xf32, #tpu.memory_space<vmem>>, vector<16x128xf32>
    %245 = arith.maximumf %244, %218 : vector<16x128xf32>
    %c0_80 = arith.constant 0 : index
    %c0_81 = arith.constant 0 : index
    %246 = vector.load %arg14[%c0_80, %c0_81] : memref<16x128xf32, #tpu.memory_space<vmem>>, vector<16x128xf32>
    tpu.vector_store %arg14[%c0_80, %c0_81], %245 {strides = array<i32>} : memref<16x128xf32, #tpu.memory_space<vmem>>, vector<16x128xf32>,
    %c0_82 = arith.constant 0 : index
    %c0_83 = arith.constant 0 : index
    %247 = vector.load %arg15[%c0_82, %c0_83] : memref<16x128xf32, #tpu.memory_space<vmem>>, vector<16x128xf32>
    %248 = arith.maximumf %247, %243 : vector<16x128xf32>
    %c0_84 = arith.constant 0 : index
    %c0_85 = arith.constant 0 : index
    %249 = vector.load %arg15[%c0_84, %c0_85] : memref<16x128xf32, #tpu.memory_space<vmem>>, vector<16x128xf32>
    tpu.vector_store %arg15[%c0_84, %c0_85], %248 {strides = array<i32>} : memref<16x128xf32, #tpu.memory_space<vmem>>, vector<16x128xf32>,
    %250 = arith.truncf %218 : vector<16x128xf32> to vector<16x128xbf16>
    %251 = arith.truncf %243 : vector<16x128xf32> to vector<16x128xbf16>
    %252 = tpu.concatenate %250, %251 in 1 : vector<16x128xbf16>, vector<16x128xbf16> -> vector<16x256xbf16>
    %c3_i32 = arith.constant 3 : i32
    %c0_86 = arith.constant 0 : index
    %c0_87 = arith.constant 0 : index
    %253 = vector.load %arg5[%c0_86, %c0_87] : memref<256x1024xbf16, #tpu.memory_space<vmem>>, vector<256x1024xbf16>
    %cst_88 = arith.constant dense<0.000000e+00> : vector<16x1024xf32>
    %254 = tpu.matmul %252, %253, %cst_88 {dimension_numbers = #tpu.dot_dimension_numbers<[1], [0], [0], [1], [0, 0, 1, 1], [], []>} : vector<16x256xbf16>, vector<256x1024xbf16>, vector<16x1024xf32> -> vector<16x1024xf32>
    %255 = vector.broadcast %15 : vector<1x1024xf32> to vector<16x1024xf32>
    %256 = arith.addf %254, %255 : vector<16x1024xf32>
    %c16_i32_89 = arith.constant 16 : i32
    %257 = arith.muli %c3_i32, %c16_i32_89 : i32
    %258 = tpu.assume_multiple %257, 16 : i32
    %c7_i32_90 = arith.constant 7 : i32
    %259 = arith.subi %c7_i32_90, %c3_i32 : i32
    %c16_i32_91 = arith.constant 16 : i32
    %260 = arith.muli %259, %c16_i32_91 : i32
    %261 = tpu.assume_multiple %260, 16 : i32
    %262 = vector.extract_strided_slice %256 {offsets = [0, 0], sizes = [16, 512], strides = [1, 1]} : vector<16x1024xf32> to vector<16x512xf32>
    %263 = arith.index_cast %258 : i32 to index
    %c0_92 = arith.constant 0 : index
    %264 = vector.load %arg10[%263, %c0_92] : memref<128x512xbf16, #tpu.memory_space<vmem>>, vector<16x512xbf16>
    %265 = arith.extf %264 : vector<16x512xbf16> to vector<16x512xf32>
    %266 = arith.addf %262, %265 : vector<16x512xf32>
    %267 = vector.extract_strided_slice %256 {offsets = [0, 512], sizes = [16, 512], strides = [1, 1]} : vector<16x1024xf32> to vector<16x512xf32>
    %268 = arith.index_cast %261 : i32 to index
    %c0_93 = arith.constant 0 : index
    %269 = vector.load %arg11[%268, %c0_93] : memref<128x512xbf16, #tpu.memory_space<vmem>>, vector<16x512xbf16>
    %270 = arith.extf %269 : vector<16x512xbf16> to vector<16x512xf32>
    %271 = arith.addf %267, %270 : vector<16x512xf32>
    %272 = vector.extract_strided_slice %266 {offsets = [0, 0], sizes = [16, 128], strides = [1, 1]} : vector<16x512xf32> to vector<16x128xf32>
    %273 = arith.negf %272 : vector<16x128xf32>
    %274 = math.exp %273 : vector<16x128xf32>
    %cst_94 = arith.constant 1.000000e+00 : f32
    %275 = vector.broadcast %cst_94 : f32 to vector<16x128xf32>
    %276 = arith.addf %275, %274 : vector<16x128xf32>
    %277 = arith.divf %275, %276 : vector<16x128xf32>
    %278 = vector.extract_strided_slice %266 {offsets = [0, 128], sizes = [16, 128], strides = [1, 1]} : vector<16x512xf32> to vector<16x128xf32>
    %279 = arith.negf %278 : vector<16x128xf32>
    %280 = math.exp %279 : vector<16x128xf32>
    %cst_95 = arith.constant 1.000000e+00 : f32
    %281 = vector.broadcast %cst_95 : f32 to vector<16x128xf32>
    %282 = arith.addf %281, %280 : vector<16x128xf32>
    %283 = arith.divf %281, %282 : vector<16x128xf32>
    %284 = vector.extract_strided_slice %266 {offsets = [0, 256], sizes = [16, 128], strides = [1, 1]} : vector<16x512xf32> to vector<16x128xf32>
    %285 = math.tanh %284 : vector<16x128xf32>
    %286 = vector.extract_strided_slice %266 {offsets = [0, 384], sizes = [16, 128], strides = [1, 1]} : vector<16x512xf32> to vector<16x128xf32>
    %287 = arith.negf %286 : vector<16x128xf32>
    %288 = math.exp %287 : vector<16x128xf32>
    %cst_96 = arith.constant 1.000000e+00 : f32
    %289 = vector.broadcast %cst_96 : f32 to vector<16x128xf32>
    %290 = arith.addf %289, %288 : vector<16x128xf32>
    %291 = arith.divf %289, %290 : vector<16x128xf32>
    %292 = arith.mulf %283, %216 : vector<16x128xf32>
    %293 = arith.mulf %277, %285 : vector<16x128xf32>
    %294 = arith.addf %292, %293 : vector<16x128xf32>
    %295 = math.tanh %294 : vector<16x128xf32>
    %296 = arith.mulf %291, %295 : vector<16x128xf32>
    %297 = vector.extract_strided_slice %271 {offsets = [0, 0], sizes = [16, 128], strides = [1, 1]} : vector<16x512xf32> to vector<16x128xf32>
    %298 = arith.negf %297 : vector<16x128xf32>
    %299 = math.exp %298 : vector<16x128xf32>
    %cst_97 = arith.constant 1.000000e+00 : f32
    %300 = vector.broadcast %cst_97 : f32 to vector<16x128xf32>
    %301 = arith.addf %300, %299 : vector<16x128xf32>
    %302 = arith.divf %300, %301 : vector<16x128xf32>
    %303 = vector.extract_strided_slice %271 {offsets = [0, 128], sizes = [16, 128], strides = [1, 1]} : vector<16x512xf32> to vector<16x128xf32>
    %304 = arith.negf %303 : vector<16x128xf32>
    %305 = math.exp %304 : vector<16x128xf32>
    %cst_98 = arith.constant 1.000000e+00 : f32
    %306 = vector.broadcast %cst_98 : f32 to vector<16x128xf32>
    %307 = arith.addf %306, %305 : vector<16x128xf32>
    %308 = arith.divf %306, %307 : vector<16x128xf32>
    %309 = vector.extract_strided_slice %271 {offsets = [0, 256], sizes = [16, 128], strides = [1, 1]} : vector<16x512xf32> to vector<16x128xf32>
    %310 = math.tanh %309 : vector<16x128xf32>
    %311 = vector.extract_strided_slice %271 {offsets = [0, 384], sizes = [16, 128], strides = [1, 1]} : vector<16x512xf32> to vector<16x128xf32>
    %312 = arith.negf %311 : vector<16x128xf32>
    %313 = math.exp %312 : vector<16x128xf32>
    %cst_99 = arith.constant 1.000000e+00 : f32
    %314 = vector.broadcast %cst_99 : f32 to vector<16x128xf32>
    %315 = arith.addf %314, %313 : vector<16x128xf32>
    %316 = arith.divf %314, %315 : vector<16x128xf32>
    %317 = arith.mulf %308, %241 : vector<16x128xf32>
    %318 = arith.mulf %302, %310 : vector<16x128xf32>
    %319 = arith.addf %317, %318 : vector<16x128xf32>
    %320 = math.tanh %319 : vector<16x128xf32>
    %321 = arith.mulf %316, %320 : vector<16x128xf32>
    %c0_100 = arith.constant 0 : index
    %c0_101 = arith.constant 0 : index
    %322 = vector.load %arg14[%c0_100, %c0_101] : memref<16x128xf32, #tpu.memory_space<vmem>>, vector<16x128xf32>
    %323 = arith.maximumf %322, %296 : vector<16x128xf32>
    %c0_102 = arith.constant 0 : index
    %c0_103 = arith.constant 0 : index
    %324 = vector.load %arg14[%c0_102, %c0_103] : memref<16x128xf32, #tpu.memory_space<vmem>>, vector<16x128xf32>
    tpu.vector_store %arg14[%c0_102, %c0_103], %323 {strides = array<i32>} : memref<16x128xf32, #tpu.memory_space<vmem>>, vector<16x128xf32>,
    %c0_104 = arith.constant 0 : index
    %c0_105 = arith.constant 0 : index
    %325 = vector.load %arg15[%c0_104, %c0_105] : memref<16x128xf32, #tpu.memory_space<vmem>>, vector<16x128xf32>
    %326 = arith.maximumf %325, %321 : vector<16x128xf32>
    %c0_106 = arith.constant 0 : index
    %c0_107 = arith.constant 0 : index
    %327 = vector.load %arg15[%c0_106, %c0_107] : memref<16x128xf32, #tpu.memory_space<vmem>>, vector<16x128xf32>
    tpu.vector_store %arg15[%c0_106, %c0_107], %326 {strides = array<i32>} : memref<16x128xf32, #tpu.memory_space<vmem>>, vector<16x128xf32>,
    %328 = arith.truncf %296 : vector<16x128xf32> to vector<16x128xbf16>
    %329 = arith.truncf %321 : vector<16x128xf32> to vector<16x128xbf16>
    %330 = tpu.concatenate %328, %329 in 1 : vector<16x128xbf16>, vector<16x128xbf16> -> vector<16x256xbf16>
    %c4_i32 = arith.constant 4 : i32
    %c0_108 = arith.constant 0 : index
    %c0_109 = arith.constant 0 : index
    %331 = vector.load %arg5[%c0_108, %c0_109] : memref<256x1024xbf16, #tpu.memory_space<vmem>>, vector<256x1024xbf16>
    %cst_110 = arith.constant dense<0.000000e+00> : vector<16x1024xf32>
    %332 = tpu.matmul %330, %331, %cst_110 {dimension_numbers = #tpu.dot_dimension_numbers<[1], [0], [0], [1], [0, 0, 1, 1], [], []>} : vector<16x256xbf16>, vector<256x1024xbf16>, vector<16x1024xf32> -> vector<16x1024xf32>
    %333 = vector.broadcast %15 : vector<1x1024xf32> to vector<16x1024xf32>
    %334 = arith.addf %332, %333 : vector<16x1024xf32>
    %c16_i32_111 = arith.constant 16 : i32
    %335 = arith.muli %c4_i32, %c16_i32_111 : i32
    %336 = tpu.assume_multiple %335, 16 : i32
    %c7_i32_112 = arith.constant 7 : i32
    %337 = arith.subi %c7_i32_112, %c4_i32 : i32
    %c16_i32_113 = arith.constant 16 : i32
    %338 = arith.muli %337, %c16_i32_113 : i32
    %339 = tpu.assume_multiple %338, 16 : i32
    %340 = vector.extract_strided_slice %334 {offsets = [0, 0], sizes = [16, 512], strides = [1, 1]} : vector<16x1024xf32> to vector<16x512xf32>
    %341 = arith.index_cast %336 : i32 to index
    %c0_114 = arith.constant 0 : index
    %342 = vector.load %arg10[%341, %c0_114] : memref<128x512xbf16, #tpu.memory_space<vmem>>, vector<16x512xbf16>
    %343 = arith.extf %342 : vector<16x512xbf16> to vector<16x512xf32>
    %344 = arith.addf %340, %343 : vector<16x512xf32>
    %345 = vector.extract_strided_slice %334 {offsets = [0, 512], sizes = [16, 512], strides = [1, 1]} : vector<16x1024xf32> to vector<16x512xf32>
    %346 = arith.index_cast %339 : i32 to index
    %c0_115 = arith.constant 0 : index
    %347 = vector.load %arg11[%346, %c0_115] : memref<128x512xbf16, #tpu.memory_space<vmem>>, vector<16x512xbf16>
    %348 = arith.extf %347 : vector<16x512xbf16> to vector<16x512xf32>
    %349 = arith.addf %345, %348 : vector<16x512xf32>
    %350 = vector.extract_strided_slice %344 {offsets = [0, 0], sizes = [16, 128], strides = [1, 1]} : vector<16x512xf32> to vector<16x128xf32>
    %351 = arith.negf %350 : vector<16x128xf32>
    %352 = math.exp %351 : vector<16x128xf32>
    %cst_116 = arith.constant 1.000000e+00 : f32
    %353 = vector.broadcast %cst_116 : f32 to vector<16x128xf32>
    %354 = arith.addf %353, %352 : vector<16x128xf32>
    %355 = arith.divf %353, %354 : vector<16x128xf32>
    %356 = vector.extract_strided_slice %344 {offsets = [0, 128], sizes = [16, 128], strides = [1, 1]} : vector<16x512xf32> to vector<16x128xf32>
    %357 = arith.negf %356 : vector<16x128xf32>
    %358 = math.exp %357 : vector<16x128xf32>
    %cst_117 = arith.constant 1.000000e+00 : f32
    %359 = vector.broadcast %cst_117 : f32 to vector<16x128xf32>
    %360 = arith.addf %359, %358 : vector<16x128xf32>
    %361 = arith.divf %359, %360 : vector<16x128xf32>
    %362 = vector.extract_strided_slice %344 {offsets = [0, 256], sizes = [16, 128], strides = [1, 1]} : vector<16x512xf32> to vector<16x128xf32>
    %363 = math.tanh %362 : vector<16x128xf32>
    %364 = vector.extract_strided_slice %344 {offsets = [0, 384], sizes = [16, 128], strides = [1, 1]} : vector<16x512xf32> to vector<16x128xf32>
    %365 = arith.negf %364 : vector<16x128xf32>
    %366 = math.exp %365 : vector<16x128xf32>
    %cst_118 = arith.constant 1.000000e+00 : f32
    %367 = vector.broadcast %cst_118 : f32 to vector<16x128xf32>
    %368 = arith.addf %367, %366 : vector<16x128xf32>
    %369 = arith.divf %367, %368 : vector<16x128xf32>
    %370 = arith.mulf %361, %294 : vector<16x128xf32>
    %371 = arith.mulf %355, %363 : vector<16x128xf32>
    %372 = arith.addf %370, %371 : vector<16x128xf32>
    %373 = math.tanh %372 : vector<16x128xf32>
    %374 = arith.mulf %369, %373 : vector<16x128xf32>
    %375 = vector.extract_strided_slice %349 {offsets = [0, 0], sizes = [16, 128], strides = [1, 1]} : vector<16x512xf32> to vector<16x128xf32>
    %376 = arith.negf %375 : vector<16x128xf32>
    %377 = math.exp %376 : vector<16x128xf32>
    %cst_119 = arith.constant 1.000000e+00 : f32
    %378 = vector.broadcast %cst_119 : f32 to vector<16x128xf32>
    %379 = arith.addf %378, %377 : vector<16x128xf32>
    %380 = arith.divf %378, %379 : vector<16x128xf32>
    %381 = vector.extract_strided_slice %349 {offsets = [0, 128], sizes = [16, 128], strides = [1, 1]} : vector<16x512xf32> to vector<16x128xf32>
    %382 = arith.negf %381 : vector<16x128xf32>
    %383 = math.exp %382 : vector<16x128xf32>
    %cst_120 = arith.constant 1.000000e+00 : f32
    %384 = vector.broadcast %cst_120 : f32 to vector<16x128xf32>
    %385 = arith.addf %384, %383 : vector<16x128xf32>
    %386 = arith.divf %384, %385 : vector<16x128xf32>
    %387 = vector.extract_strided_slice %349 {offsets = [0, 256], sizes = [16, 128], strides = [1, 1]} : vector<16x512xf32> to vector<16x128xf32>
    %388 = math.tanh %387 : vector<16x128xf32>
    %389 = vector.extract_strided_slice %349 {offsets = [0, 384], sizes = [16, 128], strides = [1, 1]} : vector<16x512xf32> to vector<16x128xf32>
    %390 = arith.negf %389 : vector<16x128xf32>
    %391 = math.exp %390 : vector<16x128xf32>
    %cst_121 = arith.constant 1.000000e+00 : f32
    %392 = vector.broadcast %cst_121 : f32 to vector<16x128xf32>
    %393 = arith.addf %392, %391 : vector<16x128xf32>
    %394 = arith.divf %392, %393 : vector<16x128xf32>
    %395 = arith.mulf %386, %319 : vector<16x128xf32>
    %396 = arith.mulf %380, %388 : vector<16x128xf32>
    %397 = arith.addf %395, %396 : vector<16x128xf32>
    %398 = math.tanh %397 : vector<16x128xf32>
    %399 = arith.mulf %394, %398 : vector<16x128xf32>
    %c0_122 = arith.constant 0 : index
    %c0_123 = arith.constant 0 : index
    %400 = vector.load %arg14[%c0_122, %c0_123] : memref<16x128xf32, #tpu.memory_space<vmem>>, vector<16x128xf32>
    %401 = arith.maximumf %400, %374 : vector<16x128xf32>
    %c0_124 = arith.constant 0 : index
    %c0_125 = arith.constant 0 : index
    %402 = vector.load %arg14[%c0_124, %c0_125] : memref<16x128xf32, #tpu.memory_space<vmem>>, vector<16x128xf32>
    tpu.vector_store %arg14[%c0_124, %c0_125], %401 {strides = array<i32>} : memref<16x128xf32, #tpu.memory_space<vmem>>, vector<16x128xf32>,
    %c0_126 = arith.constant 0 : index
    %c0_127 = arith.constant 0 : index
    %403 = vector.load %arg15[%c0_126, %c0_127] : memref<16x128xf32, #tpu.memory_space<vmem>>, vector<16x128xf32>
    %404 = arith.maximumf %403, %399 : vector<16x128xf32>
    %c0_128 = arith.constant 0 : index
    %c0_129 = arith.constant 0 : index
    %405 = vector.load %arg15[%c0_128, %c0_129] : memref<16x128xf32, #tpu.memory_space<vmem>>, vector<16x128xf32>
    tpu.vector_store %arg15[%c0_128, %c0_129], %404 {strides = array<i32>} : memref<16x128xf32, #tpu.memory_space<vmem>>, vector<16x128xf32>,
    %406 = arith.truncf %374 : vector<16x128xf32> to vector<16x128xbf16>
    %407 = arith.truncf %399 : vector<16x128xf32> to vector<16x128xbf16>
    %408 = tpu.concatenate %406, %407 in 1 : vector<16x128xbf16>, vector<16x128xbf16> -> vector<16x256xbf16>
    %c5_i32 = arith.constant 5 : i32
    %c0_130 = arith.constant 0 : index
    %c0_131 = arith.constant 0 : index
    %409 = vector.load %arg5[%c0_130, %c0_131] : memref<256x1024xbf16, #tpu.memory_space<vmem>>, vector<256x1024xbf16>
    %cst_132 = arith.constant dense<0.000000e+00> : vector<16x1024xf32>
    %410 = tpu.matmul %408, %409, %cst_132 {dimension_numbers = #tpu.dot_dimension_numbers<[1], [0], [0], [1], [0, 0, 1, 1], [], []>} : vector<16x256xbf16>, vector<256x1024xbf16>, vector<16x1024xf32> -> vector<16x1024xf32>
    %411 = vector.broadcast %15 : vector<1x1024xf32> to vector<16x1024xf32>
    %412 = arith.addf %410, %411 : vector<16x1024xf32>
    %c16_i32_133 = arith.constant 16 : i32
    %413 = arith.muli %c5_i32, %c16_i32_133 : i32
    %414 = tpu.assume_multiple %413, 16 : i32
    %c7_i32_134 = arith.constant 7 : i32
    %415 = arith.subi %c7_i32_134, %c5_i32 : i32
    %c16_i32_135 = arith.constant 16 : i32
    %416 = arith.muli %415, %c16_i32_135 : i32
    %417 = tpu.assume_multiple %416, 16 : i32
    %418 = vector.extract_strided_slice %412 {offsets = [0, 0], sizes = [16, 512], strides = [1, 1]} : vector<16x1024xf32> to vector<16x512xf32>
    %419 = arith.index_cast %414 : i32 to index
    %c0_136 = arith.constant 0 : index
    %420 = vector.load %arg10[%419, %c0_136] : memref<128x512xbf16, #tpu.memory_space<vmem>>, vector<16x512xbf16>
    %421 = arith.extf %420 : vector<16x512xbf16> to vector<16x512xf32>
    %422 = arith.addf %418, %421 : vector<16x512xf32>
    %423 = vector.extract_strided_slice %412 {offsets = [0, 512], sizes = [16, 512], strides = [1, 1]} : vector<16x1024xf32> to vector<16x512xf32>
    %424 = arith.index_cast %417 : i32 to index
    %c0_137 = arith.constant 0 : index
    %425 = vector.load %arg11[%424, %c0_137] : memref<128x512xbf16, #tpu.memory_space<vmem>>, vector<16x512xbf16>
    %426 = arith.extf %425 : vector<16x512xbf16> to vector<16x512xf32>
    %427 = arith.addf %423, %426 : vector<16x512xf32>
    %428 = vector.extract_strided_slice %422 {offsets = [0, 0], sizes = [16, 128], strides = [1, 1]} : vector<16x512xf32> to vector<16x128xf32>
    %429 = arith.negf %428 : vector<16x128xf32>
    %430 = math.exp %429 : vector<16x128xf32>
    %cst_138 = arith.constant 1.000000e+00 : f32
    %431 = vector.broadcast %cst_138 : f32 to vector<16x128xf32>
    %432 = arith.addf %431, %430 : vector<16x128xf32>
    %433 = arith.divf %431, %432 : vector<16x128xf32>
    %434 = vector.extract_strided_slice %422 {offsets = [0, 128], sizes = [16, 128], strides = [1, 1]} : vector<16x512xf32> to vector<16x128xf32>
    %435 = arith.negf %434 : vector<16x128xf32>
    %436 = math.exp %435 : vector<16x128xf32>
    %cst_139 = arith.constant 1.000000e+00 : f32
    %437 = vector.broadcast %cst_139 : f32 to vector<16x128xf32>
    %438 = arith.addf %437, %436 : vector<16x128xf32>
    %439 = arith.divf %437, %438 : vector<16x128xf32>
    %440 = vector.extract_strided_slice %422 {offsets = [0, 256], sizes = [16, 128], strides = [1, 1]} : vector<16x512xf32> to vector<16x128xf32>
    %441 = math.tanh %440 : vector<16x128xf32>
    %442 = vector.extract_strided_slice %422 {offsets = [0, 384], sizes = [16, 128], strides = [1, 1]} : vector<16x512xf32> to vector<16x128xf32>
    %443 = arith.negf %442 : vector<16x128xf32>
    %444 = math.exp %443 : vector<16x128xf32>
    %cst_140 = arith.constant 1.000000e+00 : f32
    %445 = vector.broadcast %cst_140 : f32 to vector<16x128xf32>
    %446 = arith.addf %445, %444 : vector<16x128xf32>
    %447 = arith.divf %445, %446 : vector<16x128xf32>
    %448 = arith.mulf %439, %372 : vector<16x128xf32>
    %449 = arith.mulf %433, %441 : vector<16x128xf32>
    %450 = arith.addf %448, %449 : vector<16x128xf32>
    %451 = math.tanh %450 : vector<16x128xf32>
    %452 = arith.mulf %447, %451 : vector<16x128xf32>
    %453 = vector.extract_strided_slice %427 {offsets = [0, 0], sizes = [16, 128], strides = [1, 1]} : vector<16x512xf32> to vector<16x128xf32>
    %454 = arith.negf %453 : vector<16x128xf32>
    %455 = math.exp %454 : vector<16x128xf32>
    %cst_141 = arith.constant 1.000000e+00 : f32
    %456 = vector.broadcast %cst_141 : f32 to vector<16x128xf32>
    %457 = arith.addf %456, %455 : vector<16x128xf32>
    %458 = arith.divf %456, %457 : vector<16x128xf32>
    %459 = vector.extract_strided_slice %427 {offsets = [0, 128], sizes = [16, 128], strides = [1, 1]} : vector<16x512xf32> to vector<16x128xf32>
    %460 = arith.negf %459 : vector<16x128xf32>
    %461 = math.exp %460 : vector<16x128xf32>
    %cst_142 = arith.constant 1.000000e+00 : f32
    %462 = vector.broadcast %cst_142 : f32 to vector<16x128xf32>
    %463 = arith.addf %462, %461 : vector<16x128xf32>
    %464 = arith.divf %462, %463 : vector<16x128xf32>
    %465 = vector.extract_strided_slice %427 {offsets = [0, 256], sizes = [16, 128], strides = [1, 1]} : vector<16x512xf32> to vector<16x128xf32>
    %466 = math.tanh %465 : vector<16x128xf32>
    %467 = vector.extract_strided_slice %427 {offsets = [0, 384], sizes = [16, 128], strides = [1, 1]} : vector<16x512xf32> to vector<16x128xf32>
    %468 = arith.negf %467 : vector<16x128xf32>
    %469 = math.exp %468 : vector<16x128xf32>
    %cst_143 = arith.constant 1.000000e+00 : f32
    %470 = vector.broadcast %cst_143 : f32 to vector<16x128xf32>
    %471 = arith.addf %470, %469 : vector<16x128xf32>
    %472 = arith.divf %470, %471 : vector<16x128xf32>
    %473 = arith.mulf %464, %397 : vector<16x128xf32>
    %474 = arith.mulf %458, %466 : vector<16x128xf32>
    %475 = arith.addf %473, %474 : vector<16x128xf32>
    %476 = math.tanh %475 : vector<16x128xf32>
    %477 = arith.mulf %472, %476 : vector<16x128xf32>
    %c0_144 = arith.constant 0 : index
    %c0_145 = arith.constant 0 : index
    %478 = vector.load %arg14[%c0_144, %c0_145] : memref<16x128xf32, #tpu.memory_space<vmem>>, vector<16x128xf32>
    %479 = arith.maximumf %478, %452 : vector<16x128xf32>
    %c0_146 = arith.constant 0 : index
    %c0_147 = arith.constant 0 : index
    %480 = vector.load %arg14[%c0_146, %c0_147] : memref<16x128xf32, #tpu.memory_space<vmem>>, vector<16x128xf32>
    tpu.vector_store %arg14[%c0_146, %c0_147], %479 {strides = array<i32>} : memref<16x128xf32, #tpu.memory_space<vmem>>, vector<16x128xf32>,
    %c0_148 = arith.constant 0 : index
    %c0_149 = arith.constant 0 : index
    %481 = vector.load %arg15[%c0_148, %c0_149] : memref<16x128xf32, #tpu.memory_space<vmem>>, vector<16x128xf32>
    %482 = arith.maximumf %481, %477 : vector<16x128xf32>
    %c0_150 = arith.constant 0 : index
    %c0_151 = arith.constant 0 : index
    %483 = vector.load %arg15[%c0_150, %c0_151] : memref<16x128xf32, #tpu.memory_space<vmem>>, vector<16x128xf32>
    tpu.vector_store %arg15[%c0_150, %c0_151], %482 {strides = array<i32>} : memref<16x128xf32, #tpu.memory_space<vmem>>, vector<16x128xf32>,
    %484 = arith.truncf %452 : vector<16x128xf32> to vector<16x128xbf16>
    %485 = arith.truncf %477 : vector<16x128xf32> to vector<16x128xbf16>
    %486 = tpu.concatenate %484, %485 in 1 : vector<16x128xbf16>, vector<16x128xbf16> -> vector<16x256xbf16>
    %c6_i32 = arith.constant 6 : i32
    %c0_152 = arith.constant 0 : index
    %c0_153 = arith.constant 0 : index
    %487 = vector.load %arg5[%c0_152, %c0_153] : memref<256x1024xbf16, #tpu.memory_space<vmem>>, vector<256x1024xbf16>
    %cst_154 = arith.constant dense<0.000000e+00> : vector<16x1024xf32>
    %488 = tpu.matmul %486, %487, %cst_154 {dimension_numbers = #tpu.dot_dimension_numbers<[1], [0], [0], [1], [0, 0, 1, 1], [], []>} : vector<16x256xbf16>, vector<256x1024xbf16>, vector<16x1024xf32> -> vector<16x1024xf32>
    %489 = vector.broadcast %15 : vector<1x1024xf32> to vector<16x1024xf32>
    %490 = arith.addf %488, %489 : vector<16x1024xf32>
    %c16_i32_155 = arith.constant 16 : i32
    %491 = arith.muli %c6_i32, %c16_i32_155 : i32
    %492 = tpu.assume_multiple %491, 16 : i32
    %c7_i32_156 = arith.constant 7 : i32
    %493 = arith.subi %c7_i32_156, %c6_i32 : i32
    %c16_i32_157 = arith.constant 16 : i32
    %494 = arith.muli %493, %c16_i32_157 : i32
    %495 = tpu.assume_multiple %494, 16 : i32
    %496 = vector.extract_strided_slice %490 {offsets = [0, 0], sizes = [16, 512], strides = [1, 1]} : vector<16x1024xf32> to vector<16x512xf32>
    %497 = arith.index_cast %492 : i32 to index
    %c0_158 = arith.constant 0 : index
    %498 = vector.load %arg10[%497, %c0_158] : memref<128x512xbf16, #tpu.memory_space<vmem>>, vector<16x512xbf16>
    %499 = arith.extf %498 : vector<16x512xbf16> to vector<16x512xf32>
    %500 = arith.addf %496, %499 : vector<16x512xf32>
    %501 = vector.extract_strided_slice %490 {offsets = [0, 512], sizes = [16, 512], strides = [1, 1]} : vector<16x1024xf32> to vector<16x512xf32>
    %502 = arith.index_cast %495 : i32 to index
    %c0_159 = arith.constant 0 : index
    %503 = vector.load %arg11[%502, %c0_159] : memref<128x512xbf16, #tpu.memory_space<vmem>>, vector<16x512xbf16>
    %504 = arith.extf %503 : vector<16x512xbf16> to vector<16x512xf32>
    %505 = arith.addf %501, %504 : vector<16x512xf32>
    %506 = vector.extract_strided_slice %500 {offsets = [0, 0], sizes = [16, 128], strides = [1, 1]} : vector<16x512xf32> to vector<16x128xf32>
    %507 = arith.negf %506 : vector<16x128xf32>
    %508 = math.exp %507 : vector<16x128xf32>
    %cst_160 = arith.constant 1.000000e+00 : f32
    %509 = vector.broadcast %cst_160 : f32 to vector<16x128xf32>
    %510 = arith.addf %509, %508 : vector<16x128xf32>
    %511 = arith.divf %509, %510 : vector<16x128xf32>
    %512 = vector.extract_strided_slice %500 {offsets = [0, 128], sizes = [16, 128], strides = [1, 1]} : vector<16x512xf32> to vector<16x128xf32>
    %513 = arith.negf %512 : vector<16x128xf32>
    %514 = math.exp %513 : vector<16x128xf32>
    %cst_161 = arith.constant 1.000000e+00 : f32
    %515 = vector.broadcast %cst_161 : f32 to vector<16x128xf32>
    %516 = arith.addf %515, %514 : vector<16x128xf32>
    %517 = arith.divf %515, %516 : vector<16x128xf32>
    %518 = vector.extract_strided_slice %500 {offsets = [0, 256], sizes = [16, 128], strides = [1, 1]} : vector<16x512xf32> to vector<16x128xf32>
    %519 = math.tanh %518 : vector<16x128xf32>
    %520 = vector.extract_strided_slice %500 {offsets = [0, 384], sizes = [16, 128], strides = [1, 1]} : vector<16x512xf32> to vector<16x128xf32>
    %521 = arith.negf %520 : vector<16x128xf32>
    %522 = math.exp %521 : vector<16x128xf32>
    %cst_162 = arith.constant 1.000000e+00 : f32
    %523 = vector.broadcast %cst_162 : f32 to vector<16x128xf32>
    %524 = arith.addf %523, %522 : vector<16x128xf32>
    %525 = arith.divf %523, %524 : vector<16x128xf32>
    %526 = arith.mulf %517, %450 : vector<16x128xf32>
    %527 = arith.mulf %511, %519 : vector<16x128xf32>
    %528 = arith.addf %526, %527 : vector<16x128xf32>
    %529 = math.tanh %528 : vector<16x128xf32>
    %530 = arith.mulf %525, %529 : vector<16x128xf32>
    %531 = vector.extract_strided_slice %505 {offsets = [0, 0], sizes = [16, 128], strides = [1, 1]} : vector<16x512xf32> to vector<16x128xf32>
    %532 = arith.negf %531 : vector<16x128xf32>
    %533 = math.exp %532 : vector<16x128xf32>
    %cst_163 = arith.constant 1.000000e+00 : f32
    %534 = vector.broadcast %cst_163 : f32 to vector<16x128xf32>
    %535 = arith.addf %534, %533 : vector<16x128xf32>
    %536 = arith.divf %534, %535 : vector<16x128xf32>
    %537 = vector.extract_strided_slice %505 {offsets = [0, 128], sizes = [16, 128], strides = [1, 1]} : vector<16x512xf32> to vector<16x128xf32>
    %538 = arith.negf %537 : vector<16x128xf32>
    %539 = math.exp %538 : vector<16x128xf32>
    %cst_164 = arith.constant 1.000000e+00 : f32
    %540 = vector.broadcast %cst_164 : f32 to vector<16x128xf32>
    %541 = arith.addf %540, %539 : vector<16x128xf32>
    %542 = arith.divf %540, %541 : vector<16x128xf32>
    %543 = vector.extract_strided_slice %505 {offsets = [0, 256], sizes = [16, 128], strides = [1, 1]} : vector<16x512xf32> to vector<16x128xf32>
    %544 = math.tanh %543 : vector<16x128xf32>
    %545 = vector.extract_strided_slice %505 {offsets = [0, 384], sizes = [16, 128], strides = [1, 1]} : vector<16x512xf32> to vector<16x128xf32>
    %546 = arith.negf %545 : vector<16x128xf32>
    %547 = math.exp %546 : vector<16x128xf32>
    %cst_165 = arith.constant 1.000000e+00 : f32
    %548 = vector.broadcast %cst_165 : f32 to vector<16x128xf32>
    %549 = arith.addf %548, %547 : vector<16x128xf32>
    %550 = arith.divf %548, %549 : vector<16x128xf32>
    %551 = arith.mulf %542, %475 : vector<16x128xf32>
    %552 = arith.mulf %536, %544 : vector<16x128xf32>
    %553 = arith.addf %551, %552 : vector<16x128xf32>
    %554 = math.tanh %553 : vector<16x128xf32>
    %555 = arith.mulf %550, %554 : vector<16x128xf32>
    %c0_166 = arith.constant 0 : index
    %c0_167 = arith.constant 0 : index
    %556 = vector.load %arg14[%c0_166, %c0_167] : memref<16x128xf32, #tpu.memory_space<vmem>>, vector<16x128xf32>
    %557 = arith.maximumf %556, %530 : vector<16x128xf32>
    %c0_168 = arith.constant 0 : index
    %c0_169 = arith.constant 0 : index
    %558 = vector.load %arg14[%c0_168, %c0_169] : memref<16x128xf32, #tpu.memory_space<vmem>>, vector<16x128xf32>
    tpu.vector_store %arg14[%c0_168, %c0_169], %557 {strides = array<i32>} : memref<16x128xf32, #tpu.memory_space<vmem>>, vector<16x128xf32>,
    %c0_170 = arith.constant 0 : index
    %c0_171 = arith.constant 0 : index
    %559 = vector.load %arg15[%c0_170, %c0_171] : memref<16x128xf32, #tpu.memory_space<vmem>>, vector<16x128xf32>
    %560 = arith.maximumf %559, %555 : vector<16x128xf32>
    %c0_172 = arith.constant 0 : index
    %c0_173 = arith.constant 0 : index
    %561 = vector.load %arg15[%c0_172, %c0_173] : memref<16x128xf32, #tpu.memory_space<vmem>>, vector<16x128xf32>
    tpu.vector_store %arg15[%c0_172, %c0_173], %560 {strides = array<i32>} : memref<16x128xf32, #tpu.memory_space<vmem>>, vector<16x128xf32>,
    %562 = arith.truncf %530 : vector<16x128xf32> to vector<16x128xbf16>
    %563 = arith.truncf %555 : vector<16x128xf32> to vector<16x128xbf16>
    %564 = tpu.concatenate %562, %563 in 1 : vector<16x128xbf16>, vector<16x128xbf16> -> vector<16x256xbf16>
    %c7_i32_174 = arith.constant 7 : i32
    %c0_175 = arith.constant 0 : index
    %c0_176 = arith.constant 0 : index
    %565 = vector.load %arg5[%c0_175, %c0_176] : memref<256x1024xbf16, #tpu.memory_space<vmem>>, vector<256x1024xbf16>
    %cst_177 = arith.constant dense<0.000000e+00> : vector<16x1024xf32>
    %566 = tpu.matmul %564, %565, %cst_177 {dimension_numbers = #tpu.dot_dimension_numbers<[1], [0], [0], [1], [0, 0, 1, 1], [], []>} : vector<16x256xbf16>, vector<256x1024xbf16>, vector<16x1024xf32> -> vector<16x1024xf32>
    %567 = vector.broadcast %15 : vector<1x1024xf32> to vector<16x1024xf32>
    %568 = arith.addf %566, %567 : vector<16x1024xf32>
    %c16_i32_178 = arith.constant 16 : i32
    %569 = arith.muli %c7_i32_174, %c16_i32_178 : i32
    %570 = tpu.assume_multiple %569, 16 : i32
    %c7_i32_179 = arith.constant 7 : i32
    %571 = arith.subi %c7_i32_179, %c7_i32_174 : i32
    %c16_i32_180 = arith.constant 16 : i32
    %572 = arith.muli %571, %c16_i32_180 : i32
    %573 = tpu.assume_multiple %572, 16 : i32
    %574 = vector.extract_strided_slice %568 {offsets = [0, 0], sizes = [16, 512], strides = [1, 1]} : vector<16x1024xf32> to vector<16x512xf32>
    %575 = arith.index_cast %570 : i32 to index
    %c0_181 = arith.constant 0 : index
    %576 = vector.load %arg10[%575, %c0_181] : memref<128x512xbf16, #tpu.memory_space<vmem>>, vector<16x512xbf16>
    %577 = arith.extf %576 : vector<16x512xbf16> to vector<16x512xf32>
    %578 = arith.addf %574, %577 : vector<16x512xf32>
    %579 = vector.extract_strided_slice %568 {offsets = [0, 512], sizes = [16, 512], strides = [1, 1]} : vector<16x1024xf32> to vector<16x512xf32>
    %580 = arith.index_cast %573 : i32 to index
    %c0_182 = arith.constant 0 : index
    %581 = vector.load %arg11[%580, %c0_182] : memref<128x512xbf16, #tpu.memory_space<vmem>>, vector<16x512xbf16>
    %582 = arith.extf %581 : vector<16x512xbf16> to vector<16x512xf32>
    %583 = arith.addf %579, %582 : vector<16x512xf32>
    %584 = vector.extract_strided_slice %578 {offsets = [0, 0], sizes = [16, 128], strides = [1, 1]} : vector<16x512xf32> to vector<16x128xf32>
    %585 = arith.negf %584 : vector<16x128xf32>
    %586 = math.exp %585 : vector<16x128xf32>
    %cst_183 = arith.constant 1.000000e+00 : f32
    %587 = vector.broadcast %cst_183 : f32 to vector<16x128xf32>
    %588 = arith.addf %587, %586 : vector<16x128xf32>
    %589 = arith.divf %587, %588 : vector<16x128xf32>
    %590 = vector.extract_strided_slice %578 {offsets = [0, 128], sizes = [16, 128], strides = [1, 1]} : vector<16x512xf32> to vector<16x128xf32>
    %591 = arith.negf %590 : vector<16x128xf32>
    %592 = math.exp %591 : vector<16x128xf32>
    %cst_184 = arith.constant 1.000000e+00 : f32
    %593 = vector.broadcast %cst_184 : f32 to vector<16x128xf32>
    %594 = arith.addf %593, %592 : vector<16x128xf32>
    %595 = arith.divf %593, %594 : vector<16x128xf32>
    %596 = vector.extract_strided_slice %578 {offsets = [0, 256], sizes = [16, 128], strides = [1, 1]} : vector<16x512xf32> to vector<16x128xf32>
    %597 = math.tanh %596 : vector<16x128xf32>
    %598 = vector.extract_strided_slice %578 {offsets = [0, 384], sizes = [16, 128], strides = [1, 1]} : vector<16x512xf32> to vector<16x128xf32>
    %599 = arith.negf %598 : vector<16x128xf32>
    %600 = math.exp %599 : vector<16x128xf32>
    %cst_185 = arith.constant 1.000000e+00 : f32
    %601 = vector.broadcast %cst_185 : f32 to vector<16x128xf32>
    %602 = arith.addf %601, %600 : vector<16x128xf32>
    %603 = arith.divf %601, %602 : vector<16x128xf32>
    %604 = arith.mulf %595, %528 : vector<16x128xf32>
    %605 = arith.mulf %589, %597 : vector<16x128xf32>
    %606 = arith.addf %604, %605 : vector<16x128xf32>
    %607 = math.tanh %606 : vector<16x128xf32>
    %608 = arith.mulf %603, %607 : vector<16x128xf32>
    %609 = vector.extract_strided_slice %583 {offsets = [0, 0], sizes = [16, 128], strides = [1, 1]} : vector<16x512xf32> to vector<16x128xf32>
    %610 = arith.negf %609 : vector<16x128xf32>
    %611 = math.exp %610 : vector<16x128xf32>
    %cst_186 = arith.constant 1.000000e+00 : f32
    %612 = vector.broadcast %cst_186 : f32 to vector<16x128xf32>
    %613 = arith.addf %612, %611 : vector<16x128xf32>
    %614 = arith.divf %612, %613 : vector<16x128xf32>
    %615 = vector.extract_strided_slice %583 {offsets = [0, 128], sizes = [16, 128], strides = [1, 1]} : vector<16x512xf32> to vector<16x128xf32>
    %616 = arith.negf %615 : vector<16x128xf32>
    %617 = math.exp %616 : vector<16x128xf32>
    %cst_187 = arith.constant 1.000000e+00 : f32
    %618 = vector.broadcast %cst_187 : f32 to vector<16x128xf32>
    %619 = arith.addf %618, %617 : vector<16x128xf32>
    %620 = arith.divf %618, %619 : vector<16x128xf32>
    %621 = vector.extract_strided_slice %583 {offsets = [0, 256], sizes = [16, 128], strides = [1, 1]} : vector<16x512xf32> to vector<16x128xf32>
    %622 = math.tanh %621 : vector<16x128xf32>
    %623 = vector.extract_strided_slice %583 {offsets = [0, 384], sizes = [16, 128], strides = [1, 1]} : vector<16x512xf32> to vector<16x128xf32>
    %624 = arith.negf %623 : vector<16x128xf32>
    %625 = math.exp %624 : vector<16x128xf32>
    %cst_188 = arith.constant 1.000000e+00 : f32
    %626 = vector.broadcast %cst_188 : f32 to vector<16x128xf32>
    %627 = arith.addf %626, %625 : vector<16x128xf32>
    %628 = arith.divf %626, %627 : vector<16x128xf32>
    %629 = arith.mulf %620, %553 : vector<16x128xf32>
    %630 = arith.mulf %614, %622 : vector<16x128xf32>
    %631 = arith.addf %629, %630 : vector<16x128xf32>
    %632 = math.tanh %631 : vector<16x128xf32>
    %633 = arith.mulf %628, %632 : vector<16x128xf32>
    %c0_189 = arith.constant 0 : index
    %c0_190 = arith.constant 0 : index
    %634 = vector.load %arg14[%c0_189, %c0_190] : memref<16x128xf32, #tpu.memory_space<vmem>>, vector<16x128xf32>
    %635 = arith.maximumf %634, %608 : vector<16x128xf32>
    %c0_191 = arith.constant 0 : index
    %c0_192 = arith.constant 0 : index
    %636 = vector.load %arg14[%c0_191, %c0_192] : memref<16x128xf32, #tpu.memory_space<vmem>>, vector<16x128xf32>
    tpu.vector_store %arg14[%c0_191, %c0_192], %635 {strides = array<i32>} : memref<16x128xf32, #tpu.memory_space<vmem>>, vector<16x128xf32>,
    %c0_193 = arith.constant 0 : index
    %c0_194 = arith.constant 0 : index
    %637 = vector.load %arg15[%c0_193, %c0_194] : memref<16x128xf32, #tpu.memory_space<vmem>>, vector<16x128xf32>
    %638 = arith.maximumf %637, %633 : vector<16x128xf32>
    %c0_195 = arith.constant 0 : index
    %c0_196 = arith.constant 0 : index
    %639 = vector.load %arg15[%c0_195, %c0_196] : memref<16x128xf32, #tpu.memory_space<vmem>>, vector<16x128xf32>
    tpu.vector_store %arg15[%c0_195, %c0_196], %638 {strides = array<i32>} : memref<16x128xf32, #tpu.memory_space<vmem>>, vector<16x128xf32>,
    %640 = arith.truncf %608 : vector<16x128xf32> to vector<16x128xbf16>
    %641 = arith.truncf %633 : vector<16x128xf32> to vector<16x128xbf16>
    %642 = tpu.concatenate %640, %641 in 1 : vector<16x128xbf16>, vector<16x128xbf16> -> vector<16x256xbf16>
    %c8_i32 = arith.constant 8 : i32
    %c0_197 = arith.constant 0 : index
    %c0_198 = arith.constant 0 : index
    %643 = vector.load %arg12[%c0_197, %c0_198] : memref<16x256xbf16, #tpu.memory_space<vmem>>, vector<16x256xbf16>
    tpu.vector_store %arg12[%c0_197, %c0_198], %642 {strides = array<i32>} : memref<16x256xbf16, #tpu.memory_space<vmem>>, vector<16x256xbf16>,
    %c0_199 = arith.constant 0 : index
    %c0_200 = arith.constant 0 : index
    %644 = vector.load %arg13[%c0_199, %c0_200] : memref<16x256xf32, #tpu.memory_space<vmem>>, vector<16x128xf32>
    tpu.vector_store %arg13[%c0_199, %c0_200], %606 {strides = array<i32>} : memref<16x256xf32, #tpu.memory_space<vmem>>, vector<16x128xf32>,
    %c0_201 = arith.constant 0 : index
    %c128_202 = arith.constant 128 : index
    %645 = vector.load %arg13[%c0_201, %c128_202] : memref<16x256xf32, #tpu.memory_space<vmem>>, vector<16x128xf32>
    tpu.vector_store %arg13[%c0_201, %c128_202], %631 {strides = array<i32>} : memref<16x256xf32, #tpu.memory_space<vmem>>, vector<16x128xf32>,
    %c0_i32_203 = arith.constant 0 : i32
    %646 = arith.cmpi eq, %arg1, %c0_i32_203 : i32
    %647 = arith.extui %646 : i1 to i32
    %c0_i32_204 = arith.constant 0 : i32
    %648 = arith.cmpi ne, %647, %c0_i32_204 : i32
    scf.if %648 {
      %c0_205 = arith.constant 0 : index
      %c0_206 = arith.constant 0 : index
      %649 = vector.load %arg14[%c0_205, %c0_206] : memref<16x128xf32, #tpu.memory_space<vmem>>, vector<16x128xf32>
      %650 = arith.truncf %649 : vector<16x128xf32> to vector<16x128xbf16>
      %c0_207 = arith.constant 0 : index
      %c0_208 = arith.constant 0 : index
      %651 = vector.load %arg7[%c0_207, %c0_208] : memref<256x128xbf16, #tpu.memory_space<vmem>>, vector<128x128xbf16>
      %cst_209 = arith.constant dense<0.000000e+00> : vector<16x128xf32>
      %652 = tpu.matmul %650, %651, %cst_209 {dimension_numbers = #tpu.dot_dimension_numbers<[1], [0], [0], [1], [0, 0, 1, 1], [], []>} : vector<16x128xbf16>, vector<128x128xbf16>, vector<16x128xf32> -> vector<16x128xf32>
      %c0_210 = arith.constant 0 : index
      %c0_211 = arith.constant 0 : index
      %653 = vector.load %arg15[%c0_210, %c0_211] : memref<16x128xf32, #tpu.memory_space<vmem>>, vector<16x128xf32>
      %654 = arith.truncf %653 : vector<16x128xf32> to vector<16x128xbf16>
      %c128_212 = arith.constant 128 : index
      %c0_213 = arith.constant 0 : index
      %655 = vector.load %arg7[%c128_212, %c0_213] : memref<256x128xbf16, #tpu.memory_space<vmem>>, vector<128x128xbf16>
      %cst_214 = arith.constant dense<0.000000e+00> : vector<16x128xf32>
      %656 = tpu.matmul %654, %655, %cst_214 {dimension_numbers = #tpu.dot_dimension_numbers<[1], [0], [0], [1], [0, 0, 1, 1], [], []>} : vector<16x128xbf16>, vector<128x128xbf16>, vector<16x128xf32> -> vector<16x128xf32>
      %657 = arith.addf %652, %656 : vector<16x128xf32>
      %c0_215 = arith.constant 0 : index
      %c0_216 = arith.constant 0 : index
      %658 = vector.load %arg8[%c0_215, %c0_216] : memref<1x128xf32, #tpu.memory_space<vmem>>, vector<1x128xf32>
      %659 = vector.broadcast %658 : vector<1x128xf32> to vector<16x128xf32>
      %660 = arith.addf %657, %659 : vector<16x128xf32>
      %c0_217 = arith.constant 0 : index
      %c0_218 = arith.constant 0 : index
      %661 = vector.load %arg9[%c0_217, %c0_218] : memref<16x128xf32, #tpu.memory_space<vmem>>, vector<16x128xf32>
      tpu.vector_store %arg9[%c0_217, %c0_218], %660 {strides = array<i32>} : memref<16x128xf32, #tpu.memory_space<vmem>>, vector<16x128xf32>,
    } else {
    }
    return
  }
  func.func @transform_0(%arg0: i32, %arg1: i32) -> (i32, i32, i32) {
    %c0_i32 = arith.constant 0 : i32
    %c0_i32_0 = arith.constant 0 : i32
    return %arg1, %arg0, %c0_i32 : i32, i32, i32
  }
  func.func @transform_1(%arg0: i32, %arg1: i32) -> (i32, i32, i32) {
    %c0_i32 = arith.constant 0 : i32
    %0 = arith.subi %c0_i32, %arg1 : i32
    %c0_i32_0 = arith.constant 0 : i32
    %c0_i32_1 = arith.constant 0 : i32
    return %0, %arg0, %c0_i32_0 : i32, i32, i32
  }
  func.func @transform_2(%arg0: i32, %arg1: i32) -> (i32, i32) {
    %c0_i32 = arith.constant 0 : i32
    %c0_i32_0 = arith.constant 0 : i32
    %c0_i32_1 = arith.constant 0 : i32
    return %c0_i32, %c0_i32_0 : i32, i32
  }
  func.func @transform_3(%arg0: i32, %arg1: i32) -> (i32, i32) {
    %c0_i32 = arith.constant 0 : i32
    %c0_i32_0 = arith.constant 0 : i32
    %c0_i32_1 = arith.constant 0 : i32
    return %c0_i32, %c0_i32_0 : i32, i32
  }
  func.func @transform_4(%arg0: i32, %arg1: i32) -> (i32, i32) {
    %c0_i32 = arith.constant 0 : i32
    %c0_i32_0 = arith.constant 0 : i32
    %c0_i32_1 = arith.constant 0 : i32
    return %c0_i32, %c0_i32_0 : i32, i32
  }
  func.func @transform_5(%arg0: i32, %arg1: i32) -> (i32, i32) {
    %c0_i32 = arith.constant 0 : i32
    %c0_i32_0 = arith.constant 0 : i32
    %c0_i32_1 = arith.constant 0 : i32
    return %c0_i32, %c0_i32_0 : i32, i32
  }
  func.func @transform_6(%arg0: i32, %arg1: i32) -> (i32, i32) {
    %c0_i32 = arith.constant 0 : i32
    %c0_i32_0 = arith.constant 0 : i32
    %c0_i32_1 = arith.constant 0 : i32
    return %c0_i32, %c0_i32_0 : i32, i32
  }
  func.func @transform_7(%arg0: i32, %arg1: i32) -> (i32, i32) {
    %c0_i32 = arith.constant 0 : i32
    %c0_i32_0 = arith.constant 0 : i32
    return %arg0, %c0_i32 : i32, i32
  }
}

</mosaic_0001>

<bundles_post_ra>
// kernel: tpu_custom_call.1
= control target key start
LH: loop header
LB: loop body
LE: loop exit
PB: predicated region body
PF: predicated region fallthrough
CT: control target
= control target key end

     0   :  { %12 = vsyncpa [#allocation9], 0  ;;  %s13285_s0 = inlined_call_operand.hbm [shape: bf16[8,16,32], index: 0, kind: input, shape index: {}]   ;;  %s13286_s1 = inlined_call_operand.hbm [shape: bf16[8,16,32], index: 1, kind: input, shape index: {}]   ;;  %s13287_s2 = inlined_call_operand.hbm [shape: bf16[32,1024], index: 2, kind: input, shape index: {}]   ;;  %s13288_s3 = inlined_call_operand.hbm [shape: bf16[256,1024], index: 3, kind: input, shape index: {}]   ;;  %s13289_s4 = inlined_call_operand.vmem [shape: f32[1,1024], index: 4, kind: input, shape index: {}]   ;;  %s13290_s5 = inlined_call_operand.hbm [shape: bf16[256,128], index: 5, kind: input, shape index: {}]   ;;  %s13291_s6 = inlined_call_operand.vmem [shape: f32[1,128], index: 6, kind: input, shape index: {}]   ;;  %s13292_s7 = inlined_call_operand.hbm [shape: f32[16,128], index: 7, kind: output, shape index: {}]  }
   0x1   :  { %13 = vsyncpa [#allocation12], 0 }
   0x2   :  { %14 = vsyncpa [#allocation15], 0 }
   0x3   :  { %15 = vsyncpa [#allocation10], 0  ;;  %s11991_s24 = smov [#allocation11]   ;;  %s11851_s28 = scalar_lea.hbm %s13286_s1, 1024 }
   0x4   :  { %s38_s25 = sshll.u32 %s11991_s24, 4  ;;  %p11852_p0 = scmp.ne.s32.totalorder %s13286_s1, %s11851_s28  ;;  %s39_s25 = int_to_ptr.vmem [resolvable:$true] %s38_s25 }
   0x5   :  { %p11855_p1 = scmp.lt.u32.totalorder %s11851_s28, %s13286_s1 }
   0x7   :  { %p11857_p2 = pnand %p11855_p1, %p11852_p0 }
   0x9   :  { %11860 = shalt.err (!%p11857_p2)
}
   0xa   :  { %s11861_s10 = scalar_lea.vmem %s39_s25, 1024  ;;  %p11866_p4 = scmp.lt.s32.totalorder %s39_s25, %s39_s25 }
   0xb   :  { %p11862_p3 = scmp.ne.s32.totalorder %s39_s25, %s11861_s10  ;;  %p11867_p5 = scmp.lt.s32.totalorder %s11861_s10, %s11861_s10 }
   0xd   :  { %p11868_p6 = por %p11867_p5, %p11866_p4 }
   0xf   :  { %p11869_p7 = pnand %p11868_p6, %p11862_p3 }
  0x11   :  { %11872 = shalt.err (!%p11869_p7)
}
  0x12   :  { %s11992_s11 = smov 64   ;;  %s11993_s12 = smov 4  }
  0x13   :  { %44 = dma.hbm_to_vmem [thread:$0]  %s13286_s1, 1024, %s39_s25, [#allocation12], %s11992_s11, %s11992_s11, %s11993_s12  }
  0x14   :  { %s11994_s15 = smov [#allocation14]   ;;  %s11995_s17 = smov [#allocation8]  }
  0x15   :  { %s62_s16 = sshll.u32 %s11994_s15, 4  ;;  %s21_s18 = sshll.u32 %s11995_s17, 4  ;;  %s63_s16 = int_to_ptr.vmem [resolvable:$true] %s62_s16  ;;  %s22_s18 = int_to_ptr.vmem [resolvable:$true] %s21_s18 }
  0x16   :  { %s11873_s21 = scalar_lea.hbm %s13288_s3, 16384 }
  0x17   :  { %p11874_p8 = scmp.ne.s32.totalorder %s13288_s3, %s11873_s21  ;;  %p11877_p9 = scmp.lt.u32.totalorder %s11873_s21, %s13288_s3 }
  0x19   :  { %p11879_p10 = pnand %p11877_p9, %p11874_p8 }
  0x1b   :  { %11882 = shalt.err (!%p11879_p10)
}
  0x1c   :  { %s11883_s1 = scalar_lea.vmem %s63_s16, 16384  ;;  %p11888_p12 = scmp.lt.s32.totalorder %s63_s16, %s63_s16 }
  0x1d   :  { %p11884_p11 = scmp.ne.s32.totalorder %s63_s16, %s11883_s1  ;;  %p11889_p13 = scmp.lt.s32.totalorder %s11883_s1, %s11883_s1 }
  0x1f   :  { %p11890_p0 = por %p11889_p13, %p11888_p12 }
  0x21   :  { %p11891_p1 = pnand %p11890_p0, %p11884_p11 }
  0x23   :  { %11894 = shalt.err (!%p11891_p1)
}
  0x24   :  { %s11996_s25 = smov 512   ;;  %s11997_s27 = smov 32  }
  0x25   :  { %68 = dma.hbm_to_vmem [thread:$0]  %s13288_s3, 16384, %s63_s16, [#allocation15], %s11996_s25, %s11996_s25, %s11997_s27  }
  0x26   :  { %s11895_s9 = scalar_lea.hbm %s13285_s0, 1024 }
  0x27   :  { %p11896_p2 = scmp.ne.s32.totalorder %s13285_s0, %s11895_s9  ;;  %p11899_p3 = scmp.lt.u32.totalorder %s11895_s9, %s13285_s0 }
  0x29   :  { %p11901_p4 = pnand %p11899_p3, %p11896_p2 }
  0x2b   :  { %11904 = shalt.err (!%p11901_p4)
}
  0x2c   :  { %s11905_s17 = scalar_lea.vmem %s22_s18, 1024  ;;  %p11910_p6 = scmp.lt.s32.totalorder %s22_s18, %s22_s18 }
  0x2d   :  { %p11906_p5 = scmp.ne.s32.totalorder %s22_s18, %s11905_s17  ;;  %p11911_p7 = scmp.lt.s32.totalorder %s11905_s17, %s11905_s17 }
  0x2f   :  { %p11912_p8 = por %p11911_p7, %p11910_p6 }
  0x31   :  { %p11913_p9 = pnand %p11912_p8, %p11906_p5 }
  0x33   :  { %11916 = shalt.err (!%p11913_p9)
}
  0x34   :  { %27 = dma.hbm_to_vmem [thread:$0]  %s13285_s0, 1024, %s22_s18, [#allocation9], %s11992_s11, %s11992_s11, %s11993_s12  }
  0x35   :  { %s11998_s19 = smov [#allocation13]   ;;  %s11999_s21 = smov [#allocation16]  }
  0x36   :  { %s50_s20 = sshll.u32 %s11998_s19, 4  ;;  %s76_s22 = sshll.u32 %s11999_s21, 4  ;;  %s51_s20 = int_to_ptr.vmem [resolvable:$true] %s50_s20  ;;  %s77_s22 = int_to_ptr.vmem [resolvable:$true] %s76_s22 }
  0x37   :  { %s11917_s26 = scalar_lea.hbm %s13287_s2, 2048 }
  0x38   :  { %p11918_p10 = scmp.ne.s32.totalorder %s13287_s2, %s11917_s26  ;;  %p11921_p11 = scmp.lt.u32.totalorder %s11917_s26, %s13287_s2 }
  0x3a   :  { %p11923_p12 = pnand %p11921_p11, %p11918_p10 }
  0x3c   :  { %11926 = shalt.err (!%p11923_p12)
}
  0x3d   :  { %s11927_s0 = scalar_lea.vmem %s51_s20, 2048  ;;  %p11932_p0 = scmp.lt.s32.totalorder %s51_s20, %s51_s20 }
  0x3e   :  { %p11928_p13 = scmp.ne.s32.totalorder %s51_s20, %s11927_s0  ;;  %p11933_p1 = scmp.lt.s32.totalorder %s11927_s0, %s11927_s0 }
  0x40   :  { %p11934_p2 = por %p11933_p1, %p11932_p0 }
  0x42   :  { %p11935_p3 = pnand %p11934_p2, %p11928_p13 }
  0x44   :  { %11938 = shalt.err (!%p11935_p3)
}
  0x45   :  { %56 = dma.hbm_to_vmem [thread:$0]  %s13287_s2, 2048, %s51_s20, [#allocation12], %s11996_s25, %s11996_s25, %s11997_s27  }
  0x46   :  { %s11939_s13 = scalar_lea.hbm %s13290_s5, 2048 }
  0x47   :  { %p11940_p4 = scmp.ne.s32.totalorder %s13290_s5, %s11939_s13  ;;  %p11943_p5 = scmp.lt.u32.totalorder %s11939_s13, %s13290_s5 }
  0x49   :  { %p11945_p6 = pnand %p11943_p5, %p11940_p4 }
  0x4b   :  { %11948 = shalt.err (!%p11945_p6)
}
  0x4c   :  { %s11949_s16 = scalar_lea.vmem %s77_s22, 2048  ;;  %p11954_p8 = scmp.lt.s32.totalorder %s77_s22, %s77_s22 }
  0x4d   :  { %p11950_p7 = scmp.ne.s32.totalorder %s77_s22, %s11949_s16  ;;  %p11955_p9 = scmp.lt.s32.totalorder %s11949_s16, %s11949_s16 }
  0x4f   :  { %p11956_p10 = por %p11955_p9, %p11954_p8 }
  0x51   :  { %p11957_p11 = pnand %p11956_p10, %p11950_p7 }
  0x53   :  { %11960 = shalt.err (!%p11957_p11)
}
  0x54   :  { %82 = dma.hbm_to_vmem [thread:$0]  %s13290_s5, 2048, %s77_s22, [#allocation15], %s11992_s11, %s11992_s11, %s11993_s12  }
  0x55   :  { %11983 = dma.done.wait [#allocation9], 1024  }
  0x56   :  { %11984 = vsyncadd [#allocation9], 4294966272 }
  0x57   :  { %11985 = dma.done.wait [#allocation12], 3072  }
  0x58   :  { %11986 = vsyncadd [#allocation12], 4294964224 }
  0x59   :  { %11987 = dma.done.wait [#allocation15], 18432  }
  0x5a   :  { %11988 = vsyncadd [#allocation15], 4294948864  ;;  %v12000_v0 = vmov 0   ;;  %v149_v1 = vld [vmem:[#allocation13] sm:$0xff]  ;;  %v150_v3 = vld [vmem:[#allocation13 + $0x8] sm:$0xff]  ;;  %vm237_vm0 = vcmask 261120  }
  0x5b   :  { %294 = vmatprep.mubr.bf16.mxu0 %v12000_v0  ;;  %407 = vmatprep.mubr.bf16.mxu1 %v12000_v0  ;;  %v151_v2 = vld [vmem:[#allocation13 + $0x20] sm:$0xff]  ;;  %v152_v5 = vld [vmem:[#allocation13 + $0x28] sm:$0xff]  ;;  %v552_v15 = vld [vmem:[#allocation13 + $0x10] sm:$0xff]  ;;  %vm12002_vm1 = vmmov 0   ;;  %s12003_s27 = smov [#allocation17]  }
  0x5c   :  { %v10042_v4 = vcombine.high %v149_v1, %v151_v2  ;;  %v10041_v6 = vcombine.low %v149_v1, %v151_v2  ;;  %v153_v7 = vld [vmem:[#allocation13 + $0x40] sm:$0xff]  ;;  %v10044_v9 = vcombine.high %v150_v3, %v152_v5  ;;  %v10043_v10 = vcombine.low %v150_v3, %v152_v5  ;;  %v154_v12 = vld [vmem:[#allocation13 + $0x48] sm:$0xff]  ;;  %v554_v17 = vld [vmem:[#allocation13 + $0x30] sm:$0xff]  ;;  %s10003_s19 = sshll.u32 %s12003_s27, 4  ;;  %s10004_s19 = int_to_ptr.vmem [resolvable:$true] %s10003_s19 }
  0x5d   :  { %v155_v8 = vld [vmem:[#allocation13 + $0x60] sm:$0xff]  ;;  %v156_v13 = vld [vmem:[#allocation13 + $0x68] sm:$0xff]  ;;  %v10074_v19 = vcombine.high %v552_v15, %v554_v17  ;;  %v553_v20 = vld [vmem:[#allocation13 + $0x18] sm:$0xff]  ;;  %v10073_v24 = vcombine.low %v552_v15, %v554_v17  ;;  %s11961_s20 = scalar_lea.vmem %s10004_s19, 256  ;;  %p11966_p13 = scmp.lt.s32.totalorder %s10004_s19, %s10004_s19 }
  0x5e   :  { %v10046_v11 = vcombine.high %v153_v7, %v155_v8  ;;  %262 = vmatprep.subr.bf16.mxu0 %v10042_v4  ;;  %v10048_v14 = vcombine.high %v154_v12, %v156_v13  ;;  %375 = vmatprep.subr.bf16.mxu1 %v10044_v9  ;;  %v10045_v16 = vcombine.low %v153_v7, %v155_v8  ;;  %v555_v21 = vld [vmem:[#allocation13 + $0x38] sm:$0xff]  ;;  %v11307_v23 = vld [vmem:[#allocation8] sm:$0xff]   ;;  %v556_v25 = vld [vmem:[#allocation13 + $0x50] sm:$0xff]  ;;  %p11962_p12 = scmp.ne.s32.totalorder %s10004_s19, %s11961_s20  ;;  %p11967_p0 = scmp.lt.s32.totalorder %s11961_s20, %s11961_s20 }
  0x5f   :  { %263 = vmatpush1.bf16.msra.mxu0 %v10041_v6  ;;  %376 = vmatpush1.bf16.msra.mxu1 %v10043_v10  ;;  %v10047_v18 = vcombine.low %v154_v12, %v156_v13  ;;  %v10076_v22 = vcombine.high %v553_v20, %v555_v21  ;;  %v558_v26 = vld [vmem:[#allocation13 + $0x70] sm:$0xff]  ;;  %v10075_v27 = vcombine.low %v553_v20, %v555_v21  ;;  %v557_v29 = vld [vmem:[#allocation13 + $0x58] sm:$0xff]  ;;  %v12127_v33 = vld [vmem:[#allocation14] sm:$0xff] }
  0x60   :  { %264 = vmatprep.subr.bf16.mxu0 %v10046_v11  ;;  %377 = vmatprep.subr.bf16.mxu1 %v10048_v14  ;;  %v10078_v28 = vcombine.high %v556_v25, %v558_v26  ;;  %v559_v30 = vld [vmem:[#allocation13 + $0x78] sm:$0xff]  ;;  %v10077_v31 = vcombine.low %v556_v25, %v558_v26  ;;  %v12129_v34 = vld [vmem:[#allocation14 + $0x20] sm:$0xff]  ;;  %v962_v37 = vld [vmem:[#allocation14 + $0x8] sm:$0xff]  ;;  %p11968_p1 = por %p11967_p0, %p11966_p13 }
  0x61   :  { %v10080_v32 = vcombine.high %v557_v29, %v559_v30  ;;  %v10079_v35 = vcombine.low %v557_v29, %v559_v30  ;;  %v10098_v36 = vcombine.high %v12127_v33, %v12129_v34  ;;  %v966_v38 = vld [vmem:[#allocation14 + $0x28] sm:$0xff]  ;;  %v11309_v41 = vld [vmem:[#allocation8 + $0x10] sm:$0xff]   ;;  %v11310_v42 = vld [vmem:[#allocation8 + $0x18] sm:$0xff]   ;;  %v10097_v52 = vcombine.low %v12127_v33, %v12129_v34 }
  0x62   :  { %v11308_v39 = vld [vmem:[#allocation8 + $0x8] sm:$0xff]   ;;  %v10100_v40 = vcombine.high %v962_v37, %v966_v38  ;;  %v11311_v43 = vld [vmem:[#allocation8 + $0x20] sm:$0xff]   ;;  %v11313_v45 = vld [vmem:[#allocation8 + $0x30] sm:$0xff]   ;;  %v10099_v54 = vcombine.low %v962_v37, %v966_v38  ;;  %p11969_p2 = pnand %p11968_p1, %p11962_p12 }
  0x63   :  { %265 = vmatpush1.bf16.msra.mxu0 %v10045_v16  ;;  %378 = vmatpush1.bf16.msra.mxu1 %v10047_v18  ;;  %v11312_v44 = vld [vmem:[#allocation8 + $0x28] sm:$0xff]   ;;  %v11314_v46 = vld [vmem:[#allocation8 + $0x38] sm:$0xff]   ;;  %v11315_v47 = vld [vmem:[#allocation11] sm:$0xff]  }
  0x64   :  { %664 = vmatprep.subr.bf16.mxu0 %v10074_v19  ;;  %777 = vmatprep.subr.bf16.mxu1 %v10076_v22  ;;  %v969_v48 = vld [vmem:[#allocation14 + $0x40] sm:$0xff]  ;;  %v970_v50 = vld [vmem:[#allocation14 + $0x48] sm:$0xff]  ;;  %v11317_v20 = vld [vmem:[#allocation11 + $0x10] sm:$0xff]  }
  0x65   :  { %v973_v49 = vld [vmem:[#allocation14 + $0x60] sm:$0xff]  ;;  %v974_v51 = vld [vmem:[#allocation14 + $0x68] sm:$0xff]  ;;  %v11318_v37 = vld [vmem:[#allocation11 + $0x18] sm:$0xff]  }
  0x66   :  { %10049 = vmatmul.mubr.msk.bf16.vlgmr.msra.gmra.mrb[0].mxu0 %vm237_vm0, %v11307_v23  ;;  %10057 = vmatmul.mubr.msk.bf16.vlgmr.msra.gmra.mrb[0].mxu1 %vm237_vm0, %v11307_v23  ;;  %v977_v53 = vld [vmem:[#allocation14 + $0x80] sm:$0xff]  ;;  %v10106_v55 = vcombine.high %v969_v48, %v973_v49  ;;  %v10108_v56 = vcombine.high %v970_v50, %v974_v51  ;;  %v978_v58 = vld [vmem:[#allocation14 + $0x88] sm:$0xff]  ;;  %v10105_v60 = vcombine.low %v969_v48, %v973_v49 }
  0x67   :  { %665 = vmatpush1.bf16.msra.mxu0 %v10073_v24  ;;  %304 = vmatprep.mubr.bf16.mxu0 %v12000_v0  ;;  %v981_v57 = vld [vmem:[#allocation14 + $0xa0] sm:$0xff]  ;;  %v982_v59 = vld [vmem:[#allocation14 + $0xa8] sm:$0xff]  ;;  %v10107_v61 = vcombine.low %v970_v50, %v974_v51 }
  0x68   :  { %417 = vmatprep.mubr.bf16.mxu1 %v12000_v0  ;;  %778 = vmatpush1.bf16.msra.mxu1 %v10075_v27  ;;  %v10114_v62 = vcombine.high %v977_v53, %v981_v57  ;;  %v10116_v63 = vcombine.high %v978_v58, %v982_v59  ;;  %v985_v1 = vld [vmem:[#allocation14 + $0xc0] sm:$0xff]  ;;  %v11316_v3 = vld [vmem:[#allocation11 + $0x8] sm:$0xff]   ;;  %v10113_v6 = vcombine.low %v977_v53, %v981_v57 }
  0x69   :  { %666 = vmatprep.subr.bf16.mxu0 %v10078_v28  ;;  %779 = vmatprep.subr.bf16.mxu1 %v10080_v32  ;;  %v989_v2 = vld [vmem:[#allocation14 + $0xe0] sm:$0xff]  ;;  %v986_v4 = vld [vmem:[#allocation14 + $0xc8] sm:$0xff]  ;;  %v10115_v7 = vcombine.low %v978_v58, %v982_v59 }
  0x6a   :  { %v990_v5 = vld [vmem:[#allocation14 + $0xe8] sm:$0xff]  ;;  %v10122_v8 = vcombine.high %v985_v1, %v989_v2  ;;  %v993_v10 = vld [vmem:[#allocation14 + $0x100] sm:$0xff]  ;;  %v10121_v14 = vcombine.low %v985_v1, %v989_v2 }
  0x6b   :  { %667 = vmatpush1.bf16.msra.mxu0 %v10077_v31  ;;  %v10124_v9 = vcombine.high %v986_v4, %v990_v5  ;;  %v997_v11 = vld [vmem:[#allocation14 + $0x120] sm:$0xff]  ;;  %v994_v12 = vld [vmem:[#allocation14 + $0x108] sm:$0xff]  ;;  %v10123_v15 = vcombine.low %v986_v4, %v990_v5 }
  0x6c   :  { %1770 = vmatprep.subr.bf16.mxu0 %v10098_v36  ;;  %780 = vmatpush1.bf16.msra.mxu1 %v10079_v35  ;;  %v998_v13 = vld [vmem:[#allocation14 + $0x128] sm:$0xff]  ;;  %v10130_v16 = vcombine.high %v993_v10, %v997_v11  ;;  %v1001_v18 = vld [vmem:[#allocation14 + $0x140] sm:$0xff]  ;;  %v10129_v23 = vcombine.low %v993_v10, %v997_v11 }
  0x6d   :  { %1813 = vmatprep.subr.bf16.mxu1 %v10100_v40  ;;  %v10132_v17 = vcombine.high %v994_v12, %v998_v13  ;;  %v1005_v19 = vld [vmem:[#allocation14 + $0x160] sm:$0xff]  ;;  %v1002_v21 = vld [vmem:[#allocation14 + $0x148] sm:$0xff]  ;;  %v10131_v24 = vcombine.low %v994_v12, %v998_v13 }
  0x6e   :  { %10050 = vmatmul.mubr.msk.bf16.gmra.mrb[4].mxu0 %vm237_vm0, %v11308_v39  ;;  %10058 = vmatmul.mubr.msk.bf16.gmra.mrb[4].mxu1 %vm237_vm0, %v11308_v39  ;;  %v1006_v22 = vld [vmem:[#allocation14 + $0x168] sm:$0xff]  ;;  %v10138_v25 = vcombine.high %v1001_v18, %v1005_v19  ;;  %v1009_v27 = vld [vmem:[#allocation14 + $0x180] sm:$0xff]  ;;  %v10137_v31 = vcombine.low %v1001_v18, %v1005_v19 }
  0x6f   :  { %314 = vmatprep.mubr.bf16.mxu0 %v12000_v0  ;;  %427 = vmatprep.mubr.bf16.mxu1 %v12000_v0  ;;  %v10140_v26 = vcombine.high %v1002_v21, %v1006_v22  ;;  %v1013_v28 = vld [vmem:[#allocation14 + $0x1a0] sm:$0xff]  ;;  %v1010_v29 = vld [vmem:[#allocation14 + $0x188] sm:$0xff]  ;;  %v10139_v32 = vcombine.low %v1002_v21, %v1006_v22 }
  0x70   :  { %v1014_v30 = vld [vmem:[#allocation14 + $0x1a8] sm:$0xff]  ;;  %v10146_v33 = vcombine.high %v1009_v27, %v1013_v28  ;;  %v1017_v35 = vld [vmem:[#allocation14 + $0x1c0] sm:$0xff]  ;;  %v10145_v40 = vcombine.low %v1009_v27, %v1013_v28 }
  0x71   :  { %v10148_v34 = vcombine.high %v1010_v29, %v1014_v30  ;;  %v1021_v36 = vld [vmem:[#allocation14 + $0x1e0] sm:$0xff]  ;;  %v1018_v38 = vld [vmem:[#allocation14 + $0x1c8] sm:$0xff] }
  0x72   :  { %v1022_v39 = vld [vmem:[#allocation14 + $0x1e8] sm:$0xff]  ;;  %v10153_v48 = vcombine.low %v1017_v35, %v1021_v36  ;;  %v1037_v53 = vld [vmem:[#allocation14 + $0x260] sm:$0xff] }
  0x73   :  { %v10155_v49 = vcombine.low %v1018_v38, %v1022_v39  ;;  %v1046_v1 = vld [vmem:[#allocation14 + $0x2a8] sm:$0xff] }
  0x74   :  { %v1054_v10 = vld [vmem:[#allocation14 + $0x2e8] sm:$0xff] }
  0x75   :  { %v1062_v18 = vld [vmem:[#allocation14 + $0x328] sm:$0xff] }
  0x76   :  { %10051 = vmatmul.mubr.msk.bf16.gmra.mrb[8].mxu0 %vm237_vm0, %v11309_v41  ;;  %10059 = vmatmul.mubr.msk.bf16.gmra.mrb[8].mxu1 %vm237_vm0, %v11309_v41  ;;  %v10147_v41 = vcombine.low %v1010_v29, %v1014_v30  ;;  %v1070_v27 = vld [vmem:[#allocation14 + $0x368] sm:$0xff] }
  0x77   :  { %324 = vmatprep.mubr.bf16.mxu0 %v12000_v0  ;;  %437 = vmatprep.mubr.bf16.mxu1 %v12000_v0 }
  0x7e   :  { %10052 = vmatmul.mubr.msk.bf16.gmra.mrb[12].mxu0 %vm237_vm0, %v11310_v42  ;;  %10060 = vmatmul.mubr.msk.bf16.gmra.mrb[12].mxu1 %vm237_vm0, %v11310_v42  ;;  %v10154_v42 = vcombine.high %v1017_v35, %v1021_v36  ;;  %v1078_v35 = vld [vmem:[#allocation14 + $0x3a8] sm:$0xff] }
  0x7f   :  { %334 = vmatprep.mubr.bf16.mxu0 %v12000_v0  ;;  %447 = vmatprep.mubr.bf16.mxu1 %v12000_v0 }
  0x86   :  { %10053 = vmatmul.mubr.msk.bf16.gmra.mrb[16].mxu0 %vm237_vm0, %v11311_v43  ;;  %10061 = vmatmul.mubr.msk.bf16.gmra.mrb[16].mxu1 %vm237_vm0, %v11311_v43  ;;  %v10156_v43 = vcombine.high %v1018_v38, %v1022_v39 }
  0x87   :  { %344 = vmatprep.mubr.bf16.mxu0 %v12000_v0  ;;  %457 = vmatprep.mubr.bf16.mxu1 %v12000_v0 }
  0x8e   :  { %10054 = vmatmul.mubr.msk.bf16.gmra.mrb[20].mxu0 %vm237_vm0, %v11312_v44  ;;  %10062 = vmatmul.mubr.msk.bf16.gmra.mrb[20].mxu1 %vm237_vm0, %v11312_v44  ;;  %v1025_v44 = vld [vmem:[#allocation14 + $0x200] sm:$0xff] }
  0x8f   :  { %354 = vmatprep.mubr.bf16.mxu0 %v12000_v0  ;;  %467 = vmatprep.mubr.bf16.mxu1 %v12000_v0 }
  0x96   :  { %10055 = vmatmul.mubr.msk.bf16.gmra.mrb[24].mxu0 %vm237_vm0, %v11313_v45  ;;  %10063 = vmatmul.mubr.msk.bf16.gmra.mrb[24].mxu1 %vm237_vm0, %v11313_v45  ;;  %v1029_v45 = vld [vmem:[#allocation14 + $0x220] sm:$0xff] }
  0x97   :  { %364 = vmatprep.mubr.bf16.mxu0 %v12000_v0  ;;  %477 = vmatprep.mubr.bf16.mxu1 %v12000_v0  ;;  %v10162_v50 = vcombine.high %v1025_v44, %v1029_v45  ;;  %v10161_v57 = vcombine.low %v1025_v44, %v1029_v45  ;;  %v1086_v44 = vld [vmem:[#allocation14 + $0x3e8] sm:$0xff] }
  0x9e   :  { %10056 = vmatmul.mubr.msk.bf16.gmra.mrb[28].mxu0 %vm237_vm0, %v11314_v46  ;;  %10064 = vmatmul.mubr.msk.bf16.gmra.mrb[28].mxu1 %vm237_vm0, %v11314_v46  ;;  %v1026_v46 = vld [vmem:[#allocation14 + $0x208] sm:$0xff] }
  0x9f   :  { %696 = vmatprep.mubr.bf16.mxu0 %v12000_v0  ;;  %809 = vmatprep.mubr.bf16.mxu1 %v12000_v0 }
  0xa6   :  { %10081 = vmatmul.mubr.msk.bf16.vlgmr.msra.gmra.mrb[32].mxu0 %vm237_vm0, %v11315_v47  ;;  %10089 = vmatmul.mubr.msk.bf16.vlgmr.msra.gmra.mrb[32].mxu1 %vm237_vm0, %v11315_v47  ;;  %v1030_v47 = vld [vmem:[#allocation14 + $0x228] sm:$0xff] }
  0xa7   :  { %1771 = vmatpush1.bf16.msra.mxu0 %v10097_v52  ;;  %1814 = vmatpush1.bf16.msra.mxu1 %v10099_v54  ;;  %v10164_v51 = vcombine.high %v1026_v46, %v1030_v47  ;;  %v1033_v52 = vld [vmem:[#allocation14 + $0x240] sm:$0xff]  ;;  %v10163_v58 = vcombine.low %v1026_v46, %v1030_v47 }
  0xa8   :  { %1772 = vmatprep.subr.bf16.mxu0 %v10106_v55  ;;  %1815 = vmatprep.subr.bf16.mxu1 %v10108_v56  ;;  %v11319_v54 = vld [vmem:[#allocation11 + $0x20] sm:$0xff]   ;;  %v1034_v55 = vld [vmem:[#allocation14 + $0x248] sm:$0xff]  ;;  %v10170_v59 = vcombine.high %v1033_v52, %v1037_v53  ;;  %v10169_v2 = vcombine.low %v1033_v52, %v1037_v53  ;;  %v968_v52 = vld [vmem:[#allocation14 + $0x38] sm:$0xff] }
  0xa9   :  { %706 = vmatprep.mubr.bf16.mxu0 %v12000_v0  ;;  %819 = vmatprep.mubr.bf16.mxu1 %v12000_v0  ;;  %v1038_v56 = vld [vmem:[#allocation14 + $0x268] sm:$0xff] }
  0xab   :  { %1773 = vmatpush1.bf16.msra.mxu0 %v10105_v60  ;;  %1816 = vmatpush1.bf16.msra.mxu1 %v10107_v61  ;;  %v10172_v60 = vcombine.high %v1034_v55, %v1038_v56  ;;  %v1041_v61 = vld [vmem:[#allocation14 + $0x280] sm:$0xff] }
  0xac   :  { %1774 = vmatprep.subr.bf16.mxu0 %v10114_v62  ;;  %1817 = vmatprep.subr.bf16.mxu1 %v10116_v63  ;;  %v1045_v62 = vld [vmem:[#allocation14 + $0x2a0] sm:$0xff]  ;;  %v1042_v63 = vld [vmem:[#allocation14 + $0x288] sm:$0xff] }
  0xad   :  { %v10178_v4 = vcombine.high %v1041_v61, %v1045_v62  ;;  %v10180_v5 = vcombine.high %v1042_v63, %v1046_v1  ;;  %v10177_v11 = vcombine.low %v1041_v61, %v1045_v62  ;;  %v10179_v12 = vcombine.low %v1042_v63, %v1046_v1 }
  0xae   :  { %10082 = vmatmul.mubr.msk.bf16.gmra.mrb[36].mxu0 %vm237_vm0, %v11316_v3  ;;  %10090 = vmatmul.mubr.msk.bf16.gmra.mrb[36].mxu1 %vm237_vm0, %v11316_v3  ;;  %v10171_v3 = vcombine.low %v1034_v55, %v1038_v56 }
  0xaf   :  { %1775 = vmatpush1.bf16.msra.mxu0 %v10113_v6  ;;  %1818 = vmatpush1.bf16.msra.mxu1 %v10115_v7  ;;  %v1049_v6 = vld [vmem:[#allocation14 + $0x2c0] sm:$0xff] }
  0xb0   :  { %1776 = vmatprep.subr.bf16.mxu0 %v10122_v8  ;;  %1819 = vmatprep.subr.bf16.mxu1 %v10124_v9  ;;  %v1053_v7 = vld [vmem:[#allocation14 + $0x2e0] sm:$0xff]  ;;  %v11320_v8 = vld [vmem:[#allocation11 + $0x28] sm:$0xff]  }
  0xb1   :  { %716 = vmatprep.mubr.bf16.mxu0 %v12000_v0  ;;  %829 = vmatprep.mubr.bf16.mxu1 %v12000_v0  ;;  %v1050_v9 = vld [vmem:[#allocation14 + $0x2c8] sm:$0xff]  ;;  %v10186_v13 = vcombine.high %v1049_v6, %v1053_v7  ;;  %v10185_v19 = vcombine.low %v1049_v6, %v1053_v7 }
  0xb3   :  { %1777 = vmatpush1.bf16.msra.mxu0 %v10121_v14  ;;  %1820 = vmatpush1.bf16.msra.mxu1 %v10123_v15  ;;  %v10188_v14 = vcombine.high %v1050_v9, %v1054_v10  ;;  %v1057_v15 = vld [vmem:[#allocation14 + $0x300] sm:$0xff] }
  0xb4   :  { %1778 = vmatprep.subr.bf16.mxu0 %v10130_v16  ;;  %1821 = vmatprep.subr.bf16.mxu1 %v10132_v17  ;;  %v1061_v16 = vld [vmem:[#allocation14 + $0x320] sm:$0xff]  ;;  %v1058_v17 = vld [vmem:[#allocation14 + $0x308] sm:$0xff] }
  0xb5   :  { %v10194_v21 = vcombine.high %v1057_v15, %v1061_v16  ;;  %v10196_v22 = vcombine.high %v1058_v17, %v1062_v18  ;;  %v10193_v28 = vcombine.low %v1057_v15, %v1061_v16  ;;  %v10195_v29 = vcombine.low %v1058_v17, %v1062_v18  ;;  %v995_v18 = vld [vmem:[#allocation14 + $0x110] sm:$0xff] }
  0xb6   :  { %10083 = vmatmul.mubr.msk.bf16.gmra.mrb[40].mxu0 %vm237_vm0, %v11317_v20  ;;  %10091 = vmatmul.mubr.msk.bf16.gmra.mrb[40].mxu1 %vm237_vm0, %v11317_v20  ;;  %v10187_v20 = vcombine.low %v1050_v9, %v1054_v10  ;;  %v987_v10 = vld [vmem:[#allocation14 + $0xd0] sm:$0xff] }
  0xb7   :  { %1779 = vmatpush1.bf16.msra.mxu0 %v10129_v23  ;;  %1822 = vmatpush1.bf16.msra.mxu1 %v10131_v24  ;;  %v1065_v23 = vld [vmem:[#allocation14 + $0x340] sm:$0xff] }
  0xb8   :  { %1780 = vmatprep.subr.bf16.mxu0 %v10138_v25  ;;  %1823 = vmatprep.subr.bf16.mxu1 %v10140_v26  ;;  %v1069_v24 = vld [vmem:[#allocation14 + $0x360] sm:$0xff]  ;;  %v11321_v25 = vld [vmem:[#allocation11 + $0x30] sm:$0xff]   ;;  %v1066_v26 = vld [vmem:[#allocation14 + $0x348] sm:$0xff] }
  0xb9   :  { %726 = vmatprep.mubr.bf16.mxu0 %v12000_v0  ;;  %839 = vmatprep.mubr.bf16.mxu1 %v12000_v0  ;;  %v10202_v30 = vcombine.high %v1065_v23, %v1069_v24  ;;  %v10201_v36 = vcombine.low %v1065_v23, %v1069_v24 }
  0xbb   :  { %1781 = vmatpush1.bf16.msra.mxu0 %v10137_v31  ;;  %1824 = vmatpush1.bf16.msra.mxu1 %v10139_v32  ;;  %v10204_v31 = vcombine.high %v1066_v26, %v1070_v27  ;;  %v1073_v32 = vld [vmem:[#allocation14 + $0x380] sm:$0xff] }
  0xbc   :  { %1782 = vmatprep.subr.bf16.mxu0 %v10146_v33  ;;  %1825 = vmatprep.subr.bf16.mxu1 %v10148_v34  ;;  %v1077_v33 = vld [vmem:[#allocation14 + $0x3a0] sm:$0xff]  ;;  %v1074_v34 = vld [vmem:[#allocation14 + $0x388] sm:$0xff] }
  0xbd   :  { %v10210_v38 = vcombine.high %v1073_v32, %v1077_v33  ;;  %v10212_v39 = vcombine.high %v1074_v34, %v1078_v35  ;;  %v10209_v45 = vcombine.low %v1073_v32, %v1077_v33  ;;  %v10211_v46 = vcombine.low %v1074_v34, %v1078_v35  ;;  %v1011_v34 = vld [vmem:[#allocation14 + $0x190] sm:$0xff] }
  0xbe   :  { %10084 = vmatmul.mubr.msk.bf16.gmra.mrb[44].mxu0 %vm237_vm0, %v11318_v37  ;;  %10092 = vmatmul.mubr.msk.bf16.gmra.mrb[44].mxu1 %vm237_vm0, %v11318_v37  ;;  %v10203_v37 = vcombine.low %v1066_v26, %v1070_v27  ;;  %v1003_v26 = vld [vmem:[#allocation14 + $0x150] sm:$0xff] }
  0xbf   :  { %1783 = vmatpush1.bf16.msra.mxu0 %v10145_v40  ;;  %1826 = vmatpush1.bf16.msra.mxu1 %v10147_v41  ;;  %v1081_v40 = vld [vmem:[#allocation14 + $0x3c0] sm:$0xff]  ;;  %v1007_v27 = vld [vmem:[#allocation14 + $0x170] sm:$0xff] }
  0xc0   :  { %1784 = vmatprep.subr.bf16.mxu0 %v10154_v42  ;;  %1827 = vmatprep.subr.bf16.mxu1 %v10156_v43  ;;  %v1085_v41 = vld [vmem:[#allocation14 + $0x3e0] sm:$0xff]  ;;  %v11322_v42 = vld [vmem:[#allocation11 + $0x38] sm:$0xff]   ;;  %v1082_v43 = vld [vmem:[#allocation14 + $0x3c8] sm:$0xff]  ;;  %v10142_v32 = vcombine.high %v1003_v26, %v1007_v27 }
  0xc1   :  { %736 = vmatprep.mubr.bf16.mxu0 %v12000_v0  ;;  %849 = vmatprep.mubr.bf16.mxu1 %v12000_v0  ;;  %v10218_v47 = vcombine.high %v1081_v40, %v1085_v41  ;;  %v10217_v53 = vcombine.low %v1081_v40, %v1085_v41  ;;  %v1015_v35 = vld [vmem:[#allocation14 + $0x1b0] sm:$0xff] }
  0xc2   :  { %v10150_v40 = vcombine.high %v1011_v34, %v1015_v35 }
  0xc3   :  { %1785 = vmatpush1.bf16.msra.mxu0 %v10153_v48  ;;  %1828 = vmatpush1.bf16.msra.mxu1 %v10155_v49  ;;  %v10220_v48 = vcombine.high %v1082_v43, %v1086_v44  ;;  %v963_v49 = vld [vmem:[#allocation14 + $0x10] sm:$0xff] }
  0xc4   :  { %1786 = vmatprep.subr.bf16.mxu0 %v10162_v50  ;;  %1829 = vmatprep.subr.bf16.mxu1 %v10164_v51  ;;  %v967_v50 = vld [vmem:[#allocation14 + $0x30] sm:$0xff]  ;;  %v964_v51 = vld [vmem:[#allocation14 + $0x18] sm:$0xff] }
  0xc5   :  { %v10102_v55 = vcombine.high %v963_v49, %v967_v50  ;;  %v10104_v56 = vcombine.high %v964_v51, %v968_v52  ;;  %v10101_v61 = vcombine.low %v963_v49, %v967_v50  ;;  %v10103_v62 = vcombine.low %v964_v51, %v968_v52  ;;  %v1027_v50 = vld [vmem:[#allocation14 + $0x210] sm:$0xff]  ;;  %v1028_v52 = vld [vmem:[#allocation14 + $0x218] sm:$0xff] }
  0xc6   :  { %10085 = vmatmul.mubr.msk.bf16.gmra.mrb[48].mxu0 %vm237_vm0, %v11319_v54  ;;  %10093 = vmatmul.mubr.msk.bf16.gmra.mrb[48].mxu1 %vm237_vm0, %v11319_v54  ;;  %v10219_v54 = vcombine.low %v1082_v43, %v1086_v44  ;;  %v1023_v43 = vld [vmem:[#allocation14 + $0x1f0] sm:$0xff]  ;;  %v1020_v44 = vld [vmem:[#allocation14 + $0x1d8] sm:$0xff] }
  0xc7   :  { %1787 = vmatpush1.bf16.msra.mxu0 %v10161_v57  ;;  %1830 = vmatpush1.bf16.msra.mxu1 %v10163_v58  ;;  %v971_v57 = vld [vmem:[#allocation14 + $0x50] sm:$0xff] }
  0xc8   :  { %1788 = vmatprep.subr.bf16.mxu0 %v10170_v59  ;;  %1831 = vmatprep.subr.bf16.mxu1 %v10172_v60  ;;  %v975_v58 = vld [vmem:[#allocation14 + $0x70] sm:$0xff]  ;;  %v972_v59 = vld [vmem:[#allocation14 + $0x58] sm:$0xff] }
  0xc9   :  { %746 = vmatprep.mubr.bf16.mxu0 %v12000_v0  ;;  %859 = vmatprep.mubr.bf16.mxu1 %v12000_v0  ;;  %v976_v60 = vld [vmem:[#allocation14 + $0x78] sm:$0xff]  ;;  %v10110_v63 = vcombine.high %v971_v57, %v975_v58  ;;  %v10109_v6 = vcombine.low %v971_v57, %v975_v58  ;;  %v1031_v51 = vld [vmem:[#allocation14 + $0x230] sm:$0xff] }
  0xca   :  { %v10112_v1 = vcombine.high %v972_v59, %v976_v60  ;;  %v10111_v7 = vcombine.low %v972_v59, %v976_v60  ;;  %v1035_v58 = vld [vmem:[#allocation14 + $0x250] sm:$0xff]  ;;  %v1036_v60 = vld [vmem:[#allocation14 + $0x258] sm:$0xff] }
  0xcb   :  { %1789 = vmatpush1.bf16.msra.mxu0 %v10169_v2  ;;  %1832 = vmatpush1.bf16.msra.mxu1 %v10171_v3  ;;  %v979_v2 = vld [vmem:[#allocation14 + $0x90] sm:$0xff] }
  0xcc   :  { %1790 = vmatprep.subr.bf16.mxu0 %v10178_v4  ;;  %1833 = vmatprep.subr.bf16.mxu1 %v10180_v5  ;;  %v983_v3 = vld [vmem:[#allocation14 + $0xb0] sm:$0xff]  ;;  %v980_v4 = vld [vmem:[#allocation14 + $0x98] sm:$0xff] }
  0xcd   :  { %v984_v5 = vld [vmem:[#allocation14 + $0xb8] sm:$0xff]  ;;  %v1039_v59 = vld [vmem:[#allocation14 + $0x270] sm:$0xff] }
  0xce   :  { %10086 = vmatmul.mubr.msk.bf16.gmra.mrb[52].mxu0 %vm237_vm0, %v11320_v8  ;;  %10094 = vmatmul.mubr.msk.bf16.gmra.mrb[52].mxu1 %vm237_vm0, %v11320_v8  ;;  %v10118_v8 = vcombine.high %v979_v2, %v983_v3  ;;  %v10120_v9 = vcombine.high %v980_v4, %v984_v5  ;;  %v10119_v15 = vcombine.low %v980_v4, %v984_v5  ;;  %v1047_v4 = vld [vmem:[#allocation14 + $0x2b0] sm:$0xff]  ;;  %v1044_v5 = vld [vmem:[#allocation14 + $0x298] sm:$0xff] }
  0xcf   :  { %1791 = vmatpush1.bf16.msra.mxu0 %v10177_v11  ;;  %1834 = vmatpush1.bf16.msra.mxu1 %v10179_v12  ;;  %v991_v11 = vld [vmem:[#allocation14 + $0xf0] sm:$0xff]  ;;  %v988_v12 = vld [vmem:[#allocation14 + $0xd8] sm:$0xff] }
  0xd0   :  { %1792 = vmatprep.subr.bf16.mxu0 %v10186_v13  ;;  %1835 = vmatprep.subr.bf16.mxu1 %v10188_v14  ;;  %v992_v13 = vld [vmem:[#allocation14 + $0xf8] sm:$0xff]  ;;  %v10117_v14 = vcombine.low %v979_v2, %v983_v3  ;;  %v10126_v16 = vcombine.high %v987_v10, %v991_v11  ;;  %v1043_v3 = vld [vmem:[#allocation14 + $0x290] sm:$0xff] }
  0xd1   :  { %756 = vmatprep.mubr.bf16.mxu0 %v12000_v0  ;;  %869 = vmatprep.mubr.bf16.mxu1 %v12000_v0  ;;  %v10128_v17 = vcombine.high %v988_v12, %v992_v13  ;;  %v10127_v23 = vcombine.low %v988_v12, %v992_v13  ;;  %v1055_v12 = vld [vmem:[#allocation14 + $0x2f0] sm:$0xff]  ;;  %v1052_v13 = vld [vmem:[#allocation14 + $0x2d8] sm:$0xff] }
  0xd3   :  { %1793 = vmatpush1.bf16.msra.mxu0 %v10185_v19  ;;  %1836 = vmatpush1.bf16.msra.mxu1 %v10187_v20  ;;  %v999_v19 = vld [vmem:[#allocation14 + $0x130] sm:$0xff]  ;;  %v996_v20 = vld [vmem:[#allocation14 + $0x118] sm:$0xff] }
  0xd4   :  { %1794 = vmatprep.subr.bf16.mxu0 %v10194_v21  ;;  %1837 = vmatprep.subr.bf16.mxu1 %v10196_v22  ;;  %v1000_v21 = vld [vmem:[#allocation14 + $0x138] sm:$0xff]  ;;  %v10125_v22 = vcombine.low %v987_v10, %v991_v11  ;;  %v10134_v24 = vcombine.high %v995_v18, %v999_v19  ;;  %v1051_v11 = vld [vmem:[#allocation14 + $0x2d0] sm:$0xff] }
  0xd6   :  { %10087 = vmatmul.mubr.msk.bf16.gmra.mrb[56].mxu0 %vm237_vm0, %v11321_v25  ;;  %10095 = vmatmul.mubr.msk.bf16.gmra.mrb[56].mxu1 %vm237_vm0, %v11321_v25  ;;  %v10136_v25 = vcombine.high %v996_v20, %v1000_v21 }
  0xd7   :  { %1795 = vmatpush1.bf16.msra.mxu0 %v10193_v28  ;;  %1838 = vmatpush1.bf16.msra.mxu1 %v10195_v29  ;;  %v1004_v28 = vld [vmem:[#allocation14 + $0x158] sm:$0xff] }
  0xd8   :  { %1796 = vmatprep.subr.bf16.mxu0 %v10202_v30  ;;  %1839 = vmatprep.subr.bf16.mxu1 %v10204_v31  ;;  %v1008_v29 = vld [vmem:[#allocation14 + $0x178] sm:$0xff]  ;;  %v10133_v30 = vcombine.low %v995_v18, %v999_v19  ;;  %v10135_v31 = vcombine.low %v996_v20, %v1000_v21  ;;  %v1059_v19 = vld [vmem:[#allocation14 + $0x310] sm:$0xff] }
  0xd9   :  { %766 = vmatprep.mubr.bf16.mxu0 %v12000_v0  ;;  %879 = vmatprep.mubr.bf16.mxu1 %v12000_v0  ;;  %v10144_v33 = vcombine.high %v1004_v28, %v1008_v29  ;;  %v1063_v20 = vld [vmem:[#allocation14 + $0x330] sm:$0xff]  ;;  %v1060_v21 = vld [vmem:[#allocation14 + $0x318] sm:$0xff] }
  0xdb   :  { %1797 = vmatpush1.bf16.msra.mxu0 %v10201_v36  ;;  %1840 = vmatpush1.bf16.msra.mxu1 %v10203_v37  ;;  %v1012_v36 = vld [vmem:[#allocation14 + $0x198] sm:$0xff] }
  0xdc   :  { %1798 = vmatprep.subr.bf16.mxu0 %v10210_v38  ;;  %1841 = vmatprep.subr.bf16.mxu1 %v10212_v39  ;;  %v1016_v37 = vld [vmem:[#allocation14 + $0x1b8] sm:$0xff]  ;;  %v10141_v38 = vcombine.low %v1003_v26, %v1007_v27  ;;  %v10143_v39 = vcombine.low %v1004_v28, %v1008_v29  ;;  %v1067_v27 = vld [vmem:[#allocation14 + $0x350] sm:$0xff] }
  0xdd   :  { %v10152_v41 = vcombine.high %v1012_v36, %v1016_v37  ;;  %v1071_v28 = vld [vmem:[#allocation14 + $0x370] sm:$0xff]  ;;  %v1068_v29 = vld [vmem:[#allocation14 + $0x358] sm:$0xff] }
  0xde   :  { %10088 = vmatmul.mubr.msk.bf16.gmra.mrb[60].mxu0 %vm237_vm0, %v11322_v42  ;;  %10096 = vmatmul.mubr.msk.bf16.gmra.mrb[60].mxu1 %vm237_vm0, %v11322_v42  ;;  %v1019_v42 = vld [vmem:[#allocation14 + $0x1d0] sm:$0xff] }
  0xdf   :  { %1799 = vmatpush1.bf16.msra.mxu0 %v10209_v45  ;;  %1842 = vmatpush1.bf16.msra.mxu1 %v10211_v46  ;;  %v1024_v45 = vld [vmem:[#allocation14 + $0x1f8] sm:$0xff]  ;;  %v10149_v46 = vcombine.low %v1011_v34, %v1015_v35  ;;  %v1075_v35 = vld [vmem:[#allocation14 + $0x390] sm:$0xff] }
  0xe0   :  { %1800 = vmatprep.subr.bf16.mxu0 %v10218_v47  ;;  %1843 = vmatprep.subr.bf16.mxu1 %v10220_v48  ;;  %v10151_v47 = vcombine.low %v1012_v36, %v1016_v37  ;;  %v10158_v48 = vcombine.high %v1019_v42, %v1023_v43  ;;  %v10160_v49 = vcombine.high %v1020_v44, %v1024_v45  ;;  %v1079_v36 = vld [vmem:[#allocation14 + $0x3b0] sm:$0xff]  ;;  %v1076_v37 = vld [vmem:[#allocation14 + $0x398] sm:$0xff] }
  0xe1   :  { %1802 = vmatprep.mubr.bf16.mxu0 %v12000_v0  ;;  %1845 = vmatprep.mubr.bf16.mxu1 %v12000_v0 }
  0xe3   :  { %1801 = vmatpush1.bf16.msra.mxu0 %v10217_v53  ;;  %1844 = vmatpush1.bf16.msra.mxu1 %v10219_v54  ;;  %v1032_v53 = vld [vmem:[#allocation14 + $0x238] sm:$0xff]  ;;  %v10157_v54 = vcombine.low %v1019_v42, %v1023_v43  ;;  %v1083_v43 = vld [vmem:[#allocation14 + $0x3d0] sm:$0xff] }
  0xe4   :  { %1856 = vmatprep.subr.bf16.mxu0 %v10102_v55  ;;  %1899 = vmatprep.subr.bf16.mxu1 %v10104_v56  ;;  %v10159_v55 = vcombine.low %v1020_v44, %v1024_v45  ;;  %v10166_v56 = vcombine.high %v1027_v50, %v1031_v51  ;;  %v10168_v57 = vcombine.high %v1028_v52, %v1032_v53  ;;  %v1087_v44 = vld [vmem:[#allocation14 + $0x3f0] sm:$0xff]  ;;  %v1084_v45 = vld [vmem:[#allocation14 + $0x3d8] sm:$0xff] }
  0xe6   :  { %1803 = vmatmul.mubr.bf16.vlgmr.msra.gmra.mrb[64].mxu0 %v12000_v0  ;;  %1846 = vmatmul.mubr.bf16.vlgmr.msra.gmra.mrb[64].mxu1 %v12000_v0 }
  0xe7   :  { %1857 = vmatpush1.bf16.msra.mxu0 %v10101_v61  ;;  %1900 = vmatpush1.bf16.msra.mxu1 %v10103_v62  ;;  %v1040_v61 = vld [vmem:[#allocation14 + $0x278] sm:$0xff]  ;;  %v10165_v62 = vcombine.low %v1027_v50, %v1031_v51  ;;  %v10221_v51 = vcombine.low %v1083_v43, %v1087_v44 }
  0xe8   :  { %1858 = vmatprep.subr.bf16.mxu0 %v10110_v63  ;;  %1901 = vmatprep.subr.bf16.mxu1 %v10112_v1  ;;  %v10167_v63 = vcombine.low %v1028_v52, %v1032_v53  ;;  %v10174_v1 = vcombine.high %v1035_v58, %v1039_v59  ;;  %v10176_v2 = vcombine.high %v1036_v60, %v1040_v61 }
  0xe9   :  { %1888 = vmatprep.mubr.bf16.mxu0 %v12000_v0  ;;  %1931 = vmatprep.mubr.bf16.mxu1 %v12000_v0 }
  0xeb   :  { %1859 = vmatpush1.bf16.msra.mxu0 %v10109_v6  ;;  %1902 = vmatpush1.bf16.msra.mxu1 %v10111_v7  ;;  %v1048_v6 = vld [vmem:[#allocation14 + $0x2b8] sm:$0xff]  ;;  %v10173_v7 = vcombine.low %v1035_v58, %v1039_v59 }
  0xec   :  { %1860 = vmatprep.subr.bf16.mxu0 %v10118_v8  ;;  %1903 = vmatprep.subr.bf16.mxu1 %v10120_v9  ;;  %v10175_v8 = vcombine.low %v1036_v60, %v1040_v61  ;;  %v10182_v9 = vcombine.high %v1043_v3, %v1047_v4  ;;  %v10184_v10 = vcombine.high %v1044_v5, %v1048_v6 }
  0xef   :  { %1861 = vmatpush1.bf16.msra.mxu0 %v10117_v14  ;;  %1904 = vmatpush1.bf16.msra.mxu1 %v10119_v15  ;;  %v1056_v14 = vld [vmem:[#allocation14 + $0x2f8] sm:$0xff]  ;;  %v10181_v15 = vcombine.low %v1043_v3, %v1047_v4 }
  0xf0   :  { %1862 = vmatprep.subr.bf16.mxu0 %v10126_v16  ;;  %1905 = vmatprep.subr.bf16.mxu1 %v10128_v17  ;;  %v10183_v16 = vcombine.low %v1044_v5, %v1048_v6  ;;  %v10190_v17 = vcombine.high %v1051_v11, %v1055_v12  ;;  %v10192_v18 = vcombine.high %v1052_v13, %v1056_v14 }
  0xf3   :  { %1863 = vmatpush1.bf16.msra.mxu0 %v10125_v22  ;;  %1906 = vmatpush1.bf16.msra.mxu1 %v10127_v23  ;;  %v1064_v22 = vld [vmem:[#allocation14 + $0x338] sm:$0xff]  ;;  %v10189_v23 = vcombine.low %v1051_v11, %v1055_v12 }
  0xf4   :  { %1864 = vmatprep.subr.bf16.mxu0 %v10134_v24  ;;  %1907 = vmatprep.subr.bf16.mxu1 %v10136_v25  ;;  %v10191_v24 = vcombine.low %v1052_v13, %v1056_v14  ;;  %v10198_v25 = vcombine.high %v1059_v19, %v1063_v20  ;;  %v10200_v26 = vcombine.high %v1060_v21, %v1064_v22 }
  0xf7   :  { %1865 = vmatpush1.bf16.msra.mxu0 %v10133_v30  ;;  %1908 = vmatpush1.bf16.msra.mxu1 %v10135_v31  ;;  %v1072_v30 = vld [vmem:[#allocation14 + $0x378] sm:$0xff]  ;;  %v10197_v31 = vcombine.low %v1059_v19, %v1063_v20 }
  0xf8   :  { %1866 = vmatprep.subr.bf16.mxu0 %v10142_v32  ;;  %1909 = vmatprep.subr.bf16.mxu1 %v10144_v33  ;;  %v10199_v32 = vcombine.low %v1060_v21, %v1064_v22  ;;  %v10206_v33 = vcombine.high %v1067_v27, %v1071_v28  ;;  %v10208_v34 = vcombine.high %v1068_v29, %v1072_v30 }
  0xfb   :  { %1867 = vmatpush1.bf16.msra.mxu0 %v10141_v38  ;;  %1910 = vmatpush1.bf16.msra.mxu1 %v10143_v39  ;;  %v1080_v38 = vld [vmem:[#allocation14 + $0x3b8] sm:$0xff]  ;;  %v10205_v39 = vcombine.low %v1067_v27, %v1071_v28 }
  0xfc   :  { %1868 = vmatprep.subr.bf16.mxu0 %v10150_v40  ;;  %1911 = vmatprep.subr.bf16.mxu1 %v10152_v41  ;;  %v10207_v40 = vcombine.low %v1068_v29, %v1072_v30  ;;  %v10214_v41 = vcombine.high %v1075_v35, %v1079_v36  ;;  %v10216_v42 = vcombine.high %v1076_v37, %v1080_v38 }
  0xff   :  { %1869 = vmatpush1.bf16.msra.mxu0 %v10149_v46  ;;  %1912 = vmatpush1.bf16.msra.mxu1 %v10151_v47  ;;  %v1088_v46 = vld [vmem:[#allocation14 + $0x3f8] sm:$0xff]  ;;  %v10213_v47 = vcombine.low %v1075_v35, %v1079_v36 }
 0x100   :  { %1870 = vmatprep.subr.bf16.mxu0 %v10158_v48  ;;  %1913 = vmatprep.subr.bf16.mxu1 %v10160_v49  ;;  %v10215_v48 = vcombine.low %v1076_v37, %v1080_v38  ;;  %v10222_v49 = vcombine.high %v1083_v43, %v1087_v44  ;;  %v10224_v50 = vcombine.high %v1084_v45, %v1088_v46 }
 0x101   :  { %v10223_v52 = vcombine.low %v1084_v45, %v1088_v46 }
 0x103   :  { %1871 = vmatpush1.bf16.msra.mxu0 %v10157_v54  ;;  %1914 = vmatpush1.bf16.msra.mxu1 %v10159_v55 }
 0x104   :  { %1872 = vmatprep.subr.bf16.mxu0 %v10166_v56  ;;  %1915 = vmatprep.subr.bf16.mxu1 %v10168_v57 }
 0x107   :  { %1873 = vmatpush1.bf16.msra.mxu0 %v10165_v62  ;;  %1916 = vmatpush1.bf16.msra.mxu1 %v10167_v63 }
 0x108   :  { %1874 = vmatprep.subr.bf16.mxu0 %v10174_v1  ;;  %1917 = vmatprep.subr.bf16.mxu1 %v10176_v2 }
 0x10b   :  { %1875 = vmatpush1.bf16.msra.mxu0 %v10173_v7  ;;  %1918 = vmatpush1.bf16.msra.mxu1 %v10175_v8 }
 0x10c   :  { %1876 = vmatprep.subr.bf16.mxu0 %v10182_v9  ;;  %1919 = vmatprep.subr.bf16.mxu1 %v10184_v10 }
 0x10f   :  { %1877 = vmatpush1.bf16.msra.mxu0 %v10181_v15  ;;  %1920 = vmatpush1.bf16.msra.mxu1 %v10183_v16 }
 0x110   :  { %1878 = vmatprep.subr.bf16.mxu0 %v10190_v17  ;;  %1921 = vmatprep.subr.bf16.mxu1 %v10192_v18 }
 0x113   :  { %1879 = vmatpush1.bf16.msra.mxu0 %v10189_v23  ;;  %1922 = vmatpush1.bf16.msra.mxu1 %v10191_v24 }
 0x114   :  { %1880 = vmatprep.subr.bf16.mxu0 %v10198_v25  ;;  %1923 = vmatprep.subr.bf16.mxu1 %v10200_v26 }
 0x117   :  { %1881 = vmatpush1.bf16.msra.mxu0 %v10197_v31  ;;  %1924 = vmatpush1.bf16.msra.mxu1 %v10199_v32 }
 0x118   :  { %1882 = vmatprep.subr.bf16.mxu0 %v10206_v33  ;;  %1925 = vmatprep.subr.bf16.mxu1 %v10208_v34 }
 0x11b   :  { %1883 = vmatpush1.bf16.msra.mxu0 %v10205_v39  ;;  %1926 = vmatpush1.bf16.msra.mxu1 %v10207_v40 }
 0x11c   :  { %1884 = vmatprep.subr.bf16.mxu0 %v10214_v41  ;;  %1927 = vmatprep.subr.bf16.mxu1 %v10216_v42 }
 0x11f   :  { %1885 = vmatpush1.bf16.msra.mxu0 %v10213_v47  ;;  %1928 = vmatpush1.bf16.msra.mxu1 %v10215_v48 }
 0x120   :  { %1886 = vmatprep.subr.bf16.mxu0 %v10222_v49  ;;  %1929 = vmatprep.subr.bf16.mxu1 %v10224_v50  ;;  %v2098_v50 = vld [vmem:[#allocation14] sm:$0xff] }
 0x123   :  { %1887 = vmatpush1.bf16.msra.mxu0 %v10221_v51  ;;  %1930 = vmatpush1.bf16.msra.mxu1 %v10223_v52  ;;  %v2102_v51 = vld [vmem:[#allocation14 + $0x20] sm:$0xff]  ;;  %v2099_v52 = vld [vmem:[#allocation14 + $0x8] sm:$0xff] }
 0x126   :  { %1889 = vmatmul.mubr.bf16.vlgmr.msra.gmra.mrb[68].mxu0 %v12000_v0  ;;  %1932 = vmatmul.mubr.bf16.vlgmr.msra.gmra.mrb[68].mxu1 %v12000_v0 }
 0x139   :  { %v296_v53 = vpop.f32.mrb[0].mxu0  ;;  %v409_v55 = vpop.f32.mrb[0].mxu1 }
 0x13a   :  { %v298_v54 = vpop.f32.mrb[1].mxu0  ;;  %v411_v57 = vpop.f32.mrb[1].mxu1 }
 0x13b   :  { %v300_v56 = vpop.f32.mrb[2].mxu0  ;;  %v413_v60 = vpop.f32.mrb[2].mxu1 }
 0x13c   :  { %v12201_v58 = vpack.c.bf16 %v300_v56, %v296_v53  ;;  %v302_v59 = vpop.f32.mrb[3].mxu0  ;;  %v12205_v62 = vpack.c.bf16 %v413_v60, %v409_v55  ;;  %v415_v63 = vpop.f32.mrb[3].mxu1  ;;  %v10237_v55 = vcombine.low %v2098_v50, %v2102_v51  ;;  %v10238_v56 = vcombine.high %v2098_v50, %v2102_v51  ;;  %v2110_v60 = vld [vmem:[#allocation14 + $0x60] sm:$0xff] }
 0x13d   :  { %v12203_v61 = vpack.c.bf16 %v302_v59, %v298_v54  ;;  %v12207_v1 = vpack.c.bf16 %v415_v63, %v411_v57  ;;  %v2103_v57 = vld [vmem:[#allocation14 + $0x28] sm:$0xff]  ;;  %v2106_v59 = vld [vmem:[#allocation14 + $0x40] sm:$0xff] }
 0x13e   :  { %2866 = vmatprep.subr.bf16.mxu0 %v10238_v56 }
 0x13f   :  { %2867 = vmatpush1.bf16.msra.mxu0 %v10237_v55 }
 0x141   :  { %v306_v2 = vpop.f32.mrb[4].mxu0  ;;  %v419_v4 = vpop.f32.mrb[4].mxu1 }
 0x142   :  { %v308_v3 = vpop.f32.mrb[5].mxu0  ;;  %v421_v5 = vpop.f32.mrb[5].mxu1 }
 0x143   :  { %v310_v0 = vpop.f32.mrb[6].mxu0  ;;  %v423_v8 = vpop.f32.mrb[6].mxu1 }
 0x144   :  { %v12209_v6 = vpack.c.bf16 %v310_v0, %v306_v2  ;;  %v312_v7 = vpop.f32.mrb[7].mxu0  ;;  %v12213_v10 = vpack.c.bf16 %v423_v8, %v419_v4  ;;  %v425_v11 = vpop.f32.mrb[7].mxu1  ;;  %v10240_v4 = vcombine.high %v2099_v52, %v2103_v57  ;;  %v10246_v0 = vcombine.high %v2106_v59, %v2110_v60  ;;  %v2114_v8 = vld [vmem:[#allocation14 + $0x80] sm:$0xff] }
 0x145   :  { %v12211_v9 = vpack.c.bf16 %v312_v7, %v308_v3  ;;  %v12215_v12 = vpack.c.bf16 %v425_v11, %v421_v5  ;;  %v10239_v3 = vcombine.low %v2099_v52, %v2103_v57  ;;  %v2107_v5 = vld [vmem:[#allocation14 + $0x48] sm:$0xff] }
 0x146   :  { %13386 = vst [vmem:[#allocation22_spill] sm:$0xff] %v12209_v6  ;;  %13388 = vst [vmem:[#allocation24_spill] sm:$0xff] %v12213_v10  ;;  %v2111_v7 = vld [vmem:[#allocation14 + $0x68] sm:$0xff]  ;;  %2909 = vmatprep.subr.bf16.mxu1 %v10240_v4  ;;  %2868 = vmatprep.subr.bf16.mxu0 %v10246_v0 }
 0x147   :  { %13387 = vst [vmem:[#allocation23_spill] sm:$0xff] %v12211_v9  ;;  %13389 = vst [vmem:[#allocation25_spill] sm:$0xff] %v12215_v12  ;;  %2910 = vmatpush1.bf16.msra.mxu1 %v10239_v3 }
 0x149   :  { %v316_v13 = vpop.f32.mrb[8].mxu0  ;;  %v429_v15 = vpop.f32.mrb[8].mxu1 }
 0x14a   :  { %v318_v14 = vpop.f32.mrb[9].mxu0  ;;  %v431_v17 = vpop.f32.mrb[9].mxu1 }
 0x14b   :  { %v320_v16 = vpop.f32.mrb[10].mxu0  ;;  %v433_v20 = vpop.f32.mrb[10].mxu1 }
 0x14c   :  { %v12217_v18 = vpack.c.bf16 %v320_v16, %v316_v13  ;;  %v322_v19 = vpop.f32.mrb[11].mxu0  ;;  %v12221_v22 = vpack.c.bf16 %v433_v20, %v429_v15  ;;  %v435_v23 = vpop.f32.mrb[11].mxu1  ;;  %v10248_v15 = vcombine.high %v2107_v5, %v2111_v7  ;;  %v2118_v16 = vld [vmem:[#allocation14 + $0xa0] sm:$0xff] }
 0x14d   :  { %v12219_v21 = vpack.c.bf16 %v322_v19, %v318_v14  ;;  %v12223_v24 = vpack.c.bf16 %v435_v23, %v431_v17  ;;  %v10245_v23 = vcombine.low %v2106_v59, %v2110_v60 }
 0x14e   :  { %13390 = vst [vmem:[#allocation26_spill] sm:$0xff] %v12217_v18  ;;  %13392 = vst [vmem:[#allocation28_spill] sm:$0xff] %v12221_v22  ;;  %2911 = vmatprep.subr.bf16.mxu1 %v10248_v15  ;;  %v2214_v22 = vld [vmem:[#allocation14 + $0x3a0] sm:$0xff] }
 0x14f   :  { %13391 = vst [vmem:[#allocation27_spill] sm:$0xff] %v12219_v21  ;;  %13393 = vst [vmem:[#allocation29_spill] sm:$0xff] %v12223_v24  ;;  %2869 = vmatpush1.bf16.msra.mxu0 %v10245_v23  ;;  %v2123_v23 = vld [vmem:[#allocation14 + $0xc8] sm:$0xff]  ;;  %v2210_v24 = vld [vmem:[#allocation14 + $0x380] sm:$0xff] }
 0x150   :  { %v12433_v6 = vcombine.high %v2210_v24, %v2214_v22 }
 0x151   :  { %v326_v25 = vpop.f32.mrb[12].mxu0  ;;  %v439_v27 = vpop.f32.mrb[12].mxu1 }
 0x152   :  { %v328_v26 = vpop.f32.mrb[13].mxu0  ;;  %v441_v29 = vpop.f32.mrb[13].mxu1  ;;  %13455 = vst [vmem:[#allocation91_spill] sm:$0xff] %v12433_v6 }
 0x153   :  { %v330_v28 = vpop.f32.mrb[14].mxu0  ;;  %v443_v32 = vpop.f32.mrb[14].mxu1 }
 0x154   :  { %v12225_v30 = vpack.c.bf16 %v330_v28, %v326_v25  ;;  %v332_v31 = vpop.f32.mrb[15].mxu0  ;;  %v12229_v34 = vpack.c.bf16 %v443_v32, %v439_v27  ;;  %v445_v35 = vpop.f32.mrb[15].mxu1  ;;  %v2115_v25 = vld [vmem:[#allocation14 + $0x88] sm:$0xff]  ;;  %v10247_v28 = vcombine.low %v2107_v5, %v2111_v7 }
 0x155   :  { %v12227_v33 = vpack.c.bf16 %v332_v31, %v328_v26  ;;  %v12231_v36 = vpack.c.bf16 %v445_v35, %v441_v29  ;;  %v2119_v26 = vld [vmem:[#allocation14 + $0xa8] sm:$0xff]  ;;  %v10254_v29 = vcombine.high %v2114_v8, %v2118_v16  ;;  %v10253_v35 = vcombine.low %v2114_v8, %v2118_v16 }
 0x156   :  { %13394 = vst [vmem:[#allocation30_spill] sm:$0xff] %v12225_v30  ;;  %13396 = vst [vmem:[#allocation32_spill] sm:$0xff] %v12229_v34  ;;  %v10256_v31 = vcombine.high %v2115_v25, %v2119_v26  ;;  %2912 = vmatpush1.bf16.msra.mxu1 %v10247_v28  ;;  %v2207_v30 = vld [vmem:[#allocation14 + $0x368] sm:$0xff] }
 0x157   :  { %13395 = vst [vmem:[#allocation31_spill] sm:$0xff] %v12227_v33  ;;  %13397 = vst [vmem:[#allocation33_spill] sm:$0xff] %v12231_v36  ;;  %2870 = vmatprep.subr.bf16.mxu0 %v10254_v29 }
 0x158   :  { %2913 = vmatprep.subr.bf16.mxu1 %v10256_v31  ;;  %2871 = vmatpush1.bf16.msra.mxu0 %v10253_v35 }
 0x159   :  { %v336_v37 = vpop.f32.mrb[16].mxu0  ;;  %v449_v39 = vpop.f32.mrb[16].mxu1 }
 0x15a   :  { %v338_v38 = vpop.f32.mrb[17].mxu0  ;;  %v451_v41 = vpop.f32.mrb[17].mxu1 }
 0x15b   :  { %v340_v40 = vpop.f32.mrb[18].mxu0  ;;  %v453_v44 = vpop.f32.mrb[18].mxu1 }
 0x15c   :  { %v12233_v42 = vpack.c.bf16 %v340_v40, %v336_v37  ;;  %v342_v43 = vpop.f32.mrb[19].mxu0  ;;  %v12237_v46 = vpack.c.bf16 %v453_v44, %v449_v39  ;;  %v455_v47 = vpop.f32.mrb[19].mxu1  ;;  %v10255_v39 = vcombine.low %v2115_v25, %v2119_v26  ;;  %v2127_v25 = vld [vmem:[#allocation14 + $0xe8] sm:$0xff] }
 0x15d   :  { %v12235_v45 = vpack.c.bf16 %v342_v43, %v338_v38  ;;  %v12239_v48 = vpack.c.bf16 %v455_v47, %v451_v41 }
 0x15e   :  { %13398 = vst [vmem:[#allocation34_spill] sm:$0xff] %v12233_v42  ;;  %13400 = vst [vmem:[#allocation36_spill] sm:$0xff] %v12237_v46  ;;  %2914 = vmatpush1.bf16.msra.mxu1 %v10255_v39  ;;  %v12278_v39 = vcombine.high %v2123_v23, %v2127_v25 }
 0x15f   :  { %13399 = vst [vmem:[#allocation35_spill] sm:$0xff] %v12235_v45  ;;  %13401 = vst [vmem:[#allocation37_spill] sm:$0xff] %v12239_v48 }
 0x160   :  { %2915 = vmatprep.subr.bf16.mxu1 %v12278_v39 }
 0x161   :  { %v346_v49 = vpop.f32.mrb[20].mxu0  ;;  %v459_v54 = vpop.f32.mrb[20].mxu1 }
 0x162   :  { %v348_v53 = vpop.f32.mrb[21].mxu0  ;;  %v461_v2 = vpop.f32.mrb[21].mxu1 }
 0x163   :  { %v350_v63 = vpop.f32.mrb[22].mxu0  ;;  %v463_v14 = vpop.f32.mrb[22].mxu1 }
 0x164   :  { %v12241_v11 = vpack.c.bf16 %v350_v63, %v346_v49  ;;  %v352_v13 = vpop.f32.mrb[23].mxu0  ;;  %v12245_v19 = vpack.c.bf16 %v463_v14, %v459_v54  ;;  %v465_v20 = vpop.f32.mrb[23].mxu1  ;;  %v2126_v14 = vld [vmem:[#allocation14 + $0xe0] sm:$0xff] }
 0x165   :  { %v12243_v17 = vpack.c.bf16 %v352_v13, %v348_v53  ;;  %v12247_v27 = vpack.c.bf16 %v465_v20, %v461_v2  ;;  %v2122_v13 = vld [vmem:[#allocation14 + $0xc0] sm:$0xff] }
 0x166   :  { %13402 = vst [vmem:[#allocation38_spill] sm:$0xff] %v12241_v11  ;;  %13404 = vst [vmem:[#allocation40_spill] sm:$0xff] %v12245_v19  ;;  %v12265_v20 = vcombine.high %v2122_v13, %v2126_v14  ;;  %v12269_v31 = vcombine.low %v2122_v13, %v2126_v14  ;;  %v2139_v13 = vld [vmem:[#allocation14 + $0x148] sm:$0xff] }
 0x167   :  { %13403 = vst [vmem:[#allocation39_spill] sm:$0xff] %v12243_v17  ;;  %13405 = vst [vmem:[#allocation41_spill] sm:$0xff] %v12247_v27 }
 0x168   :  { %2872 = vmatprep.subr.bf16.mxu0 %v12265_v20 }
 0x169   :  { %v356_v32 = vpop.f32.mrb[24].mxu0  ;;  %v469_v38 = vpop.f32.mrb[24].mxu1  ;;  %2873 = vmatpush1.bf16.msra.mxu0 %v12269_v31 }
 0x16a   :  { %v358_v37 = vpop.f32.mrb[25].mxu0  ;;  %v471_v41 = vpop.f32.mrb[25].mxu1 }
 0x16b   :  { %v360_v40 = vpop.f32.mrb[26].mxu0  ;;  %v473_v47 = vpop.f32.mrb[26].mxu1 }
 0x16c   :  { %v12249_v43 = vpack.c.bf16 %v360_v40, %v356_v32  ;;  %v362_v44 = vpop.f32.mrb[27].mxu0  ;;  %v12253_v50 = vpack.c.bf16 %v473_v47, %v469_v38  ;;  %v475_v51 = vpop.f32.mrb[27].mxu1  ;;  %v12276_v38 = vcombine.low %v2123_v23, %v2127_v25  ;;  %v2131_v47 = vld [vmem:[#allocation14 + $0x108] sm:$0xff] }
 0x16d   :  { %v12251_v49 = vpack.c.bf16 %v362_v44, %v358_v37  ;;  %v12255_v52 = vpack.c.bf16 %v475_v51, %v471_v41  ;;  %v2130_v41 = vld [vmem:[#allocation14 + $0x100] sm:$0xff]  ;;  %v2143_v25 = vld [vmem:[#allocation14 + $0x168] sm:$0xff] }
 0x16e   :  { %13406 = vst [vmem:[#allocation42_spill] sm:$0xff] %v12249_v43  ;;  %13408 = vst [vmem:[#allocation44_spill] sm:$0xff] %v12253_v50  ;;  %v2134_v44 = vld [vmem:[#allocation14 + $0x120] sm:$0xff]  ;;  %2916 = vmatpush1.bf16.msra.mxu1 %v12276_v38  ;;  %v2171_v43 = vld [vmem:[#allocation14 + $0x248] sm:$0xff] }
 0x16f   :  { %13407 = vst [vmem:[#allocation43_spill] sm:$0xff] %v12251_v49  ;;  %13409 = vst [vmem:[#allocation45_spill] sm:$0xff] %v12255_v52  ;;  %v12285_v51 = vcombine.high %v2130_v41, %v2134_v44  ;;  %v2170_v50 = vld [vmem:[#allocation14 + $0x240] sm:$0xff] }
 0x170   :  { %v2174_v49 = vld [vmem:[#allocation14 + $0x260] sm:$0xff] }
 0x171   :  { %v366_v53 = vpop.f32.mrb[28].mxu0  ;;  %v479_v55 = vpop.f32.mrb[28].mxu1  ;;  %2874 = vmatprep.subr.bf16.mxu0 %v12285_v51  ;;  %v12369_v27 = vcombine.low %v2170_v50, %v2174_v49 }
 0x172   :  { %v368_v54 = vpop.f32.mrb[29].mxu0  ;;  %v481_v57 = vpop.f32.mrb[29].mxu1 }
 0x173   :  { %v370_v56 = vpop.f32.mrb[30].mxu0  ;;  %v483_v63 = vpop.f32.mrb[30].mxu1  ;;  %13431 = vst [vmem:[#allocation67_spill] sm:$0xff] %v12369_v27 }
 0x174   :  { %v12257_v59 = vpack.c.bf16 %v370_v56, %v366_v53  ;;  %v372_v60 = vpop.f32.mrb[31].mxu0  ;;  %v12261_v3 = vpack.c.bf16 %v483_v63, %v479_v55  ;;  %v485_v4 = vpop.f32.mrb[31].mxu1  ;;  %v2135_v53 = vld [vmem:[#allocation14 + $0x128] sm:$0xff]  ;;  %v12287_v55 = vcombine.low %v2130_v41, %v2134_v44  ;;  %v12307_v44 = vcombine.low %v2139_v13, %v2143_v25 }
 0x175   :  { %v12259_v2 = vpack.c.bf16 %v372_v60, %v368_v54  ;;  %v12263_v0 = vpack.c.bf16 %v485_v4, %v481_v57  ;;  %v12289_v56 = vcombine.low %v2131_v47, %v2135_v53  ;;  %v12291_v57 = vcombine.high %v2131_v47, %v2135_v53 }
 0x176   :  { %13410 = vst [vmem:[#allocation46_spill] sm:$0xff] %v12257_v59  ;;  %13412 = vst [vmem:[#allocation48_spill] sm:$0xff] %v12261_v3  ;;  %2875 = vmatpush1.bf16.msra.mxu0 %v12287_v55  ;;  %v12312_v53 = vcombine.high %v2139_v13, %v2143_v25 }
 0x177   :  { %13411 = vst [vmem:[#allocation47_spill] sm:$0xff] %v12259_v2  ;;  %13413 = vst [vmem:[#allocation49_spill] sm:$0xff] %v12263_v0  ;;  %2917 = vmatprep.subr.bf16.mxu1 %v12291_v57 }
 0x178   :  { %2918 = vmatpush1.bf16.msra.mxu1 %v12289_v56 }
 0x179   :  { %v698_v5 = vpop.f32.mrb[32].mxu0  ;;  %v811_v8 = vpop.f32.mrb[32].mxu1  ;;  %2919 = vmatprep.subr.bf16.mxu1 %v12312_v53 }
 0x17a   :  { %v700_v7 = vpop.f32.mrb[33].mxu0  ;;  %v813_v16 = vpop.f32.mrb[33].mxu1 }
 0x17b   :  { %v702_v15 = vpop.f32.mrb[34].mxu0  ;;  %v815_v29 = vpop.f32.mrb[34].mxu1 }
 0x17c   :  { %v12267_v26 = vpack.c.bf16 %v702_v15, %v698_v5  ;;  %v704_v28 = vpop.f32.mrb[35].mxu0  ;;  %v12273_v35 = vpack.c.bf16 %v815_v29, %v811_v8  ;;  %v817_v37 = vpop.f32.mrb[35].mxu1  ;;  %v2142_v8 = vld [vmem:[#allocation14 + $0x160] sm:$0xff]  ;;  %2920 = vmatpush1.bf16.msra.mxu1 %v12307_v44 }
 0x17d   :  { %v12271_v32 = vpack.c.bf16 %v704_v28, %v700_v7  ;;  %v12280_v40 = vpack.c.bf16 %v817_v37, %v813_v16  ;;  %v2138_v7 = vld [vmem:[#allocation14 + $0x140] sm:$0xff] }
 0x17e   :  { %13414 = vst [vmem:[#allocation50_spill] sm:$0xff] %v12267_v26  ;;  %13416 = vst [vmem:[#allocation52_spill] sm:$0xff] %v12273_v35  ;;  %v12299_v23 = vcombine.high %v2138_v7, %v2142_v8  ;;  %v12305_v41 = vcombine.low %v2138_v7, %v2142_v8  ;;  %v2154_v35 = vld [vmem:[#allocation14 + $0x1c0] sm:$0xff]  ;;  %v2155_v26 = vld [vmem:[#allocation14 + $0x1c8] sm:$0xff] }
 0x17f   :  { %13415 = vst [vmem:[#allocation51_spill] sm:$0xff] %v12271_v32  ;;  %13417 = vst [vmem:[#allocation53_spill] sm:$0xff] %v12280_v40  ;;  %v2147_v40 = vld [vmem:[#allocation14 + $0x188] sm:$0xff]  ;;  %v2158_v32 = vld [vmem:[#allocation14 + $0x1e0] sm:$0xff] }
 0x180   :  { %2876 = vmatprep.subr.bf16.mxu0 %v12299_v23  ;;  %v12330_v3 = vcombine.high %v2154_v35, %v2158_v32 }
 0x181   :  { %v708_v54 = vpop.f32.mrb[36].mxu0  ;;  %v821_v63 = vpop.f32.mrb[36].mxu1  ;;  %2877 = vmatpush1.bf16.msra.mxu0 %v12305_v41 }
 0x182   :  { %v710_v60 = vpop.f32.mrb[37].mxu0  ;;  %v823_v5 = vpop.f32.mrb[37].mxu1 }
 0x183   :  { %v712_v4 = vpop.f32.mrb[38].mxu0  ;;  %v825_v16 = vpop.f32.mrb[38].mxu1 }
 0x184   :  { %v12296_v14 = vpack.c.bf16 %v712_v4, %v708_v54  ;;  %v714_v15 = vpop.f32.mrb[39].mxu0  ;;  %v12303_v29 = vpack.c.bf16 %v825_v16, %v821_v63  ;;  %v827_v37 = vpop.f32.mrb[39].mxu1  ;;  %v2146_v54 = vld [vmem:[#allocation14 + $0x180] sm:$0xff]  ;;  %v2151_v63 = vld [vmem:[#allocation14 + $0x1a8] sm:$0xff] }
 0x185   :  { %v12301_v28 = vpack.c.bf16 %v714_v15, %v710_v60  ;;  %v12309_v47 = vpack.c.bf16 %v827_v37, %v823_v5  ;;  %v2150_v4 = vld [vmem:[#allocation14 + $0x1a0] sm:$0xff]  ;;  %v12321_v5 = vcombine.low %v2147_v40, %v2151_v63  ;;  %v12323_v15 = vcombine.high %v2147_v40, %v2151_v63  ;;  %v2159_v40 = vld [vmem:[#allocation14 + $0x1e8] sm:$0xff] }
 0x186   :  { %13418 = vst [vmem:[#allocation54_spill] sm:$0xff] %v12296_v14  ;;  %13420 = vst [vmem:[#allocation56_spill] sm:$0xff] %v12303_v29  ;;  %v12316_v60 = vcombine.high %v2146_v54, %v2150_v4  ;;  %v12319_v8 = vcombine.low %v2146_v54, %v2150_v4  ;;  %v12339_v29 = vcombine.low %v2155_v26, %v2159_v40 }
 0x187   :  { %13419 = vst [vmem:[#allocation55_spill] sm:$0xff] %v12301_v28  ;;  %13421 = vst [vmem:[#allocation57_spill] sm:$0xff] %v12309_v47  ;;  %2921 = vmatprep.subr.bf16.mxu1 %v12323_v15  ;;  %v12337_v47 = vcombine.low %v2154_v35, %v2158_v32 }
 0x188   :  { %2878 = vmatprep.subr.bf16.mxu0 %v12316_v60  ;;  %2922 = vmatpush1.bf16.msra.mxu1 %v12321_v5 }
 0x189   :  { %v718_v7 = vpop.f32.mrb[40].mxu0  ;;  %v831_v16 = vpop.f32.mrb[40].mxu1  ;;  %2879 = vmatpush1.bf16.msra.mxu0 %v12319_v8 }
 0x18a   :  { %v720_v13 = vpop.f32.mrb[41].mxu0  ;;  %v833_v37 = vpop.f32.mrb[41].mxu1  ;;  %2880 = vmatprep.subr.bf16.mxu0 %v12330_v3 }
 0x18b   :  { %v722_v25 = vpop.f32.mrb[42].mxu0  ;;  %v835_v4 = vpop.f32.mrb[42].mxu1 }
 0x18c   :  { %v12328_v0 = vpack.c.bf16 %v722_v25, %v718_v7  ;;  %v724_v54 = vpop.f32.mrb[43].mxu0  ;;  %v12334_v2 = vpack.c.bf16 %v835_v4, %v831_v16  ;;  %v837_v59 = vpop.f32.mrb[43].mxu1  ;;  %v12344_v7 = vcombine.high %v2155_v26, %v2159_v40  ;;  %v2162_v25 = vld [vmem:[#allocation14 + $0x200] sm:$0xff]  ;;  %v2167_v4 = vld [vmem:[#allocation14 + $0x228] sm:$0xff] }
 0x18d   :  { %v12332_v63 = vpack.c.bf16 %v724_v54, %v720_v13  ;;  %v12341_v28 = vpack.c.bf16 %v837_v59, %v833_v37  ;;  %2881 = vmatpush1.bf16.msra.mxu0 %v12337_v47  ;;  %v2166_v13 = vld [vmem:[#allocation14 + $0x220] sm:$0xff]  ;;  %v2163_v54 = vld [vmem:[#allocation14 + $0x208] sm:$0xff] }
 0x18e   :  { %13422 = vst [vmem:[#allocation58_spill] sm:$0xff] %v12328_v0  ;;  %13424 = vst [vmem:[#allocation60_spill] sm:$0xff] %v12334_v2  ;;  %2923 = vmatprep.subr.bf16.mxu1 %v12344_v7  ;;  %v12348_v16 = vcombine.high %v2162_v25, %v2166_v13  ;;  %v12351_v35 = vcombine.low %v2162_v25, %v2166_v13  ;;  %v12353_v59 = vcombine.low %v2163_v54, %v2167_v4 }
 0x18f   :  { %13423 = vst [vmem:[#allocation59_spill] sm:$0xff] %v12332_v63  ;;  %13425 = vst [vmem:[#allocation61_spill] sm:$0xff] %v12341_v28  ;;  %2924 = vmatpush1.bf16.msra.mxu1 %v12339_v29  ;;  %v12355_v37 = vcombine.high %v2163_v54, %v2167_v4  ;;  %v12362_v2 = vcombine.high %v2170_v50, %v2174_v49  ;;  %v2175_v54 = vld [vmem:[#allocation14 + $0x268] sm:$0xff] }
 0x190   :  { %13426 = vst [vmem:[#allocation62_spill] sm:$0xff] %v12353_v59  ;;  %2882 = vmatprep.subr.bf16.mxu0 %v12348_v16  ;;  %v12371_v19 = vcombine.low %v2171_v43, %v2175_v54 }
 0x191   :  { %v728_v32 = vpop.f32.mrb[44].mxu0  ;;  %v841_v40 = vpop.f32.mrb[44].mxu1  ;;  %2925 = vmatprep.subr.bf16.mxu1 %v12355_v37  ;;  %2883 = vmatpush1.bf16.msra.mxu0 %v12351_v35  ;;  %13428 = vst [vmem:[#allocation64_spill] sm:$0xff] %v12362_v2 }
 0x192   :  { %v730_v26 = vpop.f32.mrb[45].mxu0  ;;  %v843_v52 = vpop.f32.mrb[45].mxu1  ;;  %13432 = vst [vmem:[#allocation68_spill] sm:$0xff] %v12371_v19  ;;  %2884 = vmatprep.subr.bf16.mxu0 %v12362_v2 }
 0x193   :  { %v732_v14 = vpop.f32.mrb[46].mxu0  ;;  %v845_v13 = vpop.f32.mrb[46].mxu1  ;;  %2926 = vmatpush1.bf16.msra.mxu1 %v12353_v59 }
 0x194   :  { %v12360_v28 = vpack.c.bf16 %v732_v14, %v728_v32  ;;  %v734_v25 = vpop.f32.mrb[47].mxu0  ;;  %v12366_v63 = vpack.c.bf16 %v845_v13, %v841_v40  ;;  %v847_v0 = vpop.f32.mrb[47].mxu1  ;;  %v12376_v14 = vcombine.high %v2171_v43, %v2175_v54  ;;  %v2178_v32 = vld [vmem:[#allocation14 + $0x280] sm:$0xff]  ;;  %v2183_v13 = vld [vmem:[#allocation14 + $0x2a8] sm:$0xff] }
 0x195   :  { %v12364_v4 = vpack.c.bf16 %v734_v25, %v730_v26  ;;  %v12373_v17 = vpack.c.bf16 %v847_v0, %v843_v52  ;;  %2885 = vmatpush1.bf16.msra.mxu0 %v12369_v27  ;;  %v2182_v26 = vld [vmem:[#allocation14 + $0x2a0] sm:$0xff]  ;;  %v2179_v25 = vld [vmem:[#allocation14 + $0x288] sm:$0xff] }
 0x196   :  { %13427 = vst [vmem:[#allocation63_spill] sm:$0xff] %v12360_v28  ;;  %13430 = vst [vmem:[#allocation66_spill] sm:$0xff] %v12366_v63  ;;  %2927 = vmatprep.subr.bf16.mxu1 %v12376_v14  ;;  %v12380_v40 = vcombine.high %v2178_v32, %v2182_v26  ;;  %v12383_v50 = vcombine.low %v2178_v32, %v2182_v26  ;;  %v12385_v52 = vcombine.low %v2179_v25, %v2183_v13  ;;  %v2186_v63 = vld [vmem:[#allocation14 + $0x2c0] sm:$0xff]  ;;  %v2187_v28 = vld [vmem:[#allocation14 + $0x2c8] sm:$0xff] }
 0x197   :  { %13429 = vst [vmem:[#allocation65_spill] sm:$0xff] %v12364_v4  ;;  %13433 = vst [vmem:[#allocation69_spill] sm:$0xff] %v12373_v17  ;;  %2928 = vmatpush1.bf16.msra.mxu1 %v12371_v19  ;;  %v12387_v0 = vcombine.high %v2179_v25, %v2183_v13  ;;  %v2190_v4 = vld [vmem:[#allocation14 + $0x2e0] sm:$0xff]  ;;  %v2191_v25 = vld [vmem:[#allocation14 + $0x2e8] sm:$0xff] }
 0x198   :  { %13434 = vst [vmem:[#allocation70_spill] sm:$0xff] %v12376_v14  ;;  %13435 = vst [vmem:[#allocation71_spill] sm:$0xff] %v12380_v40  ;;  %2886 = vmatprep.subr.bf16.mxu0 %v12380_v40  ;;  %v12394_v46 = vcombine.high %v2186_v63, %v2190_v4  ;;  %v12401_v36 = vcombine.low %v2186_v63, %v2190_v4  ;;  %v12403_v34 = vcombine.low %v2187_v28, %v2191_v25 }
 0x199   :  { %v738_v49 = vpop.f32.mrb[48].mxu0  ;;  %13436 = vst [vmem:[#allocation72_spill] sm:$0xff] %v12383_v50  ;;  %13437 = vst [vmem:[#allocation73_spill] sm:$0xff] %v12385_v52  ;;  %v851_v54 = vpop.f32.mrb[48].mxu1  ;;  %2929 = vmatprep.subr.bf16.mxu1 %v12387_v0  ;;  %2887 = vmatpush1.bf16.msra.mxu0 %v12383_v50 }
 0x19a   :  { %13438 = vst [vmem:[#allocation74_spill] sm:$0xff] %v12387_v0  ;;  %v740_v43 = vpop.f32.mrb[49].mxu0  ;;  %v853_v17 = vpop.f32.mrb[49].mxu1  ;;  %13440 = vst [vmem:[#allocation76_spill] sm:$0xff] %v12394_v46  ;;  %2888 = vmatprep.subr.bf16.mxu0 %v12394_v46 }
 0x19b   :  { %v742_v11 = vpop.f32.mrb[50].mxu0  ;;  %v855_v26 = vpop.f32.mrb[50].mxu1  ;;  %2930 = vmatpush1.bf16.msra.mxu1 %v12385_v52  ;;  %13443 = vst [vmem:[#allocation79_spill] sm:$0xff] %v12401_v36  ;;  %13444 = vst [vmem:[#allocation80_spill] sm:$0xff] %v12403_v34  ;;  %v1956_v52 = vunpack.c.h.bf16 %v12207_v1 }
 0x19c   :  { %v12392_v48 = vpack.c.bf16 %v742_v11, %v738_v49  ;;  %v744_v32 = vpop.f32.mrb[51].mxu0  ;;  %v12398_v45 = vpack.c.bf16 %v855_v26, %v851_v54  ;;  %v857_v42 = vpop.f32.mrb[51].mxu1  ;;  %v12408_v11 = vcombine.high %v2187_v28, %v2191_v25  ;;  %v2194_v49 = vld [vmem:[#allocation14 + $0x300] sm:$0xff]  ;;  %v2199_v26 = vld [vmem:[#allocation14 + $0x328] sm:$0xff] }
 0x19d   :  { %v12396_v13 = vpack.c.bf16 %v744_v32, %v740_v43  ;;  %v12405_v33 = vpack.c.bf16 %v857_v42, %v853_v17  ;;  %2889 = vmatpush1.bf16.msra.mxu0 %v12401_v36  ;;  %v2198_v43 = vld [vmem:[#allocation14 + $0x320] sm:$0xff]  ;;  %v2195_v32 = vld [vmem:[#allocation14 + $0x308] sm:$0xff] }
 0x19e   :  { %13439 = vst [vmem:[#allocation75_spill] sm:$0xff] %v12392_v48  ;;  %13442 = vst [vmem:[#allocation78_spill] sm:$0xff] %v12398_v45  ;;  %2931 = vmatprep.subr.bf16.mxu1 %v12408_v11  ;;  %v12412_v54 = vcombine.high %v2194_v49, %v2198_v43  ;;  %v12415_v4 = vcombine.low %v2194_v49, %v2198_v43  ;;  %v12417_v42 = vcombine.low %v2195_v32, %v2199_v26  ;;  %v2202_v28 = vld [vmem:[#allocation14 + $0x340] sm:$0xff] }
 0x19f   :  { %13441 = vst [vmem:[#allocation77_spill] sm:$0xff] %v12396_v13  ;;  %13445 = vst [vmem:[#allocation81_spill] sm:$0xff] %v12405_v33  ;;  %2932 = vmatpush1.bf16.msra.mxu1 %v12403_v34  ;;  %v12419_v17 = vcombine.high %v2195_v32, %v2199_v26  ;;  %v2206_v25 = vld [vmem:[#allocation14 + $0x360] sm:$0xff]  ;;  %v2203_v33 = vld [vmem:[#allocation14 + $0x348] sm:$0xff] }
 0x1a0   :  { %13446 = vst [vmem:[#allocation82_spill] sm:$0xff] %v12408_v11  ;;  %13447 = vst [vmem:[#allocation83_spill] sm:$0xff] %v12412_v54  ;;  %2890 = vmatprep.subr.bf16.mxu0 %v12412_v54  ;;  %v12422_v48 = vcombine.high %v2202_v28, %v2206_v25  ;;  %v12426_v49 = vcombine.low %v2202_v28, %v2206_v25  ;;  %v12428_v43 = vcombine.high %v2203_v33, %v2207_v30  ;;  %v2211_v32 = vld [vmem:[#allocation14 + $0x388] sm:$0xff]  ;;  %v2218_v25 = vld [vmem:[#allocation14 + $0x3c0] sm:$0xff] }
 0x1a1   :  { %v748_v63 = vpop.f32.mrb[52].mxu0  ;;  %13448 = vst [vmem:[#allocation84_spill] sm:$0xff] %v12415_v4  ;;  %13449 = vst [vmem:[#allocation85_spill] sm:$0xff] %v12417_v42  ;;  %v861_v13 = vpop.f32.mrb[52].mxu1  ;;  %2933 = vmatprep.subr.bf16.mxu1 %v12419_v17  ;;  %2891 = vmatpush1.bf16.msra.mxu0 %v12415_v4  ;;  %v2215_v26 = vld [vmem:[#allocation14 + $0x3a8] sm:$0xff]  ;;  %v12440_v28 = vcombine.low %v2203_v33, %v2207_v30  ;;  %v2222_v4 = vld [vmem:[#allocation14 + $0x3e0] sm:$0xff] }
 0x1a2   :  { %13450 = vst [vmem:[#allocation86_spill] sm:$0xff] %v12419_v17  ;;  %v750_v45 = vpop.f32.mrb[53].mxu0  ;;  %13451 = vst [vmem:[#allocation87_spill] sm:$0xff] %v12422_v48  ;;  %v863_v18 = vpop.f32.mrb[53].mxu1  ;;  %2892 = vmatprep.subr.bf16.mxu0 %v12422_v48  ;;  %v12454_v33 = vcombine.low %v2211_v32, %v2215_v26 }
 0x1a3   :  { %v752_v21 = vpop.f32.mrb[54].mxu0  ;;  %13452 = vst [vmem:[#allocation88_spill] sm:$0xff] %v12426_v49  ;;  %13453 = vst [vmem:[#allocation89_spill] sm:$0xff] %v12428_v43  ;;  %v865_v9 = vpop.f32.mrb[54].mxu1  ;;  %2934 = vmatpush1.bf16.msra.mxu1 %v12417_v42 }
 0x1a4   :  { %v12430_v12 = vpack.c.bf16 %v752_v21, %v748_v63  ;;  %v754_v10 = vpop.f32.mrb[55].mxu0  ;;  %v12437_v34 = vpack.c.bf16 %v865_v9, %v861_v13  ;;  %v867_v17 = vpop.f32.mrb[55].mxu1  ;;  %13458 = vst [vmem:[#allocation94_spill] sm:$0xff] %v12440_v28  ;;  %2935 = vmatprep.subr.bf16.mxu1 %v12428_v43  ;;  %v12445_v21 = vcombine.high %v2211_v32, %v2215_v26  ;;  %v2223_v9 = vld [vmem:[#allocation14 + $0x3e8] sm:$0xff]  ;;  %13463 = vst [vmem:[#allocation99_spill] sm:$0xff] %v12454_v33 }
 0x1a5   :  { %v12435_v54 = vpack.c.bf16 %v754_v10, %v750_v45  ;;  %v12442_v36 = vpack.c.bf16 %v867_v17, %v863_v18  ;;  %2893 = vmatpush1.bf16.msra.mxu0 %v12426_v49  ;;  %v12448_v63 = vcombine.low %v2210_v24, %v2214_v22  ;;  %v2219_v10 = vld [vmem:[#allocation14 + $0x3c8] sm:$0xff]  ;;  %v12451_v45 = vcombine.high %v2218_v25, %v2222_v4 }
 0x1a6   :  { %13454 = vst [vmem:[#allocation90_spill] sm:$0xff] %v12430_v12  ;;  %13457 = vst [vmem:[#allocation93_spill] sm:$0xff] %v12437_v34  ;;  %2894 = vmatprep.subr.bf16.mxu0 %v12433_v6  ;;  %v1090_v17 = vlaneseq  ;;  %v12460_v34 = vcombine.low %v2218_v25, %v2222_v4  ;;  %v12478_v4 = vld [vmem:[#allocation14 + $0x10] sm:$0xff] }
 0x1a7   :  { %13456 = vst [vmem:[#allocation92_spill] sm:$0xff] %v12435_v54  ;;  %13459 = vst [vmem:[#allocation95_spill] sm:$0xff] %v12442_v36  ;;  %2936 = vmatpush1.bf16.msra.mxu1 %v12440_v28  ;;  %v12457_v36 = vcombine.high %v2219_v10, %v2223_v9  ;;  %v12480_v25 = vld [vmem:[#allocation14 + $0x30] sm:$0xff] }
 0x1a8   :  { %13460 = vst [vmem:[#allocation96_spill] sm:$0xff] %v12445_v21  ;;  %13461 = vst [vmem:[#allocation97_spill] sm:$0xff] %v12448_v63  ;;  %2937 = vmatprep.subr.bf16.mxu1 %v12445_v21  ;;  %v12470_v21 = vcombine.low %v2219_v10, %v2223_v9  ;;  %v10242_v10 = vcombine.high %v12478_v4, %v12480_v25 }
 0x1a9   :  { %13462 = vst [vmem:[#allocation98_spill] sm:$0xff] %v12451_v45  ;;  %v758_v30 = vpop.f32.mrb[56].mxu0  ;;  %v871_v13 = vpop.f32.mrb[56].mxu1  ;;  %13464 = vst [vmem:[#allocation100_spill] sm:$0xff] %v12457_v36  ;;  %2895 = vmatpush1.bf16.msra.mxu0 %v12448_v63  ;;  %v12474_v63 = vshrl.u32 %v1090_v17, 7 }
 0x1aa   :  { %v760_v18 = vpop.f32.mrb[57].mxu0  ;;  %v873_v24 = vpop.f32.mrb[57].mxu1  ;;  %13465 = vst [vmem:[#allocation101_spill] sm:$0xff] %v12460_v34  ;;  %2896 = vmatprep.subr.bf16.mxu0 %v12451_v45  ;;  %13469 = vst [vmem:[#allocation105_spill] sm:$0xff] %v12470_v21 }
 0x1ab   :  { %v762_v22 = vpop.f32.mrb[58].mxu0  ;;  %v875_v6 = vpop.f32.mrb[58].mxu1  ;;  %2938 = vmatpush1.bf16.msra.mxu1 %v12454_v33 }
 0x1ac   :  { %v12462_v54 = vpack.c.bf16 %v762_v22, %v758_v30  ;;  %v764_v12 = vpop.f32.mrb[59].mxu0  ;;  %v12467_v26 = vpack.c.bf16 %v875_v6, %v871_v13  ;;  %v877_v28 = vpop.f32.mrb[59].mxu1  ;;  %2939 = vmatprep.subr.bf16.mxu1 %v12457_v36  ;;  %v1092_v22 = vsub.s32 0, %v12474_v63 }
 0x1ad   :  { %v12465_v32 = vpack.c.bf16 %v764_v12, %v760_v18  ;;  %v12472_v49 = vpack.c.bf16 %v877_v28, %v873_v24  ;;  %2897 = vmatpush1.bf16.msra.mxu0 %v12460_v34  ;;  %v12482_v12 = vld [vmem:[#allocation14 + $0x18] sm:$0xff]  ;;  %v1104_v34 = vsub.s32 3, %v12474_v63 }
 0x1ae   :  { %13466 = vst [vmem:[#allocation102_spill] sm:$0xff] %v12462_v54  ;;  %13468 = vst [vmem:[#allocation104_spill] sm:$0xff] %v12467_v26  ;;  %v12488_v28 = vld [vmem:[#allocation14 + $0x38] sm:$0xff]  ;;  %2952 = vmatprep.subr.bf16.mxu0 %v10242_v10  ;;  %v1100_v26 = vsub.s32 2, %v12474_v63 }
 0x1af   :  { %13467 = vst [vmem:[#allocation103_spill] sm:$0xff] %v12465_v32  ;;  %13470 = vst [vmem:[#allocation106_spill] sm:$0xff] %v12472_v49  ;;  %2940 = vmatpush1.bf16.msra.mxu1 %v12470_v21  ;;  %v10244_v18 = vcombine.high %v12482_v12, %v12488_v28  ;;  %v12499_v49 = vld [vmem:[%s13289_s4] sm:$0xff]  ;;  %v1096_v32 = vsub.s32 1, %v12474_v63 }
 0x1b0   :  { %v12513_v43 = vrot.slane %v12499_v49, %v1092_v22  ;;  %v12516_v48 = vrot.slane %v12499_v49, %v1100_v26 }
 0x1b1   :  { %v768_v9 = vpop.f32.mrb[60].mxu0  ;;  %v881_v17 = vpop.f32.mrb[60].mxu1  ;;  %2995 = vmatprep.subr.bf16.mxu1 %v10244_v18  ;;  %v12522_v18 = vrot.slane %v12499_v49, %v1104_v34  ;;  %v1952_v34 = vunpack.c.l.bf16 %v12207_v1 }
 0x1b2   :  { %v770_v13 = vpop.f32.mrb[61].mxu0  ;;  %v883_v6 = vpop.f32.mrb[61].mxu1  ;;  %13471 = vst [vmem:[#allocation107_spill] sm:$0xff] %v12513_v43 }
 0x1b3   :  { %v772_v24 = vpop.f32.mrb[62].mxu0  ;;  %v885_v21 = vpop.f32.mrb[62].mxu1  ;;  %13473 = vst [vmem:[#allocation109_spill] sm:$0xff] %v12522_v18 }
 0x1b4   :  { %v12503_v30 = vpack.c.bf16 %v772_v24, %v768_v9  ;;  %v774_v54 = vpop.f32.mrb[63].mxu0  ;;  %v12508_v10 = vpack.c.bf16 %v885_v21, %v881_v17  ;;  %v887_v45 = vpop.f32.mrb[63].mxu1  ;;  %v12519_v9 = vrot.slane %v12499_v49, %v1096_v32  ;;  %v1953_v21 = vunpack.c.h.bf16 %v12201_v58 }
 0x1b5   :  { %v12506_v36 = vpack.c.bf16 %v774_v54, %v770_v13  ;;  %v12510_v33 = vpack.c.bf16 %v887_v45, %v883_v6  ;;  %v1949_v54 = vunpack.c.l.bf16 %v12201_v58  ;;  %v1950_v45 = vunpack.c.l.bf16 %v12203_v61 }
 0x1b6   :  { %13472 = vst [vmem:[#allocation108_spill] sm:$0xff] %v12519_v9  ;;  %v1954_v6 = vunpack.c.h.bf16 %v12203_v61  ;;  %v1951_v17 = vunpack.c.l.bf16 %v12205_v62  ;;  %v1955_v32 = vunpack.c.h.bf16 %v12205_v62 }
 0x1b9   :  { %v1804_v13 = vpop.f32.mrb[64].mxu0  ;;  %v1847_v22 = vpop.f32.mrb[64].mxu1 }
 0x1ba   :  { %v1805_v26 = vadd.f32 %v1804_v13, %v12513_v43  ;;  %v1806_v24 = vpop.f32.mrb[65].mxu0  ;;  %v1848_v42 = vadd.f32 %v1847_v22, %v12516_v48  ;;  %v1849_v58 = vpop.f32.mrb[65].mxu1 }
 0x1bb   :  { %v1807_v11 = vadd.f32 %v1806_v24, %v12519_v9  ;;  %v1808_v46 = vpop.f32.mrb[66].mxu0  ;;  %v1850_v61 = vadd.f32 %v1849_v58, %v12522_v18  ;;  %v1851_v13 = vpop.f32.mrb[66].mxu1 }
 0x1bc   :  { %v1957_v50 = vadd.f32 %v1949_v54, %v1805_v26  ;;  %v1809_v0 = vadd.f32 %v1808_v46, %v12513_v43  ;;  %v1810_v40 = vpop.f32.mrb[67].mxu0  ;;  %v1959_v19 = vadd.f32 %v1951_v17, %v1848_v42  ;;  %v1852_v62 = vadd.f32 %v1851_v13, %v12516_v48  ;;  %v1853_v22 = vpop.f32.mrb[67].mxu1 }
 0x1bd   :  { %v1958_v27 = vadd.f32 %v1950_v45, %v1807_v11  ;;  %v1811_v14 = vadd.f32 %v1810_v40, %v12519_v9  ;;  %v12539_v24 = vadd.f32 %v1952_v34, %v1850_v61  ;;  %v1854_v1 = vadd.f32 %v1853_v22, %v12522_v18 }
 0x1be   :  { %v10225_v2 = vmul.f32 -1.442695, %v1957_v50  ;;  %v1961_v59 = vadd.f32 %v1953_v21, %v1809_v0  ;;  %v1963_v26 = vadd.f32 %v1955_v32, %v1852_v62 }
 0x1bf   :  { %v10227_v54 = vmul.f32 -1.442695, %v1958_v27  ;;  %v1962_v58 = vadd.f32 %v1954_v6, %v1811_v14  ;;  %v12542_v43 = vadd.f32 %v1956_v52, %v1854_v1  ;;  %v1108_v1 = vsub.s32 4, %v12474_v63 }
 0x1c0   :  { %11339 = vpow2.f32 %v10225_v2  ;;  %v10226_v46 = vmul.f32 -1.442695, %v1961_v59 }
 0x1c1   :  { %11341 = vpow2.f32 %v10227_v54  ;;  %v10228_v11 = vmul.f32 -1.442695, %v1962_v58  ;;  %v1116_v54 = vsub.s32 6, %v12474_v63  ;;  %v1120_v58 = vsub.s32 7, %v12474_v63 }
 0x1c2   :  { %11343 = vpow2.f32 %v10226_v46  ;;  %v12553_v46 = vrot.slane %v12499_v49, %v1108_v1 }
 0x1c3   :  { %11345 = vpow2.f32 %v10228_v11  ;;  %v12556_v11 = vrot.slane %v12499_v49, %v1116_v54 }
 0x1c4   :  { %11347 = vtanh.f32 %v1959_v19  ;;  %13474 = vst [vmem:[#allocation110_spill] sm:$0xff] %v12553_v46 }
 0x1ca   :  { %v11340_v42 = vpop.eup %11339 }
 0x1cb   :  { %v11342_v40 = vpop.eup %11341  ;;  %v1994_v45 = vadd.f32 1.0, %v11340_v42 }
 0x1cc   :  { %v2006_v50 = vadd.f32 1.0, %v11342_v40  ;;  %v11344_v17 = vpop.eup %11343  ;;  %v12562_v40 = vrot.slane %v12499_v49, %v1120_v58 }
 0x1cd   :  { %11349 = vrcp.f32 %v1994_v45  ;;  %v1995_v0 = vadd.f32 1.0, %v11344_v17  ;;  %v11346_v27 = vpop.eup %11345  ;;  %v1972_v45 = vunpack.c.l.bf16 %v12503_v30 }
 0x1ce   :  { %11351 = vrcp.f32 %v2006_v50  ;;  %v2007_v2 = vadd.f32 1.0, %v11346_v27  ;;  %v11348_v59 = vpop.eup %11347  ;;  %v1976_v50 = vunpack.c.h.bf16 %v12503_v30  ;;  %v1974_v27 = vunpack.c.l.bf16 %v12508_v10 }
 0x1cf   :  { %11353 = vtanh.f32 %v1963_v26  ;;  %v1112_v26 = vsub.s32 5, %v12474_v63  ;;  %v1977_v63 = vunpack.c.h.bf16 %v12506_v36 }
 0x1d0   :  { %11355 = vrcp.f32 %v1995_v0  ;;  %v1973_v0 = vunpack.c.l.bf16 %v12506_v36 }
 0x1d1   :  { %11357 = vrcp.f32 %v2007_v2  ;;  %v12559_v42 = vrot.slane %v12499_v49, %v1112_v26  ;;  %v1975_v49 = vunpack.c.l.bf16 %v12510_v33 }
 0x1d7   :  { %v11350_v14 = vpop.eup %11349 }
 0x1d8   :  { %v11352_v52 = vpop.eup %11351  ;;  %v2028_v21 = vmul.f32 %v11350_v14, %v11348_v59 }
 0x1d9   :  { %v11354_v6 = vpop.eup %11353  ;;  %v2026_v32 = vmul.f32 0.0, %v11352_v52  ;;  %v1978_v52 = vunpack.c.h.bf16 %v12508_v10 }
 0x1da   :  { %v11356_v34 = vpop.eup %11355 }
 0x1db   :  { %v12544_v61 = vadd.f32 %v2028_v21, %v2026_v32  ;;  %v2029_v19 = vmul.f32 %v11356_v34, %v11354_v6  ;;  %v11358_v13 = vpop.eup %11357  ;;  %v1979_v34 = vunpack.c.h.bf16 %v12510_v33 }
 0x1dc   :  { %v2027_v62 = vmul.f32 0.0, %v11358_v13 }
 0x1de   :  { %v12546_v22 = vadd.f32 %v2029_v19, %v2027_v62 }
 0x1f9   :  { %v1890_v17 = vpop.f32.mrb[68].mxu0  ;;  %v1933_v59 = vpop.f32.mrb[68].mxu1 }
 0x1fa   :  { %v1891_v2 = vadd.f32 %v1890_v17, %v12553_v46  ;;  %v1892_v14 = vpop.f32.mrb[69].mxu0  ;;  %v1934_v21 = vadd.f32 %v1933_v59, %v12556_v11  ;;  %v1935_v30 = vpop.f32.mrb[69].mxu1 }
 0x1fb   :  { %v1893_v6 = vadd.f32 %v1892_v14, %v12559_v42  ;;  %v1894_v32 = vpop.f32.mrb[70].mxu0  ;;  %v1936_v36 = vadd.f32 %v1935_v30, %v12562_v40  ;;  %v1937_v62 = vpop.f32.mrb[70].mxu1 }
 0x1fc   :  { %v1980_v19 = vadd.f32 %v1972_v45, %v1891_v2  ;;  %v1895_v13 = vadd.f32 %v1894_v32, %v12553_v46  ;;  %v1896_v1 = vpop.f32.mrb[71].mxu0  ;;  %v1982_v54 = vadd.f32 %v1974_v27, %v1934_v21  ;;  %v1938_v10 = vadd.f32 %v1937_v62, %v12556_v11  ;;  %v1939_v17 = vpop.f32.mrb[71].mxu1 }
 0x1fd   :  { %v1981_v26 = vadd.f32 %v1973_v0, %v1893_v6  ;;  %v1897_v58 = vadd.f32 %v1896_v1, %v12559_v42  ;;  %v1983_v14 = vadd.f32 %v1975_v49, %v1936_v36  ;;  %v1940_v9 = vadd.f32 %v1939_v17, %v12562_v40 }
 0x1fe   :  { %v10231_v59 = vmul.f32 -1.442695, %v1980_v19  ;;  %v1984_v18 = vadd.f32 %v1976_v50, %v1895_v13  ;;  %v1986_v45 = vadd.f32 %v1978_v52, %v1938_v10  ;;  %v10230_v0 = vmul.f32 -1.442695, %v12542_v43 }
 0x1ff   :  { %v10233_v33 = vmul.f32 -1.442695, %v1981_v26  ;;  %v1985_v2 = vadd.f32 %v1977_v63, %v1897_v58  ;;  %v1987_v32 = vadd.f32 %v1979_v34, %v1940_v9  ;;  %v10235_v27 = vmul.f32 -1.442695, %v1983_v14 }
 0x200   :  { %11359 = vpow2.f32 %v10231_v59  ;;  %v10232_v30 = vmul.f32 -1.442695, %v1984_v18  ;;  %v10229_v18 = vmul.f32 -1.442695, %v12539_v24 }
 0x201   :  { %11361 = vpow2.f32 %v10233_v33  ;;  %v10234_v46 = vmul.f32 -1.442695, %v1985_v2  ;;  %v10236_v6 = vmul.f32 -1.442695, %v1987_v32 }
 0x202   :  { %11363 = vpow2.f32 %v10232_v30 }
 0x203   :  { %11365 = vpow2.f32 %v10234_v46 }
 0x204   :  { %11367 = vpow2.f32 %v10230_v0 }
 0x205   :  { %11369 = vtanh.f32 %v1982_v54 }
 0x206   :  { %11371 = vpow2.f32 %v10235_v27 }
 0x207   :  { %11373 = vtanh.f32 %v1986_v45 }
 0x20a   :  { %v11360_v21 = vpop.eup %11359 }
 0x20b   :  { %v11362_v49 = vpop.eup %11361  ;;  %v2042_v50 = vadd.f32 1.0, %v11360_v21 }
 0x20c   :  { %v2054_v19 = vadd.f32 1.0, %v11362_v49  ;;  %v11364_v63 = vpop.eup %11363 }
 0x20d   :  { %11375 = vrcp.f32 %v2042_v50  ;;  %v2043_v9 = vadd.f32 1.0, %v11364_v63  ;;  %v11366_v52 = vpop.eup %11365 }
 0x20e   :  { %11377 = vrcp.f32 %v2054_v19  ;;  %v2055_v43 = vadd.f32 1.0, %v11366_v52  ;;  %v11368_v46 = vpop.eup %11367 }
 0x20f   :  { %11379 = vpow2.f32 %v10236_v6  ;;  %v11370_v34 = vpop.eup %11369  ;;  %v2021_v1 = vadd.f32 1.0, %v11368_v46  ;;  %v2108_v46 = vld [vmem:[#allocation14 + $0x50] sm:$0xff] }
 0x210   :  { %11381 = vrcp.f32 %v2043_v9  ;;  %v11372_v36 = vpop.eup %11371 }
 0x211   :  { %11383 = vpow2.f32 %v10229_v18  ;;  %v11374_v13 = vpop.eup %11373  ;;  %v2068_v17 = vadd.f32 1.0, %v11372_v36  ;;  %v2112_v36 = vld [vmem:[#allocation14 + $0x70] sm:$0xff] }
 0x212   :  { %11385 = vrcp.f32 %v2055_v43 }
 0x213   :  { %11387 = vrcp.f32 %v2021_v1 }
 0x214   :  { %11389 = vtanh.f32 %v12544_v61 }
 0x215   :  { %11391 = vtanh.f32 %v12546_v22 }
 0x216   :  { %11393 = vrcp.f32 %v2068_v17  ;;  %v2117_v17 = vld [vmem:[#allocation14 + $0x98] sm:$0xff] }
 0x217   :  { %v11376_v62 = vpop.eup %11375 }
 0x218   :  { %v11378_v54 = vpop.eup %11377  ;;  %v2076_v26 = vmul.f32 %v11376_v62, %v11370_v34  ;;  %v2113_v62 = vld [vmem:[#allocation14 + $0x78] sm:$0xff] }
 0x219   :  { %v11380_v10 = vpop.eup %11379  ;;  %v2074_v58 = vmul.f32 0.0, %v11378_v54 }
 0x21a   :  { %v11382_v24 = vpop.eup %11381  ;;  %v2069_v2 = vadd.f32 1.0, %v11380_v10  ;;  %v10250_v10 = vcombine.high %v2108_v46, %v2112_v36 }
 0x21b   :  { %v11384_v59 = vpop.eup %11383  ;;  %v12582_v14 = vadd.f32 %v2076_v26, %v2074_v58  ;;  %v2077_v33 = vmul.f32 %v11382_v24, %v11374_v13  ;;  %v2109_v13 = vld [vmem:[#allocation14 + $0x58] sm:$0xff]  ;;  %v2116_v26 = vld [vmem:[#allocation14 + $0x90] sm:$0xff] }
 0x21c   :  { %v11386_v45 = vpop.eup %11385  ;;  %v2020_v32 = vadd.f32 1.0, %v11384_v59  ;;  %v10252_v58 = vcombine.high %v2109_v13, %v2113_v62  ;;  %v2120_v24 = vld [vmem:[#allocation14 + $0xb0] sm:$0xff]  ;;  %v2121_v59 = vld [vmem:[#allocation14 + $0xb8] sm:$0xff] }
 0x21d   :  { %v2075_v30 = vmul.f32 0.0, %v11386_v45  ;;  %11395 = vtanh.f32 %v12582_v14  ;;  %v11388_v27 = vpop.eup %11387  ;;  %v13476_v45 = vcombine.low %v12482_v12, %v12488_v28 }
 0x21e   :  { %11397 = vrcp.f32 %v2069_v2  ;;  %v11390_v21 = vpop.eup %11389  ;;  %v10249_v2 = vcombine.low %v2108_v46, %v2112_v36  ;;  %v2137_v46 = vld [vmem:[#allocation14 + $0x138] sm:$0xff] }
 0x21f   :  { %v12587_v0 = vadd.f32 %v2077_v33, %v2075_v30  ;;  %v11392_v49 = vpop.eup %11391  ;;  %v13475_v33 = vcombine.low %v12478_v4, %v12480_v25  ;;  %v10251_v30 = vcombine.low %v2109_v13, %v2113_v62  ;;  %v10257_v4 = vcombine.low %v2116_v26, %v2120_v24 }
 0x220   :  { %v11394_v50 = vpop.eup %11393  ;;  %v12590_v18 = vmul.f32 %v11392_v49, %v11388_v27  ;;  %v10260_v27 = vcombine.high %v2117_v17, %v2121_v59  ;;  %v2128_v49 = vld [vmem:[#allocation14 + $0xf0] sm:$0xff]  ;;  %v10259_v25 = vcombine.low %v2117_v17, %v2121_v59 }
 0x221   :  { %11399 = vtanh.f32 %v12587_v0 }
 0x222   :  { %11401 = vrcp.f32 %v2020_v32  ;;  %v10258_v32 = vcombine.high %v2116_v26, %v2120_v24  ;;  %v2141_v26 = vld [vmem:[#allocation14 + $0x158] sm:$0xff] }
 0x223   :  { %v2145_v24 = vld [vmem:[#allocation14 + $0x178] sm:$0xff] }
 0x227   :  { %v11396_v6 = vpop.eup %11395 }
 0x228   :  { %v11398_v19 = vpop.eup %11397  ;;  %v12592_v52 = vmul.f32 %v11396_v6, %v11394_v50  ;;  %v2125_v50 = vld [vmem:[#allocation14 + $0xd8] sm:$0xff] }
 0x229   :  { %v2129_v6 = vld [vmem:[#allocation14 + $0xf8] sm:$0xff] }
 0x22a   :  { %v10268_v28 = vcombine.high %v2125_v50, %v2129_v6  ;;  %v10267_v13 = vcombine.low %v2125_v50, %v2129_v6 }
 0x22b   :  { %v11400_v63 = vpop.eup %11399 }
 0x22c   :  { %v11402_v9 = vpop.eup %11401  ;;  %v12594_v43 = vmul.f32 %v11400_v63, %v11398_v19  ;;  %v2132_v19 = vld [vmem:[#allocation14 + $0x110] sm:$0xff] }
 0x22d   :  { %v12596_v34 = vmul.f32 %v11402_v9, %v11390_v21  ;;  %v2124_v21 = vld [vmem:[#allocation14 + $0xd0] sm:$0xff]  ;;  %v2133_v9 = vld [vmem:[#allocation14 + $0x118] sm:$0xff] }
 0x22e   :  { %v2097_v1 = vpack.c.bf16 %v12594_v43, %v12592_v52  ;;  %v10266_v12 = vcombine.high %v2124_v21, %v2128_v49  ;;  %v2136_v63 = vld [vmem:[#allocation14 + $0x130] sm:$0xff]  ;;  %v10265_v36 = vcombine.low %v2124_v21, %v2128_v49  ;;  %v10275_v59 = vcombine.low %v2133_v9, %v2137_v46 }
 0x22f   :  { %v12602_v54 = vpack.c.bf16 %v12590_v18, %v12596_v34  ;;  %v10274_v62 = vcombine.high %v2132_v19, %v2136_v63  ;;  %v10273_v17 = vcombine.low %v2132_v19, %v2136_v63  ;;  %v10283_v49 = vcombine.low %v2141_v26, %v2145_v24 }
 0x230   :  { %2898 = vmatprep.mubr.bf16.mxu0 %v2097_v1  ;;  %2941 = vmatprep.mubr.bf16.mxu1 %v2097_v1 }
 0x231   :  { %2899 = vmatmul.mubr.bf16.vlgmr.msra.gmra.mrb[72].mxu0 %v12602_v54  ;;  %2942 = vmatmul.mubr.bf16.vlgmr.msra.gmra.mrb[72].mxu1 %v12602_v54 }
 0x232   :  { %2953 = vmatpush1.bf16.msra.mxu0 %v13475_v33  ;;  %2996 = vmatpush1.bf16.msra.mxu1 %v13476_v45  ;;  %v10284_v45 = vcombine.high %v2141_v26, %v2145_v24 }
 0x233   :  { %2984 = vmatprep.mubr.bf16.mxu0 %v2097_v1  ;;  %3027 = vmatprep.mubr.bf16.mxu1 %v2097_v1  ;;  %v10276_v1 = vcombine.high %v2133_v9, %v2137_v46 }
 0x234   :  { %2954 = vmatprep.subr.bf16.mxu0 %v10250_v10  ;;  %2997 = vmatprep.subr.bf16.mxu1 %v10252_v58  ;;  %v2140_v10 = vld [vmem:[#allocation14 + $0x150] sm:$0xff] }
 0x235   :  { %v2144_v58 = vld [vmem:[#allocation14 + $0x170] sm:$0xff] }
 0x236   :  { %2955 = vmatpush1.bf16.msra.mxu0 %v10249_v2  ;;  %2998 = vmatpush1.bf16.msra.mxu1 %v10251_v30  ;;  %v10282_v33 = vcombine.high %v2140_v10, %v2144_v58  ;;  %v2148_v2 = vld [vmem:[#allocation14 + $0x190] sm:$0xff]  ;;  %v10281_v21 = vcombine.low %v2140_v10, %v2144_v58 }
 0x237   :  { %2956 = vmatprep.subr.bf16.mxu0 %v10258_v32  ;;  %2999 = vmatprep.subr.bf16.mxu1 %v10260_v27  ;;  %v2152_v30 = vld [vmem:[#allocation14 + $0x1b0] sm:$0xff]  ;;  %v2149_v32 = vld [vmem:[#allocation14 + $0x198] sm:$0xff] }
 0x238   :  { %v2153_v27 = vld [vmem:[#allocation14 + $0x1b8] sm:$0xff]  ;;  %v10290_v50 = vcombine.high %v2148_v2, %v2152_v30  ;;  %v10289_v19 = vcombine.low %v2148_v2, %v2152_v30 }
 0x239   :  { %v10292_v6 = vcombine.high %v2149_v32, %v2153_v27  ;;  %v10291_v63 = vcombine.low %v2149_v32, %v2153_v27 }
 0x23a   :  { %2957 = vmatpush1.bf16.msra.mxu0 %v10257_v4  ;;  %3000 = vmatpush1.bf16.msra.mxu1 %v10259_v25  ;;  %v2156_v4 = vld [vmem:[#allocation14 + $0x1d0] sm:$0xff] }
 0x23b   :  { %2958 = vmatprep.subr.bf16.mxu0 %v10266_v12  ;;  %3001 = vmatprep.subr.bf16.mxu1 %v10268_v28  ;;  %v2160_v25 = vld [vmem:[#allocation14 + $0x1f0] sm:$0xff]  ;;  %v2157_v12 = vld [vmem:[#allocation14 + $0x1d8] sm:$0xff] }
 0x23c   :  { %v2161_v28 = vld [vmem:[#allocation14 + $0x1f8] sm:$0xff]  ;;  %v10298_v9 = vcombine.high %v2156_v4, %v2160_v25  ;;  %v10297_v10 = vcombine.low %v2156_v4, %v2160_v25 }
 0x23d   :  { %v10300_v46 = vcombine.high %v2157_v12, %v2161_v28  ;;  %v10299_v58 = vcombine.low %v2157_v12, %v2161_v28 }
 0x23e   :  { %2959 = vmatpush1.bf16.msra.mxu0 %v10265_v36  ;;  %3002 = vmatpush1.bf16.msra.mxu1 %v10267_v13  ;;  %v2164_v36 = vld [vmem:[#allocation14 + $0x210] sm:$0xff] }
 0x23f   :  { %2960 = vmatprep.subr.bf16.mxu0 %v10274_v62  ;;  %3003 = vmatprep.subr.bf16.mxu1 %v10276_v1  ;;  %v2168_v13 = vld [vmem:[#allocation14 + $0x230] sm:$0xff]  ;;  %v2165_v62 = vld [vmem:[#allocation14 + $0x218] sm:$0xff] }
 0x240   :  { %v2169_v1 = vld [vmem:[#allocation14 + $0x238] sm:$0xff]  ;;  %v10306_v26 = vcombine.high %v2164_v36, %v2168_v13  ;;  %v10305_v2 = vcombine.low %v2164_v36, %v2168_v13 }
 0x241   :  { %v10308_v24 = vcombine.high %v2165_v62, %v2169_v1  ;;  %v10307_v30 = vcombine.low %v2165_v62, %v2169_v1 }
 0x242   :  { %2961 = vmatpush1.bf16.msra.mxu0 %v10273_v17  ;;  %3004 = vmatpush1.bf16.msra.mxu1 %v10275_v59  ;;  %v2172_v17 = vld [vmem:[#allocation14 + $0x250] sm:$0xff] }
 0x243   :  { %2962 = vmatprep.subr.bf16.mxu0 %v10282_v33  ;;  %3005 = vmatprep.subr.bf16.mxu1 %v10284_v45  ;;  %v2176_v59 = vld [vmem:[#allocation14 + $0x270] sm:$0xff]  ;;  %v2173_v33 = vld [vmem:[#allocation14 + $0x258] sm:$0xff] }
 0x244   :  { %v2177_v45 = vld [vmem:[#allocation14 + $0x278] sm:$0xff]  ;;  %v10314_v32 = vcombine.high %v2172_v17, %v2176_v59  ;;  %v10313_v4 = vcombine.low %v2172_v17, %v2176_v59 }
 0x245   :  { %v10316_v27 = vcombine.high %v2173_v33, %v2177_v45  ;;  %v10315_v25 = vcombine.low %v2173_v33, %v2177_v45 }
 0x246   :  { %2963 = vmatpush1.bf16.msra.mxu0 %v10281_v21  ;;  %3006 = vmatpush1.bf16.msra.mxu1 %v10283_v49  ;;  %v2180_v21 = vld [vmem:[#allocation14 + $0x290] sm:$0xff] }
 0x247   :  { %2964 = vmatprep.subr.bf16.mxu0 %v10290_v50  ;;  %3007 = vmatprep.subr.bf16.mxu1 %v10292_v6  ;;  %v2184_v49 = vld [vmem:[#allocation14 + $0x2b0] sm:$0xff]  ;;  %v2181_v50 = vld [vmem:[#allocation14 + $0x298] sm:$0xff] }
 0x248   :  { %v2185_v6 = vld [vmem:[#allocation14 + $0x2b8] sm:$0xff]  ;;  %v10322_v12 = vcombine.high %v2180_v21, %v2184_v49  ;;  %v10321_v36 = vcombine.low %v2180_v21, %v2184_v49 }
 0x249   :  { %v10324_v28 = vcombine.high %v2181_v50, %v2185_v6  ;;  %v10323_v13 = vcombine.low %v2181_v50, %v2185_v6 }
 0x24a   :  { %2965 = vmatpush1.bf16.msra.mxu0 %v10289_v19  ;;  %3008 = vmatpush1.bf16.msra.mxu1 %v10291_v63  ;;  %v2188_v19 = vld [vmem:[#allocation14 + $0x2d0] sm:$0xff] }
 0x24b   :  { %2966 = vmatprep.subr.bf16.mxu0 %v10298_v9  ;;  %3009 = vmatprep.subr.bf16.mxu1 %v10300_v46  ;;  %v2192_v63 = vld [vmem:[#allocation14 + $0x2f0] sm:$0xff]  ;;  %v2189_v9 = vld [vmem:[#allocation14 + $0x2d8] sm:$0xff] }
 0x24c   :  { %v2193_v46 = vld [vmem:[#allocation14 + $0x2f8] sm:$0xff]  ;;  %v10330_v62 = vcombine.high %v2188_v19, %v2192_v63  ;;  %v10329_v17 = vcombine.low %v2188_v19, %v2192_v63 }
 0x24d   :  { %v10332_v1 = vcombine.high %v2189_v9, %v2193_v46  ;;  %v10331_v59 = vcombine.low %v2189_v9, %v2193_v46 }
 0x24e   :  { %2967 = vmatpush1.bf16.msra.mxu0 %v10297_v10  ;;  %3010 = vmatpush1.bf16.msra.mxu1 %v10299_v58  ;;  %v2196_v10 = vld [vmem:[#allocation14 + $0x310] sm:$0xff] }
 0x24f   :  { %2968 = vmatprep.subr.bf16.mxu0 %v10306_v26  ;;  %3011 = vmatprep.subr.bf16.mxu1 %v10308_v24  ;;  %v2200_v58 = vld [vmem:[#allocation14 + $0x330] sm:$0xff]  ;;  %v2197_v26 = vld [vmem:[#allocation14 + $0x318] sm:$0xff] }
 0x250   :  { %v2201_v24 = vld [vmem:[#allocation14 + $0x338] sm:$0xff]  ;;  %v10338_v33 = vcombine.high %v2196_v10, %v2200_v58  ;;  %v10337_v21 = vcombine.low %v2196_v10, %v2200_v58 }
 0x251   :  { %v10340_v45 = vcombine.high %v2197_v26, %v2201_v24  ;;  %v10339_v49 = vcombine.low %v2197_v26, %v2201_v24 }
 0x252   :  { %2969 = vmatpush1.bf16.msra.mxu0 %v10305_v2  ;;  %3012 = vmatpush1.bf16.msra.mxu1 %v10307_v30  ;;  %v2204_v2 = vld [vmem:[#allocation14 + $0x350] sm:$0xff] }
 0x253   :  { %2970 = vmatprep.subr.bf16.mxu0 %v10314_v32  ;;  %3013 = vmatprep.subr.bf16.mxu1 %v10316_v27  ;;  %v2208_v30 = vld [vmem:[#allocation14 + $0x370] sm:$0xff]  ;;  %v2205_v32 = vld [vmem:[#allocation14 + $0x358] sm:$0xff] }
 0x254   :  { %v2209_v27 = vld [vmem:[#allocation14 + $0x378] sm:$0xff]  ;;  %v10346_v50 = vcombine.high %v2204_v2, %v2208_v30  ;;  %v10345_v19 = vcombine.low %v2204_v2, %v2208_v30  ;;  %v3195_v2 = vld [vmem:[#allocation14 + $0x8] sm:$0xff] }
 0x255   :  { %v10348_v6 = vcombine.high %v2205_v32, %v2209_v27  ;;  %v10347_v63 = vcombine.low %v2205_v32, %v2209_v27  ;;  %v3199_v27 = vld [vmem:[#allocation14 + $0x28] sm:$0xff] }
 0x256   :  { %2971 = vmatpush1.bf16.msra.mxu0 %v10313_v4  ;;  %3014 = vmatpush1.bf16.msra.mxu1 %v10315_v25  ;;  %v2212_v4 = vld [vmem:[#allocation14 + $0x390] sm:$0xff] }
 0x257   :  { %2972 = vmatprep.subr.bf16.mxu0 %v10322_v12  ;;  %3015 = vmatprep.subr.bf16.mxu1 %v10324_v28  ;;  %v2216_v25 = vld [vmem:[#allocation14 + $0x3b0] sm:$0xff]  ;;  %v2213_v12 = vld [vmem:[#allocation14 + $0x398] sm:$0xff] }
 0x258   :  { %v2217_v28 = vld [vmem:[#allocation14 + $0x3b8] sm:$0xff]  ;;  %v10354_v9 = vcombine.high %v2212_v4, %v2216_v25  ;;  %v10353_v10 = vcombine.low %v2212_v4, %v2216_v25  ;;  %v3203_v25 = vld [vmem:[#allocation14 + $0x48] sm:$0xff] }
 0x259   :  { %v10356_v46 = vcombine.high %v2213_v12, %v2217_v28  ;;  %v10355_v58 = vcombine.low %v2213_v12, %v2217_v28  ;;  %v3207_v12 = vld [vmem:[#allocation14 + $0x68] sm:$0xff]  ;;  %v3210_v28 = vld [vmem:[#allocation14 + $0x80] sm:$0xff] }
 0x25a   :  { %2973 = vmatpush1.bf16.msra.mxu0 %v10321_v36  ;;  %3016 = vmatpush1.bf16.msra.mxu1 %v10323_v13  ;;  %v2220_v36 = vld [vmem:[#allocation14 + $0x3d0] sm:$0xff] }
 0x25b   :  { %2974 = vmatprep.subr.bf16.mxu0 %v10330_v62  ;;  %3017 = vmatprep.subr.bf16.mxu1 %v10332_v1  ;;  %v2224_v13 = vld [vmem:[#allocation14 + $0x3f0] sm:$0xff]  ;;  %v2221_v62 = vld [vmem:[#allocation14 + $0x3d8] sm:$0xff] }
 0x25c   :  { %v2225_v1 = vld [vmem:[#allocation14 + $0x3f8] sm:$0xff]  ;;  %v10362_v26 = vcombine.high %v2220_v36, %v2224_v13 }
 0x25d   :  { %v10364_v24 = vcombine.high %v2221_v62, %v2225_v1 }
 0x25e   :  { %2975 = vmatpush1.bf16.msra.mxu0 %v10329_v17  ;;  %3018 = vmatpush1.bf16.msra.mxu1 %v10331_v59  ;;  %v10361_v17 = vcombine.low %v2220_v36, %v2224_v13  ;;  %v10363_v59 = vcombine.low %v2221_v62, %v2225_v1  ;;  %v10387_v36 = vcombine.low %v3203_v25, %v3207_v12 }
 0x25f   :  { %2976 = vmatprep.subr.bf16.mxu0 %v10338_v33  ;;  %3019 = vmatprep.subr.bf16.mxu1 %v10340_v45  ;;  %v3194_v33 = vld [vmem:[#allocation14] sm:$0xff] }
 0x260   :  { %v3198_v45 = vld [vmem:[#allocation14 + $0x20] sm:$0xff] }
 0x261   :  { %v10377_v30 = vcombine.low %v3194_v33, %v3198_v45  ;;  %v10378_v32 = vcombine.high %v3194_v33, %v3198_v45  ;;  %v13505_v33 = vld [vmem:[#allocation105_spill] sm:$0xff]  ;;  %v12666_v45 = vld [vmem:[#allocation14 + $0x10] sm:$0xff] }
 0x262   :  { %2977 = vmatpush1.bf16.msra.mxu0 %v10337_v21  ;;  %3020 = vmatpush1.bf16.msra.mxu1 %v10339_v49  ;;  %v3202_v21 = vld [vmem:[#allocation14 + $0x40] sm:$0xff] }
 0x263   :  { %2978 = vmatprep.subr.bf16.mxu0 %v10346_v50  ;;  %3021 = vmatprep.subr.bf16.mxu1 %v10348_v6  ;;  %v3206_v49 = vld [vmem:[#allocation14 + $0x60] sm:$0xff]  ;;  %v10379_v50 = vcombine.low %v3195_v2, %v3199_v27  ;;  %v10380_v6 = vcombine.high %v3195_v2, %v3199_v27  ;;  %v12668_v2 = vld [vmem:[#allocation14 + $0x30] sm:$0xff] }
 0x264   :  { %v10386_v4 = vcombine.high %v3202_v21, %v3206_v49  ;;  %v10382_v27 = vcombine.high %v12666_v45, %v12668_v2 }
 0x266   :  { %2979 = vmatpush1.bf16.msra.mxu0 %v10345_v19  ;;  %3022 = vmatpush1.bf16.msra.mxu1 %v10347_v63  ;;  %v10388_v19 = vcombine.high %v3203_v25, %v3207_v12  ;;  %v3214_v63 = vld [vmem:[#allocation14 + $0xa0] sm:$0xff]  ;;  %v13507_v12 = vld [vmem:[#allocation23_spill] sm:$0xff] }
 0x267   :  { %2980 = vmatprep.subr.bf16.mxu0 %v10354_v9  ;;  %3023 = vmatprep.subr.bf16.mxu1 %v10356_v46  ;;  %v3211_v9 = vld [vmem:[#allocation14 + $0x88] sm:$0xff]  ;;  %v10394_v13 = vcombine.high %v3210_v28, %v3214_v63  ;;  %v10393_v1 = vcombine.low %v3210_v28, %v3214_v63  ;;  %v3046_v28 = vunpack.c.l.bf16 %v13507_v12 }
 0x268   :  { %v3215_v46 = vld [vmem:[#allocation14 + $0xa8] sm:$0xff] }
 0x269   :  { %v10396_v62 = vcombine.high %v3211_v9, %v3215_v46 }
 0x26a   :  { %2981 = vmatpush1.bf16.msra.mxu0 %v10353_v10  ;;  %3024 = vmatpush1.bf16.msra.mxu1 %v10355_v58  ;;  %v10395_v10 = vcombine.low %v3211_v9, %v3215_v46  ;;  %v13500_v58 = vld [vmem:[#allocation97_spill] sm:$0xff]  ;;  %v13508_v46 = vld [vmem:[#allocation24_spill] sm:$0xff] }
 0x26b   :  { %2982 = vmatprep.subr.bf16.mxu0 %v10362_v26  ;;  %3025 = vmatprep.subr.bf16.mxu1 %v10364_v24  ;;  %v13501_v26 = vld [vmem:[#allocation99_spill] sm:$0xff]  ;;  %v13502_v24 = vld [vmem:[#allocation98_spill] sm:$0xff] }
 0x26e   :  { %2983 = vmatpush1.bf16.msra.mxu0 %v10361_v17  ;;  %3026 = vmatpush1.bf16.msra.mxu1 %v10363_v59  ;;  %v13503_v17 = vld [vmem:[#allocation100_spill] sm:$0xff]  ;;  %v13504_v59 = vld [vmem:[#allocation101_spill] sm:$0xff] }
 0x26f   :  { %3962 = vmatprep.subr.bf16.mxu0 %v10378_v32  ;;  %4005 = vmatprep.subr.bf16.mxu1 %v10380_v6  ;;  %v10381_v32 = vcombine.low %v12666_v45, %v12668_v2  ;;  %v13506_v6 = vld [vmem:[#allocation22_spill] sm:$0xff] }
 0x270   :  { %v3049_v25 = vunpack.c.h.bf16 %v13506_v6 }
 0x271   :  { %2985 = vmatmul.mubr.bf16.vlgmr.msra.gmra.mrb[76].mxu0 %v12602_v54  ;;  %3028 = vmatmul.mubr.bf16.vlgmr.msra.gmra.mrb[76].mxu1 %v12602_v54  ;;  %v10385_v54 = vcombine.low %v3202_v21, %v3206_v49  ;;  %v12676_v21 = vld [vmem:[#allocation14 + $0x38] sm:$0xff] }
 0x272   :  { %3963 = vmatpush1.bf16.msra.mxu0 %v10377_v30  ;;  %4006 = vmatpush1.bf16.msra.mxu1 %v10379_v50  ;;  %v12670_v30 = vld [vmem:[#allocation14 + $0x18] sm:$0xff] }
 0x273   :  { %3964 = vmatprep.subr.bf16.mxu0 %v10386_v4  ;;  %4007 = vmatprep.subr.bf16.mxu1 %v10388_v19  ;;  %v10383_v49 = vcombine.low %v12670_v30, %v12676_v21  ;;  %v10384_v50 = vcombine.high %v12670_v30, %v12676_v21  ;;  %v3045_v4 = vunpack.c.l.bf16 %v13506_v6  ;;  %v3050_v19 = vunpack.c.h.bf16 %v13507_v12  ;;  %v3228_v21 = vld [vmem:[#allocation14 + $0x110] sm:$0xff] }
 0x276   :  { %3965 = vmatpush1.bf16.msra.mxu0 %v10385_v54  ;;  %4008 = vmatpush1.bf16.msra.mxu1 %v10387_v36  ;;  %v3047_v54 = vunpack.c.l.bf16 %v13508_v46  ;;  %v3051_v36 = vunpack.c.h.bf16 %v13508_v46 }
 0x277   :  { %3966 = vmatprep.subr.bf16.mxu0 %v10394_v13  ;;  %4009 = vmatprep.subr.bf16.mxu1 %v10396_v62  ;;  %v13509_v13 = vld [vmem:[#allocation107_spill] sm:$0xff] }
 0x27a   :  { %3967 = vmatpush1.bf16.msra.mxu0 %v10393_v1  ;;  %4010 = vmatpush1.bf16.msra.mxu1 %v10395_v10 }
 0x27b   :  { %3968 = vmatprep.subr.bf16.mxu0 %v12265_v20  ;;  %4011 = vmatprep.subr.bf16.mxu1 %v12278_v39  ;;  %v13477_v20 = vld [vmem:[#allocation62_spill] sm:$0xff]  ;;  %v13480_v39 = vld [vmem:[#allocation67_spill] sm:$0xff] }
 0x27e   :  { %3969 = vmatpush1.bf16.msra.mxu0 %v12269_v31  ;;  %4012 = vmatpush1.bf16.msra.mxu1 %v12276_v38  ;;  %v13478_v31 = vld [vmem:[#allocation64_spill] sm:$0xff]  ;;  %v13479_v38 = vld [vmem:[#allocation70_spill] sm:$0xff] }
 0x27f   :  { %3970 = vmatprep.subr.bf16.mxu0 %v12285_v51  ;;  %4013 = vmatprep.subr.bf16.mxu1 %v12291_v57  ;;  %v13482_v51 = vld [vmem:[#allocation71_spill] sm:$0xff]  ;;  %v13485_v57 = vld [vmem:[#allocation73_spill] sm:$0xff] }
 0x282   :  { %3971 = vmatpush1.bf16.msra.mxu0 %v12287_v55  ;;  %4014 = vmatpush1.bf16.msra.mxu1 %v12289_v56  ;;  %v13483_v55 = vld [vmem:[#allocation74_spill] sm:$0xff]  ;;  %v13484_v56 = vld [vmem:[#allocation72_spill] sm:$0xff] }
 0x283   :  { %3972 = vmatprep.subr.bf16.mxu0 %v12299_v23  ;;  %4015 = vmatprep.subr.bf16.mxu1 %v12312_v53  ;;  %v13486_v23 = vld [vmem:[#allocation76_spill] sm:$0xff]  ;;  %v13491_v53 = vld [vmem:[#allocation86_spill] sm:$0xff] }
 0x286   :  { %3973 = vmatpush1.bf16.msra.mxu0 %v12305_v41  ;;  %4016 = vmatpush1.bf16.msra.mxu1 %v12307_v44  ;;  %v13488_v41 = vld [vmem:[#allocation79_spill] sm:$0xff]  ;;  %v13489_v44 = vld [vmem:[#allocation80_spill] sm:$0xff] }
 0x287   :  { %3974 = vmatprep.subr.bf16.mxu0 %v12316_v60  ;;  %4017 = vmatprep.subr.bf16.mxu1 %v12323_v15  ;;  %v13492_v60 = vld [vmem:[#allocation84_spill] sm:$0xff]  ;;  %v13495_v15 = vld [vmem:[#allocation89_spill] sm:$0xff] }
 0x28a   :  { %3975 = vmatpush1.bf16.msra.mxu0 %v12319_v8  ;;  %4018 = vmatpush1.bf16.msra.mxu1 %v12321_v5  ;;  %v13493_v8 = vld [vmem:[#allocation85_spill] sm:$0xff]  ;;  %v13494_v5 = vld [vmem:[#allocation87_spill] sm:$0xff] }
 0x28b   :  { %3976 = vmatprep.subr.bf16.mxu0 %v12330_v3  ;;  %4019 = vmatprep.subr.bf16.mxu1 %v12344_v7  ;;  %v13481_v3 = vld [vmem:[#allocation68_spill] sm:$0xff] }
 0x28c   :  { %v13496_v7 = vld [vmem:[#allocation88_spill] sm:$0xff] }
 0x28e   :  { %3977 = vmatpush1.bf16.msra.mxu0 %v12337_v47  ;;  %4020 = vmatpush1.bf16.msra.mxu1 %v12339_v29  ;;  %v13487_v29 = vld [vmem:[#allocation82_spill] sm:$0xff]  ;;  %v13490_v47 = vld [vmem:[#allocation83_spill] sm:$0xff] }
 0x28f   :  { %3978 = vmatprep.subr.bf16.mxu0 %v12348_v16  ;;  %4021 = vmatprep.subr.bf16.mxu1 %v12355_v37  ;;  %v13497_v16 = vld [vmem:[#allocation94_spill] sm:$0xff]  ;;  %v13499_v37 = vld [vmem:[#allocation96_spill] sm:$0xff] }
 0x292   :  { %3979 = vmatpush1.bf16.msra.mxu0 %v12351_v35  ;;  %4022 = vmatpush1.bf16.msra.mxu1 %v13477_v20  ;;  %v13498_v35 = vld [vmem:[#allocation91_spill] sm:$0xff] }
 0x293   :  { %3980 = vmatprep.subr.bf16.mxu0 %v13478_v31  ;;  %4023 = vmatprep.subr.bf16.mxu1 %v13479_v38  ;;  %v13510_v31 = vld [vmem:[#allocation25_spill] sm:$0xff] }
 0x294   :  { %v3048_v38 = vunpack.c.l.bf16 %v13510_v31 }
 0x296   :  { %3981 = vmatpush1.bf16.msra.mxu0 %v13480_v39  ;;  %4024 = vmatpush1.bf16.msra.mxu1 %v13481_v3  ;;  %v3052_v39 = vunpack.c.h.bf16 %v13510_v31  ;;  %v13511_v3 = vld [vmem:[#allocation108_spill] sm:$0xff] }
 0x297   :  { %3982 = vmatprep.subr.bf16.mxu0 %v13482_v51  ;;  %4025 = vmatprep.subr.bf16.mxu1 %v13483_v55  ;;  %v13512_v55 = vld [vmem:[#allocation109_spill] sm:$0xff] }
 0x29a   :  { %3983 = vmatpush1.bf16.msra.mxu0 %v13484_v56  ;;  %4026 = vmatpush1.bf16.msra.mxu1 %v13485_v57 }
 0x29b   :  { %3984 = vmatprep.subr.bf16.mxu0 %v13486_v23  ;;  %4027 = vmatprep.subr.bf16.mxu1 %v13487_v29 }
 0x29e   :  { %3985 = vmatpush1.bf16.msra.mxu0 %v13488_v41  ;;  %4028 = vmatpush1.bf16.msra.mxu1 %v13489_v44 }
 0x29f   :  { %3986 = vmatprep.subr.bf16.mxu0 %v13490_v47  ;;  %4029 = vmatprep.subr.bf16.mxu1 %v13491_v53 }
 0x2a2   :  { %3987 = vmatpush1.bf16.msra.mxu0 %v13492_v60  ;;  %4030 = vmatpush1.bf16.msra.mxu1 %v13493_v8 }
 0x2a3   :  { %3988 = vmatprep.subr.bf16.mxu0 %v13494_v5  ;;  %4031 = vmatprep.subr.bf16.mxu1 %v13495_v15 }
 0x2a6   :  { %3989 = vmatpush1.bf16.msra.mxu0 %v13496_v7  ;;  %4032 = vmatpush1.bf16.msra.mxu1 %v13497_v16 }
 0x2a7   :  { %3990 = vmatprep.subr.bf16.mxu0 %v13498_v35  ;;  %4033 = vmatprep.subr.bf16.mxu1 %v13499_v37 }
 0x2aa   :  { %3991 = vmatpush1.bf16.msra.mxu0 %v13500_v58  ;;  %4034 = vmatpush1.bf16.msra.mxu1 %v13501_v26 }
 0x2ab   :  { %3992 = vmatprep.subr.bf16.mxu0 %v13502_v24  ;;  %4035 = vmatprep.subr.bf16.mxu1 %v13503_v17 }
 0x2ae   :  { %3993 = vmatpush1.bf16.msra.mxu0 %v13504_v59  ;;  %4036 = vmatpush1.bf16.msra.mxu1 %v13505_v33 }
 0x2af   :  { %4048 = vmatprep.subr.bf16.mxu0 %v10382_v27  ;;  %4091 = vmatprep.subr.bf16.mxu1 %v10384_v50 }
 0x304   :  { %v2900_v63 = vpop.f32.mrb[72].mxu0  ;;  %v2943_v9 = vpop.f32.mrb[72].mxu1 }
 0x305   :  { %v2901_v62 = vadd.f32 %v2900_v63, %v13509_v13  ;;  %v2944_v1 = vadd.f32 %v2943_v9, %v12516_v48  ;;  %v2902_v10 = vpop.f32.mrb[73].mxu0  ;;  %v2945_v20 = vpop.f32.mrb[73].mxu1 }
 0x306   :  { %v2903_v51 = vadd.f32 %v2902_v10, %v13511_v3  ;;  %v2946_v56 = vadd.f32 %v2945_v20, %v13512_v55  ;;  %v2904_v57 = vpop.f32.mrb[74].mxu0  ;;  %v2947_v23 = vpop.f32.mrb[74].mxu1 }
 0x307   :  { %v3053_v29 = vadd.f32 %v3045_v4, %v2901_v62  ;;  %v3055_v41 = vadd.f32 %v3047_v54, %v2944_v1  ;;  %v2905_v44 = vadd.f32 %v2904_v57, %v13509_v13  ;;  %v2948_v47 = vadd.f32 %v2947_v23, %v12516_v48  ;;  %v2906_v53 = vpop.f32.mrb[75].mxu0  ;;  %v2949_v60 = vpop.f32.mrb[75].mxu1 }
 0x308   :  { %v3054_v8 = vadd.f32 %v3046_v28, %v2903_v51  ;;  %v3056_v5 = vadd.f32 %v3048_v38, %v2946_v56  ;;  %v2907_v15 = vadd.f32 %v2906_v53, %v13511_v3  ;;  %v2950_v7 = vadd.f32 %v2949_v60, %v13512_v55 }
 0x309   :  { %v10365_v16 = vmul.f32 -1.442695, %v3053_v29  ;;  %v3057_v35 = vadd.f32 %v3049_v25, %v2905_v44  ;;  %v3059_v37 = vadd.f32 %v3051_v36, %v2948_v47 }
 0x30a   :  { %v10367_v58 = vmul.f32 -1.442695, %v3054_v8  ;;  %v3058_v26 = vadd.f32 %v3050_v19, %v2907_v15  ;;  %v3060_v24 = vadd.f32 %v3052_v39, %v2950_v7  ;;  %v10369_v33 = vmul.f32 -1.442695, %v3056_v5  ;;  %v13514_v7 = vld [vmem:[#allocation103_spill] sm:$0xff] }
 0x30b   :  { %11403 = vpow2.f32 %v10365_v16  ;;  %v10366_v17 = vmul.f32 -1.442695, %v3057_v35  ;;  %v3069_v16 = vunpack.c.l.bf16 %v13514_v7  ;;  %v3073_v35 = vunpack.c.h.bf16 %v13514_v7 }
 0x30c   :  { %11405 = vpow2.f32 %v10367_v58  ;;  %v10368_v59 = vmul.f32 -1.442695, %v3058_v26  ;;  %v10370_v4 = vmul.f32 -1.442695, %v3060_v24  ;;  %v13515_v26 = vld [vmem:[#allocation104_spill] sm:$0xff] }
 0x30d   :  { %11407 = vpow2.f32 %v10366_v17  ;;  %v3070_v24 = vunpack.c.l.bf16 %v13515_v26  ;;  %v3074_v17 = vunpack.c.h.bf16 %v13515_v26 }
 0x30e   :  { %11409 = vpow2.f32 %v10368_v59  ;;  %v13516_v59 = vld [vmem:[#allocation110_spill] sm:$0xff] }
 0x30f   :  { %11411 = vtanh.f32 %v3055_v41 }
 0x310   :  { %11413 = vpow2.f32 %v10369_v33 }
 0x311   :  { %11415 = vtanh.f32 %v3059_v37 }
 0x315   :  { %v11404_v27 = vpop.eup %11403 }
 0x316   :  { %v11406_v50 = vpop.eup %11405  ;;  %v3090_v6 = vadd.f32 1.0, %v11404_v27 }
 0x317   :  { %v3102_v12 = vadd.f32 1.0, %v11406_v50  ;;  %v11408_v25 = vpop.eup %11407 }
 0x318   :  { %11417 = vrcp.f32 %v3090_v6  ;;  %v3091_v28 = vadd.f32 1.0, %v11408_v25  ;;  %v11410_v19 = vpop.eup %11409 }
 0x319   :  { %11419 = vrcp.f32 %v3102_v12  ;;  %v3103_v63 = vadd.f32 1.0, %v11410_v19  ;;  %v11412_v9 = vpop.eup %11411 }
 0x31a   :  { %11421 = vpow2.f32 %v10370_v4  ;;  %v11414_v46 = vpop.eup %11413  ;;  %v13517_v4 = vld [vmem:[#allocation106_spill] sm:$0xff] }
 0x31b   :  { %11423 = vrcp.f32 %v3091_v28  ;;  %v11416_v54 = vpop.eup %11415  ;;  %v3116_v38 = vadd.f32 1.0, %v11414_v46  ;;  %v3071_v12 = vunpack.c.l.bf16 %v13517_v4  ;;  %v3075_v25 = vunpack.c.h.bf16 %v13517_v4 }
 0x31c   :  { %11425 = vrcp.f32 %v3103_v63 }
 0x31d   :  { %11427 = vrcp.f32 %v3116_v38 }
 0x322   :  { %v11418_v36 = vpop.eup %11417 }
 0x323   :  { %v11420_v62 = vpop.eup %11419  ;;  %v3124_v1 = vmul.f32 %v11418_v36, %v11412_v9 }
 0x324   :  { %v11422_v10 = vpop.eup %11421  ;;  %v3122_v20 = vmul.f32 %v11420_v62, %v12544_v61 }
 0x325   :  { %v11424_v31 = vpop.eup %11423  ;;  %v3117_v57 = vadd.f32 1.0, %v11422_v10 }
 0x326   :  { %v12699_v39 = vadd.f32 %v3124_v1, %v3122_v20  ;;  %v3125_v51 = vmul.f32 %v11424_v31, %v11416_v54  ;;  %v11426_v56 = vpop.eup %11425 }
 0x327   :  { %v3123_v23 = vmul.f32 %v11426_v56, %v12546_v22  ;;  %v11428_v41 = vpop.eup %11427  ;;  %v13513_v22 = vld [vmem:[#allocation102_spill] sm:$0xff] }
 0x328   :  { %11429 = vtanh.f32 %v12699_v39  ;;  %v3068_v5 = vunpack.c.l.bf16 %v13513_v22  ;;  %v3072_v15 = vunpack.c.h.bf16 %v13513_v22 }
 0x329   :  { %v12702_v29 = vadd.f32 %v3125_v51, %v3123_v23  ;;  %11431 = vrcp.f32 %v3117_v57 }
 0x32b   :  { %11433 = vtanh.f32 %v12702_v29 }
 0x332   :  { %v11430_v44 = vpop.eup %11429 }
 0x333   :  { %v11432_v61 = vpop.eup %11431  ;;  %v12706_v53 = vmul.f32 %v11430_v44, %v11428_v41 }
 0x335   :  { %v11434_v47 = vpop.eup %11433 }
 0x336   :  { %v12708_v60 = vmul.f32 %v11434_v47, %v11432_v61 }
 0x338   :  { %v12712_v8 = vpack.c.bf16 %v12708_v60, %v12706_v53 }
 0x344   :  { %v2986_v37 = vpop.f32.mrb[76].mxu0  ;;  %v3029_v58 = vpop.f32.mrb[76].mxu1 }
 0x345   :  { %v2987_v33 = vadd.f32 %v2986_v37, %v13516_v59  ;;  %v3030_v27 = vadd.f32 %v3029_v58, %v12556_v11  ;;  %v2988_v50 = vpop.f32.mrb[77].mxu0  ;;  %v3031_v6 = vpop.f32.mrb[77].mxu1 }
 0x346   :  { %v2989_v28 = vadd.f32 %v2988_v50, %v12559_v42  ;;  %v3032_v19 = vadd.f32 %v3031_v6, %v12562_v40  ;;  %v2990_v63 = vpop.f32.mrb[78].mxu0  ;;  %v3033_v9 = vpop.f32.mrb[78].mxu1 }
 0x347   :  { %v3076_v46 = vadd.f32 %v3068_v5, %v2987_v33  ;;  %v3078_v54 = vadd.f32 %v3070_v24, %v3030_v27  ;;  %v2991_v36 = vadd.f32 %v2990_v63, %v13516_v59  ;;  %v3034_v62 = vadd.f32 %v3033_v9, %v12556_v11  ;;  %v2992_v1 = vpop.f32.mrb[79].mxu0  ;;  %v3035_v10 = vpop.f32.mrb[79].mxu1 }
 0x348   :  { %v3077_v20 = vadd.f32 %v3069_v16, %v2989_v28  ;;  %v3079_v31 = vadd.f32 %v3071_v12, %v3032_v19  ;;  %v2993_v38 = vadd.f32 %v2992_v1, %v12559_v42  ;;  %v3036_v51 = vadd.f32 %v3035_v10, %v12562_v40 }
 0x349   :  { %v10371_v56 = vmul.f32 -1.442695, %v3076_v46  ;;  %v3080_v57 = vadd.f32 %v3072_v15, %v2991_v36  ;;  %v3082_v23 = vadd.f32 %v3074_v17, %v3034_v62 }
 0x34a   :  { %v10373_v41 = vmul.f32 -1.442695, %v3077_v20  ;;  %v3081_v44 = vadd.f32 %v3073_v35, %v2993_v38  ;;  %v3083_v61 = vadd.f32 %v3075_v25, %v3036_v51  ;;  %v10375_v5 = vmul.f32 -1.442695, %v3079_v31 }
 0x34b   :  { %11435 = vpow2.f32 %v10371_v56  ;;  %v10372_v47 = vmul.f32 -1.442695, %v3080_v57  ;;  %v3204_v56 = vld [vmem:[#allocation14 + $0x50] sm:$0xff] }
 0x34c   :  { %11437 = vpow2.f32 %v10373_v41  ;;  %v10374_v22 = vmul.f32 -1.442695, %v3081_v44  ;;  %v10376_v58 = vmul.f32 -1.442695, %v3083_v61  ;;  %v3208_v57 = vld [vmem:[#allocation14 + $0x70] sm:$0xff] }
 0x34d   :  { %11439 = vpow2.f32 %v10372_v47  ;;  %v3212_v44 = vld [vmem:[#allocation14 + $0x90] sm:$0xff]  ;;  %v10390_v61 = vcombine.high %v3204_v56, %v3208_v57 }
 0x34e   :  { %11441 = vpow2.f32 %v10374_v22  ;;  %v3216_v22 = vld [vmem:[#allocation14 + $0xb0] sm:$0xff] }
 0x34f   :  { %11443 = vtanh.f32 %v3078_v54  ;;  %v10397_v45 = vcombine.low %v3212_v44, %v3216_v22 }
 0x350   :  { %11445 = vpow2.f32 %v10375_v5  ;;  %v3213_v5 = vld [vmem:[#allocation14 + $0x98] sm:$0xff] }
 0x351   :  { %11447 = vtanh.f32 %v3082_v23  ;;  %v3205_v23 = vld [vmem:[#allocation14 + $0x58] sm:$0xff] }
 0x355   :  { %v11436_v7 = vpop.eup %11435 }
 0x356   :  { %v11438_v16 = vpop.eup %11437  ;;  %v3138_v37 = vadd.f32 1.0, %v11436_v7  ;;  %v3217_v7 = vld [vmem:[#allocation14 + $0xb8] sm:$0xff] }
 0x357   :  { %v3150_v26 = vadd.f32 1.0, %v11438_v16  ;;  %v11440_v15 = vpop.eup %11439  ;;  %v10389_v16 = vcombine.low %v3204_v56, %v3208_v57  ;;  %v10399_v2 = vcombine.low %v3213_v5, %v3217_v7 }
 0x358   :  { %11449 = vrcp.f32 %v3138_v37  ;;  %v3139_v35 = vadd.f32 1.0, %v11440_v15  ;;  %v11442_v24 = vpop.eup %11441  ;;  %v3220_v15 = vld [vmem:[#allocation14 + $0xd0] sm:$0xff] }
 0x359   :  { %11451 = vrcp.f32 %v3150_v26  ;;  %v3151_v17 = vadd.f32 1.0, %v11442_v24  ;;  %v11444_v33 = vpop.eup %11443  ;;  %v10400_v26 = vcombine.high %v3213_v5, %v3217_v7  ;;  %v3221_v24 = vld [vmem:[#allocation14 + $0xd8] sm:$0xff] }
 0x35a   :  { %11453 = vpow2.f32 %v10376_v58  ;;  %v11446_v27 = vpop.eup %11445  ;;  %v10398_v58 = vcombine.high %v3212_v44, %v3216_v22  ;;  %v3256_v44 = vld [vmem:[#allocation14 + $0x1f0] sm:$0xff] }
 0x35b   :  { %11455 = vrcp.f32 %v3139_v35  ;;  %v11448_v50 = vpop.eup %11447  ;;  %v3164_v63 = vadd.f32 1.0, %v11446_v27  ;;  %v3224_v35 = vld [vmem:[#allocation14 + $0xf0] sm:$0xff]  ;;  %v3233_v27 = vld [vmem:[#allocation14 + $0x138] sm:$0xff] }
 0x35c   :  { %11457 = vrcp.f32 %v3151_v17  ;;  %v3225_v17 = vld [vmem:[#allocation14 + $0xf8] sm:$0xff]  ;;  %v10406_v30 = vcombine.high %v3220_v15, %v3224_v35 }
 0x35d   :  { %11459 = vrcp.f32 %v3164_v63  ;;  %v3241_v63 = vld [vmem:[#allocation14 + $0x178] sm:$0xff] }
 0x362   :  { %v11450_v6 = vpop.eup %11449 }
 0x363   :  { %v11452_v4 = vpop.eup %11451  ;;  %v3172_v12 = vmul.f32 %v11450_v6, %v11444_v33  ;;  %v3229_v33 = vld [vmem:[#allocation14 + $0x118] sm:$0xff]  ;;  %v10407_v6 = vcombine.low %v3221_v24, %v3225_v17 }
 0x364   :  { %v11454_v25 = vpop.eup %11453  ;;  %v3170_v28 = vmul.f32 %v11452_v4, %v12582_v14 }
 0x365   :  { %v11456_v19 = vpop.eup %11455  ;;  %v3165_v36 = vadd.f32 1.0, %v11454_v25  ;;  %v3236_v25 = vld [vmem:[#allocation14 + $0x150] sm:$0xff] }
 0x366   :  { %v12731_v9 = vadd.f32 %v3172_v12, %v3170_v28  ;;  %v3173_v46 = vmul.f32 %v11456_v19, %v11448_v50  ;;  %v11458_v54 = vpop.eup %11457  ;;  %v10405_v50 = vcombine.low %v3220_v15, %v3224_v35  ;;  %v10416_v12 = vcombine.high %v3229_v33, %v3233_v27  ;;  %v3240_v28 = vld [vmem:[#allocation14 + $0x170] sm:$0xff]  ;;  %v3237_v19 = vld [vmem:[#allocation14 + $0x158] sm:$0xff] }
 0x367   :  { %v3171_v62 = vmul.f32 %v11458_v54, %v12587_v0  ;;  %v11460_v10 = vpop.eup %11459  ;;  %v3209_v0 = vld [vmem:[#allocation14 + $0x78] sm:$0xff]  ;;  %v10415_v54 = vcombine.low %v3229_v33, %v3233_v27  ;;  %v10421_v56 = vcombine.low %v3236_v25, %v3240_v28  ;;  %v10423_v57 = vcombine.low %v3237_v19, %v3241_v63 }
 0x368   :  { %11461 = vtanh.f32 %v12731_v9  ;;  %v10392_v47 = vcombine.high %v3205_v23, %v3209_v0  ;;  %v10391_v37 = vcombine.low %v3205_v23, %v3209_v0  ;;  %v3265_v15 = vld [vmem:[#allocation14 + $0x238] sm:$0xff] }
 0x369   :  { %v12734_v1 = vadd.f32 %v3173_v46, %v3171_v62  ;;  %11463 = vrcp.f32 %v3165_v36  ;;  %v10422_v36 = vcombine.high %v3236_v25, %v3240_v28  ;;  %v10424_v62 = vcombine.high %v3237_v19, %v3241_v63  ;;  %v3281_v25 = vld [vmem:[#allocation14 + $0x2b8] sm:$0xff] }
 0x36b   :  { %11465 = vtanh.f32 %v12734_v1 }
 0x372   :  { %v11462_v20 = vpop.eup %11461 }
 0x373   :  { %v11464_v14 = vpop.eup %11463  ;;  %v12738_v38 = vmul.f32 %v11462_v20, %v11460_v10  ;;  %v3244_v10 = vld [vmem:[#allocation14 + $0x190] sm:$0xff] }
 0x374   :  { %v3248_v20 = vld [vmem:[#allocation14 + $0x1b0] sm:$0xff] }
 0x375   :  { %v11466_v31 = vpop.eup %11465  ;;  %v10430_v23 = vcombine.high %v3244_v10, %v3248_v20  ;;  %v10429_v22 = vcombine.low %v3244_v10, %v3248_v20  ;;  %v3289_v10 = vld [vmem:[#allocation14 + $0x2f8] sm:$0xff] }
 0x376   :  { %v12740_v51 = vmul.f32 %v11466_v31, %v11464_v14  ;;  %v3245_v14 = vld [vmem:[#allocation14 + $0x198] sm:$0xff] }
 0x377   :  { %v3249_v31 = vld [vmem:[#allocation14 + $0x1b8] sm:$0xff] }
 0x378   :  { %v3193_v41 = vpack.c.bf16 %v12740_v51, %v12738_v38  ;;  %v10432_v0 = vcombine.high %v3245_v14, %v3249_v31  ;;  %v10431_v5 = vcombine.low %v3245_v14, %v3249_v31 }
 0x37a   :  { %3994 = vmatprep.mubr.bf16.mxu0 %v3193_v41  ;;  %4037 = vmatprep.mubr.bf16.mxu1 %v3193_v41 }
 0x37b   :  { %3995 = vmatmul.mubr.bf16.vlgmr.msra.gmra.mrb[80].mxu0 %v12712_v8  ;;  %4038 = vmatmul.mubr.bf16.vlgmr.msra.gmra.mrb[80].mxu1 %v12712_v8 }
 0x37c   :  { %4049 = vmatpush1.bf16.msra.mxu0 %v10381_v32  ;;  %4092 = vmatpush1.bf16.msra.mxu1 %v10383_v49  ;;  %v10408_v32 = vcombine.high %v3221_v24, %v3225_v17  ;;  %v3232_v49 = vld [vmem:[#allocation14 + $0x130] sm:$0xff] }
 0x37d   :  { %4080 = vmatprep.mubr.bf16.mxu0 %v3193_v41  ;;  %4123 = vmatprep.mubr.bf16.mxu1 %v3193_v41  ;;  %v10414_v4 = vcombine.high %v3228_v21, %v3232_v49  ;;  %v10413_v46 = vcombine.low %v3228_v21, %v3232_v49  ;;  %v3252_v41 = vld [vmem:[#allocation14 + $0x1d0] sm:$0xff]  ;;  %v3273_v21 = vld [vmem:[#allocation14 + $0x278] sm:$0xff] }
 0x37e   :  { %4050 = vmatprep.subr.bf16.mxu0 %v10390_v61  ;;  %4093 = vmatprep.subr.bf16.mxu1 %v10392_v47  ;;  %v3253_v61 = vld [vmem:[#allocation14 + $0x1d8] sm:$0xff]  ;;  %v10438_v7 = vcombine.high %v3252_v41, %v3256_v44  ;;  %v10437_v35 = vcombine.low %v3252_v41, %v3256_v44 }
 0x37f   :  { %v3257_v47 = vld [vmem:[#allocation14 + $0x1f8] sm:$0xff] }
 0x380   :  { %4051 = vmatpush1.bf16.msra.mxu0 %v10389_v16  ;;  %4094 = vmatpush1.bf16.msra.mxu1 %v10391_v37  ;;  %v10440_v16 = vcombine.high %v3253_v61, %v3257_v47  ;;  %v3260_v37 = vld [vmem:[#allocation14 + $0x210] sm:$0xff]  ;;  %v10439_v24 = vcombine.low %v3253_v61, %v3257_v47  ;;  %v3297_v41 = vld [vmem:[#allocation14 + $0x338] sm:$0xff] }
 0x381   :  { %4052 = vmatprep.subr.bf16.mxu0 %v10398_v58  ;;  %4095 = vmatprep.subr.bf16.mxu1 %v10400_v26  ;;  %v3264_v58 = vld [vmem:[#allocation14 + $0x230] sm:$0xff]  ;;  %v3261_v26 = vld [vmem:[#allocation14 + $0x218] sm:$0xff] }
 0x382   :  { %v10446_v17 = vcombine.high %v3260_v37, %v3264_v58  ;;  %v10445_v49 = vcombine.low %v3260_v37, %v3264_v58  ;;  %v10447_v33 = vcombine.low %v3261_v26, %v3265_v15  ;;  %v3305_v37 = vld [vmem:[#allocation14 + $0x378] sm:$0xff] }
 0x384   :  { %4053 = vmatpush1.bf16.msra.mxu0 %v10397_v45  ;;  %4096 = vmatpush1.bf16.msra.mxu1 %v10399_v2  ;;  %v10448_v45 = vcombine.high %v3261_v26, %v3265_v15  ;;  %v3268_v2 = vld [vmem:[#allocation14 + $0x250] sm:$0xff] }
 0x385   :  { %4054 = vmatprep.subr.bf16.mxu0 %v10406_v30  ;;  %4097 = vmatprep.subr.bf16.mxu1 %v10408_v32  ;;  %v3272_v30 = vld [vmem:[#allocation14 + $0x270] sm:$0xff]  ;;  %v3269_v32 = vld [vmem:[#allocation14 + $0x258] sm:$0xff] }
 0x386   :  { %v10454_v27 = vcombine.high %v3268_v2, %v3272_v30  ;;  %v10453_v28 = vcombine.low %v3268_v2, %v3272_v30  ;;  %v10455_v19 = vcombine.low %v3269_v32, %v3273_v21  ;;  %v3313_v2 = vld [vmem:[#allocation14 + $0x3b8] sm:$0xff] }
 0x388   :  { %4055 = vmatpush1.bf16.msra.mxu0 %v10405_v50  ;;  %4098 = vmatpush1.bf16.msra.mxu1 %v10407_v6  ;;  %v10456_v50 = vcombine.high %v3269_v32, %v3273_v21  ;;  %v3276_v6 = vld [vmem:[#allocation14 + $0x290] sm:$0xff] }
 0x389   :  { %4056 = vmatprep.subr.bf16.mxu0 %v10414_v4  ;;  %4099 = vmatprep.subr.bf16.mxu1 %v10416_v12  ;;  %v3280_v4 = vld [vmem:[#allocation14 + $0x2b0] sm:$0xff]  ;;  %v3277_v12 = vld [vmem:[#allocation14 + $0x298] sm:$0xff] }
 0x38a   :  { %v10462_v63 = vcombine.high %v3276_v6, %v3280_v4  ;;  %v10461_v20 = vcombine.low %v3276_v6, %v3280_v4  ;;  %v10463_v14 = vcombine.low %v3277_v12, %v3281_v25  ;;  %v3321_v6 = vld [vmem:[#allocation14 + $0x3f8] sm:$0xff] }
 0x38c   :  { %4057 = vmatpush1.bf16.msra.mxu0 %v10413_v46  ;;  %4100 = vmatpush1.bf16.msra.mxu1 %v10415_v54  ;;  %v10464_v46 = vcombine.high %v3277_v12, %v3281_v25  ;;  %v3284_v54 = vld [vmem:[#allocation14 + $0x2d0] sm:$0xff] }
 0x38d   :  { %4058 = vmatprep.subr.bf16.mxu0 %v10422_v36  ;;  %4101 = vmatprep.subr.bf16.mxu1 %v10424_v62  ;;  %v3288_v36 = vld [vmem:[#allocation14 + $0x2f0] sm:$0xff]  ;;  %v3285_v62 = vld [vmem:[#allocation14 + $0x2d8] sm:$0xff] }
 0x38e   :  { %v10470_v31 = vcombine.high %v3284_v54, %v3288_v36  ;;  %v10469_v44 = vcombine.low %v3284_v54, %v3288_v36  ;;  %v10471_v61 = vcombine.low %v3285_v62, %v3289_v10  ;;  %v4294_v54 = vld [vmem:[#allocation14 + $0x20] sm:$0xff]  ;;  %v4291_v36 = vld [vmem:[#allocation14 + $0x8] sm:$0xff] }
 0x390   :  { %4059 = vmatpush1.bf16.msra.mxu0 %v10421_v56  ;;  %4102 = vmatpush1.bf16.msra.mxu1 %v10423_v57  ;;  %v10472_v56 = vcombine.high %v3285_v62, %v3289_v10  ;;  %v3292_v57 = vld [vmem:[#allocation14 + $0x310] sm:$0xff] }
 0x391   :  { %4060 = vmatprep.subr.bf16.mxu0 %v10430_v23  ;;  %4103 = vmatprep.subr.bf16.mxu1 %v10432_v0  ;;  %v3296_v23 = vld [vmem:[#allocation14 + $0x330] sm:$0xff]  ;;  %v3293_v0 = vld [vmem:[#allocation14 + $0x318] sm:$0xff] }
 0x392   :  { %v10478_v47 = vcombine.high %v3292_v57, %v3296_v23  ;;  %v10477_v58 = vcombine.low %v3292_v57, %v3296_v23  ;;  %v10479_v26 = vcombine.low %v3293_v0, %v3297_v41 }
 0x394   :  { %4061 = vmatpush1.bf16.msra.mxu0 %v10429_v22  ;;  %4104 = vmatpush1.bf16.msra.mxu1 %v10431_v5  ;;  %v10480_v22 = vcombine.high %v3293_v0, %v3297_v41  ;;  %v3300_v5 = vld [vmem:[#allocation14 + $0x350] sm:$0xff]  ;;  %v4299_v0 = vld [vmem:[#allocation14 + $0x48] sm:$0xff] }
 0x395   :  { %4062 = vmatprep.subr.bf16.mxu0 %v10438_v7  ;;  %4105 = vmatprep.subr.bf16.mxu1 %v10440_v16  ;;  %v3304_v7 = vld [vmem:[#allocation14 + $0x370] sm:$0xff]  ;;  %v3301_v16 = vld [vmem:[#allocation14 + $0x358] sm:$0xff]  ;;  %v4303_v41 = vld [vmem:[#allocation14 + $0x68] sm:$0xff] }
 0x396   :  { %v10486_v15 = vcombine.high %v3300_v5, %v3304_v7  ;;  %v10485_v30 = vcombine.low %v3300_v5, %v3304_v7  ;;  %v10487_v32 = vcombine.low %v3301_v16, %v3305_v37  ;;  %v4311_v5 = vld [vmem:[#allocation14 + $0xa8] sm:$0xff]  ;;  %v10527_v7 = vcombine.low %v4299_v0, %v4303_v41 }
 0x398   :  { %4063 = vmatpush1.bf16.msra.mxu0 %v10437_v35  ;;  %4106 = vmatpush1.bf16.msra.mxu1 %v10439_v24  ;;  %v10488_v35 = vcombine.high %v3301_v16, %v3305_v37  ;;  %v3308_v24 = vld [vmem:[#allocation14 + $0x390] sm:$0xff] }
 0x399   :  { %4064 = vmatprep.subr.bf16.mxu0 %v10446_v17  ;;  %4107 = vmatprep.subr.bf16.mxu1 %v10448_v45  ;;  %v3312_v17 = vld [vmem:[#allocation14 + $0x3b0] sm:$0xff]  ;;  %v3309_v45 = vld [vmem:[#allocation14 + $0x398] sm:$0xff] }
 0x39a   :  { %v10494_v21 = vcombine.high %v3308_v24, %v3312_v17  ;;  %v10493_v4 = vcombine.low %v3308_v24, %v3312_v17  ;;  %v10495_v12 = vcombine.low %v3309_v45, %v3313_v2  ;;  %v4315_v24 = vld [vmem:[#allocation14 + $0xc8] sm:$0xff] }
 0x39c   :  { %4065 = vmatpush1.bf16.msra.mxu0 %v10445_v49  ;;  %4108 = vmatpush1.bf16.msra.mxu1 %v10447_v33  ;;  %v10496_v49 = vcombine.high %v3309_v45, %v3313_v2  ;;  %v3316_v33 = vld [vmem:[#allocation14 + $0x3d0] sm:$0xff]  ;;  %v4319_v45 = vld [vmem:[#allocation14 + $0xe8] sm:$0xff] }
 0x39d   :  { %4066 = vmatprep.subr.bf16.mxu0 %v10454_v27  ;;  %4109 = vmatprep.subr.bf16.mxu1 %v10456_v50  ;;  %v3320_v27 = vld [vmem:[#allocation14 + $0x3f0] sm:$0xff]  ;;  %v3317_v50 = vld [vmem:[#allocation14 + $0x3d8] sm:$0xff] }
 0x39e   :  { %v10502_v25 = vcombine.high %v3316_v33, %v3320_v27 }
 0x3a0   :  { %4067 = vmatpush1.bf16.msra.mxu0 %v10453_v28  ;;  %4110 = vmatpush1.bf16.msra.mxu1 %v10455_v19  ;;  %v10504_v28 = vcombine.high %v3317_v50, %v3321_v6  ;;  %v10501_v19 = vcombine.low %v3316_v33, %v3320_v27  ;;  %v4323_v33 = vld [vmem:[#allocation14 + $0x108] sm:$0xff] }
 0x3a1   :  { %4068 = vmatprep.subr.bf16.mxu0 %v10462_v63  ;;  %4111 = vmatprep.subr.bf16.mxu1 %v10464_v46  ;;  %v10503_v63 = vcombine.low %v3317_v50, %v3321_v6  ;;  %v4290_v46 = vld [vmem:[#allocation14] sm:$0xff]  ;;  %v4327_v50 = vld [vmem:[#allocation14 + $0x128] sm:$0xff] }
 0x3a2   :  { %v10517_v62 = vcombine.low %v4290_v46, %v4294_v54  ;;  %v10518_v10 = vcombine.high %v4290_v46, %v4294_v54  ;;  %v4335_v46 = vld [vmem:[#allocation14 + $0x168] sm:$0xff] }
 0x3a4   :  { %4069 = vmatpush1.bf16.msra.mxu0 %v10461_v20  ;;  %4112 = vmatpush1.bf16.msra.mxu1 %v10463_v14  ;;  %v4295_v20 = vld [vmem:[#allocation14 + $0x28] sm:$0xff]  ;;  %v4298_v14 = vld [vmem:[#allocation14 + $0x40] sm:$0xff] }
 0x3a5   :  { %4070 = vmatprep.subr.bf16.mxu0 %v10470_v31  ;;  %4113 = vmatprep.subr.bf16.mxu1 %v10472_v56  ;;  %v4302_v31 = vld [vmem:[#allocation14 + $0x60] sm:$0xff]  ;;  %v10519_v56 = vcombine.low %v4291_v36, %v4295_v20  ;;  %v10520_v57 = vcombine.high %v4291_v36, %v4295_v20 }
 0x3a6   :  { %v10526_v23 = vcombine.high %v4298_v14, %v4302_v31  ;;  %v4342_v20 = vld [vmem:[#allocation14 + $0x1a0] sm:$0xff] }
 0x3a8   :  { %4071 = vmatpush1.bf16.msra.mxu0 %v10469_v44  ;;  %4114 = vmatpush1.bf16.msra.mxu1 %v10471_v61  ;;  %v4306_v44 = vld [vmem:[#allocation14 + $0x80] sm:$0xff]  ;;  %v10528_v61 = vcombine.high %v4299_v0, %v4303_v41 }
 0x3a9   :  { %4072 = vmatprep.subr.bf16.mxu0 %v10478_v47  ;;  %4115 = vmatprep.subr.bf16.mxu1 %v10480_v22  ;;  %v4310_v47 = vld [vmem:[#allocation14 + $0xa0] sm:$0xff]  ;;  %v4307_v22 = vld [vmem:[#allocation14 + $0x88] sm:$0xff] }
 0x3aa   :  { %v10534_v16 = vcombine.high %v4306_v44, %v4310_v47  ;;  %v10536_v37 = vcombine.high %v4307_v22, %v4311_v5  ;;  %v4346_v41 = vld [vmem:[#allocation14 + $0x1c0] sm:$0xff] }
 0x3ac   :  { %4073 = vmatpush1.bf16.msra.mxu0 %v10477_v58  ;;  %4116 = vmatpush1.bf16.msra.mxu1 %v10479_v26  ;;  %v10533_v58 = vcombine.low %v4306_v44, %v4310_v47  ;;  %v10535_v26 = vcombine.low %v4307_v22, %v4311_v5  ;;  %v4350_v44 = vld [vmem:[#allocation14 + $0x1e0] sm:$0xff]  ;;  %v4351_v22 = vld [vmem:[#allocation14 + $0x1e8] sm:$0xff] }
 0x3ad   :  { %4074 = vmatprep.subr.bf16.mxu0 %v10486_v15  ;;  %4117 = vmatprep.subr.bf16.mxu1 %v10488_v35  ;;  %v4314_v15 = vld [vmem:[#allocation14 + $0xc0] sm:$0xff]  ;;  %v10574_v47 = vcombine.high %v4346_v41, %v4350_v44  ;;  %v10573_v5 = vcombine.low %v4346_v41, %v4350_v44  ;;  %v4391_v44 = vld [vmem:[#allocation14 + $0x328] sm:$0xff] }
 0x3ae   :  { %v4318_v35 = vld [vmem:[#allocation14 + $0xe0] sm:$0xff] }
 0x3af   :  { %v10542_v17 = vcombine.high %v4314_v15, %v4318_v35  ;;  %v10541_v2 = vcombine.low %v4314_v15, %v4318_v35  ;;  %v4359_v15 = vld [vmem:[#allocation14 + $0x228] sm:$0xff] }
 0x3b0   :  { %4075 = vmatpush1.bf16.msra.mxu0 %v10485_v30  ;;  %4118 = vmatpush1.bf16.msra.mxu1 %v10487_v32  ;;  %v10543_v30 = vcombine.low %v4315_v24, %v4319_v45  ;;  %v10544_v32 = vcombine.high %v4315_v24, %v4319_v45  ;;  %v4362_v45 = vld [vmem:[#allocation14 + $0x240] sm:$0xff] }
 0x3b1   :  { %4076 = vmatprep.subr.bf16.mxu0 %v10494_v21  ;;  %4119 = vmatprep.subr.bf16.mxu1 %v10496_v49  ;;  %v4322_v21 = vld [vmem:[#allocation14 + $0x100] sm:$0xff] }
 0x3b2   :  { %v4326_v49 = vld [vmem:[#allocation14 + $0x120] sm:$0xff] }
 0x3b3   :  { %v10550_v27 = vcombine.high %v4322_v21, %v4326_v49  ;;  %v10549_v6 = vcombine.low %v4322_v21, %v4326_v49  ;;  %v4367_v21 = vld [vmem:[#allocation14 + $0x268] sm:$0xff] }
 0x3b4   :  { %4077 = vmatpush1.bf16.msra.mxu0 %v10493_v4  ;;  %4120 = vmatpush1.bf16.msra.mxu1 %v10495_v12  ;;  %v10551_v4 = vcombine.low %v4323_v33, %v4327_v50  ;;  %v10552_v12 = vcombine.high %v4323_v33, %v4327_v50  ;;  %v4370_v50 = vld [vmem:[#allocation14 + $0x280] sm:$0xff] }
 0x3b5   :  { %4078 = vmatprep.subr.bf16.mxu0 %v10502_v25  ;;  %4121 = vmatprep.subr.bf16.mxu1 %v10504_v28  ;;  %v4330_v25 = vld [vmem:[#allocation14 + $0x140] sm:$0xff] }
 0x3b6   :  { %v4334_v28 = vld [vmem:[#allocation14 + $0x160] sm:$0xff] }
 0x3b7   :  { %v10557_v54 = vcombine.low %v4330_v25, %v4334_v28 }
 0x3b8   :  { %4079 = vmatpush1.bf16.msra.mxu0 %v10501_v19  ;;  %4122 = vmatpush1.bf16.msra.mxu1 %v10503_v63  ;;  %v4331_v19 = vld [vmem:[#allocation14 + $0x148] sm:$0xff]  ;;  %v10558_v63 = vcombine.high %v4330_v25, %v4334_v28 }
 0x3b9   :  { %5058 = vmatprep.subr.bf16.mxu0 %v10518_v10  ;;  %5101 = vmatprep.subr.bf16.mxu1 %v10520_v57  ;;  %v10559_v36 = vcombine.low %v4331_v19, %v4335_v46  ;;  %v4338_v10 = vld [vmem:[#allocation14 + $0x180] sm:$0xff]  ;;  %v4375_v25 = vld [vmem:[#allocation14 + $0x2a8] sm:$0xff] }
 0x3ba   :  { %v10565_v57 = vcombine.low %v4338_v10, %v4342_v20 }
 0x3bb   :  { %4081 = vmatmul.mubr.bf16.vlgmr.msra.gmra.mrb[84].mxu0 %v12712_v8  ;;  %4124 = vmatmul.mubr.bf16.vlgmr.msra.gmra.mrb[84].mxu1 %v12712_v8  ;;  %v10525_v8 = vcombine.low %v4298_v14, %v4302_v31  ;;  %v4339_v14 = vld [vmem:[#allocation14 + $0x188] sm:$0xff]  ;;  %v10566_v31 = vcombine.high %v4338_v10, %v4342_v20 }
 0x3bc   :  { %5059 = vmatpush1.bf16.msra.mxu0 %v10517_v62  ;;  %5102 = vmatpush1.bf16.msra.mxu1 %v10519_v56  ;;  %v10560_v62 = vcombine.high %v4331_v19, %v4335_v46  ;;  %v4343_v56 = vld [vmem:[#allocation14 + $0x1a8] sm:$0xff]  ;;  %v4378_v46 = vld [vmem:[#allocation14 + $0x2c0] sm:$0xff] }
 0x3bd   :  { %5060 = vmatprep.subr.bf16.mxu0 %v10526_v23  ;;  %5103 = vmatprep.subr.bf16.mxu1 %v10528_v61  ;;  %v10567_v23 = vcombine.low %v4339_v14, %v4343_v56  ;;  %v10568_v0 = vcombine.high %v4339_v14, %v4343_v56  ;;  %v4347_v61 = vld [vmem:[#allocation14 + $0x1c8] sm:$0xff]  ;;  %v4386_v56 = vld [vmem:[#allocation14 + $0x300] sm:$0xff] }
 0x3be   :  { %v4383_v10 = vld [vmem:[#allocation14 + $0x2e8] sm:$0xff] }
 0x3c0   :  { %5061 = vmatpush1.bf16.msra.mxu0 %v10525_v8  ;;  %5104 = vmatpush1.bf16.msra.mxu1 %v10527_v7  ;;  %v10575_v8 = vcombine.low %v4347_v61, %v4351_v22  ;;  %v10576_v7 = vcombine.high %v4347_v61, %v4351_v22  ;;  %v4394_v61 = vld [vmem:[#allocation14 + $0x340] sm:$0xff] }
 0x3c1   :  { %5062 = vmatprep.subr.bf16.mxu0 %v10534_v16  ;;  %5105 = vmatprep.subr.bf16.mxu1 %v10536_v37  ;;  %v4354_v16 = vld [vmem:[#allocation14 + $0x200] sm:$0xff] }
 0x3c2   :  { %v4358_v37 = vld [vmem:[#allocation14 + $0x220] sm:$0xff] }
 0x3c3   :  { %v10581_v35 = vcombine.low %v4354_v16, %v4358_v37 }
 0x3c4   :  { %5063 = vmatpush1.bf16.msra.mxu0 %v10533_v58  ;;  %5106 = vmatpush1.bf16.msra.mxu1 %v10535_v26  ;;  %v4355_v58 = vld [vmem:[#allocation14 + $0x208] sm:$0xff]  ;;  %v10582_v26 = vcombine.high %v4354_v16, %v4358_v37  ;;  %v4402_v37 = vld [vmem:[#allocation14 + $0x380] sm:$0xff] }
 0x3c5   :  { %5064 = vmatprep.subr.bf16.mxu0 %v10542_v17  ;;  %5107 = vmatprep.subr.bf16.mxu1 %v10544_v32  ;;  %v10583_v24 = vcombine.low %v4355_v58, %v4359_v15  ;;  %v10584_v17 = vcombine.high %v4355_v58, %v4359_v15  ;;  %v4399_v16 = vld [vmem:[#allocation14 + $0x368] sm:$0xff] }
 0x3c6   :  { %v4403_v15 = vld [vmem:[#allocation14 + $0x388] sm:$0xff] }
 0x3c8   :  { %5065 = vmatpush1.bf16.msra.mxu0 %v10541_v2  ;;  %5108 = vmatpush1.bf16.msra.mxu1 %v10543_v30  ;;  %v4366_v2 = vld [vmem:[#allocation14 + $0x260] sm:$0xff]  ;;  %v4363_v30 = vld [vmem:[#allocation14 + $0x248] sm:$0xff] }
 0x3c9   :  { %5066 = vmatprep.subr.bf16.mxu0 %v10550_v27  ;;  %5109 = vmatprep.subr.bf16.mxu1 %v10552_v12  ;;  %v10590_v32 = vcombine.high %v4362_v45, %v4366_v2  ;;  %v10589_v49 = vcombine.low %v4362_v45, %v4366_v2  ;;  %v10591_v33 = vcombine.low %v4363_v30, %v4367_v21 }
 0x3ca   :  { %v10592_v27 = vcombine.high %v4363_v30, %v4367_v21  ;;  %v4410_v30 = vld [vmem:[#allocation14 + $0x3c0] sm:$0xff]  ;;  %v4411_v21 = vld [vmem:[#allocation14 + $0x3c8] sm:$0xff] }
 0x3cc   :  { %5067 = vmatpush1.bf16.msra.mxu0 %v10549_v6  ;;  %5110 = vmatpush1.bf16.msra.mxu1 %v10551_v4  ;;  %v4374_v6 = vld [vmem:[#allocation14 + $0x2a0] sm:$0xff]  ;;  %v4371_v4 = vld [vmem:[#allocation14 + $0x288] sm:$0xff] }
 0x3cd   :  { %5068 = vmatprep.subr.bf16.mxu0 %v10558_v63  ;;  %5111 = vmatprep.subr.bf16.mxu1 %v10560_v62  ;;  %v10598_v12 = vcombine.high %v4370_v50, %v4374_v6  ;;  %v10597_v28 = vcombine.low %v4370_v50, %v4374_v6  ;;  %v10599_v19 = vcombine.low %v4371_v4, %v4375_v25 }
 0x3ce   :  { %v10600_v63 = vcombine.high %v4371_v4, %v4375_v25  ;;  %v12754_v25 = vld [vmem:[#allocation14 + $0x10] sm:$0xff] }
 0x3d0   :  { %5069 = vmatpush1.bf16.msra.mxu0 %v10557_v54  ;;  %5112 = vmatpush1.bf16.msra.mxu1 %v10559_v36  ;;  %v4382_v54 = vld [vmem:[#allocation14 + $0x2e0] sm:$0xff]  ;;  %v4379_v36 = vld [vmem:[#allocation14 + $0x2c8] sm:$0xff] }
 0x3d1   :  { %5070 = vmatprep.subr.bf16.mxu0 %v10566_v31  ;;  %5113 = vmatprep.subr.bf16.mxu1 %v10568_v0  ;;  %v10606_v62 = vcombine.high %v4378_v46, %v4382_v54  ;;  %v10605_v20 = vcombine.low %v4378_v46, %v4382_v54  ;;  %v10607_v14 = vcombine.low %v4379_v36, %v4383_v10  ;;  %v12764_v54 = vld [vmem:[#allocation14 + $0x38] sm:$0xff] }
 0x3d2   :  { %v10608_v31 = vcombine.high %v4379_v36, %v4383_v10  ;;  %v13518_v10 = vld [vmem:[#allocation26_spill] sm:$0xff] }
 0x3d4   :  { %5071 = vmatpush1.bf16.msra.mxu0 %v10565_v57  ;;  %5114 = vmatpush1.bf16.msra.mxu1 %v10567_v23  ;;  %v4390_v57 = vld [vmem:[#allocation14 + $0x320] sm:$0xff]  ;;  %v4387_v23 = vld [vmem:[#allocation14 + $0x308] sm:$0xff] }
 0x3d5   :  { %5072 = vmatprep.subr.bf16.mxu0 %v10574_v47  ;;  %5115 = vmatprep.subr.bf16.mxu1 %v10576_v7  ;;  %v10613_v0 = vcombine.low %v4386_v56, %v4390_v57  ;;  %v10614_v41 = vcombine.high %v4386_v56, %v4390_v57  ;;  %v4398_v47 = vld [vmem:[#allocation14 + $0x360] sm:$0xff]  ;;  %v10615_v22 = vcombine.low %v4387_v23, %v4391_v44  ;;  %v4395_v7 = vld [vmem:[#allocation14 + $0x348] sm:$0xff] }
 0x3d6   :  { %v10624_v58 = vcombine.high %v4395_v7, %v4399_v16 }
 0x3d8   :  { %5073 = vmatpush1.bf16.msra.mxu0 %v10573_v5  ;;  %5116 = vmatpush1.bf16.msra.mxu1 %v10575_v8  ;;  %v10616_v5 = vcombine.high %v4387_v23, %v4391_v44  ;;  %v10622_v8 = vcombine.high %v4394_v61, %v4398_v47 }
 0x3d9   :  { %5074 = vmatprep.subr.bf16.mxu0 %v10582_v26  ;;  %5117 = vmatprep.subr.bf16.mxu1 %v10584_v17  ;;  %v4406_v26 = vld [vmem:[#allocation14 + $0x3a0] sm:$0xff]  ;;  %v10623_v17 = vcombine.low %v4395_v7, %v4399_v16  ;;  %v13521_v7 = vld [vmem:[#allocation29_spill] sm:$0xff] }
 0x3da   :  { %v10630_v45 = vcombine.high %v4402_v37, %v4406_v26  ;;  %v4144_v16 = vunpack.c.l.bf16 %v13521_v7 }
 0x3dc   :  { %5075 = vmatpush1.bf16.msra.mxu0 %v10581_v35  ;;  %5118 = vmatpush1.bf16.msra.mxu1 %v10583_v24  ;;  %v4407_v35 = vld [vmem:[#allocation14 + $0x3a8] sm:$0xff]  ;;  %v10621_v24 = vcombine.low %v4394_v61, %v4398_v47 }
 0x3dd   :  { %5076 = vmatprep.subr.bf16.mxu0 %v10590_v32  ;;  %5119 = vmatprep.subr.bf16.mxu1 %v10592_v27  ;;  %v10632_v2 = vcombine.high %v4403_v15, %v4407_v35  ;;  %v4414_v32 = vld [vmem:[#allocation14 + $0x3e0] sm:$0xff]  ;;  %v10631_v27 = vcombine.low %v4403_v15, %v4407_v35 }
 0x3de   :  { %v10638_v50 = vcombine.high %v4410_v30, %v4414_v32  ;;  %v10637_v4 = vcombine.low %v4410_v30, %v4414_v32 }
 0x3e0   :  { %5077 = vmatpush1.bf16.msra.mxu0 %v10589_v49  ;;  %5120 = vmatpush1.bf16.msra.mxu1 %v10591_v33  ;;  %v4415_v49 = vld [vmem:[#allocation14 + $0x3e8] sm:$0xff]  ;;  %v10629_v33 = vcombine.low %v4402_v37, %v4406_v26  ;;  %v4148_v37 = vunpack.c.h.bf16 %v13521_v7 }
 0x3e1   :  { %5078 = vmatprep.subr.bf16.mxu0 %v10598_v12  ;;  %5121 = vmatprep.subr.bf16.mxu1 %v10600_v63  ;;  %v10640_v6 = vcombine.high %v4411_v21, %v4415_v49  ;;  %v10639_v12 = vcombine.low %v4411_v21, %v4415_v49 }
 0x3e4   :  { %5079 = vmatpush1.bf16.msra.mxu0 %v10597_v28  ;;  %5122 = vmatpush1.bf16.msra.mxu1 %v10599_v19  ;;  %v12756_v28 = vld [vmem:[#allocation14 + $0x30] sm:$0xff]  ;;  %v12758_v19 = vld [vmem:[#allocation14 + $0x18] sm:$0xff] }
 0x3e5   :  { %5080 = vmatprep.subr.bf16.mxu0 %v10606_v62  ;;  %5123 = vmatprep.subr.bf16.mxu1 %v10608_v31  ;;  %v10521_v63 = vcombine.low %v12754_v25, %v12756_v28  ;;  %v10522_v46 = vcombine.high %v12754_v25, %v12756_v28  ;;  %v10523_v36 = vcombine.low %v12758_v19, %v12764_v54  ;;  %v13519_v31 = vld [vmem:[#allocation27_spill] sm:$0xff] }
 0x3e6   :  { %v10524_v62 = vcombine.high %v12758_v19, %v12764_v54  ;;  %v4142_v56 = vunpack.c.l.bf16 %v13519_v31  ;;  %v4146_v57 = vunpack.c.h.bf16 %v13519_v31  ;;  %v4324_v54 = vld [vmem:[#allocation14 + $0x110] sm:$0xff] }
 0x3e8   :  { %5081 = vmatpush1.bf16.msra.mxu0 %v10605_v20  ;;  %5124 = vmatpush1.bf16.msra.mxu1 %v10607_v14  ;;  %v4141_v20 = vunpack.c.l.bf16 %v13518_v10  ;;  %v4145_v14 = vunpack.c.h.bf16 %v13518_v10 }
 0x3e9   :  { %5082 = vmatprep.subr.bf16.mxu0 %v10614_v41  ;;  %5125 = vmatprep.subr.bf16.mxu1 %v10616_v5  ;;  %v13520_v41 = vld [vmem:[#allocation28_spill] sm:$0xff] }
 0x3ea   :  { %v4143_v44 = vunpack.c.l.bf16 %v13520_v41  ;;  %v4147_v61 = vunpack.c.h.bf16 %v13520_v41 }
 0x3ec   :  { %5083 = vmatpush1.bf16.msra.mxu0 %v10613_v0  ;;  %5126 = vmatpush1.bf16.msra.mxu1 %v10615_v22 }
 0x3ed   :  { %5084 = vmatprep.subr.bf16.mxu0 %v10622_v8  ;;  %5127 = vmatprep.subr.bf16.mxu1 %v10624_v58 }
 0x3f0   :  { %5085 = vmatpush1.bf16.msra.mxu0 %v10621_v24  ;;  %5128 = vmatpush1.bf16.msra.mxu1 %v10623_v17 }
 0x3f1   :  { %5086 = vmatprep.subr.bf16.mxu0 %v10630_v45  ;;  %5129 = vmatprep.subr.bf16.mxu1 %v10632_v2 }
 0x3f4   :  { %5087 = vmatpush1.bf16.msra.mxu0 %v10629_v33  ;;  %5130 = vmatpush1.bf16.msra.mxu1 %v10631_v27 }
 0x3f5   :  { %5088 = vmatprep.subr.bf16.mxu0 %v10638_v50  ;;  %5131 = vmatprep.subr.bf16.mxu1 %v10640_v6 }
 0x3f8   :  { %5089 = vmatpush1.bf16.msra.mxu0 %v10637_v4  ;;  %5132 = vmatpush1.bf16.msra.mxu1 %v10639_v12 }
 0x3f9   :  { %5144 = vmatprep.subr.bf16.mxu0 %v10522_v46  ;;  %5187 = vmatprep.subr.bf16.mxu1 %v10524_v62 }
 0x44e   :  { %v3996_v23 = vpop.f32.mrb[80].mxu0  ;;  %v4039_v0 = vpop.f32.mrb[80].mxu1 }
 0x44f   :  { %v3997_v47 = vadd.f32 %v3996_v23, %v13509_v13  ;;  %v4040_v22 = vadd.f32 %v4039_v0, %v12516_v48  ;;  %v3998_v5 = vpop.f32.mrb[81].mxu0  ;;  %v4041_v8 = vpop.f32.mrb[81].mxu1 }
 0x450   :  { %v3999_v58 = vadd.f32 %v3998_v5, %v13511_v3  ;;  %v4042_v26 = vadd.f32 %v4041_v8, %v13512_v55  ;;  %v4000_v15 = vpop.f32.mrb[82].mxu0  ;;  %v4043_v35 = vpop.f32.mrb[82].mxu1 }
 0x451   :  { %v4149_v24 = vadd.f32 %v4141_v20, %v3997_v47  ;;  %v4151_v17 = vadd.f32 %v4143_v44, %v4040_v22  ;;  %v4001_v45 = vadd.f32 %v4000_v15, %v13509_v13  ;;  %v4044_v2 = vadd.f32 %v4043_v35, %v12516_v48  ;;  %v4002_v30 = vpop.f32.mrb[83].mxu0  ;;  %v4045_v32 = vpop.f32.mrb[83].mxu1 }
 0x452   :  { %v4150_v21 = vadd.f32 %v4142_v56, %v3999_v58  ;;  %v4152_v49 = vadd.f32 %v4144_v16, %v4042_v26  ;;  %v4003_v33 = vadd.f32 %v4002_v30, %v13511_v3  ;;  %v4046_v27 = vadd.f32 %v4045_v32, %v13512_v55 }
 0x453   :  { %v10505_v50 = vmul.f32 -1.442695, %v4149_v24  ;;  %v4153_v6 = vadd.f32 %v4145_v14, %v4001_v45  ;;  %v4155_v4 = vadd.f32 %v4147_v61, %v4044_v2 }
 0x454   :  { %v10507_v12 = vmul.f32 -1.442695, %v4150_v21  ;;  %v4154_v46 = vadd.f32 %v4146_v57, %v4003_v33  ;;  %v4156_v62 = vadd.f32 %v4148_v37, %v4046_v27  ;;  %v10509_v31 = vmul.f32 -1.442695, %v4152_v49 }
 0x455   :  { %11467 = vpow2.f32 %v10505_v50  ;;  %v10506_v10 = vmul.f32 -1.442695, %v4153_v6 }
 0x456   :  { %11469 = vpow2.f32 %v10507_v12  ;;  %v10508_v20 = vmul.f32 -1.442695, %v4154_v46  ;;  %v10510_v41 = vmul.f32 -1.442695, %v4156_v62  ;;  %v13522_v62 = vld [vmem:[#allocation90_spill] sm:$0xff] }
 0x457   :  { %11471 = vpow2.f32 %v10506_v10  ;;  %v4164_v10 = vunpack.c.l.bf16 %v13522_v62 }
 0x458   :  { %11473 = vpow2.f32 %v10508_v20  ;;  %v4168_v20 = vunpack.c.h.bf16 %v13522_v62 }
 0x459   :  { %11475 = vtanh.f32 %v4151_v17 }
 0x45a   :  { %11477 = vpow2.f32 %v10509_v31  ;;  %v13523_v31 = vld [vmem:[#allocation92_spill] sm:$0xff] }
 0x45b   :  { %11479 = vtanh.f32 %v4155_v4 }
 0x45f   :  { %v11468_v23 = vpop.eup %11467 }
 0x460   :  { %v11470_v56 = vpop.eup %11469  ;;  %v4186_v0 = vadd.f32 1.0, %v11468_v23  ;;  %v4165_v23 = vunpack.c.l.bf16 %v13523_v31 }
 0x461   :  { %v4198_v44 = vadd.f32 1.0, %v11470_v56  ;;  %v11472_v14 = vpop.eup %11471 }
 0x462   :  { %11481 = vrcp.f32 %v4186_v0  ;;  %v4187_v57 = vadd.f32 1.0, %v11472_v14  ;;  %v11474_v61 = vpop.eup %11473  ;;  %v13524_v0 = vld [vmem:[#allocation93_spill] sm:$0xff] }
 0x463   :  { %11483 = vrcp.f32 %v4198_v44  ;;  %v4199_v47 = vadd.f32 1.0, %v11474_v61  ;;  %v11476_v22 = vpop.eup %11475  ;;  %v4170_v44 = vunpack.c.h.bf16 %v13524_v0  ;;  %v13525_v61 = vld [vmem:[#allocation95_spill] sm:$0xff] }
 0x464   :  { %11485 = vpow2.f32 %v10510_v41  ;;  %v11478_v5 = vpop.eup %11477  ;;  %v4166_v41 = vunpack.c.l.bf16 %v13524_v0 }
 0x465   :  { %11487 = vrcp.f32 %v4187_v57  ;;  %v11480_v8 = vpop.eup %11479  ;;  %v4212_v58 = vadd.f32 1.0, %v11478_v5 }
 0x466   :  { %11489 = vrcp.f32 %v4199_v47  ;;  %v4167_v47 = vunpack.c.l.bf16 %v13525_v61 }
 0x467   :  { %11491 = vrcp.f32 %v4212_v58 }
 0x46c   :  { %v11482_v7 = vpop.eup %11481 }
 0x46d   :  { %v11484_v16 = vpop.eup %11483  ;;  %v4220_v37 = vmul.f32 %v11482_v7, %v11476_v22  ;;  %v4171_v22 = vunpack.c.h.bf16 %v13525_v61 }
 0x46e   :  { %v11486_v26 = vpop.eup %11485  ;;  %v4218_v15 = vmul.f32 %v11484_v16, %v12699_v39  ;;  %v3182_v39 = vmax.f32 %v12596_v34, %v12706_v53  ;;  %v4169_v34 = vunpack.c.h.bf16 %v13523_v31 }
 0x46f   :  { %v11488_v35 = vpop.eup %11487  ;;  %v4213_v2 = vadd.f32 1.0, %v11486_v26 }
 0x470   :  { %v12787_v24 = vadd.f32 %v4220_v37, %v4218_v15  ;;  %v4221_v17 = vmul.f32 %v11488_v35, %v11480_v8  ;;  %v11490_v45 = vpop.eup %11489 }
 0x471   :  { %v4219_v30 = vmul.f32 %v11490_v45, %v12702_v29  ;;  %v11492_v21 = vpop.eup %11491  ;;  %v3183_v29 = vmax.f32 %v12590_v18, %v12708_v60 }
 0x472   :  { %11493 = vtanh.f32 %v12787_v24 }
 0x473   :  { %v12791_v32 = vadd.f32 %v4221_v17, %v4219_v30  ;;  %11495 = vrcp.f32 %v4213_v2 }
 0x475   :  { %11497 = vtanh.f32 %v12791_v32 }
 0x47c   :  { %v11494_v49 = vpop.eup %11493 }
 0x47d   :  { %v4226_v33 = vmul.f32 %v11494_v49, %v11492_v21  ;;  %v11496_v27 = vpop.eup %11495 }
 0x47f   :  { %v12796_v50 = vmax.f32 %v3182_v39, %v4226_v33  ;;  %v11498_v6 = vpop.eup %11497 }
 0x480   :  { %v4227_v4 = vmul.f32 %v11498_v6, %v11496_v27 }
 0x482   :  { %v12800_v12 = vmax.f32 %v3183_v29, %v4227_v4  ;;  %v12802_v46 = vpack.c.bf16 %v4227_v4, %v4226_v33 }
 0x48e   :  { %v4082_v53 = vpop.f32.mrb[84].mxu0  ;;  %v4125_v56 = vpop.f32.mrb[84].mxu1 }
 0x48f   :  { %v4083_v18 = vadd.f32 %v4082_v53, %v13516_v59  ;;  %v4126_v60 = vadd.f32 %v4125_v56, %v12556_v11  ;;  %v4084_v14 = vpop.f32.mrb[85].mxu0  ;;  %v4127_v57 = vpop.f32.mrb[85].mxu1 }
 0x490   :  { %v4085_v5 = vadd.f32 %v4084_v14, %v12559_v42  ;;  %v4128_v8 = vadd.f32 %v4127_v57, %v12562_v40  ;;  %v4086_v7 = vpop.f32.mrb[86].mxu0  ;;  %v4129_v16 = vpop.f32.mrb[86].mxu1 }
 0x491   :  { %v4172_v37 = vadd.f32 %v4164_v10, %v4083_v18  ;;  %v4174_v58 = vadd.f32 %v4166_v41, %v4126_v60  ;;  %v4087_v26 = vadd.f32 %v4086_v7, %v13516_v59  ;;  %v4130_v15 = vadd.f32 %v4129_v16, %v12556_v11  ;;  %v4088_v35 = vpop.f32.mrb[87].mxu0  ;;  %v4131_v17 = vpop.f32.mrb[87].mxu1 }
 0x492   :  { %v4173_v45 = vadd.f32 %v4165_v23, %v4085_v5  ;;  %v4175_v2 = vadd.f32 %v4167_v47, %v4128_v8  ;;  %v4089_v30 = vadd.f32 %v4088_v35, %v12559_v42  ;;  %v4132_v21 = vadd.f32 %v4131_v17, %v12562_v40 }
 0x493   :  { %v10511_v49 = vmul.f32 -1.442695, %v4172_v37  ;;  %v4176_v39 = vadd.f32 %v4168_v20, %v4087_v26  ;;  %v4178_v33 = vadd.f32 %v4170_v44, %v4130_v15 }
 0x494   :  { %v10513_v27 = vmul.f32 -1.442695, %v4173_v45  ;;  %v4177_v6 = vadd.f32 %v4169_v34, %v4089_v30  ;;  %v4179_v29 = vadd.f32 %v4171_v22, %v4132_v21  ;;  %v10515_v10 = vmul.f32 -1.442695, %v4175_v2 }
 0x495   :  { %11499 = vpow2.f32 %v10511_v49  ;;  %v10512_v4 = vmul.f32 -1.442695, %v4176_v39 }
 0x496   :  { %11501 = vpow2.f32 %v10513_v27  ;;  %v10514_v62 = vmul.f32 -1.442695, %v4177_v6  ;;  %v10516_v56 = vmul.f32 -1.442695, %v4179_v29  ;;  %v4304_v27 = vld [vmem:[#allocation14 + $0x70] sm:$0xff]  ;;  %v4301_v6 = vld [vmem:[#allocation14 + $0x58] sm:$0xff] }
 0x497   :  { %11503 = vpow2.f32 %v10512_v4  ;;  %v4305_v29 = vld [vmem:[#allocation14 + $0x78] sm:$0xff] }
 0x498   :  { %11505 = vpow2.f32 %v10514_v62 }
 0x499   :  { %11507 = vtanh.f32 %v4174_v58 }
 0x49a   :  { %11509 = vpow2.f32 %v10515_v10  ;;  %v4308_v10 = vld [vmem:[#allocation14 + $0x90] sm:$0xff] }
 0x49b   :  { %11511 = vtanh.f32 %v4178_v33  ;;  %v4300_v33 = vld [vmem:[#allocation14 + $0x50] sm:$0xff] }
 0x49f   :  { %v11500_v31 = vpop.eup %11499 }
 0x4a0   :  { %v11502_v23 = vpop.eup %11501  ;;  %v4234_v53 = vadd.f32 1.0, %v11500_v31  ;;  %v4312_v31 = vld [vmem:[#allocation14 + $0xb0] sm:$0xff] }
 0x4a1   :  { %v4246_v0 = vadd.f32 1.0, %v11502_v23  ;;  %v11504_v20 = vpop.eup %11503  ;;  %v4309_v23 = vld [vmem:[#allocation14 + $0x98] sm:$0xff]  ;;  %v10537_v25 = vcombine.low %v4308_v10, %v4312_v31 }
 0x4a2   :  { %11513 = vrcp.f32 %v4234_v53  ;;  %v4235_v34 = vadd.f32 1.0, %v11504_v20  ;;  %v11506_v41 = vpop.eup %11505  ;;  %v4313_v53 = vld [vmem:[#allocation14 + $0xb8] sm:$0xff]  ;;  %v4316_v20 = vld [vmem:[#allocation14 + $0xd0] sm:$0xff] }
 0x4a3   :  { %11515 = vrcp.f32 %v4246_v0  ;;  %v4247_v44 = vadd.f32 1.0, %v11506_v41  ;;  %v11508_v18 = vpop.eup %11507  ;;  %v10540_v0 = vcombine.high %v4309_v23, %v4313_v53  ;;  %v4317_v41 = vld [vmem:[#allocation14 + $0xd8] sm:$0xff]  ;;  %v10539_v28 = vcombine.low %v4309_v23, %v4313_v53  ;;  %v4360_v23 = vld [vmem:[#allocation14 + $0x230] sm:$0xff] }
 0x4a4   :  { %11517 = vpow2.f32 %v10516_v56  ;;  %v11510_v60 = vpop.eup %11509  ;;  %v10538_v56 = vcombine.high %v4308_v10, %v4312_v31  ;;  %v4356_v31 = vld [vmem:[#allocation14 + $0x210] sm:$0xff]  ;;  %v4357_v53 = vld [vmem:[#allocation14 + $0x218] sm:$0xff] }
 0x4a5   :  { %11519 = vrcp.f32 %v4235_v34  ;;  %v11512_v14 = vpop.eup %11511  ;;  %v4260_v22 = vadd.f32 1.0, %v11510_v60  ;;  %v4320_v34 = vld [vmem:[#allocation14 + $0xf0] sm:$0xff]  ;;  %v4329_v60 = vld [vmem:[#allocation14 + $0x138] sm:$0xff] }
 0x4a6   :  { %11521 = vrcp.f32 %v4247_v44  ;;  %v4321_v44 = vld [vmem:[#allocation14 + $0xf8] sm:$0xff]  ;;  %v10546_v19 = vcombine.high %v4316_v20, %v4320_v34 }
 0x4a7   :  { %11523 = vrcp.f32 %v4260_v22  ;;  %v4332_v22 = vld [vmem:[#allocation14 + $0x150] sm:$0xff] }
 0x4ac   :  { %v11514_v57 = vpop.eup %11513 }
 0x4ad   :  { %v11516_v61 = vpop.eup %11515  ;;  %v4268_v47 = vmul.f32 %v11514_v57, %v11508_v18  ;;  %v4325_v18 = vld [vmem:[#allocation14 + $0x118] sm:$0xff]  ;;  %v10547_v57 = vcombine.low %v4317_v41, %v4321_v44 }
 0x4ae   :  { %v11518_v5 = vpop.eup %11517  ;;  %v4266_v8 = vmul.f32 %v11516_v61, %v12731_v9  ;;  %v3188_v9 = vmax.f32 %v12592_v52, %v12738_v38  ;;  %v10530_v52 = vcombine.high %v4300_v33, %v4304_v27  ;;  %v10532_v38 = vcombine.high %v4301_v6, %v4305_v29 }
 0x4af   :  { %v11520_v7 = vpop.eup %11519  ;;  %v4261_v26 = vadd.f32 1.0, %v11518_v5  ;;  %v4336_v5 = vld [vmem:[#allocation14 + $0x170] sm:$0xff] }
 0x4b0   :  { %v12821_v16 = vadd.f32 %v4268_v47, %v4266_v8  ;;  %v4269_v37 = vmul.f32 %v11520_v7, %v11512_v14  ;;  %v11522_v58 = vpop.eup %11521  ;;  %v10545_v14 = vcombine.low %v4316_v20, %v4320_v34  ;;  %v10556_v47 = vcombine.high %v4325_v18, %v4329_v60  ;;  %v4333_v8 = vld [vmem:[#allocation14 + $0x158] sm:$0xff]  ;;  %v4364_v34 = vld [vmem:[#allocation14 + $0x250] sm:$0xff] }
 0x4b1   :  { %v4267_v15 = vmul.f32 %v11522_v58, %v12734_v1  ;;  %v11524_v17 = vpop.eup %11523  ;;  %v3189_v1 = vmax.f32 %v12594_v43, %v12740_v51  ;;  %v10529_v43 = vcombine.low %v4300_v33, %v4304_v27  ;;  %v10531_v51 = vcombine.low %v4301_v6, %v4305_v29  ;;  %v4337_v7 = vld [vmem:[#allocation14 + $0x178] sm:$0xff]  ;;  %v4348_v33 = vld [vmem:[#allocation14 + $0x1d0] sm:$0xff] }
 0x4b2   :  { %11525 = vtanh.f32 %v12821_v16  ;;  %v10555_v58 = vcombine.low %v4325_v18, %v4329_v60  ;;  %v4352_v27 = vld [vmem:[#allocation14 + $0x1f0] sm:$0xff]  ;;  %v4349_v6 = vld [vmem:[#allocation14 + $0x1d8] sm:$0xff] }
 0x4b3   :  { %v12825_v35 = vadd.f32 %v4269_v37, %v4267_v15  ;;  %11527 = vrcp.f32 %v4261_v26  ;;  %v10562_v26 = vcombine.high %v4332_v22, %v4336_v5  ;;  %v10564_v15 = vcombine.high %v4333_v8, %v4337_v7  ;;  %v4353_v29 = vld [vmem:[#allocation14 + $0x1f8] sm:$0xff]  ;;  %v4376_v18 = vld [vmem:[#allocation14 + $0x2b0] sm:$0xff] }
 0x4b4   :  { %v4373_v60 = vld [vmem:[#allocation14 + $0x298] sm:$0xff] }
 0x4b5   :  { %11529 = vtanh.f32 %v12825_v35 }
 0x4bc   :  { %v11526_v45 = vpop.eup %11525 }
 0x4bd   :  { %v4274_v2 = vmul.f32 %v11526_v45, %v11524_v17  ;;  %v11528_v30 = vpop.eup %11527  ;;  %v4340_v17 = vld [vmem:[#allocation14 + $0x190] sm:$0xff] }
 0x4be   :  { %v4344_v45 = vld [vmem:[#allocation14 + $0x1b0] sm:$0xff] }
 0x4bf   :  { %v12830_v21 = vmax.f32 %v3188_v9, %v4274_v2  ;;  %v11530_v49 = vpop.eup %11529  ;;  %v4341_v9 = vld [vmem:[#allocation14 + $0x198] sm:$0xff] }
 0x4c0   :  { %v4275_v39 = vmul.f32 %v11530_v49, %v11528_v30  ;;  %v10561_v30 = vcombine.low %v4332_v22, %v4336_v5  ;;  %v10563_v49 = vcombine.low %v4333_v8, %v4337_v7  ;;  %v4380_v5 = vld [vmem:[#allocation14 + $0x2d0] sm:$0xff]  ;;  %v4381_v7 = vld [vmem:[#allocation14 + $0x2d8] sm:$0xff] }
 0x4c1   :  { %v4384_v8 = vld [vmem:[#allocation14 + $0x2f0] sm:$0xff] }
 0x4c2   :  { %v12834_v4 = vmax.f32 %v3189_v1, %v4275_v39  ;;  %v4289_v62 = vpack.c.bf16 %v4275_v39, %v4274_v2  ;;  %v4345_v2 = vld [vmem:[#allocation14 + $0x1b8] sm:$0xff]  ;;  %v10570_v1 = vcombine.high %v4340_v17, %v4344_v45 }
 0x4c3   :  { %v10572_v39 = vcombine.high %v4341_v9, %v4345_v2  ;;  %v10571_v10 = vcombine.low %v4341_v9, %v4345_v2  ;;  %v4392_v9 = vld [vmem:[#allocation14 + $0x330] sm:$0xff]  ;;  %v4389_v2 = vld [vmem:[#allocation14 + $0x318] sm:$0xff] }
 0x4c4   :  { %5090 = vmatprep.mubr.bf16.mxu0 %v4289_v62  ;;  %5133 = vmatprep.mubr.bf16.mxu1 %v4289_v62 }
 0x4c5   :  { %5091 = vmatmul.mubr.bf16.vlgmr.msra.gmra.mrb[88].mxu0 %v12802_v46  ;;  %5134 = vmatmul.mubr.bf16.vlgmr.msra.gmra.mrb[88].mxu1 %v12802_v46 }
 0x4c6   :  { %5145 = vmatpush1.bf16.msra.mxu0 %v10521_v63  ;;  %5188 = vmatpush1.bf16.msra.mxu1 %v10523_v36  ;;  %v10548_v63 = vcombine.high %v4317_v41, %v4321_v44  ;;  %v4328_v36 = vld [vmem:[#allocation14 + $0x130] sm:$0xff]  ;;  %v4365_v44 = vld [vmem:[#allocation14 + $0x258] sm:$0xff] }
 0x4c7   :  { %5176 = vmatprep.mubr.bf16.mxu0 %v4289_v62  ;;  %5219 = vmatprep.mubr.bf16.mxu1 %v4289_v62  ;;  %v10554_v61 = vcombine.high %v4324_v54, %v4328_v36  ;;  %v10553_v37 = vcombine.low %v4324_v54, %v4328_v36  ;;  %v10569_v62 = vcombine.low %v4340_v17, %v4344_v45  ;;  %v4368_v41 = vld [vmem:[#allocation14 + $0x270] sm:$0xff] }
 0x4c8   :  { %5146 = vmatprep.subr.bf16.mxu0 %v10530_v52  ;;  %5189 = vmatprep.subr.bf16.mxu1 %v10532_v38  ;;  %v10578_v52 = vcombine.high %v4348_v33, %v4352_v27  ;;  %v10580_v38 = vcombine.high %v4349_v6, %v4353_v29  ;;  %v4372_v36 = vld [vmem:[#allocation14 + $0x290] sm:$0xff] }
 0x4c9   :  { %v4388_v45 = vld [vmem:[#allocation14 + $0x310] sm:$0xff] }
 0x4ca   :  { %5147 = vmatpush1.bf16.msra.mxu0 %v10529_v43  ;;  %5190 = vmatpush1.bf16.msra.mxu1 %v10531_v51  ;;  %v4361_v43 = vld [vmem:[#allocation14 + $0x238] sm:$0xff]  ;;  %v10577_v51 = vcombine.low %v4348_v33, %v4352_v27  ;;  %v4396_v27 = vld [vmem:[#allocation14 + $0x350] sm:$0xff] }
 0x4cb   :  { %5148 = vmatprep.subr.bf16.mxu0 %v10538_v56  ;;  %5191 = vmatprep.subr.bf16.mxu1 %v10540_v0  ;;  %v10579_v56 = vcombine.low %v4349_v6, %v4353_v29  ;;  %v10586_v0 = vcombine.high %v4356_v31, %v4360_v23  ;;  %v10588_v20 = vcombine.high %v4357_v53, %v4361_v43  ;;  %v4400_v6 = vld [vmem:[#allocation14 + $0x370] sm:$0xff]  ;;  %v4397_v29 = vld [vmem:[#allocation14 + $0x358] sm:$0xff] }
 0x4ce   :  { %5149 = vmatpush1.bf16.msra.mxu0 %v10537_v25  ;;  %5192 = vmatpush1.bf16.msra.mxu1 %v10539_v28  ;;  %v4369_v25 = vld [vmem:[#allocation14 + $0x278] sm:$0xff]  ;;  %v10585_v28 = vcombine.low %v4356_v31, %v4360_v23  ;;  %v4404_v23 = vld [vmem:[#allocation14 + $0x390] sm:$0xff] }
 0x4cf   :  { %5150 = vmatprep.subr.bf16.mxu0 %v10546_v19  ;;  %5193 = vmatprep.subr.bf16.mxu1 %v10548_v63  ;;  %v10587_v19 = vcombine.low %v4357_v53, %v4361_v43  ;;  %v10594_v63 = vcombine.high %v4364_v34, %v4368_v41  ;;  %v10596_v54 = vcombine.high %v4365_v44, %v4369_v25  ;;  %v4408_v53 = vld [vmem:[#allocation14 + $0x3b0] sm:$0xff]  ;;  %v4405_v43 = vld [vmem:[#allocation14 + $0x398] sm:$0xff] }
 0x4d2   :  { %5151 = vmatpush1.bf16.msra.mxu0 %v10545_v14  ;;  %5194 = vmatpush1.bf16.msra.mxu1 %v10547_v57  ;;  %v4377_v14 = vld [vmem:[#allocation14 + $0x2b8] sm:$0xff]  ;;  %v10593_v57 = vcombine.low %v4364_v34, %v4368_v41  ;;  %v4412_v41 = vld [vmem:[#allocation14 + $0x3d0] sm:$0xff] }
 0x4d3   :  { %5152 = vmatprep.subr.bf16.mxu0 %v10554_v61  ;;  %5195 = vmatprep.subr.bf16.mxu1 %v10556_v47  ;;  %v10595_v61 = vcombine.low %v4365_v44, %v4369_v25  ;;  %v10602_v47 = vcombine.high %v4372_v36, %v4376_v18  ;;  %v10604_v22 = vcombine.high %v4373_v60, %v4377_v14  ;;  %v4416_v44 = vld [vmem:[#allocation14 + $0x3f0] sm:$0xff]  ;;  %v4413_v25 = vld [vmem:[#allocation14 + $0x3d8] sm:$0xff] }
 0x4d6   :  { %5153 = vmatpush1.bf16.msra.mxu0 %v10553_v37  ;;  %5196 = vmatpush1.bf16.msra.mxu1 %v10555_v58  ;;  %v4385_v37 = vld [vmem:[#allocation14 + $0x2f8] sm:$0xff]  ;;  %v10601_v58 = vcombine.low %v4372_v36, %v4376_v18  ;;  %v10641_v18 = vcombine.low %v4412_v41, %v4416_v44 }
 0x4d7   :  { %5154 = vmatprep.subr.bf16.mxu0 %v10562_v26  ;;  %5197 = vmatprep.subr.bf16.mxu1 %v10564_v15  ;;  %v10603_v26 = vcombine.low %v4373_v60, %v4377_v14  ;;  %v10610_v15 = vcombine.high %v4380_v5, %v4384_v8  ;;  %v10612_v17 = vcombine.high %v4381_v7, %v4385_v37  ;;  %v5386_v14 = vld [vmem:[#allocation14] sm:$0xff] }
 0x4da   :  { %5155 = vmatpush1.bf16.msra.mxu0 %v10561_v30  ;;  %5198 = vmatpush1.bf16.msra.mxu1 %v10563_v49  ;;  %v4393_v30 = vld [vmem:[#allocation14 + $0x338] sm:$0xff]  ;;  %v10609_v49 = vcombine.low %v4380_v5, %v4384_v8  ;;  %v5391_v5 = vld [vmem:[#allocation14 + $0x28] sm:$0xff]  ;;  %v5394_v8 = vld [vmem:[#allocation14 + $0x40] sm:$0xff] }
 0x4db   :  { %5156 = vmatprep.subr.bf16.mxu0 %v10570_v1  ;;  %5199 = vmatprep.subr.bf16.mxu1 %v10572_v39  ;;  %v10611_v1 = vcombine.low %v4381_v7, %v4385_v37  ;;  %v10618_v39 = vcombine.high %v4388_v45, %v4392_v9  ;;  %v10620_v33 = vcombine.high %v4389_v2, %v4393_v30  ;;  %v5398_v7 = vld [vmem:[#allocation14 + $0x60] sm:$0xff] }
 0x4de   :  { %5157 = vmatpush1.bf16.msra.mxu0 %v10569_v62  ;;  %5200 = vmatpush1.bf16.msra.mxu1 %v10571_v10  ;;  %v4401_v62 = vld [vmem:[#allocation14 + $0x378] sm:$0xff]  ;;  %v10617_v10 = vcombine.low %v4388_v45, %v4392_v9  ;;  %v5402_v45 = vld [vmem:[#allocation14 + $0x80] sm:$0xff] }
 0x4df   :  { %5158 = vmatprep.subr.bf16.mxu0 %v10578_v52  ;;  %5201 = vmatprep.subr.bf16.mxu1 %v10580_v38  ;;  %v10619_v52 = vcombine.low %v4389_v2, %v4393_v30  ;;  %v10626_v38 = vcombine.high %v4396_v27, %v4400_v6  ;;  %v10628_v31 = vcombine.high %v4397_v29, %v4401_v62  ;;  %v5406_v2 = vld [vmem:[#allocation14 + $0xa0] sm:$0xff]  ;;  %v5403_v30 = vld [vmem:[#allocation14 + $0x88] sm:$0xff] }
 0x4e2   :  { %5159 = vmatpush1.bf16.msra.mxu0 %v10577_v51  ;;  %5202 = vmatpush1.bf16.msra.mxu1 %v10579_v56  ;;  %v4409_v51 = vld [vmem:[#allocation14 + $0x3b8] sm:$0xff]  ;;  %v10625_v56 = vcombine.low %v4396_v27, %v4400_v6  ;;  %v10673_v27 = vcombine.low %v5402_v45, %v5406_v2 }
 0x4e3   :  { %5160 = vmatprep.subr.bf16.mxu0 %v10586_v0  ;;  %5203 = vmatprep.subr.bf16.mxu1 %v10588_v20  ;;  %v10627_v0 = vcombine.low %v4397_v29, %v4401_v62  ;;  %v10634_v20 = vcombine.high %v4404_v23, %v4408_v53  ;;  %v10636_v34 = vcombine.high %v4405_v43, %v4409_v51  ;;  %v5410_v29 = vld [vmem:[#allocation14 + $0xc0] sm:$0xff] }
 0x4e4   :  { %v5414_v62 = vld [vmem:[#allocation14 + $0xe0] sm:$0xff] }
 0x4e6   :  { %5161 = vmatpush1.bf16.msra.mxu0 %v10585_v28  ;;  %5204 = vmatpush1.bf16.msra.mxu1 %v10587_v19  ;;  %v4417_v28 = vld [vmem:[#allocation14 + $0x3f8] sm:$0xff]  ;;  %v10633_v19 = vcombine.low %v4404_v23, %v4408_v53 }
 0x4e7   :  { %5162 = vmatprep.subr.bf16.mxu0 %v10594_v63  ;;  %5205 = vmatprep.subr.bf16.mxu1 %v10596_v54  ;;  %v10635_v63 = vcombine.low %v4405_v43, %v4409_v51  ;;  %v10642_v54 = vcombine.high %v4412_v41, %v4416_v44  ;;  %v10644_v36 = vcombine.high %v4413_v25, %v4417_v28  ;;  %v5418_v43 = vld [vmem:[#allocation14 + $0x100] sm:$0xff] }
 0x4e8   :  { %v10643_v60 = vcombine.low %v4413_v25, %v4417_v28  ;;  %v5422_v51 = vld [vmem:[#allocation14 + $0x120] sm:$0xff] }
 0x4e9   :  { %v5426_v25 = vld [vmem:[#allocation14 + $0x140] sm:$0xff] }
 0x4ea   :  { %5163 = vmatpush1.bf16.msra.mxu0 %v10593_v57  ;;  %5206 = vmatpush1.bf16.msra.mxu1 %v10595_v61  ;;  %v5390_v57 = vld [vmem:[#allocation14 + $0x20] sm:$0xff]  ;;  %v5387_v61 = vld [vmem:[#allocation14 + $0x8] sm:$0xff] }
 0x4eb   :  { %5164 = vmatprep.subr.bf16.mxu0 %v10602_v47  ;;  %5207 = vmatprep.subr.bf16.mxu1 %v10604_v22  ;;  %v10657_v47 = vcombine.low %v5386_v14, %v5390_v57  ;;  %v10658_v22 = vcombine.high %v5386_v14, %v5390_v57  ;;  %v10659_v37 = vcombine.low %v5387_v61, %v5391_v5  ;;  %v5430_v28 = vld [vmem:[#allocation14 + $0x160] sm:$0xff] }
 0x4ec   :  { %v5434_v14 = vld [vmem:[#allocation14 + $0x180] sm:$0xff] }
 0x4ed   :  { %v5438_v57 = vld [vmem:[#allocation14 + $0x1a0] sm:$0xff] }
 0x4ee   :  { %5165 = vmatpush1.bf16.msra.mxu0 %v10601_v58  ;;  %5208 = vmatpush1.bf16.msra.mxu1 %v10603_v26  ;;  %v10660_v58 = vcombine.high %v5387_v61, %v5391_v5  ;;  %v10666_v26 = vcombine.high %v5394_v8, %v5398_v7  ;;  %v5435_v61 = vld [vmem:[#allocation14 + $0x188] sm:$0xff]  ;;  %v10705_v5 = vcombine.low %v5434_v14, %v5438_v57 }
 0x4ef   :  { %5166 = vmatprep.subr.bf16.mxu0 %v10610_v15  ;;  %5209 = vmatprep.subr.bf16.mxu1 %v10612_v17  ;;  %v5395_v15 = vld [vmem:[#allocation14 + $0x48] sm:$0xff] }
 0x4f0   :  { %v5399_v17 = vld [vmem:[#allocation14 + $0x68] sm:$0xff] }
 0x4f1   :  { %v10668_v9 = vcombine.high %v5395_v15, %v5399_v17 }
 0x4f2   :  { %5167 = vmatpush1.bf16.msra.mxu0 %v10609_v49  ;;  %5210 = vmatpush1.bf16.msra.mxu1 %v10611_v1  ;;  %v5407_v49 = vld [vmem:[#allocation14 + $0xa8] sm:$0xff]  ;;  %v10667_v1 = vcombine.low %v5395_v15, %v5399_v17 }
 0x4f3   :  { %5168 = vmatprep.subr.bf16.mxu0 %v10618_v39  ;;  %5211 = vmatprep.subr.bf16.mxu1 %v10620_v33  ;;  %v10674_v39 = vcombine.high %v5402_v45, %v5406_v2  ;;  %v10676_v33 = vcombine.high %v5403_v30, %v5407_v49  ;;  %v10675_v6 = vcombine.low %v5403_v30, %v5407_v49  ;;  %v5447_v17 = vld [vmem:[#allocation14 + $0x1e8] sm:$0xff]  ;;  %v5450_v30 = vld [vmem:[#allocation14 + $0x200] sm:$0xff] }
 0x4f4   :  { %v5454_v49 = vld [vmem:[#allocation14 + $0x220] sm:$0xff] }
 0x4f6   :  { %5169 = vmatpush1.bf16.msra.mxu0 %v10617_v10  ;;  %5212 = vmatpush1.bf16.msra.mxu1 %v10619_v52  ;;  %v5411_v10 = vld [vmem:[#allocation14 + $0xc8] sm:$0xff]  ;;  %v10682_v52 = vcombine.high %v5410_v29, %v5414_v62 }
 0x4f7   :  { %5170 = vmatprep.subr.bf16.mxu0 %v10626_v38  ;;  %5213 = vmatprep.subr.bf16.mxu1 %v10628_v31  ;;  %v5415_v38 = vld [vmem:[#allocation14 + $0xe8] sm:$0xff]  ;;  %v10681_v31 = vcombine.low %v5410_v29, %v5414_v62  ;;  %v5458_v29 = vld [vmem:[#allocation14 + $0x240] sm:$0xff] }
 0x4f8   :  { %v10683_v23 = vcombine.low %v5411_v10, %v5415_v38  ;;  %v10684_v53 = vcombine.high %v5411_v10, %v5415_v38  ;;  %v5462_v62 = vld [vmem:[#allocation14 + $0x260] sm:$0xff]  ;;  %v5459_v10 = vld [vmem:[#allocation14 + $0x248] sm:$0xff] }
 0x4f9   :  { %v5463_v38 = vld [vmem:[#allocation14 + $0x268] sm:$0xff] }
 0x4fa   :  { %5171 = vmatpush1.bf16.msra.mxu0 %v10625_v56  ;;  %5214 = vmatpush1.bf16.msra.mxu1 %v10627_v0  ;;  %v5419_v56 = vld [vmem:[#allocation14 + $0x108] sm:$0xff]  ;;  %v10690_v0 = vcombine.high %v5418_v43, %v5422_v51 }
 0x4fb   :  { %5172 = vmatprep.subr.bf16.mxu0 %v10634_v20  ;;  %5215 = vmatprep.subr.bf16.mxu1 %v10636_v34  ;;  %v5423_v20 = vld [vmem:[#allocation14 + $0x128] sm:$0xff]  ;;  %v10689_v34 = vcombine.low %v5418_v43, %v5422_v51  ;;  %v5466_v43 = vld [vmem:[#allocation14 + $0x280] sm:$0xff] }
 0x4fc   :  { %v10691_v41 = vcombine.low %v5419_v56, %v5423_v20  ;;  %v10692_v44 = vcombine.high %v5419_v56, %v5423_v20  ;;  %v5470_v51 = vld [vmem:[#allocation14 + $0x2a0] sm:$0xff]  ;;  %v5467_v56 = vld [vmem:[#allocation14 + $0x288] sm:$0xff] }
 0x4fd   :  { %v5471_v20 = vld [vmem:[#allocation14 + $0x2a8] sm:$0xff] }
 0x4fe   :  { %5173 = vmatpush1.bf16.msra.mxu0 %v10633_v19  ;;  %5216 = vmatpush1.bf16.msra.mxu1 %v10635_v63  ;;  %v5427_v19 = vld [vmem:[#allocation14 + $0x148] sm:$0xff]  ;;  %v10698_v63 = vcombine.high %v5426_v25, %v5430_v28 }
 0x4ff   :  { %5174 = vmatprep.subr.bf16.mxu0 %v10642_v54  ;;  %5217 = vmatprep.subr.bf16.mxu1 %v10644_v36  ;;  %v5431_v54 = vld [vmem:[#allocation14 + $0x168] sm:$0xff]  ;;  %v10697_v36 = vcombine.low %v5426_v25, %v5430_v28  ;;  %v5474_v25 = vld [vmem:[#allocation14 + $0x2c0] sm:$0xff] }
 0x500   :  { %v5478_v28 = vld [vmem:[#allocation14 + $0x2e0] sm:$0xff] }
 0x502   :  { %5175 = vmatpush1.bf16.msra.mxu0 %v10641_v18  ;;  %5218 = vmatpush1.bf16.msra.mxu1 %v10643_v60  ;;  %v10699_v18 = vcombine.low %v5427_v19, %v5431_v54  ;;  %v10700_v60 = vcombine.high %v5427_v19, %v5431_v54  ;;  %v5475_v19 = vld [vmem:[#allocation14 + $0x2c8] sm:$0xff] }
 0x503   :  { %6154 = vmatprep.subr.bf16.mxu0 %v10658_v22  ;;  %6197 = vmatprep.subr.bf16.mxu1 %v10660_v58  ;;  %v5439_v22 = vld [vmem:[#allocation14 + $0x1a8] sm:$0xff]  ;;  %v5446_v58 = vld [vmem:[#allocation14 + $0x1e0] sm:$0xff] }
 0x504   :  { %v5479_v54 = vld [vmem:[#allocation14 + $0x2e8] sm:$0xff] }
 0x505   :  { %5177 = vmatmul.mubr.bf16.vlgmr.msra.gmra.mrb[92].mxu0 %v12802_v46  ;;  %5220 = vmatmul.mubr.bf16.vlgmr.msra.gmra.mrb[92].mxu1 %v12802_v46  ;;  %v10665_v46 = vcombine.low %v5394_v8, %v5398_v7  ;;  %v10707_v8 = vcombine.low %v5435_v61, %v5439_v22  ;;  %v10708_v7 = vcombine.high %v5435_v61, %v5439_v22  ;;  %v5483_v61 = vld [vmem:[#allocation14 + $0x308] sm:$0xff] }
 0x506   :  { %6155 = vmatpush1.bf16.msra.mxu0 %v10657_v47  ;;  %6198 = vmatpush1.bf16.msra.mxu1 %v10659_v37  ;;  %v10706_v47 = vcombine.high %v5434_v14, %v5438_v57  ;;  %v5442_v37 = vld [vmem:[#allocation14 + $0x1c0] sm:$0xff] }
 0x507   :  { %6156 = vmatprep.subr.bf16.mxu0 %v10666_v26  ;;  %6199 = vmatprep.subr.bf16.mxu1 %v10668_v9  ;;  %v5443_v26 = vld [vmem:[#allocation14 + $0x1c8] sm:$0xff]  ;;  %v10714_v15 = vcombine.high %v5442_v37, %v5446_v58  ;;  %v10713_v45 = vcombine.low %v5442_v37, %v5446_v58  ;;  %v5482_v14 = vld [vmem:[#allocation14 + $0x300] sm:$0xff] }
 0x508   :  { %v10715_v9 = vcombine.low %v5443_v26, %v5447_v17  ;;  %v10716_v2 = vcombine.high %v5443_v26, %v5447_v17  ;;  %v5486_v57 = vld [vmem:[#allocation14 + $0x320] sm:$0xff]  ;;  %v5495_v17 = vld [vmem:[#allocation14 + $0x368] sm:$0xff] }
 0x509   :  { %v10754_v22 = vcombine.high %v5482_v14, %v5486_v57 }
 0x50a   :  { %6157 = vmatpush1.bf16.msra.mxu0 %v10665_v46  ;;  %6200 = vmatpush1.bf16.msra.mxu1 %v10667_v1  ;;  %v5451_v46 = vld [vmem:[#allocation14 + $0x208] sm:$0xff]  ;;  %v10722_v1 = vcombine.high %v5450_v30, %v5454_v49 }
 0x50b   :  { %6158 = vmatprep.subr.bf16.mxu0 %v10674_v39  ;;  %6201 = vmatprep.subr.bf16.mxu1 %v10676_v33  ;;  %v5455_v39 = vld [vmem:[#allocation14 + $0x228] sm:$0xff]  ;;  %v10721_v33 = vcombine.low %v5450_v30, %v5454_v49 }
 0x50c   :  { %v5499_v30 = vld [vmem:[#allocation14 + $0x388] sm:$0xff] }
 0x50d   :  { %v5503_v49 = vld [vmem:[#allocation14 + $0x3a8] sm:$0xff] }
 0x50e   :  { %6159 = vmatpush1.bf16.msra.mxu0 %v10673_v27  ;;  %6202 = vmatpush1.bf16.msra.mxu1 %v10675_v6  ;;  %v10723_v27 = vcombine.low %v5451_v46, %v5455_v39  ;;  %v10724_v6 = vcombine.high %v5451_v46, %v5455_v39 }
 0x50f   :  { %6160 = vmatprep.subr.bf16.mxu0 %v10682_v52  ;;  %6203 = vmatprep.subr.bf16.mxu1 %v10684_v53  ;;  %v10730_v52 = vcombine.high %v5458_v29, %v5462_v62  ;;  %v10732_v53 = vcombine.high %v5459_v10, %v5463_v38 }
 0x512   :  { %6161 = vmatpush1.bf16.msra.mxu0 %v10681_v31  ;;  %6204 = vmatpush1.bf16.msra.mxu1 %v10683_v23  ;;  %v10729_v31 = vcombine.low %v5458_v29, %v5462_v62  ;;  %v10731_v23 = vcombine.low %v5459_v10, %v5463_v38  ;;  %v5507_v29 = vld [vmem:[#allocation14 + $0x3c8] sm:$0xff] }
 0x513   :  { %6162 = vmatprep.subr.bf16.mxu0 %v10690_v0  ;;  %6205 = vmatprep.subr.bf16.mxu1 %v10692_v44  ;;  %v10738_v0 = vcombine.high %v5466_v43, %v5470_v51  ;;  %v10740_v44 = vcombine.high %v5467_v56, %v5471_v20  ;;  %v5511_v62 = vld [vmem:[#allocation14 + $0x3e8] sm:$0xff] }
 0x516   :  { %6163 = vmatpush1.bf16.msra.mxu0 %v10689_v34  ;;  %6206 = vmatpush1.bf16.msra.mxu1 %v10691_v41  ;;  %v10737_v34 = vcombine.low %v5466_v43, %v5470_v51  ;;  %v10739_v41 = vcombine.low %v5467_v56, %v5471_v20  ;;  %v12846_v43 = vld [vmem:[#allocation14 + $0x10] sm:$0xff]  ;;  %v12850_v56 = vld [vmem:[#allocation14 + $0x18] sm:$0xff] }
 0x517   :  { %6164 = vmatprep.subr.bf16.mxu0 %v10698_v63  ;;  %6207 = vmatprep.subr.bf16.mxu1 %v10700_v60  ;;  %v10746_v63 = vcombine.high %v5474_v25, %v5478_v28  ;;  %v10748_v60 = vcombine.high %v5475_v19, %v5479_v54  ;;  %v12848_v51 = vld [vmem:[#allocation14 + $0x30] sm:$0xff] }
 0x518   :  { %v10662_v20 = vcombine.high %v12846_v43, %v12848_v51 }
 0x51a   :  { %6165 = vmatpush1.bf16.msra.mxu0 %v10697_v36  ;;  %6208 = vmatpush1.bf16.msra.mxu1 %v10699_v18  ;;  %v10745_v36 = vcombine.low %v5474_v25, %v5478_v28  ;;  %v10747_v18 = vcombine.low %v5475_v19, %v5479_v54  ;;  %v13526_v25 = vld [vmem:[#allocation30_spill] sm:$0xff] }
 0x51b   :  { %6166 = vmatprep.subr.bf16.mxu0 %v10706_v47  ;;  %6209 = vmatprep.subr.bf16.mxu1 %v10708_v7  ;;  %v10753_v47 = vcombine.low %v5482_v14, %v5486_v57  ;;  %v5494_v7 = vld [vmem:[#allocation14 + $0x360] sm:$0xff]  ;;  %v5237_v28 = vunpack.c.l.bf16 %v13526_v25  ;;  %v5241_v19 = vunpack.c.h.bf16 %v13526_v25 }
 0x51c   :  { %v13528_v14 = vld [vmem:[#allocation32_spill] sm:$0xff] }
 0x51d   :  { %v5239_v57 = vunpack.c.l.bf16 %v13528_v14 }
 0x51e   :  { %6167 = vmatpush1.bf16.msra.mxu0 %v10705_v5  ;;  %6210 = vmatpush1.bf16.msra.mxu1 %v10707_v8  ;;  %v5487_v5 = vld [vmem:[#allocation14 + $0x328] sm:$0xff]  ;;  %v5490_v8 = vld [vmem:[#allocation14 + $0x340] sm:$0xff] }
 0x51f   :  { %6168 = vmatprep.subr.bf16.mxu0 %v10714_v15  ;;  %6211 = vmatprep.subr.bf16.mxu1 %v10716_v2  ;;  %v10755_v37 = vcombine.low %v5483_v61, %v5487_v5  ;;  %v10756_v58 = vcombine.high %v5483_v61, %v5487_v5  ;;  %v10762_v26 = vcombine.high %v5490_v8, %v5494_v7  ;;  %v5491_v15 = vld [vmem:[#allocation14 + $0x348] sm:$0xff]  ;;  %v5502_v2 = vld [vmem:[#allocation14 + $0x3a0] sm:$0xff]  ;;  %v5243_v61 = vunpack.c.h.bf16 %v13528_v14 }
 0x520   :  { %v10761_v46 = vcombine.low %v5490_v8, %v5494_v7  ;;  %v13529_v7 = vld [vmem:[#allocation33_spill] sm:$0xff] }
 0x522   :  { %6169 = vmatpush1.bf16.msra.mxu0 %v10713_v45  ;;  %6212 = vmatpush1.bf16.msra.mxu1 %v10715_v9  ;;  %v5498_v45 = vld [vmem:[#allocation14 + $0x380] sm:$0xff]  ;;  %v10764_v9 = vcombine.high %v5491_v15, %v5495_v17 }
 0x523   :  { %6170 = vmatprep.subr.bf16.mxu0 %v10722_v1  ;;  %6213 = vmatprep.subr.bf16.mxu1 %v10724_v6  ;;  %v10763_v1 = vcombine.low %v5491_v15, %v5495_v17  ;;  %v10770_v39 = vcombine.high %v5498_v45, %v5502_v2  ;;  %v5510_v6 = vld [vmem:[#allocation14 + $0x3e0] sm:$0xff]  ;;  %v10769_v10 = vcombine.low %v5498_v45, %v5502_v2 }
 0x526   :  { %6171 = vmatpush1.bf16.msra.mxu0 %v10721_v33  ;;  %6214 = vmatpush1.bf16.msra.mxu1 %v10723_v27  ;;  %v10772_v33 = vcombine.high %v5499_v30, %v5503_v49  ;;  %v5506_v27 = vld [vmem:[#allocation14 + $0x3c0] sm:$0xff] }
 0x527   :  { %6172 = vmatprep.subr.bf16.mxu0 %v10730_v52  ;;  %6215 = vmatprep.subr.bf16.mxu1 %v10732_v53  ;;  %v10771_v52 = vcombine.low %v5499_v30, %v5503_v49  ;;  %v10778_v38 = vcombine.high %v5506_v27, %v5510_v6  ;;  %v10779_v53 = vcombine.low %v5507_v29, %v5511_v62 }
 0x52a   :  { %6173 = vmatpush1.bf16.msra.mxu0 %v10729_v31  ;;  %6216 = vmatpush1.bf16.msra.mxu1 %v10731_v23  ;;  %v10780_v31 = vcombine.high %v5507_v29, %v5511_v62  ;;  %v10777_v23 = vcombine.low %v5506_v27, %v5510_v6 }
 0x52b   :  { %6174 = vmatprep.subr.bf16.mxu0 %v10738_v0  ;;  %6217 = vmatprep.subr.bf16.mxu1 %v10740_v44  ;;  %v10661_v0 = vcombine.low %v12846_v43, %v12848_v51 }
 0x52e   :  { %6175 = vmatpush1.bf16.msra.mxu0 %v10737_v34  ;;  %6218 = vmatpush1.bf16.msra.mxu1 %v10739_v41  ;;  %v12856_v34 = vld [vmem:[#allocation14 + $0x38] sm:$0xff] }
 0x52f   :  { %6176 = vmatprep.subr.bf16.mxu0 %v10746_v63  ;;  %6219 = vmatprep.subr.bf16.mxu1 %v10748_v60  ;;  %v10663_v41 = vcombine.low %v12850_v56, %v12856_v34  ;;  %v10664_v44 = vcombine.high %v12850_v56, %v12856_v34  ;;  %v13527_v63 = vld [vmem:[#allocation31_spill] sm:$0xff]  ;;  %v5420_v34 = vld [vmem:[#allocation14 + $0x110] sm:$0xff] }
 0x530   :  { %v5238_v54 = vunpack.c.l.bf16 %v13527_v63 }
 0x532   :  { %6177 = vmatpush1.bf16.msra.mxu0 %v10745_v36  ;;  %6220 = vmatpush1.bf16.msra.mxu1 %v10747_v18  ;;  %v5242_v36 = vunpack.c.h.bf16 %v13527_v63 }
 0x533   :  { %6178 = vmatprep.subr.bf16.mxu0 %v10754_v22  ;;  %6221 = vmatprep.subr.bf16.mxu1 %v10756_v58  ;;  %v5244_v58 = vunpack.c.h.bf16 %v13529_v7 }
 0x536   :  { %6179 = vmatpush1.bf16.msra.mxu0 %v10753_v47  ;;  %6222 = vmatpush1.bf16.msra.mxu1 %v10755_v37  ;;  %v5240_v37 = vunpack.c.l.bf16 %v13529_v7 }
 0x537   :  { %6180 = vmatprep.subr.bf16.mxu0 %v10762_v26  ;;  %6223 = vmatprep.subr.bf16.mxu1 %v10764_v9 }
 0x53a   :  { %6181 = vmatpush1.bf16.msra.mxu0 %v10761_v46  ;;  %6224 = vmatpush1.bf16.msra.mxu1 %v10763_v1 }
 0x53b   :  { %6182 = vmatprep.subr.bf16.mxu0 %v10770_v39  ;;  %6225 = vmatprep.subr.bf16.mxu1 %v10772_v33 }
 0x53e   :  { %6183 = vmatpush1.bf16.msra.mxu0 %v10769_v10  ;;  %6226 = vmatpush1.bf16.msra.mxu1 %v10771_v52 }
 0x53f   :  { %6184 = vmatprep.subr.bf16.mxu0 %v10778_v38  ;;  %6227 = vmatprep.subr.bf16.mxu1 %v10780_v31 }
 0x542   :  { %6185 = vmatpush1.bf16.msra.mxu0 %v10777_v23  ;;  %6228 = vmatpush1.bf16.msra.mxu1 %v10779_v53 }
 0x543   :  { %6240 = vmatprep.subr.bf16.mxu0 %v10662_v20  ;;  %6283 = vmatprep.subr.bf16.mxu1 %v10664_v44 }
 0x598   :  { %v5092_v18 = vpop.f32.mrb[88].mxu0  ;;  %v5135_v60 = vpop.f32.mrb[88].mxu1 }
 0x599   :  { %v5093_v47 = vadd.f32 %v5092_v18, %v13509_v13  ;;  %v5136_v22 = vadd.f32 %v5135_v60, %v12516_v48  ;;  %v5094_v5 = vpop.f32.mrb[89].mxu0  ;;  %v5137_v8 = vpop.f32.mrb[89].mxu1 }
 0x59a   :  { %v5095_v26 = vadd.f32 %v5094_v5, %v13511_v3  ;;  %v5138_v15 = vadd.f32 %v5137_v8, %v13512_v55  ;;  %v5096_v17 = vpop.f32.mrb[90].mxu0  ;;  %v5139_v45 = vpop.f32.mrb[90].mxu1 }
 0x59b   :  { %v5245_v9 = vadd.f32 %v5237_v28, %v5093_v47  ;;  %v5247_v2 = vadd.f32 %v5239_v57, %v5136_v22  ;;  %v5097_v30 = vadd.f32 %v5096_v17, %v13509_v13  ;;  %v5140_v49 = vadd.f32 %v5139_v45, %v12516_v48  ;;  %v5098_v46 = vpop.f32.mrb[91].mxu0  ;;  %v5141_v1 = vpop.f32.mrb[91].mxu1 }
 0x59c   :  { %v5246_v39 = vadd.f32 %v5238_v54, %v5095_v26  ;;  %v5248_v33 = vadd.f32 %v5240_v37, %v5138_v15  ;;  %v5099_v27 = vadd.f32 %v5098_v46, %v13511_v3  ;;  %v5142_v6 = vadd.f32 %v5141_v1, %v13512_v55 }
 0x59d   :  { %v10645_v29 = vmul.f32 -1.442695, %v5245_v9  ;;  %v5249_v62 = vadd.f32 %v5241_v19, %v5097_v30  ;;  %v5251_v10 = vadd.f32 %v5243_v61, %v5140_v49 }
 0x59e   :  { %v10647_v52 = vmul.f32 -1.442695, %v5246_v39  ;;  %v5250_v38 = vadd.f32 %v5242_v36, %v5099_v27  ;;  %v5252_v31 = vadd.f32 %v5244_v58, %v5142_v6  ;;  %v10649_v20 = vmul.f32 -1.442695, %v5248_v33  ;;  %v13530_v6 = vld [vmem:[#allocation75_spill] sm:$0xff] }
 0x59f   :  { %11531 = vpow2.f32 %v10645_v29  ;;  %v10646_v23 = vmul.f32 -1.442695, %v5249_v62  ;;  %v5260_v29 = vunpack.c.l.bf16 %v13530_v6  ;;  %v5264_v62 = vunpack.c.h.bf16 %v13530_v6 }
 0x5a0   :  { %11533 = vpow2.f32 %v10647_v52  ;;  %v10648_v53 = vmul.f32 -1.442695, %v5250_v38  ;;  %v10650_v63 = vmul.f32 -1.442695, %v5252_v31 }
 0x5a1   :  { %11535 = vpow2.f32 %v10646_v23 }
 0x5a2   :  { %11537 = vpow2.f32 %v10648_v53  ;;  %v13532_v53 = vld [vmem:[#allocation78_spill] sm:$0xff] }
 0x5a3   :  { %11539 = vtanh.f32 %v5247_v2 }
 0x5a4   :  { %11541 = vpow2.f32 %v10649_v20  ;;  %v5262_v20 = vunpack.c.l.bf16 %v13532_v53 }
 0x5a5   :  { %11543 = vtanh.f32 %v5251_v10  ;;  %v13531_v10 = vld [vmem:[#allocation77_spill] sm:$0xff] }
 0x5a6   :  { %v5261_v52 = vunpack.c.l.bf16 %v13531_v10  ;;  %v5265_v38 = vunpack.c.h.bf16 %v13531_v10 }
 0x5a9   :  { %v11532_v44 = vpop.eup %11531 }
 0x5aa   :  { %v11534_v25 = vpop.eup %11533  ;;  %v5282_v28 = vadd.f32 1.0, %v11532_v44  ;;  %v5266_v44 = vunpack.c.h.bf16 %v13532_v53 }
 0x5ab   :  { %v5294_v54 = vadd.f32 1.0, %v11534_v25  ;;  %v11536_v19 = vpop.eup %11535 }
 0x5ac   :  { %11545 = vrcp.f32 %v5282_v28  ;;  %v5283_v36 = vadd.f32 1.0, %v11536_v19  ;;  %v11538_v18 = vpop.eup %11537  ;;  %v13533_v19 = vld [vmem:[#allocation81_spill] sm:$0xff] }
 0x5ad   :  { %11547 = vrcp.f32 %v5294_v54  ;;  %v5295_v60 = vadd.f32 1.0, %v11538_v18  ;;  %v11540_v14 = vpop.eup %11539  ;;  %v5267_v18 = vunpack.c.h.bf16 %v13533_v19 }
 0x5ae   :  { %11549 = vpow2.f32 %v10650_v63  ;;  %v11542_v57 = vpop.eup %11541 }
 0x5af   :  { %11551 = vrcp.f32 %v5283_v36  ;;  %v11544_v61 = vpop.eup %11543  ;;  %v5308_v8 = vadd.f32 1.0, %v11542_v57  ;;  %v5263_v36 = vunpack.c.l.bf16 %v13533_v19 }
 0x5b0   :  { %11553 = vrcp.f32 %v5295_v60 }
 0x5b1   :  { %11555 = vrcp.f32 %v5308_v8 }
 0x5b6   :  { %v11546_v47 = vpop.eup %11545 }
 0x5b7   :  { %v11548_v22 = vpop.eup %11547  ;;  %v5316_v5 = vmul.f32 %v11546_v47, %v11540_v14 }
 0x5b8   :  { %v11550_v7 = vpop.eup %11549  ;;  %v5314_v37 = vmul.f32 %v11548_v22, %v12787_v24 }
 0x5b9   :  { %v11552_v58 = vpop.eup %11551  ;;  %v5309_v45 = vadd.f32 1.0, %v11550_v7 }
 0x5ba   :  { %v12879_v26 = vadd.f32 %v5316_v5, %v5314_v37  ;;  %v5317_v15 = vmul.f32 %v11552_v58, %v11544_v61  ;;  %v11554_v17 = vpop.eup %11553 }
 0x5bb   :  { %v5315_v9 = vmul.f32 %v11554_v17, %v12791_v32  ;;  %v11556_v30 = vpop.eup %11555 }
 0x5bc   :  { %11557 = vtanh.f32 %v12879_v26 }
 0x5bd   :  { %v12883_v2 = vadd.f32 %v5317_v15, %v5315_v9  ;;  %11559 = vrcp.f32 %v5309_v45 }
 0x5bf   :  { %11561 = vtanh.f32 %v12883_v2 }
 0x5c6   :  { %v11558_v49 = vpop.eup %11557 }
 0x5c7   :  { %v12886_v46 = vmul.f32 %v11558_v49, %v11556_v30  ;;  %v11560_v24 = vpop.eup %11559 }
 0x5c9   :  { %v5374_v1 = vmax.f32 %v12796_v50, %v12886_v46  ;;  %v11562_v39 = vpop.eup %11561 }
 0x5ca   :  { %v12890_v33 = vmul.f32 %v11562_v39, %v11560_v24 }
 0x5cc   :  { %v5375_v32 = vmax.f32 %v12800_v12, %v12890_v33  ;;  %v12896_v27 = vpack.c.bf16 %v12890_v33, %v12886_v46 }
 0x5d8   :  { %v5178_v31 = vpop.f32.mrb[92].mxu0  ;;  %v5221_v23 = vpop.f32.mrb[92].mxu1 }
 0x5d9   :  { %v5179_v25 = vadd.f32 %v5178_v31, %v13516_v59  ;;  %v5222_v28 = vadd.f32 %v5221_v23, %v12556_v11  ;;  %v5180_v63 = vpop.f32.mrb[93].mxu0  ;;  %v5223_v54 = vpop.f32.mrb[93].mxu1 }
 0x5da   :  { %v5181_v60 = vadd.f32 %v5180_v63, %v12559_v42  ;;  %v5224_v14 = vadd.f32 %v5223_v54, %v12562_v40  ;;  %v5182_v57 = vpop.f32.mrb[94].mxu0  ;;  %v5225_v61 = vpop.f32.mrb[94].mxu1 }
 0x5db   :  { %v5268_v47 = vadd.f32 %v5260_v29, %v5179_v25  ;;  %v5270_v22 = vadd.f32 %v5262_v20, %v5222_v28  ;;  %v5183_v5 = vadd.f32 %v5182_v57, %v13516_v59  ;;  %v5226_v8 = vadd.f32 %v5225_v61, %v12556_v11  ;;  %v5184_v7 = vpop.f32.mrb[95].mxu0  ;;  %v5227_v37 = vpop.f32.mrb[95].mxu1 }
 0x5dc   :  { %v5269_v58 = vadd.f32 %v5261_v52, %v5181_v60  ;;  %v5271_v15 = vadd.f32 %v5263_v36, %v5224_v14  ;;  %v5185_v17 = vadd.f32 %v5184_v7, %v12559_v42  ;;  %v5228_v45 = vadd.f32 %v5227_v37, %v12562_v40 }
 0x5dd   :  { %v10651_v9 = vmul.f32 -1.442695, %v5268_v47  ;;  %v5272_v30 = vadd.f32 %v5264_v62, %v5183_v5  ;;  %v5274_v49 = vadd.f32 %v5266_v44, %v5226_v8 }
 0x5de   :  { %v10653_v24 = vmul.f32 -1.442695, %v5269_v58  ;;  %v5273_v39 = vadd.f32 %v5265_v38, %v5185_v17  ;;  %v5275_v6 = vadd.f32 %v5267_v18, %v5228_v45  ;;  %v10655_v31 = vmul.f32 -1.442695, %v5271_v15 }
 0x5df   :  { %11563 = vpow2.f32 %v10651_v9  ;;  %v10652_v29 = vmul.f32 -1.442695, %v5272_v30 }
 0x5e0   :  { %11565 = vpow2.f32 %v10653_v24  ;;  %v10654_v10 = vmul.f32 -1.442695, %v5273_v39  ;;  %v10656_v20 = vmul.f32 -1.442695, %v5275_v6  ;;  %v5396_v24 = vld [vmem:[#allocation14 + $0x50] sm:$0xff]  ;;  %v5397_v39 = vld [vmem:[#allocation14 + $0x58] sm:$0xff] }
 0x5e1   :  { %11567 = vpow2.f32 %v10652_v29  ;;  %v5401_v6 = vld [vmem:[#allocation14 + $0x78] sm:$0xff] }
 0x5e2   :  { %11569 = vpow2.f32 %v10654_v10 }
 0x5e3   :  { %11571 = vtanh.f32 %v5270_v22 }
 0x5e4   :  { %11573 = vpow2.f32 %v10655_v31  ;;  %v5404_v31 = vld [vmem:[#allocation14 + $0x90] sm:$0xff] }
 0x5e5   :  { %11575 = vtanh.f32 %v5274_v49 }
 0x5e9   :  { %v11564_v23 = vpop.eup %11563 }
 0x5ea   :  { %v11566_v52 = vpop.eup %11565  ;;  %v5330_v53 = vadd.f32 1.0, %v11564_v23 }
 0x5eb   :  { %v5342_v25 = vadd.f32 1.0, %v11566_v52  ;;  %v11568_v62 = vpop.eup %11567  ;;  %v10672_v52 = vcombine.high %v5397_v39, %v5401_v6 }
 0x5ec   :  { %11577 = vrcp.f32 %v5330_v53  ;;  %v5331_v38 = vadd.f32 1.0, %v11568_v62  ;;  %v11570_v44 = vpop.eup %11569  ;;  %v5408_v53 = vld [vmem:[#allocation14 + $0xb0] sm:$0xff] }
 0x5ed   :  { %11579 = vrcp.f32 %v5342_v25  ;;  %v5343_v28 = vadd.f32 1.0, %v11570_v44  ;;  %v11572_v63 = vpop.eup %11571  ;;  %v5409_v25 = vld [vmem:[#allocation14 + $0xb8] sm:$0xff]  ;;  %v10678_v44 = vcombine.high %v5404_v31, %v5408_v53  ;;  %v10677_v43 = vcombine.low %v5404_v31, %v5408_v53  ;;  %v5444_v53 = vld [vmem:[#allocation14 + $0x1d0] sm:$0xff] }
 0x5ee   :  { %11581 = vpow2.f32 %v10656_v20  ;;  %v11574_v54 = vpop.eup %11573  ;;  %v5405_v20 = vld [vmem:[#allocation14 + $0x98] sm:$0xff] }
 0x5ef   :  { %11583 = vrcp.f32 %v5331_v38  ;;  %v11576_v19 = vpop.eup %11575  ;;  %v5356_v14 = vadd.f32 1.0, %v11574_v54  ;;  %v10671_v38 = vcombine.low %v5397_v39, %v5401_v6  ;;  %v5416_v54 = vld [vmem:[#allocation14 + $0xf0] sm:$0xff]  ;;  %v10679_v51 = vcombine.low %v5405_v20, %v5409_v25  ;;  %v5437_v39 = vld [vmem:[#allocation14 + $0x198] sm:$0xff] }
 0x5f0   :  { %11585 = vrcp.f32 %v5343_v28  ;;  %v10680_v28 = vcombine.high %v5405_v20, %v5409_v25  ;;  %v5441_v6 = vld [vmem:[#allocation14 + $0x1b8] sm:$0xff]  ;;  %v5448_v20 = vld [vmem:[#allocation14 + $0x1f0] sm:$0xff] }
 0x5f1   :  { %11587 = vrcp.f32 %v5356_v14  ;;  %v5445_v25 = vld [vmem:[#allocation14 + $0x1d8] sm:$0xff] }
 0x5f6   :  { %v11578_v36 = vpop.eup %11577 }
 0x5f7   :  { %v11580_v18 = vpop.eup %11579  ;;  %v5364_v60 = vmul.f32 %v11578_v36, %v11572_v63  ;;  %v5412_v63 = vld [vmem:[#allocation14 + $0xd0] sm:$0xff]  ;;  %v5417_v36 = vld [vmem:[#allocation14 + $0xf8] sm:$0xff] }
 0x5f8   :  { %v11582_v57 = vpop.eup %11581  ;;  %v5362_v61 = vmul.f32 %v11580_v18, %v12821_v16  ;;  %v10686_v56 = vcombine.high %v5412_v63, %v5416_v54  ;;  %v5421_v18 = vld [vmem:[#allocation14 + $0x118] sm:$0xff]  ;;  %v10685_v14 = vcombine.low %v5412_v63, %v5416_v54  ;;  %v5452_v54 = vld [vmem:[#allocation14 + $0x210] sm:$0xff] }
 0x5f9   :  { %v11584_v47 = vpop.eup %11583  ;;  %v5357_v7 = vadd.f32 1.0, %v11582_v57 }
 0x5fa   :  { %v12915_v22 = vadd.f32 %v5364_v60, %v5362_v61  ;;  %v5365_v5 = vmul.f32 %v11584_v47, %v11576_v19  ;;  %v11586_v8 = vpop.eup %11585  ;;  %v5413_v19 = vld [vmem:[#allocation14 + $0xd8] sm:$0xff] }
 0x5fb   :  { %v5363_v37 = vmul.f32 %v11586_v8, %v12825_v35  ;;  %v11588_v15 = vpop.eup %11587  ;;  %v5400_v35 = vld [vmem:[#allocation14 + $0x70] sm:$0xff]  ;;  %v5425_v60 = vld [vmem:[#allocation14 + $0x138] sm:$0xff]  ;;  %v10687_v57 = vcombine.low %v5413_v19, %v5417_v36 }
 0x5fc   :  { %11589 = vtanh.f32 %v12915_v22  ;;  %v10670_v23 = vcombine.high %v5396_v24, %v5400_v35  ;;  %v10669_v62 = vcombine.low %v5396_v24, %v5400_v35  ;;  %v10696_v47 = vcombine.high %v5421_v18, %v5425_v60  ;;  %v5432_v8 = vld [vmem:[#allocation14 + $0x170] sm:$0xff] }
 0x5fd   :  { %v12919_v58 = vadd.f32 %v5365_v5, %v5363_v37  ;;  %11591 = vrcp.f32 %v5357_v7  ;;  %v5428_v5 = vld [vmem:[#allocation14 + $0x150] sm:$0xff]  ;;  %v5429_v7 = vld [vmem:[#allocation14 + $0x158] sm:$0xff] }
 0x5fe   :  { %v5433_v37 = vld [vmem:[#allocation14 + $0x178] sm:$0xff]  ;;  %v5436_v24 = vld [vmem:[#allocation14 + $0x190] sm:$0xff] }
 0x5ff   :  { %11593 = vtanh.f32 %v12919_v58  ;;  %v5440_v35 = vld [vmem:[#allocation14 + $0x1b0] sm:$0xff]  ;;  %v10703_v31 = vcombine.low %v5429_v7, %v5433_v37 }
 0x606   :  { %v11590_v17 = vpop.eup %11589 }
 0x607   :  { %v12922_v45 = vmul.f32 %v11590_v17, %v11588_v15  ;;  %v11592_v16 = vpop.eup %11591  ;;  %v10695_v17 = vcombine.low %v5421_v18, %v5425_v60  ;;  %v5464_v18 = vld [vmem:[#allocation14 + $0x270] sm:$0xff]  ;;  %v5461_v60 = vld [vmem:[#allocation14 + $0x258] sm:$0xff] }
 0x609   :  { %v5380_v9 = vmax.f32 %v12830_v21, %v12922_v45  ;;  %v11594_v30 = vpop.eup %11593  ;;  %v6502_v21 = vld [vmem:[#allocation14 + $0xb0] sm:$0xff] }
 0x60a   :  { %v12926_v49 = vmul.f32 %v11594_v30, %v11592_v16  ;;  %v10702_v16 = vcombine.high %v5428_v5, %v5432_v8  ;;  %v10704_v30 = vcombine.high %v5429_v7, %v5433_v37  ;;  %v5472_v7 = vld [vmem:[#allocation14 + $0x2b0] sm:$0xff]  ;;  %v5469_v37 = vld [vmem:[#allocation14 + $0x298] sm:$0xff] }
 0x60c   :  { %v5381_v29 = vmax.f32 %v12834_v4, %v12926_v49  ;;  %v5385_v10 = vpack.c.bf16 %v12926_v49, %v12922_v45  ;;  %v6499_v45 = vld [vmem:[#allocation14 + $0x98] sm:$0xff] }
 0x60e   :  { %6186 = vmatprep.mubr.bf16.mxu0 %v5385_v10  ;;  %6229 = vmatprep.mubr.bf16.mxu1 %v5385_v10 }
 0x60f   :  { %6187 = vmatmul.mubr.bf16.vlgmr.msra.gmra.mrb[96].mxu0 %v12896_v27  ;;  %6230 = vmatmul.mubr.bf16.vlgmr.msra.gmra.mrb[96].mxu1 %v12896_v27 }
 0x610   :  { %6241 = vmatpush1.bf16.msra.mxu0 %v10661_v0  ;;  %6284 = vmatpush1.bf16.msra.mxu1 %v10663_v41  ;;  %v10688_v0 = vcombine.high %v5413_v19, %v5417_v36  ;;  %v5424_v41 = vld [vmem:[#allocation14 + $0x130] sm:$0xff]  ;;  %v5453_v36 = vld [vmem:[#allocation14 + $0x218] sm:$0xff] }
 0x611   :  { %6272 = vmatprep.mubr.bf16.mxu0 %v5385_v10  ;;  %6315 = vmatprep.mubr.bf16.mxu1 %v5385_v10  ;;  %v10694_v61 = vcombine.high %v5420_v34, %v5424_v41  ;;  %v10693_v15 = vcombine.low %v5420_v34, %v5424_v41  ;;  %v10701_v10 = vcombine.low %v5428_v5, %v5432_v8  ;;  %v5456_v19 = vld [vmem:[#allocation14 + $0x230] sm:$0xff] }
 0x612   :  { %6242 = vmatprep.subr.bf16.mxu0 %v10670_v23  ;;  %6285 = vmatprep.subr.bf16.mxu1 %v10672_v52  ;;  %v10710_v23 = vcombine.high %v5436_v24, %v5440_v35  ;;  %v10712_v52 = vcombine.high %v5437_v39, %v5441_v6  ;;  %v5460_v41 = vld [vmem:[#allocation14 + $0x250] sm:$0xff] }
 0x613   :  { %v5468_v8 = vld [vmem:[#allocation14 + $0x290] sm:$0xff] }
 0x614   :  { %6243 = vmatpush1.bf16.msra.mxu0 %v10669_v62  ;;  %6286 = vmatpush1.bf16.msra.mxu1 %v10671_v38  ;;  %v5449_v62 = vld [vmem:[#allocation14 + $0x1f8] sm:$0xff]  ;;  %v10709_v38 = vcombine.low %v5436_v24, %v5440_v35  ;;  %v5476_v35 = vld [vmem:[#allocation14 + $0x2d0] sm:$0xff] }
 0x615   :  { %6244 = vmatprep.subr.bf16.mxu0 %v10678_v44  ;;  %6287 = vmatprep.subr.bf16.mxu1 %v10680_v28  ;;  %v10711_v44 = vcombine.low %v5437_v39, %v5441_v6  ;;  %v10718_v28 = vcombine.high %v5444_v53, %v5448_v20  ;;  %v10720_v63 = vcombine.high %v5445_v25, %v5449_v62  ;;  %v5480_v39 = vld [vmem:[#allocation14 + $0x2f0] sm:$0xff]  ;;  %v5477_v6 = vld [vmem:[#allocation14 + $0x2d8] sm:$0xff] }
 0x618   :  { %6245 = vmatpush1.bf16.msra.mxu0 %v10677_v43  ;;  %6288 = vmatpush1.bf16.msra.mxu1 %v10679_v51  ;;  %v5457_v43 = vld [vmem:[#allocation14 + $0x238] sm:$0xff]  ;;  %v10717_v51 = vcombine.low %v5444_v53, %v5448_v20  ;;  %v5484_v20 = vld [vmem:[#allocation14 + $0x310] sm:$0xff] }
 0x619   :  { %6246 = vmatprep.subr.bf16.mxu0 %v10686_v56  ;;  %6289 = vmatprep.subr.bf16.mxu1 %v10688_v0  ;;  %v10719_v56 = vcombine.low %v5445_v25, %v5449_v62  ;;  %v10726_v0 = vcombine.high %v5452_v54, %v5456_v19  ;;  %v10728_v34 = vcombine.high %v5453_v36, %v5457_v43  ;;  %v5488_v25 = vld [vmem:[#allocation14 + $0x330] sm:$0xff]  ;;  %v5485_v62 = vld [vmem:[#allocation14 + $0x318] sm:$0xff] }
 0x61c   :  { %6247 = vmatpush1.bf16.msra.mxu0 %v10685_v14  ;;  %6290 = vmatpush1.bf16.msra.mxu1 %v10687_v57  ;;  %v5465_v14 = vld [vmem:[#allocation14 + $0x278] sm:$0xff]  ;;  %v10725_v57 = vcombine.low %v5452_v54, %v5456_v19  ;;  %v5492_v19 = vld [vmem:[#allocation14 + $0x350] sm:$0xff] }
 0x61d   :  { %6248 = vmatprep.subr.bf16.mxu0 %v10694_v61  ;;  %6291 = vmatprep.subr.bf16.mxu1 %v10696_v47  ;;  %v10727_v61 = vcombine.low %v5453_v36, %v5457_v43  ;;  %v10734_v47 = vcombine.high %v5460_v41, %v5464_v18  ;;  %v10736_v5 = vcombine.high %v5461_v60, %v5465_v14  ;;  %v5496_v36 = vld [vmem:[#allocation14 + $0x370] sm:$0xff]  ;;  %v5493_v43 = vld [vmem:[#allocation14 + $0x358] sm:$0xff] }
 0x620   :  { %6249 = vmatpush1.bf16.msra.mxu0 %v10693_v15  ;;  %6292 = vmatpush1.bf16.msra.mxu1 %v10695_v17  ;;  %v5473_v15 = vld [vmem:[#allocation14 + $0x2b8] sm:$0xff]  ;;  %v10733_v17 = vcombine.low %v5460_v41, %v5464_v18  ;;  %v5500_v18 = vld [vmem:[#allocation14 + $0x390] sm:$0xff] }
 0x621   :  { %6250 = vmatprep.subr.bf16.mxu0 %v10702_v16  ;;  %6293 = vmatprep.subr.bf16.mxu1 %v10704_v30  ;;  %v10735_v16 = vcombine.low %v5461_v60, %v5465_v14  ;;  %v10742_v30 = vcombine.high %v5468_v8, %v5472_v7  ;;  %v10744_v24 = vcombine.high %v5469_v37, %v5473_v15  ;;  %v5504_v60 = vld [vmem:[#allocation14 + $0x3b0] sm:$0xff]  ;;  %v5501_v14 = vld [vmem:[#allocation14 + $0x398] sm:$0xff] }
 0x624   :  { %6251 = vmatpush1.bf16.msra.mxu0 %v10701_v10  ;;  %6294 = vmatpush1.bf16.msra.mxu1 %v10703_v31  ;;  %v5481_v10 = vld [vmem:[#allocation14 + $0x2f8] sm:$0xff]  ;;  %v10741_v31 = vcombine.low %v5468_v8, %v5472_v7  ;;  %v5508_v7 = vld [vmem:[#allocation14 + $0x3d0] sm:$0xff] }
 0x625   :  { %6252 = vmatprep.subr.bf16.mxu0 %v10710_v23  ;;  %6295 = vmatprep.subr.bf16.mxu1 %v10712_v52  ;;  %v10743_v23 = vcombine.low %v5469_v37, %v5473_v15  ;;  %v10750_v52 = vcombine.high %v5476_v35, %v5480_v39  ;;  %v10752_v53 = vcombine.high %v5477_v6, %v5481_v10  ;;  %v5512_v37 = vld [vmem:[#allocation14 + $0x3f0] sm:$0xff]  ;;  %v5509_v15 = vld [vmem:[#allocation14 + $0x3d8] sm:$0xff] }
 0x628   :  { %6253 = vmatpush1.bf16.msra.mxu0 %v10709_v38  ;;  %6296 = vmatpush1.bf16.msra.mxu1 %v10711_v44  ;;  %v5489_v38 = vld [vmem:[#allocation14 + $0x338] sm:$0xff]  ;;  %v10749_v44 = vcombine.low %v5476_v35, %v5480_v39  ;;  %v10781_v39 = vcombine.low %v5508_v7, %v5512_v37 }
 0x629   :  { %6254 = vmatprep.subr.bf16.mxu0 %v10718_v28  ;;  %6297 = vmatprep.subr.bf16.mxu1 %v10720_v63  ;;  %v10751_v28 = vcombine.low %v5477_v6, %v5481_v10  ;;  %v10758_v63 = vcombine.high %v5484_v20, %v5488_v25  ;;  %v10760_v54 = vcombine.high %v5485_v62, %v5489_v38  ;;  %v6480_v10 = vld [vmem:[#allocation14] sm:$0xff] }
 0x62c   :  { %6255 = vmatpush1.bf16.msra.mxu0 %v10717_v51  ;;  %6298 = vmatpush1.bf16.msra.mxu1 %v10719_v56  ;;  %v5497_v51 = vld [vmem:[#allocation14 + $0x378] sm:$0xff]  ;;  %v10757_v56 = vcombine.low %v5484_v20, %v5488_v25  ;;  %v6485_v20 = vld [vmem:[#allocation14 + $0x28] sm:$0xff]  ;;  %v6488_v25 = vld [vmem:[#allocation14 + $0x40] sm:$0xff] }
 0x62d   :  { %6256 = vmatprep.subr.bf16.mxu0 %v10726_v0  ;;  %6299 = vmatprep.subr.bf16.mxu1 %v10728_v34  ;;  %v10759_v0 = vcombine.low %v5485_v62, %v5489_v38  ;;  %v10766_v34 = vcombine.high %v5492_v19, %v5496_v36  ;;  %v10768_v41 = vcombine.high %v5493_v43, %v5497_v51  ;;  %v6492_v62 = vld [vmem:[#allocation14 + $0x60] sm:$0xff] }
 0x630   :  { %6257 = vmatpush1.bf16.msra.mxu0 %v10725_v57  ;;  %6300 = vmatpush1.bf16.msra.mxu1 %v10727_v61  ;;  %v5505_v57 = vld [vmem:[#allocation14 + $0x3b8] sm:$0xff]  ;;  %v10765_v61 = vcombine.low %v5492_v19, %v5496_v36  ;;  %v6496_v19 = vld [vmem:[#allocation14 + $0x80] sm:$0xff] }
 0x631   :  { %6258 = vmatprep.subr.bf16.mxu0 %v10734_v47  ;;  %6301 = vmatprep.subr.bf16.mxu1 %v10736_v5  ;;  %v10767_v47 = vcombine.low %v5493_v43, %v5497_v51  ;;  %v10774_v5 = vcombine.high %v5500_v18, %v5504_v60  ;;  %v10776_v8 = vcombine.high %v5501_v14, %v5505_v57  ;;  %v6500_v43 = vld [vmem:[#allocation14 + $0xa0] sm:$0xff]  ;;  %v6497_v51 = vld [vmem:[#allocation14 + $0x88] sm:$0xff] }
 0x634   :  { %6259 = vmatpush1.bf16.msra.mxu0 %v10733_v17  ;;  %6302 = vmatpush1.bf16.msra.mxu1 %v10735_v16  ;;  %v5513_v17 = vld [vmem:[#allocation14 + $0x3f8] sm:$0xff]  ;;  %v10773_v16 = vcombine.low %v5500_v18, %v5504_v60  ;;  %v10813_v18 = vcombine.low %v6496_v19, %v6500_v43 }
 0x635   :  { %6260 = vmatprep.subr.bf16.mxu0 %v10742_v30  ;;  %6303 = vmatprep.subr.bf16.mxu1 %v10744_v24  ;;  %v10775_v30 = vcombine.low %v5501_v14, %v5505_v57  ;;  %v10782_v24 = vcombine.high %v5508_v7, %v5512_v37  ;;  %v10784_v35 = vcombine.high %v5509_v15, %v5513_v17  ;;  %v6504_v14 = vld [vmem:[#allocation14 + $0xc0] sm:$0xff] }
 0x636   :  { %v10783_v6 = vcombine.low %v5509_v15, %v5513_v17  ;;  %v6508_v57 = vld [vmem:[#allocation14 + $0xe0] sm:$0xff] }
 0x637   :  { %v6512_v15 = vld [vmem:[#allocation14 + $0x100] sm:$0xff] }
 0x638   :  { %6261 = vmatpush1.bf16.msra.mxu0 %v10741_v31  ;;  %6304 = vmatpush1.bf16.msra.mxu1 %v10743_v23  ;;  %v6484_v31 = vld [vmem:[#allocation14 + $0x20] sm:$0xff]  ;;  %v6481_v23 = vld [vmem:[#allocation14 + $0x8] sm:$0xff] }
 0x639   :  { %6262 = vmatprep.subr.bf16.mxu0 %v10750_v52  ;;  %6305 = vmatprep.subr.bf16.mxu1 %v10752_v53  ;;  %v10797_v52 = vcombine.low %v6480_v10, %v6484_v31  ;;  %v10798_v53 = vcombine.high %v6480_v10, %v6484_v31  ;;  %v10799_v38 = vcombine.low %v6481_v23, %v6485_v20  ;;  %v6516_v17 = vld [vmem:[#allocation14 + $0x120] sm:$0xff] }
 0x63a   :  { %v6520_v10 = vld [vmem:[#allocation14 + $0x140] sm:$0xff] }
 0x63b   :  { %v6524_v31 = vld [vmem:[#allocation14 + $0x160] sm:$0xff] }
 0x63c   :  { %6263 = vmatpush1.bf16.msra.mxu0 %v10749_v44  ;;  %6306 = vmatpush1.bf16.msra.mxu1 %v10751_v28  ;;  %v10800_v44 = vcombine.high %v6481_v23, %v6485_v20  ;;  %v10806_v28 = vcombine.high %v6488_v25, %v6492_v62  ;;  %v6521_v23 = vld [vmem:[#allocation14 + $0x148] sm:$0xff]  ;;  %v10837_v20 = vcombine.low %v6520_v10, %v6524_v31 }
 0x63d   :  { %6264 = vmatprep.subr.bf16.mxu0 %v10758_v63  ;;  %6307 = vmatprep.subr.bf16.mxu1 %v10760_v54  ;;  %v6489_v63 = vld [vmem:[#allocation14 + $0x48] sm:$0xff] }
 0x63e   :  { %v6493_v54 = vld [vmem:[#allocation14 + $0x68] sm:$0xff] }
 0x63f   :  { %v10808_v36 = vcombine.high %v6489_v63, %v6493_v54 }
 0x640   :  { %6265 = vmatpush1.bf16.msra.mxu0 %v10757_v56  ;;  %6308 = vmatpush1.bf16.msra.mxu1 %v10759_v0  ;;  %v6501_v56 = vld [vmem:[#allocation14 + $0xa8] sm:$0xff]  ;;  %v10807_v0 = vcombine.low %v6489_v63, %v6493_v54 }
 0x641   :  { %6266 = vmatprep.subr.bf16.mxu0 %v10766_v34  ;;  %6309 = vmatprep.subr.bf16.mxu1 %v10768_v41  ;;  %v10814_v34 = vcombine.high %v6496_v19, %v6500_v43  ;;  %v10816_v41 = vcombine.high %v6497_v51, %v6501_v56  ;;  %v10815_v60 = vcombine.low %v6497_v51, %v6501_v56  ;;  %v6533_v54 = vld [vmem:[#allocation14 + $0x1a8] sm:$0xff]  ;;  %v6536_v51 = vld [vmem:[#allocation14 + $0x1c0] sm:$0xff] }
 0x642   :  { %v6540_v56 = vld [vmem:[#allocation14 + $0x1e0] sm:$0xff] }
 0x644   :  { %6267 = vmatpush1.bf16.msra.mxu0 %v10765_v61  ;;  %6310 = vmatpush1.bf16.msra.mxu1 %v10767_v47  ;;  %v6505_v61 = vld [vmem:[#allocation14 + $0xc8] sm:$0xff]  ;;  %v10822_v47 = vcombine.high %v6504_v14, %v6508_v57 }
 0x645   :  { %6268 = vmatprep.subr.bf16.mxu0 %v10774_v5  ;;  %6311 = vmatprep.subr.bf16.mxu1 %v10776_v8  ;;  %v6509_v5 = vld [vmem:[#allocation14 + $0xe8] sm:$0xff]  ;;  %v10821_v8 = vcombine.low %v6504_v14, %v6508_v57  ;;  %v6544_v14 = vld [vmem:[#allocation14 + $0x200] sm:$0xff] }
 0x646   :  { %v10823_v7 = vcombine.low %v6505_v61, %v6509_v5  ;;  %v10824_v37 = vcombine.high %v6505_v61, %v6509_v5  ;;  %v6548_v57 = vld [vmem:[#allocation14 + $0x220] sm:$0xff]  ;;  %v6545_v61 = vld [vmem:[#allocation14 + $0x208] sm:$0xff] }
 0x647   :  { %v6549_v5 = vld [vmem:[#allocation14 + $0x228] sm:$0xff] }
 0x648   :  { %6269 = vmatpush1.bf16.msra.mxu0 %v10773_v16  ;;  %6312 = vmatpush1.bf16.msra.mxu1 %v10775_v30  ;;  %v6513_v16 = vld [vmem:[#allocation14 + $0x108] sm:$0xff]  ;;  %v10830_v30 = vcombine.high %v6512_v15, %v6516_v17 }
 0x649   :  { %6270 = vmatprep.subr.bf16.mxu0 %v10782_v24  ;;  %6313 = vmatprep.subr.bf16.mxu1 %v10784_v35  ;;  %v6517_v24 = vld [vmem:[#allocation14 + $0x128] sm:$0xff]  ;;  %v10829_v35 = vcombine.low %v6512_v15, %v6516_v17  ;;  %v6552_v15 = vld [vmem:[#allocation14 + $0x240] sm:$0xff] }
 0x64a   :  { %v6556_v17 = vld [vmem:[#allocation14 + $0x260] sm:$0xff] }
 0x64c   :  { %6271 = vmatpush1.bf16.msra.mxu0 %v10781_v39  ;;  %6314 = vmatpush1.bf16.msra.mxu1 %v10783_v6  ;;  %v10831_v39 = vcombine.low %v6513_v16, %v6517_v24  ;;  %v10832_v6 = vcombine.high %v6513_v16, %v6517_v24  ;;  %v6553_v16 = vld [vmem:[#allocation14 + $0x248] sm:$0xff] }
 0x64d   :  { %7248 = vmatprep.subr.bf16.mxu0 %v10798_v53  ;;  %7291 = vmatprep.subr.bf16.mxu1 %v10800_v44  ;;  %v6525_v53 = vld [vmem:[#allocation14 + $0x168] sm:$0xff]  ;;  %v6532_v44 = vld [vmem:[#allocation14 + $0x1a0] sm:$0xff] }
 0x64e   :  { %v6557_v24 = vld [vmem:[#allocation14 + $0x268] sm:$0xff] }
 0x64f   :  { %6273 = vmatmul.mubr.bf16.vlgmr.msra.gmra.mrb[100].mxu0 %v12896_v27  ;;  %6316 = vmatmul.mubr.bf16.vlgmr.msra.gmra.mrb[100].mxu1 %v12896_v27  ;;  %v10805_v27 = vcombine.low %v6488_v25, %v6492_v62  ;;  %v10839_v25 = vcombine.low %v6521_v23, %v6525_v53  ;;  %v10840_v62 = vcombine.high %v6521_v23, %v6525_v53  ;;  %v6561_v23 = vld [vmem:[#allocation14 + $0x288] sm:$0xff] }
 0x650   :  { %7249 = vmatpush1.bf16.msra.mxu0 %v10797_v52  ;;  %7292 = vmatpush1.bf16.msra.mxu1 %v10799_v38  ;;  %v10838_v52 = vcombine.high %v6520_v10, %v6524_v31  ;;  %v6528_v38 = vld [vmem:[#allocation14 + $0x180] sm:$0xff]  ;;  %v6565_v53 = vld [vmem:[#allocation14 + $0x2a8] sm:$0xff] }
 0x651   :  { %7250 = vmatprep.subr.bf16.mxu0 %v10806_v28  ;;  %7293 = vmatprep.subr.bf16.mxu1 %v10808_v36  ;;  %v6529_v28 = vld [vmem:[#allocation14 + $0x188] sm:$0xff]  ;;  %v10846_v63 = vcombine.high %v6528_v38, %v6532_v44  ;;  %v10845_v19 = vcombine.low %v6528_v38, %v6532_v44  ;;  %v6560_v10 = vld [vmem:[#allocation14 + $0x280] sm:$0xff] }
 0x652   :  { %v10847_v36 = vcombine.low %v6529_v28, %v6533_v54  ;;  %v10848_v43 = vcombine.high %v6529_v28, %v6533_v54  ;;  %v6564_v31 = vld [vmem:[#allocation14 + $0x2a0] sm:$0xff]  ;;  %v6569_v28 = vld [vmem:[#allocation14 + $0x2c8] sm:$0xff] }
 0x653   :  { %v6568_v38 = vld [vmem:[#allocation14 + $0x2c0] sm:$0xff]  ;;  %v6573_v54 = vld [vmem:[#allocation14 + $0x2e8] sm:$0xff] }
 0x654   :  { %7251 = vmatpush1.bf16.msra.mxu0 %v10805_v27  ;;  %7294 = vmatpush1.bf16.msra.mxu1 %v10807_v0  ;;  %v6537_v27 = vld [vmem:[#allocation14 + $0x1c8] sm:$0xff]  ;;  %v10854_v0 = vcombine.high %v6536_v51, %v6540_v56  ;;  %v6572_v44 = vld [vmem:[#allocation14 + $0x2e0] sm:$0xff] }
 0x655   :  { %7252 = vmatprep.subr.bf16.mxu0 %v10814_v34  ;;  %7295 = vmatprep.subr.bf16.mxu1 %v10816_v41  ;;  %v6541_v34 = vld [vmem:[#allocation14 + $0x1e8] sm:$0xff]  ;;  %v10853_v41 = vcombine.low %v6536_v51, %v6540_v56  ;;  %v6576_v51 = vld [vmem:[#allocation14 + $0x300] sm:$0xff] }
 0x656   :  { %v6580_v56 = vld [vmem:[#allocation14 + $0x320] sm:$0xff] }
 0x658   :  { %7253 = vmatpush1.bf16.msra.mxu0 %v10813_v18  ;;  %7296 = vmatpush1.bf16.msra.mxu1 %v10815_v60  ;;  %v10855_v18 = vcombine.low %v6537_v27, %v6541_v34  ;;  %v10856_v60 = vcombine.high %v6537_v27, %v6541_v34  ;;  %v6577_v27 = vld [vmem:[#allocation14 + $0x308] sm:$0xff]  ;;  %v10894_v34 = vcombine.high %v6576_v51, %v6580_v56 }
 0x659   :  { %7254 = vmatprep.subr.bf16.mxu0 %v10822_v47  ;;  %7297 = vmatprep.subr.bf16.mxu1 %v10824_v37  ;;  %v10862_v47 = vcombine.high %v6544_v14, %v6548_v57  ;;  %v10864_v37 = vcombine.high %v6545_v61, %v6549_v5 }
 0x65c   :  { %7255 = vmatpush1.bf16.msra.mxu0 %v10821_v8  ;;  %7298 = vmatpush1.bf16.msra.mxu1 %v10823_v7  ;;  %v10861_v8 = vcombine.low %v6544_v14, %v6548_v57  ;;  %v10863_v7 = vcombine.low %v6545_v61, %v6549_v5  ;;  %v6589_v5 = vld [vmem:[#allocation14 + $0x368] sm:$0xff] }
 0x65d   :  { %7256 = vmatprep.subr.bf16.mxu0 %v10830_v30  ;;  %7299 = vmatprep.subr.bf16.mxu1 %v10832_v6  ;;  %v10870_v30 = vcombine.high %v6552_v15, %v6556_v17  ;;  %v10872_v6 = vcombine.high %v6553_v16, %v6557_v24 }
 0x660   :  { %7257 = vmatpush1.bf16.msra.mxu0 %v10829_v35  ;;  %7300 = vmatpush1.bf16.msra.mxu1 %v10831_v39  ;;  %v10869_v35 = vcombine.low %v6552_v15, %v6556_v17  ;;  %v10871_v39 = vcombine.low %v6553_v16, %v6557_v24  ;;  %v6593_v15 = vld [vmem:[#allocation14 + $0x388] sm:$0xff] }
 0x661   :  { %7258 = vmatprep.subr.bf16.mxu0 %v10838_v52  ;;  %7301 = vmatprep.subr.bf16.mxu1 %v10840_v62  ;;  %v10878_v52 = vcombine.high %v6560_v10, %v6564_v31  ;;  %v10880_v62 = vcombine.high %v6561_v23, %v6565_v53  ;;  %v6597_v17 = vld [vmem:[#allocation14 + $0x3a8] sm:$0xff] }
 0x664   :  { %7259 = vmatpush1.bf16.msra.mxu0 %v10837_v20  ;;  %7302 = vmatpush1.bf16.msra.mxu1 %v10839_v25  ;;  %v10877_v20 = vcombine.low %v6560_v10, %v6564_v31  ;;  %v10879_v25 = vcombine.low %v6561_v23, %v6565_v53  ;;  %v6601_v10 = vld [vmem:[#allocation14 + $0x3c8] sm:$0xff] }
 0x665   :  { %7260 = vmatprep.subr.bf16.mxu0 %v10846_v63  ;;  %7303 = vmatprep.subr.bf16.mxu1 %v10848_v43  ;;  %v10886_v63 = vcombine.high %v6568_v38, %v6572_v44  ;;  %v10888_v43 = vcombine.high %v6569_v28, %v6573_v54  ;;  %v6605_v31 = vld [vmem:[#allocation14 + $0x3e8] sm:$0xff] }
 0x668   :  { %7261 = vmatpush1.bf16.msra.mxu0 %v10845_v19  ;;  %7304 = vmatpush1.bf16.msra.mxu1 %v10847_v36  ;;  %v10885_v19 = vcombine.low %v6568_v38, %v6572_v44  ;;  %v10887_v36 = vcombine.low %v6569_v28, %v6573_v54  ;;  %v12942_v38 = vld [vmem:[#allocation14 + $0x10] sm:$0xff]  ;;  %v12946_v28 = vld [vmem:[#allocation14 + $0x18] sm:$0xff] }
 0x669   :  { %7262 = vmatprep.subr.bf16.mxu0 %v10854_v0  ;;  %7305 = vmatprep.subr.bf16.mxu1 %v10856_v60  ;;  %v10893_v0 = vcombine.low %v6576_v51, %v6580_v56  ;;  %v6588_v60 = vld [vmem:[#allocation14 + $0x360] sm:$0xff]  ;;  %v12944_v44 = vld [vmem:[#allocation14 + $0x30] sm:$0xff] }
 0x66a   :  { %v10802_v54 = vcombine.high %v12942_v38, %v12944_v44  ;;  %v13534_v51 = vld [vmem:[#allocation34_spill] sm:$0xff] }
 0x66b   :  { %v6332_v56 = vunpack.c.l.bf16 %v13534_v51 }
 0x66c   :  { %7263 = vmatpush1.bf16.msra.mxu0 %v10853_v41  ;;  %7306 = vmatpush1.bf16.msra.mxu1 %v10855_v18  ;;  %v6581_v41 = vld [vmem:[#allocation14 + $0x328] sm:$0xff]  ;;  %v6584_v18 = vld [vmem:[#allocation14 + $0x340] sm:$0xff] }
 0x66d   :  { %7264 = vmatprep.subr.bf16.mxu0 %v10862_v47  ;;  %7307 = vmatprep.subr.bf16.mxu1 %v10864_v37  ;;  %v10895_v14 = vcombine.low %v6577_v27, %v6581_v41  ;;  %v10896_v57 = vcombine.high %v6577_v27, %v6581_v41  ;;  %v10902_v61 = vcombine.high %v6584_v18, %v6588_v60  ;;  %v6585_v47 = vld [vmem:[#allocation14 + $0x348] sm:$0xff]  ;;  %v6596_v37 = vld [vmem:[#allocation14 + $0x3a0] sm:$0xff]  ;;  %v6336_v27 = vunpack.c.h.bf16 %v13534_v51 }
 0x66e   :  { %v10901_v16 = vcombine.low %v6584_v18, %v6588_v60 }
 0x670   :  { %7265 = vmatpush1.bf16.msra.mxu0 %v10861_v8  ;;  %7308 = vmatpush1.bf16.msra.mxu1 %v10863_v7  ;;  %v6592_v8 = vld [vmem:[#allocation14 + $0x380] sm:$0xff]  ;;  %v10904_v7 = vcombine.high %v6585_v47, %v6589_v5 }
 0x671   :  { %7266 = vmatprep.subr.bf16.mxu0 %v10870_v30  ;;  %7309 = vmatprep.subr.bf16.mxu1 %v10872_v6  ;;  %v10903_v30 = vcombine.low %v6585_v47, %v6589_v5  ;;  %v10910_v24 = vcombine.high %v6592_v8, %v6596_v37  ;;  %v6604_v6 = vld [vmem:[#allocation14 + $0x3e0] sm:$0xff]  ;;  %v10909_v23 = vcombine.low %v6592_v8, %v6596_v37  ;;  %v13537_v37 = vld [vmem:[#allocation37_spill] sm:$0xff] }
 0x674   :  { %7267 = vmatpush1.bf16.msra.mxu0 %v10869_v35  ;;  %7310 = vmatpush1.bf16.msra.mxu1 %v10871_v39  ;;  %v10912_v35 = vcombine.high %v6593_v15, %v6597_v17  ;;  %v6600_v39 = vld [vmem:[#allocation14 + $0x3c0] sm:$0xff] }
 0x675   :  { %7268 = vmatprep.subr.bf16.mxu0 %v10878_v52  ;;  %7311 = vmatprep.subr.bf16.mxu1 %v10880_v62  ;;  %v10911_v52 = vcombine.low %v6593_v15, %v6597_v17  ;;  %v10918_v53 = vcombine.high %v6600_v39, %v6604_v6  ;;  %v10919_v62 = vcombine.low %v6601_v10, %v6605_v31  ;;  %v6335_v15 = vunpack.c.l.bf16 %v13537_v37 }
 0x676   :  { %v6339_v17 = vunpack.c.h.bf16 %v13537_v37 }
 0x678   :  { %7269 = vmatpush1.bf16.msra.mxu0 %v10877_v20  ;;  %7312 = vmatpush1.bf16.msra.mxu1 %v10879_v25  ;;  %v10920_v20 = vcombine.high %v6601_v10, %v6605_v31  ;;  %v10917_v25 = vcombine.low %v6600_v39, %v6604_v6 }
 0x679   :  { %7270 = vmatprep.subr.bf16.mxu0 %v10886_v63  ;;  %7313 = vmatprep.subr.bf16.mxu1 %v10888_v43  ;;  %v10801_v63 = vcombine.low %v12942_v38, %v12944_v44 }
 0x67c   :  { %7271 = vmatpush1.bf16.msra.mxu0 %v10885_v19  ;;  %7314 = vmatpush1.bf16.msra.mxu1 %v10887_v36  ;;  %v12952_v19 = vld [vmem:[#allocation14 + $0x38] sm:$0xff] }
 0x67d   :  { %7272 = vmatprep.subr.bf16.mxu0 %v10894_v34  ;;  %7315 = vmatprep.subr.bf16.mxu1 %v10896_v57  ;;  %v10803_v36 = vcombine.low %v12946_v28, %v12952_v19  ;;  %v10804_v43 = vcombine.high %v12946_v28, %v12952_v19  ;;  %v6514_v19 = vld [vmem:[#allocation14 + $0x110] sm:$0xff] }
 0x680   :  { %7273 = vmatpush1.bf16.msra.mxu0 %v10893_v0  ;;  %7316 = vmatpush1.bf16.msra.mxu1 %v10895_v14  ;;  %v13535_v0 = vld [vmem:[#allocation35_spill] sm:$0xff]  ;;  %v13536_v14 = vld [vmem:[#allocation36_spill] sm:$0xff] }
 0x681   :  { %7274 = vmatprep.subr.bf16.mxu0 %v10902_v61  ;;  %7317 = vmatprep.subr.bf16.mxu1 %v10904_v7  ;;  %v6333_v34 = vunpack.c.l.bf16 %v13535_v0  ;;  %v6337_v41 = vunpack.c.h.bf16 %v13535_v0  ;;  %v6334_v57 = vunpack.c.l.bf16 %v13536_v14  ;;  %v6338_v61 = vunpack.c.h.bf16 %v13536_v14 }
 0x684   :  { %7275 = vmatpush1.bf16.msra.mxu0 %v10901_v16  ;;  %7318 = vmatpush1.bf16.msra.mxu1 %v10903_v30 }
 0x685   :  { %7276 = vmatprep.subr.bf16.mxu0 %v10910_v24  ;;  %7319 = vmatprep.subr.bf16.mxu1 %v10912_v35 }
 0x688   :  { %7277 = vmatpush1.bf16.msra.mxu0 %v10909_v23  ;;  %7320 = vmatpush1.bf16.msra.mxu1 %v10911_v52 }
 0x689   :  { %7278 = vmatprep.subr.bf16.mxu0 %v10918_v53  ;;  %7321 = vmatprep.subr.bf16.mxu1 %v10920_v20 }
 0x68c   :  { %7279 = vmatpush1.bf16.msra.mxu0 %v10917_v25  ;;  %7322 = vmatpush1.bf16.msra.mxu1 %v10919_v62 }
 0x68d   :  { %7334 = vmatprep.subr.bf16.mxu0 %v10802_v54  ;;  %7377 = vmatprep.subr.bf16.mxu1 %v10804_v43 }
 0x6e2   :  { %v6188_v18 = vpop.f32.mrb[96].mxu0  ;;  %v6231_v60 = vpop.f32.mrb[96].mxu1 }
 0x6e3   :  { %v6189_v47 = vadd.f32 %v6188_v18, %v13509_v13  ;;  %v6232_v5 = vadd.f32 %v6231_v60, %v12516_v48  ;;  %v6190_v8 = vpop.f32.mrb[97].mxu0  ;;  %v6233_v7 = vpop.f32.mrb[97].mxu1 }
 0x6e4   :  { %v6191_v16 = vadd.f32 %v6190_v8, %v13511_v3  ;;  %v6234_v30 = vadd.f32 %v6233_v7, %v13512_v55  ;;  %v6192_v24 = vpop.f32.mrb[98].mxu0  ;;  %v6235_v35 = vpop.f32.mrb[98].mxu1 }
 0x6e5   :  { %v6340_v39 = vadd.f32 %v6332_v56, %v6189_v47  ;;  %v6342_v6 = vadd.f32 %v6334_v57, %v6232_v5  ;;  %v6193_v10 = vadd.f32 %v6192_v24, %v13509_v13  ;;  %v6236_v31 = vadd.f32 %v6235_v35, %v12516_v48  ;;  %v6194_v23 = vpop.f32.mrb[99].mxu0  ;;  %v6237_v52 = vpop.f32.mrb[99].mxu1 }
 0x6e6   :  { %v6341_v53 = vadd.f32 %v6333_v34, %v6191_v16  ;;  %v6343_v20 = vadd.f32 %v6335_v15, %v6234_v30  ;;  %v6195_v25 = vadd.f32 %v6194_v23, %v13511_v3  ;;  %v6238_v62 = vadd.f32 %v6237_v52, %v13512_v55 }
 0x6e7   :  { %v10785_v54 = vmul.f32 -1.442695, %v6340_v39  ;;  %v6344_v43 = vadd.f32 %v6336_v27, %v6193_v10  ;;  %v6346_v51 = vadd.f32 %v6338_v61, %v6236_v31 }
 0x6e8   :  { %v10787_v0 = vmul.f32 -1.442695, %v6341_v53  ;;  %v6345_v18 = vadd.f32 %v6337_v41, %v6195_v25  ;;  %v6347_v60 = vadd.f32 %v6339_v17, %v6238_v62  ;;  %v10789_v57 = vmul.f32 -1.442695, %v6343_v20 }
 0x6e9   :  { %11595 = vpow2.f32 %v10785_v54  ;;  %v10786_v56 = vmul.f32 -1.442695, %v6344_v43 }
 0x6ea   :  { %11597 = vpow2.f32 %v10787_v0  ;;  %v10788_v14 = vmul.f32 -1.442695, %v6345_v18  ;;  %v10790_v8 = vmul.f32 -1.442695, %v6347_v60 }
 0x6eb   :  { %11599 = vpow2.f32 %v10786_v56 }
 0x6ec   :  { %11601 = vpow2.f32 %v10788_v14  ;;  %v13538_v14 = vld [vmem:[#allocation63_spill] sm:$0xff] }
 0x6ed   :  { %11603 = vtanh.f32 %v6342_v6 }
 0x6ee   :  { %11605 = vpow2.f32 %v10789_v57  ;;  %v6354_v57 = vunpack.c.l.bf16 %v13538_v14 }
 0x6ef   :  { %11607 = vtanh.f32 %v6346_v51 }
 0x6f3   :  { %v11596_v47 = vpop.eup %11595 }
 0x6f4   :  { %v11598_v34 = vpop.eup %11597  ;;  %v6376_v5 = vadd.f32 1.0, %v11596_v47  ;;  %v6358_v47 = vunpack.c.h.bf16 %v13538_v14 }
 0x6f5   :  { %v6388_v7 = vadd.f32 1.0, %v11598_v34  ;;  %v11600_v27 = vpop.eup %11599  ;;  %v13539_v34 = vld [vmem:[#allocation65_spill] sm:$0xff] }
 0x6f6   :  { %11609 = vrcp.f32 %v6376_v5  ;;  %v6377_v41 = vadd.f32 1.0, %v11600_v27  ;;  %v11602_v61 = vpop.eup %11601  ;;  %v6355_v5 = vunpack.c.l.bf16 %v13539_v34 }
 0x6f7   :  { %11611 = vrcp.f32 %v6388_v7  ;;  %v6389_v37 = vadd.f32 1.0, %v11602_v61  ;;  %v11604_v15 = vpop.eup %11603  ;;  %v13541_v61 = vld [vmem:[#allocation69_spill] sm:$0xff] }
 0x6f8   :  { %11613 = vpow2.f32 %v10790_v8  ;;  %v11606_v17 = vpop.eup %11605  ;;  %v6359_v8 = vunpack.c.h.bf16 %v13539_v34 }
 0x6f9   :  { %11615 = vrcp.f32 %v6377_v41  ;;  %v11608_v16 = vpop.eup %11607  ;;  %v6402_v39 = vadd.f32 1.0, %v11606_v17 }
 0x6fa   :  { %11617 = vrcp.f32 %v6389_v37  ;;  %v6357_v37 = vunpack.c.l.bf16 %v13541_v61 }
 0x6fb   :  { %11619 = vrcp.f32 %v6402_v39 }
 0x700   :  { %v11610_v30 = vpop.eup %11609 }
 0x701   :  { %v11612_v24 = vpop.eup %11611  ;;  %v6410_v35 = vmul.f32 %v11610_v30, %v11604_v15  ;;  %v6361_v15 = vunpack.c.h.bf16 %v13541_v61 }
 0x702   :  { %v11614_v6 = vpop.eup %11613  ;;  %v6408_v10 = vmul.f32 %v11612_v24, %v12879_v26 }
 0x703   :  { %v11616_v31 = vpop.eup %11615  ;;  %v6403_v20 = vadd.f32 1.0, %v11614_v6 }
 0x704   :  { %v12975_v23 = vadd.f32 %v6410_v35, %v6408_v10  ;;  %v6411_v52 = vmul.f32 %v11616_v31, %v11608_v16  ;;  %v11618_v53 = vpop.eup %11617 }
 0x705   :  { %v6409_v25 = vmul.f32 %v11618_v53, %v12883_v2  ;;  %v11620_v54 = vpop.eup %11619 }
 0x706   :  { %11621 = vtanh.f32 %v12975_v23 }
 0x707   :  { %v12979_v62 = vadd.f32 %v6411_v52, %v6409_v25  ;;  %11623 = vrcp.f32 %v6403_v20 }
 0x709   :  { %11625 = vtanh.f32 %v12979_v62 }
 0x710   :  { %v11622_v43 = vpop.eup %11621 }
 0x711   :  { %v6416_v51 = vmul.f32 %v11622_v43, %v11620_v54  ;;  %v11624_v26 = vpop.eup %11623 }
 0x713   :  { %v12985_v0 = vmax.f32 %v5374_v1, %v6416_v51  ;;  %v11626_v18 = vpop.eup %11625  ;;  %v13540_v1 = vld [vmem:[#allocation66_spill] sm:$0xff] }
 0x714   :  { %v6417_v60 = vmul.f32 %v11626_v18, %v11624_v26  ;;  %v6356_v7 = vunpack.c.l.bf16 %v13540_v1  ;;  %v6360_v27 = vunpack.c.h.bf16 %v13540_v1 }
 0x716   :  { %v12990_v2 = vmax.f32 %v5375_v32, %v6417_v60  ;;  %v12992_v56 = vpack.c.bf16 %v6417_v60, %v6416_v51 }
 0x722   :  { %v6274_v50 = vpop.f32.mrb[100].mxu0  ;;  %v6317_v46 = vpop.f32.mrb[100].mxu1 }
 0x723   :  { %v6275_v12 = vadd.f32 %v6274_v50, %v13516_v59  ;;  %v6318_v33 = vadd.f32 %v6317_v46, %v12556_v11  ;;  %v6276_v32 = vpop.f32.mrb[101].mxu0  ;;  %v6319_v41 = vpop.f32.mrb[101].mxu1 }
 0x724   :  { %v6277_v17 = vadd.f32 %v6276_v32, %v12559_v42  ;;  %v6320_v16 = vadd.f32 %v6319_v41, %v12562_v40  ;;  %v6278_v30 = vpop.f32.mrb[102].mxu0  ;;  %v6321_v24 = vpop.f32.mrb[102].mxu1 }
 0x725   :  { %v6362_v35 = vadd.f32 %v6354_v57, %v6275_v12  ;;  %v6364_v39 = vadd.f32 %v6356_v7, %v6318_v33  ;;  %v6279_v6 = vadd.f32 %v6278_v30, %v13516_v59  ;;  %v6322_v10 = vadd.f32 %v6321_v24, %v12556_v11  ;;  %v6280_v31 = vpop.f32.mrb[103].mxu0  ;;  %v6323_v52 = vpop.f32.mrb[103].mxu1 }
 0x726   :  { %v6363_v53 = vadd.f32 %v6355_v5, %v6277_v17  ;;  %v6365_v20 = vadd.f32 %v6357_v37, %v6320_v16  ;;  %v6281_v25 = vadd.f32 %v6280_v31, %v12559_v42  ;;  %v6324_v54 = vadd.f32 %v6323_v52, %v12562_v40 }
 0x727   :  { %v10791_v43 = vmul.f32 -1.442695, %v6362_v35  ;;  %v6366_v51 = vadd.f32 %v6358_v47, %v6279_v6  ;;  %v6368_v26 = vadd.f32 %v6360_v27, %v6322_v10 }
 0x728   :  { %v10793_v18 = vmul.f32 -1.442695, %v6363_v53  ;;  %v6367_v60 = vadd.f32 %v6359_v8, %v6281_v25  ;;  %v6369_v14 = vadd.f32 %v6361_v15, %v6324_v54  ;;  %v10795_v50 = vmul.f32 -1.442695, %v6365_v20 }
 0x729   :  { %11627 = vpow2.f32 %v10791_v43  ;;  %v10792_v57 = vmul.f32 -1.442695, %v6366_v51 }
 0x72a   :  { %11629 = vpow2.f32 %v10793_v18  ;;  %v10794_v34 = vmul.f32 -1.442695, %v6367_v60  ;;  %v10796_v7 = vmul.f32 -1.442695, %v6369_v14  ;;  %v6490_v18 = vld [vmem:[#allocation14 + $0x50] sm:$0xff]  ;;  %v6491_v60 = vld [vmem:[#allocation14 + $0x58] sm:$0xff] }
 0x72b   :  { %11631 = vpow2.f32 %v10792_v57  ;;  %v6495_v14 = vld [vmem:[#allocation14 + $0x78] sm:$0xff] }
 0x72c   :  { %11633 = vpow2.f32 %v10794_v34  ;;  %v10811_v49 = vcombine.low %v6491_v60, %v6495_v14 }
 0x72d   :  { %11635 = vtanh.f32 %v6364_v39 }
 0x72e   :  { %11637 = vpow2.f32 %v10795_v50  ;;  %v6498_v50 = vld [vmem:[#allocation14 + $0x90] sm:$0xff] }
 0x72f   :  { %11639 = vtanh.f32 %v6368_v26  ;;  %v10817_v38 = vcombine.low %v6498_v50, %v6502_v21 }
 0x733   :  { %v11628_v46 = vpop.eup %11627 }
 0x734   :  { %v11630_v5 = vpop.eup %11629  ;;  %v6424_v1 = vadd.f32 1.0, %v11628_v46 }
 0x735   :  { %v6436_v12 = vadd.f32 1.0, %v11630_v5  ;;  %v11632_v47 = vpop.eup %11631  ;;  %v10812_v5 = vcombine.high %v6491_v60, %v6495_v14  ;;  %v6539_v60 = vld [vmem:[#allocation14 + $0x1d8] sm:$0xff] }
 0x736   :  { %11641 = vrcp.f32 %v6424_v1  ;;  %v6425_v8 = vadd.f32 1.0, %v11632_v47  ;;  %v11634_v27 = vpop.eup %11633  ;;  %v6507_v47 = vld [vmem:[#allocation14 + $0xd8] sm:$0xff] }
 0x737   :  { %11643 = vrcp.f32 %v6436_v12  ;;  %v6437_v33 = vadd.f32 1.0, %v11634_v27  ;;  %v11636_v32 = vpop.eup %11635  ;;  %v6510_v12 = vld [vmem:[#allocation14 + $0xf0] sm:$0xff]  ;;  %v6515_v27 = vld [vmem:[#allocation14 + $0x118] sm:$0xff] }
 0x738   :  { %11645 = vpow2.f32 %v10796_v7  ;;  %v11638_v41 = vpop.eup %11637  ;;  %v6506_v7 = vld [vmem:[#allocation14 + $0xd0] sm:$0xff]  ;;  %v6543_v14 = vld [vmem:[#allocation14 + $0x1f8] sm:$0xff] }
 0x739   :  { %11647 = vrcp.f32 %v6425_v8  ;;  %v11640_v61 = vpop.eup %11639  ;;  %v6450_v16 = vadd.f32 1.0, %v11638_v41  ;;  %v6511_v8 = vld [vmem:[#allocation14 + $0xf8] sm:$0xff]  ;;  %v10826_v28 = vcombine.high %v6506_v7, %v6510_v12 }
 0x73a   :  { %11649 = vrcp.f32 %v6437_v33  ;;  %v6519_v33 = vld [vmem:[#allocation14 + $0x138] sm:$0xff]  ;;  %v10827_v41 = vcombine.low %v6507_v47, %v6511_v8 }
 0x73b   :  { %11651 = vrcp.f32 %v6450_v16  ;;  %v6523_v16 = vld [vmem:[#allocation14 + $0x158] sm:$0xff] }
 0x740   :  { %v11642_v37 = vpop.eup %11641 }
 0x741   :  { %v11644_v15 = vpop.eup %11643  ;;  %v6458_v17 = vmul.f32 %v11642_v37, %v11636_v32  ;;  %v10825_v32 = vcombine.low %v6506_v7, %v6510_v12  ;;  %v10836_v37 = vcombine.high %v6515_v27, %v6519_v33  ;;  %v6554_v12 = vld [vmem:[#allocation14 + $0x250] sm:$0xff] }
 0x742   :  { %v11646_v30 = vpop.eup %11645  ;;  %v6456_v24 = vmul.f32 %v11644_v15, %v12915_v22  ;;  %v6522_v15 = vld [vmem:[#allocation14 + $0x150] sm:$0xff] }
 0x743   :  { %v11648_v35 = vpop.eup %11647  ;;  %v6451_v31 = vadd.f32 1.0, %v11646_v30  ;;  %v6527_v30 = vld [vmem:[#allocation14 + $0x178] sm:$0xff] }
 0x744   :  { %v13011_v39 = vadd.f32 %v6458_v17, %v6456_v24  ;;  %v6459_v6 = vmul.f32 %v11648_v35, %v11640_v61  ;;  %v11650_v10 = vpop.eup %11649  ;;  %v6526_v17 = vld [vmem:[#allocation14 + $0x170] sm:$0xff]  ;;  %v10835_v35 = vcombine.low %v6515_v27, %v6519_v33  ;;  %v6563_v33 = vld [vmem:[#allocation14 + $0x298] sm:$0xff] }
 0x745   :  { %v6457_v52 = vmul.f32 %v11650_v10, %v12919_v58  ;;  %v11652_v20 = vpop.eup %11651  ;;  %v6494_v58 = vld [vmem:[#allocation14 + $0x70] sm:$0xff]  ;;  %v10844_v10 = vcombine.high %v6523_v16, %v6527_v30 }
 0x746   :  { %11653 = vtanh.f32 %v13011_v39  ;;  %v10810_v46 = vcombine.high %v6490_v18, %v6494_v58  ;;  %v10809_v4 = vcombine.low %v6490_v18, %v6494_v58  ;;  %v6538_v18 = vld [vmem:[#allocation14 + $0x1d0] sm:$0xff] }
 0x747   :  { %v13015_v53 = vadd.f32 %v6459_v6, %v6457_v52  ;;  %11655 = vrcp.f32 %v6451_v31  ;;  %v10842_v6 = vcombine.high %v6522_v15, %v6526_v17  ;;  %v6530_v31 = vld [vmem:[#allocation14 + $0x190] sm:$0xff] }
 0x748   :  { %v6534_v52 = vld [vmem:[#allocation14 + $0x1b0] sm:$0xff] }
 0x749   :  { %11657 = vtanh.f32 %v13015_v53  ;;  %v6542_v58 = vld [vmem:[#allocation14 + $0x1f0] sm:$0xff] }
 0x74a   :  { %v6566_v27 = vld [vmem:[#allocation14 + $0x2b0] sm:$0xff] }
 0x750   :  { %v11654_v25 = vpop.eup %11653 }
 0x751   :  { %v6464_v54 = vmul.f32 %v11654_v25, %v11652_v20  ;;  %v11656_v22 = vpop.eup %11655  ;;  %v6531_v20 = vld [vmem:[#allocation14 + $0x198] sm:$0xff] }
 0x752   :  { %v6535_v25 = vld [vmem:[#allocation14 + $0x1b8] sm:$0xff] }
 0x753   :  { %v13021_v43 = vmax.f32 %v5380_v9, %v6464_v54  ;;  %v11658_v51 = vpop.eup %11657  ;;  %v6503_v9 = vld [vmem:[#allocation14 + $0xb8] sm:$0xff] }
 0x754   :  { %v6465_v26 = vmul.f32 %v11658_v51, %v11656_v22  ;;  %v10820_v1 = vcombine.high %v6499_v45, %v6503_v9  ;;  %v10819_v44 = vcombine.low %v6499_v45, %v6503_v9  ;;  %v10843_v22 = vcombine.low %v6523_v16, %v6527_v30  ;;  %v6550_v45 = vld [vmem:[#allocation14 + $0x230] sm:$0xff]  ;;  %v6547_v9 = vld [vmem:[#allocation14 + $0x218] sm:$0xff] }
 0x755   :  { %v10850_v51 = vcombine.high %v6530_v31, %v6534_v52  ;;  %v6574_v16 = vld [vmem:[#allocation14 + $0x2f0] sm:$0xff]  ;;  %v6571_v30 = vld [vmem:[#allocation14 + $0x2d8] sm:$0xff] }
 0x756   :  { %v13026_v57 = vmax.f32 %v5381_v29, %v6465_v26  ;;  %v6479_v34 = vpack.c.bf16 %v6465_v26, %v6464_v54  ;;  %v10818_v29 = vcombine.high %v6498_v50, %v6502_v21  ;;  %v10841_v54 = vcombine.low %v6522_v15, %v6526_v17  ;;  %v6546_v21 = vld [vmem:[#allocation14 + $0x210] sm:$0xff] }
 0x757   :  { %v10852_v26 = vcombine.high %v6531_v20, %v6535_v25  ;;  %v10851_v50 = vcombine.low %v6531_v20, %v6535_v25  ;;  %v6570_v17 = vld [vmem:[#allocation14 + $0x2d0] sm:$0xff]  ;;  %v6579_v25 = vld [vmem:[#allocation14 + $0x318] sm:$0xff] }
 0x758   :  { %7280 = vmatprep.mubr.bf16.mxu0 %v6479_v34  ;;  %7323 = vmatprep.mubr.bf16.mxu1 %v6479_v34  ;;  %v6582_v20 = vld [vmem:[#allocation14 + $0x330] sm:$0xff] }
 0x759   :  { %7281 = vmatmul.mubr.bf16.vlgmr.msra.gmra.mrb[104].mxu0 %v12992_v56  ;;  %7324 = vmatmul.mubr.bf16.vlgmr.msra.gmra.mrb[104].mxu1 %v12992_v56 }
 0x75a   :  { %7335 = vmatpush1.bf16.msra.mxu0 %v10801_v63  ;;  %7378 = vmatpush1.bf16.msra.mxu1 %v10803_v36  ;;  %v10828_v63 = vcombine.high %v6507_v47, %v6511_v8  ;;  %v6518_v36 = vld [vmem:[#allocation14 + $0x130] sm:$0xff]  ;;  %v6555_v8 = vld [vmem:[#allocation14 + $0x258] sm:$0xff] }
 0x75b   :  { %7366 = vmatprep.mubr.bf16.mxu0 %v6479_v34  ;;  %7409 = vmatprep.mubr.bf16.mxu1 %v6479_v34  ;;  %v10834_v61 = vcombine.high %v6514_v19, %v6518_v36  ;;  %v10833_v24 = vcombine.low %v6514_v19, %v6518_v36  ;;  %v10849_v34 = vcombine.low %v6530_v31, %v6534_v52  ;;  %v6558_v47 = vld [vmem:[#allocation14 + $0x270] sm:$0xff] }
 0x75c   :  { %7336 = vmatprep.subr.bf16.mxu0 %v10810_v46  ;;  %7379 = vmatprep.subr.bf16.mxu1 %v10812_v5  ;;  %v10858_v46 = vcombine.high %v6538_v18, %v6542_v58  ;;  %v10860_v5 = vcombine.high %v6539_v60, %v6543_v14  ;;  %v6562_v36 = vld [vmem:[#allocation14 + $0x290] sm:$0xff] }
 0x75d   :  { %v6578_v52 = vld [vmem:[#allocation14 + $0x310] sm:$0xff] }
 0x75e   :  { %7337 = vmatpush1.bf16.msra.mxu0 %v10809_v4  ;;  %7380 = vmatpush1.bf16.msra.mxu1 %v10811_v49  ;;  %v6551_v4 = vld [vmem:[#allocation14 + $0x238] sm:$0xff]  ;;  %v10857_v49 = vcombine.low %v6538_v18, %v6542_v58  ;;  %v6586_v58 = vld [vmem:[#allocation14 + $0x350] sm:$0xff] }
 0x75f   :  { %7338 = vmatprep.subr.bf16.mxu0 %v10818_v29  ;;  %7381 = vmatprep.subr.bf16.mxu1 %v10820_v1  ;;  %v10859_v29 = vcombine.low %v6539_v60, %v6543_v14  ;;  %v10866_v1 = vcombine.high %v6546_v21, %v6550_v45  ;;  %v10868_v7 = vcombine.high %v6547_v9, %v6551_v4  ;;  %v6590_v60 = vld [vmem:[#allocation14 + $0x370] sm:$0xff]  ;;  %v6587_v14 = vld [vmem:[#allocation14 + $0x358] sm:$0xff] }
 0x762   :  { %7339 = vmatpush1.bf16.msra.mxu0 %v10817_v38  ;;  %7382 = vmatpush1.bf16.msra.mxu1 %v10819_v44  ;;  %v6559_v38 = vld [vmem:[#allocation14 + $0x278] sm:$0xff]  ;;  %v10865_v44 = vcombine.low %v6546_v21, %v6550_v45  ;;  %v6594_v45 = vld [vmem:[#allocation14 + $0x390] sm:$0xff] }
 0x763   :  { %7340 = vmatprep.subr.bf16.mxu0 %v10826_v28  ;;  %7383 = vmatprep.subr.bf16.mxu1 %v10828_v63  ;;  %v10867_v28 = vcombine.low %v6547_v9, %v6551_v4  ;;  %v10874_v63 = vcombine.high %v6554_v12, %v6558_v47  ;;  %v10876_v19 = vcombine.high %v6555_v8, %v6559_v38  ;;  %v6598_v9 = vld [vmem:[#allocation14 + $0x3b0] sm:$0xff]  ;;  %v6595_v4 = vld [vmem:[#allocation14 + $0x398] sm:$0xff] }
 0x766   :  { %7341 = vmatpush1.bf16.msra.mxu0 %v10825_v32  ;;  %7384 = vmatpush1.bf16.msra.mxu1 %v10827_v41  ;;  %v6567_v32 = vld [vmem:[#allocation14 + $0x2b8] sm:$0xff]  ;;  %v10873_v41 = vcombine.low %v6554_v12, %v6558_v47  ;;  %v6602_v47 = vld [vmem:[#allocation14 + $0x3d0] sm:$0xff] }
 0x767   :  { %7342 = vmatprep.subr.bf16.mxu0 %v10834_v61  ;;  %7385 = vmatprep.subr.bf16.mxu1 %v10836_v37  ;;  %v10875_v61 = vcombine.low %v6555_v8, %v6559_v38  ;;  %v10882_v37 = vcombine.high %v6562_v36, %v6566_v27  ;;  %v10884_v15 = vcombine.high %v6563_v33, %v6567_v32  ;;  %v6606_v8 = vld [vmem:[#allocation14 + $0x3f0] sm:$0xff]  ;;  %v6603_v38 = vld [vmem:[#allocation14 + $0x3d8] sm:$0xff] }
 0x76a   :  { %7343 = vmatpush1.bf16.msra.mxu0 %v10833_v24  ;;  %7386 = vmatpush1.bf16.msra.mxu1 %v10835_v35  ;;  %v6575_v24 = vld [vmem:[#allocation14 + $0x2f8] sm:$0xff]  ;;  %v10881_v35 = vcombine.low %v6562_v36, %v6566_v27  ;;  %v10921_v27 = vcombine.low %v6602_v47, %v6606_v8 }
 0x76b   :  { %7344 = vmatprep.subr.bf16.mxu0 %v10842_v6  ;;  %7387 = vmatprep.subr.bf16.mxu1 %v10844_v10  ;;  %v10883_v6 = vcombine.low %v6563_v33, %v6567_v32  ;;  %v10890_v10 = vcombine.high %v6570_v17, %v6574_v16  ;;  %v10892_v31 = vcombine.high %v6571_v30, %v6575_v24  ;;  %v7574_v32 = vld [vmem:[#allocation14] sm:$0xff] }
 0x76e   :  { %7345 = vmatpush1.bf16.msra.mxu0 %v10841_v54  ;;  %7388 = vmatpush1.bf16.msra.mxu1 %v10843_v22  ;;  %v6583_v54 = vld [vmem:[#allocation14 + $0x338] sm:$0xff]  ;;  %v10889_v22 = vcombine.low %v6570_v17, %v6574_v16  ;;  %v7579_v17 = vld [vmem:[#allocation14 + $0x28] sm:$0xff]  ;;  %v7582_v16 = vld [vmem:[#allocation14 + $0x40] sm:$0xff] }
 0x76f   :  { %7346 = vmatprep.subr.bf16.mxu0 %v10850_v51  ;;  %7389 = vmatprep.subr.bf16.mxu1 %v10852_v26  ;;  %v10891_v51 = vcombine.low %v6571_v30, %v6575_v24  ;;  %v10898_v26 = vcombine.high %v6578_v52, %v6582_v20  ;;  %v10900_v18 = vcombine.high %v6579_v25, %v6583_v54  ;;  %v7586_v30 = vld [vmem:[#allocation14 + $0x60] sm:$0xff] }
 0x772   :  { %7347 = vmatpush1.bf16.msra.mxu0 %v10849_v34  ;;  %7390 = vmatpush1.bf16.msra.mxu1 %v10851_v50  ;;  %v6591_v34 = vld [vmem:[#allocation14 + $0x378] sm:$0xff]  ;;  %v10897_v50 = vcombine.low %v6578_v52, %v6582_v20  ;;  %v7590_v52 = vld [vmem:[#allocation14 + $0x80] sm:$0xff] }
 0x773   :  { %7348 = vmatprep.subr.bf16.mxu0 %v10858_v46  ;;  %7391 = vmatprep.subr.bf16.mxu1 %v10860_v5  ;;  %v10899_v46 = vcombine.low %v6579_v25, %v6583_v54  ;;  %v10906_v5 = vcombine.high %v6586_v58, %v6590_v60  ;;  %v10908_v21 = vcombine.high %v6587_v14, %v6591_v34  ;;  %v7594_v25 = vld [vmem:[#allocation14 + $0xa0] sm:$0xff]  ;;  %v7591_v54 = vld [vmem:[#allocation14 + $0x88] sm:$0xff] }
 0x776   :  { %7349 = vmatpush1.bf16.msra.mxu0 %v10857_v49  ;;  %7392 = vmatpush1.bf16.msra.mxu1 %v10859_v29  ;;  %v6599_v49 = vld [vmem:[#allocation14 + $0x3b8] sm:$0xff]  ;;  %v10905_v29 = vcombine.low %v6586_v58, %v6590_v60  ;;  %v10953_v58 = vcombine.low %v7590_v52, %v7594_v25 }
 0x777   :  { %7350 = vmatprep.subr.bf16.mxu0 %v10866_v1  ;;  %7393 = vmatprep.subr.bf16.mxu1 %v10868_v7  ;;  %v10907_v1 = vcombine.low %v6587_v14, %v6591_v34  ;;  %v10914_v7 = vcombine.high %v6594_v45, %v6598_v9  ;;  %v10916_v12 = vcombine.high %v6595_v4, %v6599_v49  ;;  %v7598_v14 = vld [vmem:[#allocation14 + $0xc0] sm:$0xff] }
 0x778   :  { %v7602_v34 = vld [vmem:[#allocation14 + $0xe0] sm:$0xff] }
 0x77a   :  { %7351 = vmatpush1.bf16.msra.mxu0 %v10865_v44  ;;  %7394 = vmatpush1.bf16.msra.mxu1 %v10867_v28  ;;  %v6607_v44 = vld [vmem:[#allocation14 + $0x3f8] sm:$0xff]  ;;  %v10913_v28 = vcombine.low %v6594_v45, %v6598_v9 }
 0x77b   :  { %7352 = vmatprep.subr.bf16.mxu0 %v10874_v63  ;;  %7395 = vmatprep.subr.bf16.mxu1 %v10876_v19  ;;  %v10915_v63 = vcombine.low %v6595_v4, %v6599_v49  ;;  %v10922_v19 = vcombine.high %v6602_v47, %v6606_v8  ;;  %v10924_v36 = vcombine.high %v6603_v38, %v6607_v44  ;;  %v7606_v4 = vld [vmem:[#allocation14 + $0x100] sm:$0xff] }
 0x77c   :  { %v10923_v33 = vcombine.low %v6603_v38, %v6607_v44  ;;  %v7610_v49 = vld [vmem:[#allocation14 + $0x120] sm:$0xff] }
 0x77d   :  { %v7614_v38 = vld [vmem:[#allocation14 + $0x140] sm:$0xff] }
 0x77e   :  { %7353 = vmatpush1.bf16.msra.mxu0 %v10873_v41  ;;  %7396 = vmatpush1.bf16.msra.mxu1 %v10875_v61  ;;  %v7578_v41 = vld [vmem:[#allocation14 + $0x20] sm:$0xff]  ;;  %v7575_v61 = vld [vmem:[#allocation14 + $0x8] sm:$0xff] }
 0x77f   :  { %7354 = vmatprep.subr.bf16.mxu0 %v10882_v37  ;;  %7397 = vmatprep.subr.bf16.mxu1 %v10884_v15  ;;  %v10937_v37 = vcombine.low %v7574_v32, %v7578_v41  ;;  %v10938_v15 = vcombine.high %v7574_v32, %v7578_v41  ;;  %v10939_v24 = vcombine.low %v7575_v61, %v7579_v17  ;;  %v7618_v44 = vld [vmem:[#allocation14 + $0x160] sm:$0xff] }
 0x780   :  { %v7622_v32 = vld [vmem:[#allocation14 + $0x180] sm:$0xff] }
 0x781   :  { %v7626_v41 = vld [vmem:[#allocation14 + $0x1a0] sm:$0xff] }
 0x782   :  { %7355 = vmatpush1.bf16.msra.mxu0 %v10881_v35  ;;  %7398 = vmatpush1.bf16.msra.mxu1 %v10883_v6  ;;  %v10940_v35 = vcombine.high %v7575_v61, %v7579_v17  ;;  %v10946_v6 = vcombine.high %v7582_v16, %v7586_v30  ;;  %v7623_v61 = vld [vmem:[#allocation14 + $0x188] sm:$0xff]  ;;  %v10985_v17 = vcombine.low %v7622_v32, %v7626_v41 }
 0x783   :  { %7356 = vmatprep.subr.bf16.mxu0 %v10890_v10  ;;  %7399 = vmatprep.subr.bf16.mxu1 %v10892_v31  ;;  %v7583_v10 = vld [vmem:[#allocation14 + $0x48] sm:$0xff] }
 0x784   :  { %v7587_v31 = vld [vmem:[#allocation14 + $0x68] sm:$0xff] }
 0x785   :  { %v10948_v20 = vcombine.high %v7583_v10, %v7587_v31 }
 0x786   :  { %7357 = vmatpush1.bf16.msra.mxu0 %v10889_v22  ;;  %7400 = vmatpush1.bf16.msra.mxu1 %v10891_v51  ;;  %v7595_v22 = vld [vmem:[#allocation14 + $0xa8] sm:$0xff]  ;;  %v10947_v51 = vcombine.low %v7583_v10, %v7587_v31 }
 0x787   :  { %7358 = vmatprep.subr.bf16.mxu0 %v10898_v26  ;;  %7401 = vmatprep.subr.bf16.mxu1 %v10900_v18  ;;  %v10954_v26 = vcombine.high %v7590_v52, %v7594_v25  ;;  %v10956_v18 = vcombine.high %v7591_v54, %v7595_v22  ;;  %v10955_v60 = vcombine.low %v7591_v54, %v7595_v22  ;;  %v7635_v31 = vld [vmem:[#allocation14 + $0x1e8] sm:$0xff]  ;;  %v7638_v54 = vld [vmem:[#allocation14 + $0x200] sm:$0xff] }
 0x788   :  { %v7642_v22 = vld [vmem:[#allocation14 + $0x220] sm:$0xff] }
 0x78a   :  { %7359 = vmatpush1.bf16.msra.mxu0 %v10897_v50  ;;  %7402 = vmatpush1.bf16.msra.mxu1 %v10899_v46  ;;  %v7599_v50 = vld [vmem:[#allocation14 + $0xc8] sm:$0xff]  ;;  %v10962_v46 = vcombine.high %v7598_v14, %v7602_v34 }
 0x78b   :  { %7360 = vmatprep.subr.bf16.mxu0 %v10906_v5  ;;  %7403 = vmatprep.subr.bf16.mxu1 %v10908_v21  ;;  %v7603_v5 = vld [vmem:[#allocation14 + $0xe8] sm:$0xff]  ;;  %v10961_v21 = vcombine.low %v7598_v14, %v7602_v34  ;;  %v7646_v14 = vld [vmem:[#allocation14 + $0x240] sm:$0xff] }
 0x78c   :  { %v10963_v45 = vcombine.low %v7599_v50, %v7603_v5  ;;  %v10964_v9 = vcombine.high %v7599_v50, %v7603_v5  ;;  %v7650_v34 = vld [vmem:[#allocation14 + $0x260] sm:$0xff]  ;;  %v7647_v50 = vld [vmem:[#allocation14 + $0x248] sm:$0xff] }
 0x78d   :  { %v7651_v5 = vld [vmem:[#allocation14 + $0x268] sm:$0xff] }
 0x78e   :  { %7361 = vmatpush1.bf16.msra.mxu0 %v10905_v29  ;;  %7404 = vmatpush1.bf16.msra.mxu1 %v10907_v1  ;;  %v7607_v29 = vld [vmem:[#allocation14 + $0x108] sm:$0xff]  ;;  %v10970_v1 = vcombine.high %v7606_v4, %v7610_v49 }
 0x78f   :  { %7362 = vmatprep.subr.bf16.mxu0 %v10914_v7  ;;  %7405 = vmatprep.subr.bf16.mxu1 %v10916_v12  ;;  %v7611_v7 = vld [vmem:[#allocation14 + $0x128] sm:$0xff]  ;;  %v10969_v12 = vcombine.low %v7606_v4, %v7610_v49  ;;  %v7654_v4 = vld [vmem:[#allocation14 + $0x280] sm:$0xff] }
 0x790   :  { %v10971_v47 = vcombine.low %v7607_v29, %v7611_v7  ;;  %v10972_v8 = vcombine.high %v7607_v29, %v7611_v7  ;;  %v7658_v49 = vld [vmem:[#allocation14 + $0x2a0] sm:$0xff]  ;;  %v7655_v29 = vld [vmem:[#allocation14 + $0x288] sm:$0xff] }
 0x791   :  { %v7659_v7 = vld [vmem:[#allocation14 + $0x2a8] sm:$0xff] }
 0x792   :  { %7363 = vmatpush1.bf16.msra.mxu0 %v10913_v28  ;;  %7406 = vmatpush1.bf16.msra.mxu1 %v10915_v63  ;;  %v7615_v28 = vld [vmem:[#allocation14 + $0x148] sm:$0xff]  ;;  %v10978_v63 = vcombine.high %v7614_v38, %v7618_v44 }
 0x793   :  { %7364 = vmatprep.subr.bf16.mxu0 %v10922_v19  ;;  %7407 = vmatprep.subr.bf16.mxu1 %v10924_v36  ;;  %v7619_v19 = vld [vmem:[#allocation14 + $0x168] sm:$0xff]  ;;  %v10977_v36 = vcombine.low %v7614_v38, %v7618_v44  ;;  %v7662_v38 = vld [vmem:[#allocation14 + $0x2c0] sm:$0xff] }
 0x794   :  { %v7666_v44 = vld [vmem:[#allocation14 + $0x2e0] sm:$0xff] }
 0x796   :  { %7365 = vmatpush1.bf16.msra.mxu0 %v10921_v27  ;;  %7408 = vmatpush1.bf16.msra.mxu1 %v10923_v33  ;;  %v10979_v27 = vcombine.low %v7615_v28, %v7619_v19  ;;  %v10980_v33 = vcombine.high %v7615_v28, %v7619_v19  ;;  %v7663_v28 = vld [vmem:[#allocation14 + $0x2c8] sm:$0xff] }
 0x797   :  { %8342 = vmatprep.subr.bf16.mxu0 %v10938_v15  ;;  %8385 = vmatprep.subr.bf16.mxu1 %v10940_v35  ;;  %v7627_v15 = vld [vmem:[#allocation14 + $0x1a8] sm:$0xff]  ;;  %v7634_v35 = vld [vmem:[#allocation14 + $0x1e0] sm:$0xff] }
 0x798   :  { %v7667_v19 = vld [vmem:[#allocation14 + $0x2e8] sm:$0xff] }
 0x799   :  { %7367 = vmatmul.mubr.bf16.vlgmr.msra.gmra.mrb[108].mxu0 %v12992_v56  ;;  %7410 = vmatmul.mubr.bf16.vlgmr.msra.gmra.mrb[108].mxu1 %v12992_v56  ;;  %v10945_v56 = vcombine.low %v7582_v16, %v7586_v30  ;;  %v10987_v16 = vcombine.low %v7623_v61, %v7627_v15  ;;  %v10988_v30 = vcombine.high %v7623_v61, %v7627_v15  ;;  %v7671_v61 = vld [vmem:[#allocation14 + $0x308] sm:$0xff] }
 0x79a   :  { %8343 = vmatpush1.bf16.msra.mxu0 %v10937_v37  ;;  %8386 = vmatpush1.bf16.msra.mxu1 %v10939_v24  ;;  %v10986_v37 = vcombine.high %v7622_v32, %v7626_v41  ;;  %v7630_v24 = vld [vmem:[#allocation14 + $0x1c0] sm:$0xff] }
 0x79b   :  { %8344 = vmatprep.subr.bf16.mxu0 %v10946_v6  ;;  %8387 = vmatprep.subr.bf16.mxu1 %v10948_v20  ;;  %v7631_v6 = vld [vmem:[#allocation14 + $0x1c8] sm:$0xff]  ;;  %v10994_v10 = vcombine.high %v7630_v24, %v7634_v35  ;;  %v10993_v52 = vcombine.low %v7630_v24, %v7634_v35  ;;  %v7670_v32 = vld [vmem:[#allocation14 + $0x300] sm:$0xff] }
 0x79c   :  { %v10995_v20 = vcombine.low %v7631_v6, %v7635_v31  ;;  %v10996_v25 = vcombine.high %v7631_v6, %v7635_v31  ;;  %v7674_v41 = vld [vmem:[#allocation14 + $0x320] sm:$0xff]  ;;  %v7683_v31 = vld [vmem:[#allocation14 + $0x368] sm:$0xff] }
 0x79d   :  { %v11034_v15 = vcombine.high %v7670_v32, %v7674_v41 }
 0x79e   :  { %8345 = vmatpush1.bf16.msra.mxu0 %v10945_v56  ;;  %8388 = vmatpush1.bf16.msra.mxu1 %v10947_v51  ;;  %v7639_v56 = vld [vmem:[#allocation14 + $0x208] sm:$0xff]  ;;  %v11002_v51 = vcombine.high %v7638_v54, %v7642_v22 }
 0x79f   :  { %8346 = vmatprep.subr.bf16.mxu0 %v10954_v26  ;;  %8389 = vmatprep.subr.bf16.mxu1 %v10956_v18  ;;  %v7643_v26 = vld [vmem:[#allocation14 + $0x228] sm:$0xff]  ;;  %v11001_v18 = vcombine.low %v7638_v54, %v7642_v22 }
 0x7a0   :  { %v7687_v54 = vld [vmem:[#allocation14 + $0x388] sm:$0xff] }
 0x7a1   :  { %v7691_v22 = vld [vmem:[#allocation14 + $0x3a8] sm:$0xff] }
 0x7a2   :  { %8347 = vmatpush1.bf16.msra.mxu0 %v10953_v58  ;;  %8390 = vmatpush1.bf16.msra.mxu1 %v10955_v60  ;;  %v11003_v58 = vcombine.low %v7639_v56, %v7643_v26  ;;  %v11004_v60 = vcombine.high %v7639_v56, %v7643_v26 }
 0x7a3   :  { %8348 = vmatprep.subr.bf16.mxu0 %v10962_v46  ;;  %8391 = vmatprep.subr.bf16.mxu1 %v10964_v9  ;;  %v11010_v46 = vcombine.high %v7646_v14, %v7650_v34  ;;  %v11012_v9 = vcombine.high %v7647_v50, %v7651_v5 }
 0x7a6   :  { %8349 = vmatpush1.bf16.msra.mxu0 %v10961_v21  ;;  %8392 = vmatpush1.bf16.msra.mxu1 %v10963_v45  ;;  %v11009_v21 = vcombine.low %v7646_v14, %v7650_v34  ;;  %v11011_v45 = vcombine.low %v7647_v50, %v7651_v5  ;;  %v7695_v14 = vld [vmem:[#allocation14 + $0x3c8] sm:$0xff] }
 0x7a7   :  { %8350 = vmatprep.subr.bf16.mxu0 %v10970_v1  ;;  %8393 = vmatprep.subr.bf16.mxu1 %v10972_v8  ;;  %v11018_v1 = vcombine.high %v7654_v4, %v7658_v49  ;;  %v11020_v8 = vcombine.high %v7655_v29, %v7659_v7  ;;  %v7699_v34 = vld [vmem:[#allocation14 + $0x3e8] sm:$0xff] }
 0x7aa   :  { %8351 = vmatpush1.bf16.msra.mxu0 %v10969_v12  ;;  %8394 = vmatpush1.bf16.msra.mxu1 %v10971_v47  ;;  %v11017_v12 = vcombine.low %v7654_v4, %v7658_v49  ;;  %v11019_v47 = vcombine.low %v7655_v29, %v7659_v7  ;;  %v13038_v4 = vld [vmem:[#allocation14 + $0x10] sm:$0xff]  ;;  %v13042_v29 = vld [vmem:[#allocation14 + $0x18] sm:$0xff] }
 0x7ab   :  { %8352 = vmatprep.subr.bf16.mxu0 %v10978_v63  ;;  %8395 = vmatprep.subr.bf16.mxu1 %v10980_v33  ;;  %v11026_v63 = vcombine.high %v7662_v38, %v7666_v44  ;;  %v11028_v33 = vcombine.high %v7663_v28, %v7667_v19  ;;  %v13040_v49 = vld [vmem:[#allocation14 + $0x30] sm:$0xff] }
 0x7ac   :  { %v10942_v7 = vcombine.high %v13038_v4, %v13040_v49 }
 0x7ae   :  { %8353 = vmatpush1.bf16.msra.mxu0 %v10977_v36  ;;  %8396 = vmatpush1.bf16.msra.mxu1 %v10979_v27  ;;  %v11025_v36 = vcombine.low %v7662_v38, %v7666_v44  ;;  %v11027_v27 = vcombine.low %v7663_v28, %v7667_v19  ;;  %v13542_v38 = vld [vmem:[#allocation38_spill] sm:$0xff] }
 0x7af   :  { %8354 = vmatprep.subr.bf16.mxu0 %v10986_v37  ;;  %8397 = vmatprep.subr.bf16.mxu1 %v10988_v30  ;;  %v11033_v37 = vcombine.low %v7670_v32, %v7674_v41  ;;  %v7682_v30 = vld [vmem:[#allocation14 + $0x360] sm:$0xff]  ;;  %v7426_v44 = vunpack.c.l.bf16 %v13542_v38  ;;  %v7430_v28 = vunpack.c.h.bf16 %v13542_v38 }
 0x7b0   :  { %v13544_v32 = vld [vmem:[#allocation40_spill] sm:$0xff] }
 0x7b1   :  { %v7428_v41 = vunpack.c.l.bf16 %v13544_v32 }
 0x7b2   :  { %8355 = vmatpush1.bf16.msra.mxu0 %v10985_v17  ;;  %8398 = vmatpush1.bf16.msra.mxu1 %v10987_v16  ;;  %v7675_v17 = vld [vmem:[#allocation14 + $0x328] sm:$0xff]  ;;  %v7678_v16 = vld [vmem:[#allocation14 + $0x340] sm:$0xff] }
 0x7b3   :  { %8356 = vmatprep.subr.bf16.mxu0 %v10994_v10  ;;  %8399 = vmatprep.subr.bf16.mxu1 %v10996_v25  ;;  %v11035_v24 = vcombine.low %v7671_v61, %v7675_v17  ;;  %v11036_v35 = vcombine.high %v7671_v61, %v7675_v17  ;;  %v11042_v6 = vcombine.high %v7678_v16, %v7682_v30  ;;  %v7679_v10 = vld [vmem:[#allocation14 + $0x348] sm:$0xff]  ;;  %v7690_v25 = vld [vmem:[#allocation14 + $0x3a0] sm:$0xff]  ;;  %v7432_v61 = vunpack.c.h.bf16 %v13544_v32 }
 0x7b4   :  { %v11041_v56 = vcombine.low %v7678_v16, %v7682_v30  ;;  %v13545_v30 = vld [vmem:[#allocation41_spill] sm:$0xff] }
 0x7b6   :  { %8357 = vmatpush1.bf16.msra.mxu0 %v10993_v52  ;;  %8400 = vmatpush1.bf16.msra.mxu1 %v10995_v20  ;;  %v7686_v52 = vld [vmem:[#allocation14 + $0x380] sm:$0xff]  ;;  %v11044_v20 = vcombine.high %v7679_v10, %v7683_v31 }
 0x7b7   :  { %8358 = vmatprep.subr.bf16.mxu0 %v11002_v51  ;;  %8401 = vmatprep.subr.bf16.mxu1 %v11004_v60  ;;  %v11043_v51 = vcombine.low %v7679_v10, %v7683_v31  ;;  %v11050_v26 = vcombine.high %v7686_v52, %v7690_v25  ;;  %v7698_v60 = vld [vmem:[#allocation14 + $0x3e0] sm:$0xff]  ;;  %v11049_v50 = vcombine.low %v7686_v52, %v7690_v25 }
 0x7ba   :  { %8359 = vmatpush1.bf16.msra.mxu0 %v11001_v18  ;;  %8402 = vmatpush1.bf16.msra.mxu1 %v11003_v58  ;;  %v11052_v18 = vcombine.high %v7687_v54, %v7691_v22  ;;  %v7694_v58 = vld [vmem:[#allocation14 + $0x3c0] sm:$0xff] }
 0x7bb   :  { %8360 = vmatprep.subr.bf16.mxu0 %v11010_v46  ;;  %8403 = vmatprep.subr.bf16.mxu1 %v11012_v9  ;;  %v11051_v46 = vcombine.low %v7687_v54, %v7691_v22  ;;  %v11058_v5 = vcombine.high %v7694_v58, %v7698_v60  ;;  %v11059_v9 = vcombine.low %v7695_v14, %v7699_v34 }
 0x7be   :  { %8361 = vmatpush1.bf16.msra.mxu0 %v11009_v21  ;;  %8404 = vmatpush1.bf16.msra.mxu1 %v11011_v45  ;;  %v11060_v21 = vcombine.high %v7695_v14, %v7699_v34  ;;  %v11057_v45 = vcombine.low %v7694_v58, %v7698_v60 }
 0x7bf   :  { %8362 = vmatprep.subr.bf16.mxu0 %v11018_v1  ;;  %8405 = vmatprep.subr.bf16.mxu1 %v11020_v8  ;;  %v10941_v1 = vcombine.low %v13038_v4, %v13040_v49 }
 0x7c2   :  { %8363 = vmatpush1.bf16.msra.mxu0 %v11017_v12  ;;  %8406 = vmatpush1.bf16.msra.mxu1 %v11019_v47  ;;  %v13048_v12 = vld [vmem:[#allocation14 + $0x38] sm:$0xff] }
 0x7c3   :  { %8364 = vmatprep.subr.bf16.mxu0 %v11026_v63  ;;  %8407 = vmatprep.subr.bf16.mxu1 %v11028_v33  ;;  %v10943_v47 = vcombine.low %v13042_v29, %v13048_v12  ;;  %v10944_v8 = vcombine.high %v13042_v29, %v13048_v12  ;;  %v13543_v63 = vld [vmem:[#allocation39_spill] sm:$0xff]  ;;  %v7608_v12 = vld [vmem:[#allocation14 + $0x110] sm:$0xff] }
 0x7c4   :  { %v7427_v19 = vunpack.c.l.bf16 %v13543_v63 }
 0x7c6   :  { %8365 = vmatpush1.bf16.msra.mxu0 %v11025_v36  ;;  %8408 = vmatpush1.bf16.msra.mxu1 %v11027_v27  ;;  %v7431_v36 = vunpack.c.h.bf16 %v13543_v63 }
 0x7c7   :  { %8366 = vmatprep.subr.bf16.mxu0 %v11034_v15  ;;  %8409 = vmatprep.subr.bf16.mxu1 %v11036_v35  ;;  %v7433_v35 = vunpack.c.h.bf16 %v13545_v30 }
 0x7ca   :  { %8367 = vmatpush1.bf16.msra.mxu0 %v11033_v37  ;;  %8410 = vmatpush1.bf16.msra.mxu1 %v11035_v24  ;;  %v7429_v24 = vunpack.c.l.bf16 %v13545_v30 }
 0x7cb   :  { %8368 = vmatprep.subr.bf16.mxu0 %v11042_v6  ;;  %8411 = vmatprep.subr.bf16.mxu1 %v11044_v20 }
 0x7ce   :  { %8369 = vmatpush1.bf16.msra.mxu0 %v11041_v56  ;;  %8412 = vmatpush1.bf16.msra.mxu1 %v11043_v51 }
 0x7cf   :  { %8370 = vmatprep.subr.bf16.mxu0 %v11050_v26  ;;  %8413 = vmatprep.subr.bf16.mxu1 %v11052_v18 }
 0x7d2   :  { %8371 = vmatpush1.bf16.msra.mxu0 %v11049_v50  ;;  %8414 = vmatpush1.bf16.msra.mxu1 %v11051_v46 }
 0x7d3   :  { %8372 = vmatprep.subr.bf16.mxu0 %v11058_v5  ;;  %8415 = vmatprep.subr.bf16.mxu1 %v11060_v21 }
 0x7d6   :  { %8373 = vmatpush1.bf16.msra.mxu0 %v11057_v45  ;;  %8416 = vmatpush1.bf16.msra.mxu1 %v11059_v9 }
 0x7d7   :  { %8428 = vmatprep.subr.bf16.mxu0 %v10942_v7  ;;  %8471 = vmatprep.subr.bf16.mxu1 %v10944_v8 }
 0x82c   :  { %v7282_v27 = vpop.f32.mrb[104].mxu0  ;;  %v7325_v33 = vpop.f32.mrb[104].mxu1 }
 0x82d   :  { %v7283_v37 = vadd.f32 %v7282_v27, %v13509_v13  ;;  %v7326_v15 = vadd.f32 %v7325_v33, %v12516_v48  ;;  %v7284_v17 = vpop.f32.mrb[105].mxu0  ;;  %v7327_v16 = vpop.f32.mrb[105].mxu1 }
 0x82e   :  { %v7285_v6 = vadd.f32 %v7284_v17, %v13511_v3  ;;  %v7328_v10 = vadd.f32 %v7327_v16, %v13512_v55  ;;  %v7286_v31 = vpop.f32.mrb[106].mxu0  ;;  %v7329_v52 = vpop.f32.mrb[106].mxu1 }
 0x82f   :  { %v7434_v20 = vadd.f32 %v7426_v44, %v7283_v37  ;;  %v7436_v25 = vadd.f32 %v7428_v41, %v7326_v15  ;;  %v7287_v54 = vadd.f32 %v7286_v31, %v13509_v13  ;;  %v7330_v22 = vadd.f32 %v7329_v52, %v12516_v48  ;;  %v7288_v56 = vpop.f32.mrb[107].mxu0  ;;  %v7331_v51 = vpop.f32.mrb[107].mxu1 }
 0x830   :  { %v7435_v26 = vadd.f32 %v7427_v19, %v7285_v6  ;;  %v7437_v18 = vadd.f32 %v7429_v24, %v7328_v10  ;;  %v7289_v58 = vadd.f32 %v7288_v56, %v13511_v3  ;;  %v7332_v60 = vadd.f32 %v7331_v51, %v13512_v55 }
 0x831   :  { %v10925_v14 = vmul.f32 -1.442695, %v7434_v20  ;;  %v7438_v34 = vadd.f32 %v7430_v28, %v7287_v54  ;;  %v7440_v50 = vadd.f32 %v7432_v61, %v7330_v22 }
 0x832   :  { %v10927_v46 = vmul.f32 -1.442695, %v7435_v26  ;;  %v7439_v5 = vadd.f32 %v7431_v36, %v7289_v58  ;;  %v7441_v21 = vadd.f32 %v7433_v35, %v7332_v60  ;;  %v10929_v7 = vmul.f32 -1.442695, %v7437_v18  ;;  %v13546_v60 = vld [vmem:[#allocation58_spill] sm:$0xff] }
 0x833   :  { %11659 = vpow2.f32 %v10925_v14  ;;  %v10926_v45 = vmul.f32 -1.442695, %v7438_v34  ;;  %v7448_v14 = vunpack.c.l.bf16 %v13546_v60  ;;  %v7452_v34 = vunpack.c.h.bf16 %v13546_v60 }
 0x834   :  { %11661 = vpow2.f32 %v10927_v46  ;;  %v10928_v9 = vmul.f32 -1.442695, %v7439_v5  ;;  %v10930_v63 = vmul.f32 -1.442695, %v7441_v21 }
 0x835   :  { %11663 = vpow2.f32 %v10926_v45 }
 0x836   :  { %11665 = vpow2.f32 %v10928_v9  ;;  %v13548_v9 = vld [vmem:[#allocation60_spill] sm:$0xff] }
 0x837   :  { %11667 = vtanh.f32 %v7436_v25 }
 0x838   :  { %11669 = vpow2.f32 %v10929_v7  ;;  %v7450_v7 = vunpack.c.l.bf16 %v13548_v9 }
 0x839   :  { %11671 = vtanh.f32 %v7440_v50  ;;  %v13547_v50 = vld [vmem:[#allocation59_spill] sm:$0xff] }
 0x83a   :  { %v7449_v46 = vunpack.c.l.bf16 %v13547_v50  ;;  %v7453_v5 = vunpack.c.h.bf16 %v13547_v50 }
 0x83d   :  { %v11660_v8 = vpop.eup %11659 }
 0x83e   :  { %v11662_v38 = vpop.eup %11661  ;;  %v7470_v44 = vadd.f32 1.0, %v11660_v8  ;;  %v7454_v8 = vunpack.c.h.bf16 %v13548_v9 }
 0x83f   :  { %v7482_v19 = vadd.f32 1.0, %v11662_v38  ;;  %v11664_v28 = vpop.eup %11663 }
 0x840   :  { %11673 = vrcp.f32 %v7470_v44  ;;  %v7471_v36 = vadd.f32 1.0, %v11664_v28  ;;  %v11666_v27 = vpop.eup %11665  ;;  %v13549_v28 = vld [vmem:[#allocation61_spill] sm:$0xff] }
 0x841   :  { %11675 = vrcp.f32 %v7482_v19  ;;  %v7483_v33 = vadd.f32 1.0, %v11666_v27  ;;  %v11668_v32 = vpop.eup %11667  ;;  %v7455_v27 = vunpack.c.h.bf16 %v13549_v28 }
 0x842   :  { %11677 = vpow2.f32 %v10930_v63  ;;  %v11670_v41 = vpop.eup %11669 }
 0x843   :  { %11679 = vrcp.f32 %v7471_v36  ;;  %v11672_v61 = vpop.eup %11671  ;;  %v7496_v16 = vadd.f32 1.0, %v11670_v41  ;;  %v7451_v36 = vunpack.c.l.bf16 %v13549_v28 }
 0x844   :  { %11681 = vrcp.f32 %v7483_v33 }
 0x845   :  { %11683 = vrcp.f32 %v7496_v16 }
 0x84a   :  { %v11674_v37 = vpop.eup %11673 }
 0x84b   :  { %v11676_v15 = vpop.eup %11675  ;;  %v7504_v17 = vmul.f32 %v11674_v37, %v11668_v32 }
 0x84c   :  { %v11678_v30 = vpop.eup %11677  ;;  %v7502_v24 = vmul.f32 %v11676_v15, %v12975_v23 }
 0x84d   :  { %v11680_v35 = vpop.eup %11679  ;;  %v7497_v52 = vadd.f32 1.0, %v11678_v30 }
 0x84e   :  { %v13071_v6 = vadd.f32 %v7504_v17, %v7502_v24  ;;  %v7505_v10 = vmul.f32 %v11680_v35, %v11672_v61  ;;  %v11682_v31 = vpop.eup %11681 }
 0x84f   :  { %v7503_v20 = vmul.f32 %v11682_v31, %v12979_v62  ;;  %v11684_v54 = vpop.eup %11683 }
 0x850   :  { %11685 = vtanh.f32 %v13071_v6 }
 0x851   :  { %v13075_v25 = vadd.f32 %v7505_v10, %v7503_v20  ;;  %11687 = vrcp.f32 %v7497_v52 }
 0x853   :  { %11689 = vtanh.f32 %v13075_v25 }
 0x85a   :  { %v11686_v22 = vpop.eup %11685 }
 0x85b   :  { %v13078_v56 = vmul.f32 %v11686_v22, %v11684_v54  ;;  %v11688_v23 = vpop.eup %11687 }
 0x85d   :  { %v7562_v51 = vmax.f32 %v12985_v0, %v13078_v56  ;;  %v11690_v26 = vpop.eup %11689 }
 0x85e   :  { %v13082_v18 = vmul.f32 %v11690_v26, %v11688_v23 }
 0x860   :  { %v7563_v62 = vmax.f32 %v12990_v2, %v13082_v18  ;;  %v13088_v58 = vpack.c.bf16 %v13082_v18, %v13078_v56 }
 0x86c   :  { %v7368_v21 = vpop.f32.mrb[108].mxu0  ;;  %v7411_v45 = vpop.f32.mrb[108].mxu1 }
 0x86d   :  { %v7369_v38 = vadd.f32 %v7368_v21, %v13516_v59  ;;  %v7412_v44 = vadd.f32 %v7411_v45, %v12556_v11  ;;  %v7370_v63 = vpop.f32.mrb[109].mxu0  ;;  %v7413_v19 = vpop.f32.mrb[109].mxu1 }
 0x86e   :  { %v7371_v33 = vadd.f32 %v7370_v63, %v12559_v42  ;;  %v7414_v32 = vadd.f32 %v7413_v19, %v12562_v40  ;;  %v7372_v41 = vpop.f32.mrb[110].mxu0  ;;  %v7415_v61 = vpop.f32.mrb[110].mxu1 }
 0x86f   :  { %v7456_v37 = vadd.f32 %v7448_v14, %v7369_v38  ;;  %v7458_v15 = vadd.f32 %v7450_v7, %v7412_v44  ;;  %v7373_v17 = vadd.f32 %v7372_v41, %v13516_v59  ;;  %v7416_v16 = vadd.f32 %v7415_v61, %v12556_v11  ;;  %v7374_v30 = vpop.f32.mrb[111].mxu0  ;;  %v7417_v24 = vpop.f32.mrb[111].mxu1 }
 0x870   :  { %v7457_v35 = vadd.f32 %v7449_v46, %v7371_v33  ;;  %v7459_v10 = vadd.f32 %v7451_v36, %v7414_v32  ;;  %v7375_v31 = vadd.f32 %v7374_v30, %v12559_v42  ;;  %v7418_v52 = vadd.f32 %v7417_v24, %v12562_v40 }
 0x871   :  { %v10931_v20 = vmul.f32 -1.442695, %v7456_v37  ;;  %v7460_v54 = vadd.f32 %v7452_v34, %v7373_v17  ;;  %v7462_v22 = vadd.f32 %v7454_v8, %v7416_v16 }
 0x872   :  { %v10933_v23 = vmul.f32 -1.442695, %v7457_v35  ;;  %v7461_v26 = vadd.f32 %v7453_v5, %v7375_v31  ;;  %v7463_v60 = vadd.f32 %v7455_v27, %v7418_v52  ;;  %v10935_v21 = vmul.f32 -1.442695, %v7459_v10 }
 0x873   :  { %11691 = vpow2.f32 %v10931_v20  ;;  %v10932_v14 = vmul.f32 -1.442695, %v7460_v54 }
 0x874   :  { %11693 = vpow2.f32 %v10933_v23  ;;  %v10934_v50 = vmul.f32 -1.442695, %v7461_v26  ;;  %v10936_v7 = vmul.f32 -1.442695, %v7463_v60  ;;  %v7584_v23 = vld [vmem:[#allocation14 + $0x50] sm:$0xff]  ;;  %v7585_v26 = vld [vmem:[#allocation14 + $0x58] sm:$0xff] }
 0x875   :  { %11695 = vpow2.f32 %v10932_v14  ;;  %v7589_v60 = vld [vmem:[#allocation14 + $0x78] sm:$0xff] }
 0x876   :  { %11697 = vpow2.f32 %v10934_v50 }
 0x877   :  { %11699 = vtanh.f32 %v7458_v15 }
 0x878   :  { %11701 = vpow2.f32 %v10935_v21  ;;  %v7592_v21 = vld [vmem:[#allocation14 + $0x90] sm:$0xff] }
 0x879   :  { %11703 = vtanh.f32 %v7462_v22 }
 0x87d   :  { %v11692_v45 = vpop.eup %11691 }
 0x87e   :  { %v11694_v46 = vpop.eup %11693  ;;  %v7518_v9 = vadd.f32 1.0, %v11692_v45 }
 0x87f   :  { %v7530_v38 = vadd.f32 1.0, %v11694_v46  ;;  %v11696_v34 = vpop.eup %11695  ;;  %v10952_v46 = vcombine.high %v7585_v26, %v7589_v60 }
 0x880   :  { %11705 = vrcp.f32 %v7518_v9  ;;  %v7519_v5 = vadd.f32 1.0, %v11696_v34  ;;  %v11698_v8 = vpop.eup %11697  ;;  %v7596_v9 = vld [vmem:[#allocation14 + $0xb0] sm:$0xff] }
 0x881   :  { %11707 = vrcp.f32 %v7530_v38  ;;  %v7531_v44 = vadd.f32 1.0, %v11698_v8  ;;  %v11700_v63 = vpop.eup %11699  ;;  %v7597_v38 = vld [vmem:[#allocation14 + $0xb8] sm:$0xff]  ;;  %v10958_v8 = vcombine.high %v7592_v21, %v7596_v9  ;;  %v10957_v4 = vcombine.low %v7592_v21, %v7596_v9  ;;  %v7632_v9 = vld [vmem:[#allocation14 + $0x1d0] sm:$0xff] }
 0x882   :  { %11709 = vpow2.f32 %v10936_v7  ;;  %v11702_v19 = vpop.eup %11701  ;;  %v7593_v7 = vld [vmem:[#allocation14 + $0x98] sm:$0xff] }
 0x883   :  { %11711 = vrcp.f32 %v7519_v5  ;;  %v11704_v28 = vpop.eup %11703  ;;  %v7544_v32 = vadd.f32 1.0, %v11702_v19  ;;  %v10951_v5 = vcombine.low %v7585_v26, %v7589_v60  ;;  %v7604_v19 = vld [vmem:[#allocation14 + $0xf0] sm:$0xff]  ;;  %v10959_v49 = vcombine.low %v7593_v7, %v7597_v38  ;;  %v7625_v26 = vld [vmem:[#allocation14 + $0x198] sm:$0xff] }
 0x884   :  { %11713 = vrcp.f32 %v7531_v44  ;;  %v10960_v44 = vcombine.high %v7593_v7, %v7597_v38  ;;  %v7629_v60 = vld [vmem:[#allocation14 + $0x1b8] sm:$0xff]  ;;  %v7636_v7 = vld [vmem:[#allocation14 + $0x1f0] sm:$0xff] }
 0x885   :  { %11715 = vrcp.f32 %v7544_v32  ;;  %v7633_v38 = vld [vmem:[#allocation14 + $0x1d8] sm:$0xff] }
 0x88a   :  { %v11706_v36 = vpop.eup %11705 }
 0x88b   :  { %v11708_v27 = vpop.eup %11707  ;;  %v7552_v33 = vmul.f32 %v11706_v36, %v11700_v63  ;;  %v7600_v63 = vld [vmem:[#allocation14 + $0xd0] sm:$0xff]  ;;  %v7605_v36 = vld [vmem:[#allocation14 + $0xf8] sm:$0xff] }
 0x88c   :  { %v11710_v41 = vpop.eup %11709  ;;  %v7550_v61 = vmul.f32 %v11708_v27, %v13011_v39  ;;  %v10966_v29 = vcombine.high %v7600_v63, %v7604_v19  ;;  %v7609_v27 = vld [vmem:[#allocation14 + $0x118] sm:$0xff]  ;;  %v10965_v32 = vcombine.low %v7600_v63, %v7604_v19  ;;  %v7640_v19 = vld [vmem:[#allocation14 + $0x210] sm:$0xff] }
 0x88d   :  { %v11712_v37 = vpop.eup %11711  ;;  %v7545_v30 = vadd.f32 1.0, %v11710_v41 }
 0x88e   :  { %v13107_v15 = vadd.f32 %v7552_v33, %v7550_v61  ;;  %v7553_v17 = vmul.f32 %v11712_v37, %v11704_v28  ;;  %v11714_v16 = vpop.eup %11713  ;;  %v7601_v28 = vld [vmem:[#allocation14 + $0xd8] sm:$0xff] }
 0x88f   :  { %v7551_v24 = vmul.f32 %v11714_v16, %v13015_v53  ;;  %v11716_v10 = vpop.eup %11715  ;;  %v7588_v53 = vld [vmem:[#allocation14 + $0x70] sm:$0xff]  ;;  %v7613_v33 = vld [vmem:[#allocation14 + $0x138] sm:$0xff]  ;;  %v10967_v41 = vcombine.low %v7601_v28, %v7605_v36 }
 0x890   :  { %11717 = vtanh.f32 %v13107_v15  ;;  %v10950_v45 = vcombine.high %v7584_v23, %v7588_v53  ;;  %v10949_v34 = vcombine.low %v7584_v23, %v7588_v53  ;;  %v10976_v37 = vcombine.high %v7609_v27, %v7613_v33  ;;  %v7620_v16 = vld [vmem:[#allocation14 + $0x170] sm:$0xff] }
 0x891   :  { %v13111_v35 = vadd.f32 %v7553_v17, %v7551_v24  ;;  %11719 = vrcp.f32 %v7545_v30  ;;  %v7616_v17 = vld [vmem:[#allocation14 + $0x150] sm:$0xff]  ;;  %v7617_v30 = vld [vmem:[#allocation14 + $0x158] sm:$0xff] }
 0x892   :  { %v7621_v24 = vld [vmem:[#allocation14 + $0x178] sm:$0xff]  ;;  %v7624_v23 = vld [vmem:[#allocation14 + $0x190] sm:$0xff] }
 0x893   :  { %11721 = vtanh.f32 %v13111_v35  ;;  %v7628_v53 = vld [vmem:[#allocation14 + $0x1b0] sm:$0xff]  ;;  %v10983_v21 = vcombine.low %v7617_v30, %v7621_v24 }
 0x89a   :  { %v11718_v31 = vpop.eup %11717 }
 0x89b   :  { %v13114_v52 = vmul.f32 %v11718_v31, %v11716_v10  ;;  %v11720_v39 = vpop.eup %11719  ;;  %v10975_v31 = vcombine.low %v7609_v27, %v7613_v33  ;;  %v7652_v27 = vld [vmem:[#allocation14 + $0x270] sm:$0xff]  ;;  %v7649_v33 = vld [vmem:[#allocation14 + $0x258] sm:$0xff] }
 0x89d   :  { %v7568_v20 = vmax.f32 %v13021_v43, %v13114_v52  ;;  %v11722_v54 = vpop.eup %11721  ;;  %v8690_v43 = vld [vmem:[#allocation14 + $0xb0] sm:$0xff] }
 0x89e   :  { %v13118_v22 = vmul.f32 %v11722_v54, %v11720_v39  ;;  %v10982_v39 = vcombine.high %v7616_v17, %v7620_v16  ;;  %v10984_v54 = vcombine.high %v7617_v30, %v7621_v24  ;;  %v7660_v30 = vld [vmem:[#allocation14 + $0x2b0] sm:$0xff]  ;;  %v7657_v24 = vld [vmem:[#allocation14 + $0x298] sm:$0xff] }
 0x8a0   :  { %v7569_v14 = vmax.f32 %v13026_v57, %v13118_v22  ;;  %v7573_v50 = vpack.c.bf16 %v13118_v22, %v13114_v52  ;;  %v8687_v52 = vld [vmem:[#allocation14 + $0x98] sm:$0xff] }
 0x8a2   :  { %8374 = vmatprep.mubr.bf16.mxu0 %v7573_v50  ;;  %8417 = vmatprep.mubr.bf16.mxu1 %v7573_v50 }
 0x8a3   :  { %8375 = vmatmul.mubr.bf16.vlgmr.msra.gmra.mrb[112].mxu0 %v13088_v58  ;;  %8418 = vmatmul.mubr.bf16.vlgmr.msra.gmra.mrb[112].mxu1 %v13088_v58 }
 0x8a4   :  { %8429 = vmatpush1.bf16.msra.mxu0 %v10941_v1  ;;  %8472 = vmatpush1.bf16.msra.mxu1 %v10943_v47  ;;  %v10968_v1 = vcombine.high %v7601_v28, %v7605_v36  ;;  %v7612_v47 = vld [vmem:[#allocation14 + $0x130] sm:$0xff]  ;;  %v7641_v36 = vld [vmem:[#allocation14 + $0x218] sm:$0xff] }
 0x8a5   :  { %8460 = vmatprep.mubr.bf16.mxu0 %v7573_v50  ;;  %8503 = vmatprep.mubr.bf16.mxu1 %v7573_v50  ;;  %v10974_v61 = vcombine.high %v7608_v12, %v7612_v47  ;;  %v10973_v10 = vcombine.low %v7608_v12, %v7612_v47  ;;  %v10981_v50 = vcombine.low %v7616_v17, %v7620_v16  ;;  %v7644_v28 = vld [vmem:[#allocation14 + $0x230] sm:$0xff] }
 0x8a6   :  { %8430 = vmatprep.subr.bf16.mxu0 %v10950_v45  ;;  %8473 = vmatprep.subr.bf16.mxu1 %v10952_v46  ;;  %v10990_v45 = vcombine.high %v7624_v23, %v7628_v53  ;;  %v10992_v46 = vcombine.high %v7625_v26, %v7629_v60  ;;  %v7648_v47 = vld [vmem:[#allocation14 + $0x250] sm:$0xff] }
 0x8a7   :  { %v7656_v16 = vld [vmem:[#allocation14 + $0x290] sm:$0xff] }
 0x8a8   :  { %8431 = vmatpush1.bf16.msra.mxu0 %v10949_v34  ;;  %8474 = vmatpush1.bf16.msra.mxu1 %v10951_v5  ;;  %v7637_v34 = vld [vmem:[#allocation14 + $0x1f8] sm:$0xff]  ;;  %v10989_v5 = vcombine.low %v7624_v23, %v7628_v53  ;;  %v7664_v53 = vld [vmem:[#allocation14 + $0x2d0] sm:$0xff] }
 0x8a9   :  { %8432 = vmatprep.subr.bf16.mxu0 %v10958_v8  ;;  %8475 = vmatprep.subr.bf16.mxu1 %v10960_v44  ;;  %v10991_v8 = vcombine.low %v7625_v26, %v7629_v60  ;;  %v10998_v44 = vcombine.high %v7632_v9, %v7636_v7  ;;  %v11000_v63 = vcombine.high %v7633_v38, %v7637_v34  ;;  %v7668_v26 = vld [vmem:[#allocation14 + $0x2f0] sm:$0xff]  ;;  %v7665_v60 = vld [vmem:[#allocation14 + $0x2d8] sm:$0xff] }
 0x8ac   :  { %8433 = vmatpush1.bf16.msra.mxu0 %v10957_v4  ;;  %8476 = vmatpush1.bf16.msra.mxu1 %v10959_v49  ;;  %v7645_v4 = vld [vmem:[#allocation14 + $0x238] sm:$0xff]  ;;  %v10997_v49 = vcombine.low %v7632_v9, %v7636_v7  ;;  %v7672_v7 = vld [vmem:[#allocation14 + $0x310] sm:$0xff] }
 0x8ad   :  { %8434 = vmatprep.subr.bf16.mxu0 %v10966_v29  ;;  %8477 = vmatprep.subr.bf16.mxu1 %v10968_v1  ;;  %v10999_v29 = vcombine.low %v7633_v38, %v7637_v34  ;;  %v11006_v1 = vcombine.high %v7640_v19, %v7644_v28  ;;  %v11008_v12 = vcombine.high %v7641_v36, %v7645_v4  ;;  %v7676_v38 = vld [vmem:[#allocation14 + $0x330] sm:$0xff]  ;;  %v7673_v34 = vld [vmem:[#allocation14 + $0x318] sm:$0xff] }
 0x8b0   :  { %8435 = vmatpush1.bf16.msra.mxu0 %v10965_v32  ;;  %8478 = vmatpush1.bf16.msra.mxu1 %v10967_v41  ;;  %v7653_v32 = vld [vmem:[#allocation14 + $0x278] sm:$0xff]  ;;  %v11005_v41 = vcombine.low %v7640_v19, %v7644_v28  ;;  %v7680_v28 = vld [vmem:[#allocation14 + $0x350] sm:$0xff] }
 0x8b1   :  { %8436 = vmatprep.subr.bf16.mxu0 %v10974_v61  ;;  %8479 = vmatprep.subr.bf16.mxu1 %v10976_v37  ;;  %v11007_v61 = vcombine.low %v7641_v36, %v7645_v4  ;;  %v11014_v37 = vcombine.high %v7648_v47, %v7652_v27  ;;  %v11016_v17 = vcombine.high %v7649_v33, %v7653_v32  ;;  %v7684_v36 = vld [vmem:[#allocation14 + $0x370] sm:$0xff]  ;;  %v7681_v4 = vld [vmem:[#allocation14 + $0x358] sm:$0xff] }
 0x8b4   :  { %8437 = vmatpush1.bf16.msra.mxu0 %v10973_v10  ;;  %8480 = vmatpush1.bf16.msra.mxu1 %v10975_v31  ;;  %v7661_v10 = vld [vmem:[#allocation14 + $0x2b8] sm:$0xff]  ;;  %v11013_v31 = vcombine.low %v7648_v47, %v7652_v27  ;;  %v7688_v27 = vld [vmem:[#allocation14 + $0x390] sm:$0xff] }
 0x8b5   :  { %8438 = vmatprep.subr.bf16.mxu0 %v10982_v39  ;;  %8481 = vmatprep.subr.bf16.mxu1 %v10984_v54  ;;  %v11015_v39 = vcombine.low %v7649_v33, %v7653_v32  ;;  %v11022_v54 = vcombine.high %v7656_v16, %v7660_v30  ;;  %v11024_v23 = vcombine.high %v7657_v24, %v7661_v10  ;;  %v7692_v33 = vld [vmem:[#allocation14 + $0x3b0] sm:$0xff]  ;;  %v7689_v32 = vld [vmem:[#allocation14 + $0x398] sm:$0xff] }
 0x8b8   :  { %8439 = vmatpush1.bf16.msra.mxu0 %v10981_v50  ;;  %8482 = vmatpush1.bf16.msra.mxu1 %v10983_v21  ;;  %v7669_v50 = vld [vmem:[#allocation14 + $0x2f8] sm:$0xff]  ;;  %v11021_v21 = vcombine.low %v7656_v16, %v7660_v30  ;;  %v7696_v30 = vld [vmem:[#allocation14 + $0x3d0] sm:$0xff] }
 0x8b9   :  { %8440 = vmatprep.subr.bf16.mxu0 %v10990_v45  ;;  %8483 = vmatprep.subr.bf16.mxu1 %v10992_v46  ;;  %v11023_v45 = vcombine.low %v7657_v24, %v7661_v10  ;;  %v11030_v46 = vcombine.high %v7664_v53, %v7668_v26  ;;  %v11032_v9 = vcombine.high %v7665_v60, %v7669_v50  ;;  %v7700_v24 = vld [vmem:[#allocation14 + $0x3f0] sm:$0xff]  ;;  %v7697_v10 = vld [vmem:[#allocation14 + $0x3d8] sm:$0xff] }
 0x8bc   :  { %8441 = vmatpush1.bf16.msra.mxu0 %v10989_v5  ;;  %8484 = vmatpush1.bf16.msra.mxu1 %v10991_v8  ;;  %v7677_v5 = vld [vmem:[#allocation14 + $0x338] sm:$0xff]  ;;  %v11029_v8 = vcombine.low %v7664_v53, %v7668_v26  ;;  %v11061_v26 = vcombine.low %v7696_v30, %v7700_v24 }
 0x8bd   :  { %8442 = vmatprep.subr.bf16.mxu0 %v10998_v44  ;;  %8485 = vmatprep.subr.bf16.mxu1 %v11000_v63  ;;  %v11031_v44 = vcombine.low %v7665_v60, %v7669_v50  ;;  %v11038_v63 = vcombine.high %v7672_v7, %v7676_v38  ;;  %v11040_v19 = vcombine.high %v7673_v34, %v7677_v5  ;;  %v8668_v50 = vld [vmem:[#allocation14] sm:$0xff] }
 0x8c0   :  { %8443 = vmatpush1.bf16.msra.mxu0 %v10997_v49  ;;  %8486 = vmatpush1.bf16.msra.mxu1 %v10999_v29  ;;  %v7685_v49 = vld [vmem:[#allocation14 + $0x378] sm:$0xff]  ;;  %v11037_v29 = vcombine.low %v7672_v7, %v7676_v38  ;;  %v8673_v7 = vld [vmem:[#allocation14 + $0x28] sm:$0xff]  ;;  %v8676_v38 = vld [vmem:[#allocation14 + $0x40] sm:$0xff] }
 0x8c1   :  { %8444 = vmatprep.subr.bf16.mxu0 %v11006_v1  ;;  %8487 = vmatprep.subr.bf16.mxu1 %v11008_v12  ;;  %v11039_v1 = vcombine.low %v7673_v34, %v7677_v5  ;;  %v11046_v12 = vcombine.high %v7680_v28, %v7684_v36  ;;  %v11048_v47 = vcombine.high %v7681_v4, %v7685_v49  ;;  %v8680_v34 = vld [vmem:[#allocation14 + $0x60] sm:$0xff] }
 0x8c4   :  { %8445 = vmatpush1.bf16.msra.mxu0 %v11005_v41  ;;  %8488 = vmatpush1.bf16.msra.mxu1 %v11007_v61  ;;  %v7693_v41 = vld [vmem:[#allocation14 + $0x3b8] sm:$0xff]  ;;  %v11045_v61 = vcombine.low %v7680_v28, %v7684_v36  ;;  %v8684_v28 = vld [vmem:[#allocation14 + $0x80] sm:$0xff] }
 0x8c5   :  { %8446 = vmatprep.subr.bf16.mxu0 %v11014_v37  ;;  %8489 = vmatprep.subr.bf16.mxu1 %v11016_v17  ;;  %v11047_v37 = vcombine.low %v7681_v4, %v7685_v49  ;;  %v11054_v17 = vcombine.high %v7688_v27, %v7692_v33  ;;  %v11056_v16 = vcombine.high %v7689_v32, %v7693_v41  ;;  %v8688_v4 = vld [vmem:[#allocation14 + $0xa0] sm:$0xff]  ;;  %v8685_v49 = vld [vmem:[#allocation14 + $0x88] sm:$0xff] }
 0x8c8   :  { %8447 = vmatpush1.bf16.msra.mxu0 %v11013_v31  ;;  %8490 = vmatpush1.bf16.msra.mxu1 %v11015_v39  ;;  %v7701_v31 = vld [vmem:[#allocation14 + $0x3f8] sm:$0xff]  ;;  %v11053_v39 = vcombine.low %v7688_v27, %v7692_v33  ;;  %v11093_v27 = vcombine.low %v8684_v28, %v8688_v4 }
 0x8c9   :  { %8448 = vmatprep.subr.bf16.mxu0 %v11022_v54  ;;  %8491 = vmatprep.subr.bf16.mxu1 %v11024_v23  ;;  %v11055_v54 = vcombine.low %v7689_v32, %v7693_v41  ;;  %v11062_v23 = vcombine.high %v7696_v30, %v7700_v24  ;;  %v11064_v53 = vcombine.high %v7697_v10, %v7701_v31  ;;  %v8692_v32 = vld [vmem:[#allocation14 + $0xc0] sm:$0xff] }
 0x8ca   :  { %v11063_v60 = vcombine.low %v7697_v10, %v7701_v31  ;;  %v8696_v41 = vld [vmem:[#allocation14 + $0xe0] sm:$0xff] }
 0x8cb   :  { %v8700_v10 = vld [vmem:[#allocation14 + $0x100] sm:$0xff] }
 0x8cc   :  { %8449 = vmatpush1.bf16.msra.mxu0 %v11021_v21  ;;  %8492 = vmatpush1.bf16.msra.mxu1 %v11023_v45  ;;  %v8672_v21 = vld [vmem:[#allocation14 + $0x20] sm:$0xff]  ;;  %v8669_v45 = vld [vmem:[#allocation14 + $0x8] sm:$0xff] }
 0x8cd   :  { %8450 = vmatprep.subr.bf16.mxu0 %v11030_v46  ;;  %8493 = vmatprep.subr.bf16.mxu1 %v11032_v9  ;;  %v11077_v46 = vcombine.low %v8668_v50, %v8672_v21  ;;  %v11078_v9 = vcombine.high %v8668_v50, %v8672_v21  ;;  %v11079_v5 = vcombine.low %v8669_v45, %v8673_v7  ;;  %v8704_v31 = vld [vmem:[#allocation14 + $0x120] sm:$0xff] }
 0x8ce   :  { %v8708_v50 = vld [vmem:[#allocation14 + $0x140] sm:$0xff] }
 0x8cf   :  { %v8712_v21 = vld [vmem:[#allocation14 + $0x160] sm:$0xff] }
 0x8d0   :  { %8451 = vmatpush1.bf16.msra.mxu0 %v11029_v8  ;;  %8494 = vmatpush1.bf16.msra.mxu1 %v11031_v44  ;;  %v11080_v8 = vcombine.high %v8669_v45, %v8673_v7  ;;  %v11086_v44 = vcombine.high %v8676_v38, %v8680_v34  ;;  %v8709_v45 = vld [vmem:[#allocation14 + $0x148] sm:$0xff]  ;;  %v11117_v7 = vcombine.low %v8708_v50, %v8712_v21 }
 0x8d1   :  { %8452 = vmatprep.subr.bf16.mxu0 %v11038_v63  ;;  %8495 = vmatprep.subr.bf16.mxu1 %v11040_v19  ;;  %v8677_v63 = vld [vmem:[#allocation14 + $0x48] sm:$0xff] }
 0x8d2   :  { %v8681_v19 = vld [vmem:[#allocation14 + $0x68] sm:$0xff] }
 0x8d3   :  { %v11088_v36 = vcombine.high %v8677_v63, %v8681_v19 }
 0x8d4   :  { %8453 = vmatpush1.bf16.msra.mxu0 %v11037_v29  ;;  %8496 = vmatpush1.bf16.msra.mxu1 %v11039_v1  ;;  %v8689_v29 = vld [vmem:[#allocation14 + $0xa8] sm:$0xff]  ;;  %v11087_v1 = vcombine.low %v8677_v63, %v8681_v19 }
 0x8d5   :  { %8454 = vmatprep.subr.bf16.mxu0 %v11046_v12  ;;  %8497 = vmatprep.subr.bf16.mxu1 %v11048_v47  ;;  %v11094_v12 = vcombine.high %v8684_v28, %v8688_v4  ;;  %v11096_v47 = vcombine.high %v8685_v49, %v8689_v29  ;;  %v11095_v33 = vcombine.low %v8685_v49, %v8689_v29  ;;  %v8721_v19 = vld [vmem:[#allocation14 + $0x1a8] sm:$0xff]  ;;  %v8724_v49 = vld [vmem:[#allocation14 + $0x1c0] sm:$0xff] }
 0x8d6   :  { %v8728_v29 = vld [vmem:[#allocation14 + $0x1e0] sm:$0xff] }
 0x8d8   :  { %8455 = vmatpush1.bf16.msra.mxu0 %v11045_v61  ;;  %8498 = vmatpush1.bf16.msra.mxu1 %v11047_v37  ;;  %v8693_v61 = vld [vmem:[#allocation14 + $0xc8] sm:$0xff]  ;;  %v11102_v37 = vcombine.high %v8692_v32, %v8696_v41 }
 0x8d9   :  { %8456 = vmatprep.subr.bf16.mxu0 %v11054_v17  ;;  %8499 = vmatprep.subr.bf16.mxu1 %v11056_v16  ;;  %v8697_v17 = vld [vmem:[#allocation14 + $0xe8] sm:$0xff]  ;;  %v11101_v16 = vcombine.low %v8692_v32, %v8696_v41  ;;  %v8732_v32 = vld [vmem:[#allocation14 + $0x200] sm:$0xff] }
 0x8da   :  { %v11103_v30 = vcombine.low %v8693_v61, %v8697_v17  ;;  %v11104_v24 = vcombine.high %v8693_v61, %v8697_v17  ;;  %v8736_v41 = vld [vmem:[#allocation14 + $0x220] sm:$0xff]  ;;  %v8733_v61 = vld [vmem:[#allocation14 + $0x208] sm:$0xff] }
 0x8db   :  { %v8737_v17 = vld [vmem:[#allocation14 + $0x228] sm:$0xff] }
 0x8dc   :  { %8457 = vmatpush1.bf16.msra.mxu0 %v11053_v39  ;;  %8500 = vmatpush1.bf16.msra.mxu1 %v11055_v54  ;;  %v8701_v39 = vld [vmem:[#allocation14 + $0x108] sm:$0xff]  ;;  %v11110_v54 = vcombine.high %v8700_v10, %v8704_v31 }
 0x8dd   :  { %8458 = vmatprep.subr.bf16.mxu0 %v11062_v23  ;;  %8501 = vmatprep.subr.bf16.mxu1 %v11064_v53  ;;  %v8705_v23 = vld [vmem:[#allocation14 + $0x128] sm:$0xff]  ;;  %v11109_v53 = vcombine.low %v8700_v10, %v8704_v31  ;;  %v8740_v10 = vld [vmem:[#allocation14 + $0x240] sm:$0xff] }
 0x8de   :  { %v8744_v31 = vld [vmem:[#allocation14 + $0x260] sm:$0xff] }
 0x8e0   :  { %8459 = vmatpush1.bf16.msra.mxu0 %v11061_v26  ;;  %8502 = vmatpush1.bf16.msra.mxu1 %v11063_v60  ;;  %v11111_v26 = vcombine.low %v8701_v39, %v8705_v23  ;;  %v11112_v60 = vcombine.high %v8701_v39, %v8705_v23  ;;  %v8741_v39 = vld [vmem:[#allocation14 + $0x248] sm:$0xff] }
 0x8e1   :  { %9436 = vmatprep.subr.bf16.mxu0 %v11078_v9  ;;  %9479 = vmatprep.subr.bf16.mxu1 %v11080_v8  ;;  %v8713_v9 = vld [vmem:[#allocation14 + $0x168] sm:$0xff]  ;;  %v8720_v8 = vld [vmem:[#allocation14 + $0x1a0] sm:$0xff] }
 0x8e2   :  { %v8745_v23 = vld [vmem:[#allocation14 + $0x268] sm:$0xff] }
 0x8e3   :  { %8461 = vmatmul.mubr.bf16.vlgmr.msra.gmra.mrb[116].mxu0 %v13088_v58  ;;  %8504 = vmatmul.mubr.bf16.vlgmr.msra.gmra.mrb[116].mxu1 %v13088_v58  ;;  %v11085_v58 = vcombine.low %v8676_v38, %v8680_v34  ;;  %v11119_v38 = vcombine.low %v8709_v45, %v8713_v9  ;;  %v11120_v34 = vcombine.high %v8709_v45, %v8713_v9  ;;  %v8749_v45 = vld [vmem:[#allocation14 + $0x288] sm:$0xff] }
 0x8e4   :  { %9437 = vmatpush1.bf16.msra.mxu0 %v11077_v46  ;;  %9480 = vmatpush1.bf16.msra.mxu1 %v11079_v5  ;;  %v11118_v46 = vcombine.high %v8708_v50, %v8712_v21  ;;  %v8716_v5 = vld [vmem:[#allocation14 + $0x180] sm:$0xff]  ;;  %v8753_v9 = vld [vmem:[#allocation14 + $0x2a8] sm:$0xff] }
 0x8e5   :  { %9438 = vmatprep.subr.bf16.mxu0 %v11086_v44  ;;  %9481 = vmatprep.subr.bf16.mxu1 %v11088_v36  ;;  %v8717_v44 = vld [vmem:[#allocation14 + $0x188] sm:$0xff]  ;;  %v11126_v63 = vcombine.high %v8716_v5, %v8720_v8  ;;  %v11125_v28 = vcombine.low %v8716_v5, %v8720_v8  ;;  %v8748_v50 = vld [vmem:[#allocation14 + $0x280] sm:$0xff] }
 0x8e6   :  { %v11127_v36 = vcombine.low %v8717_v44, %v8721_v19  ;;  %v11128_v4 = vcombine.high %v8717_v44, %v8721_v19  ;;  %v8752_v21 = vld [vmem:[#allocation14 + $0x2a0] sm:$0xff]  ;;  %v8757_v44 = vld [vmem:[#allocation14 + $0x2c8] sm:$0xff] }
 0x8e7   :  { %v8756_v5 = vld [vmem:[#allocation14 + $0x2c0] sm:$0xff]  ;;  %v8761_v19 = vld [vmem:[#allocation14 + $0x2e8] sm:$0xff] }
 0x8e8   :  { %9439 = vmatpush1.bf16.msra.mxu0 %v11085_v58  ;;  %9482 = vmatpush1.bf16.msra.mxu1 %v11087_v1  ;;  %v8725_v58 = vld [vmem:[#allocation14 + $0x1c8] sm:$0xff]  ;;  %v11134_v1 = vcombine.high %v8724_v49, %v8728_v29  ;;  %v8760_v8 = vld [vmem:[#allocation14 + $0x2e0] sm:$0xff] }
 0x8e9   :  { %9440 = vmatprep.subr.bf16.mxu0 %v11094_v12  ;;  %9483 = vmatprep.subr.bf16.mxu1 %v11096_v47  ;;  %v8729_v12 = vld [vmem:[#allocation14 + $0x1e8] sm:$0xff]  ;;  %v11133_v47 = vcombine.low %v8724_v49, %v8728_v29  ;;  %v8764_v49 = vld [vmem:[#allocation14 + $0x300] sm:$0xff] }
 0x8ea   :  { %v8768_v29 = vld [vmem:[#allocation14 + $0x320] sm:$0xff] }
 0x8ec   :  { %9441 = vmatpush1.bf16.msra.mxu0 %v11093_v27  ;;  %9484 = vmatpush1.bf16.msra.mxu1 %v11095_v33  ;;  %v11135_v27 = vcombine.low %v8725_v58, %v8729_v12  ;;  %v11136_v33 = vcombine.high %v8725_v58, %v8729_v12  ;;  %v8765_v58 = vld [vmem:[#allocation14 + $0x308] sm:$0xff]  ;;  %v11174_v12 = vcombine.high %v8764_v49, %v8768_v29 }
 0x8ed   :  { %9442 = vmatprep.subr.bf16.mxu0 %v11102_v37  ;;  %9485 = vmatprep.subr.bf16.mxu1 %v11104_v24  ;;  %v11142_v37 = vcombine.high %v8732_v32, %v8736_v41  ;;  %v11144_v24 = vcombine.high %v8733_v61, %v8737_v17 }
 0x8f0   :  { %9443 = vmatpush1.bf16.msra.mxu0 %v11101_v16  ;;  %9486 = vmatpush1.bf16.msra.mxu1 %v11103_v30  ;;  %v11141_v16 = vcombine.low %v8732_v32, %v8736_v41  ;;  %v11143_v30 = vcombine.low %v8733_v61, %v8737_v17  ;;  %v8777_v17 = vld [vmem:[#allocation14 + $0x368] sm:$0xff] }
 0x8f1   :  { %9444 = vmatprep.subr.bf16.mxu0 %v11110_v54  ;;  %9487 = vmatprep.subr.bf16.mxu1 %v11112_v60  ;;  %v11150_v54 = vcombine.high %v8740_v10, %v8744_v31  ;;  %v11152_v60 = vcombine.high %v8741_v39, %v8745_v23 }
 0x8f4   :  { %9445 = vmatpush1.bf16.msra.mxu0 %v11109_v53  ;;  %9488 = vmatpush1.bf16.msra.mxu1 %v11111_v26  ;;  %v11149_v53 = vcombine.low %v8740_v10, %v8744_v31  ;;  %v11151_v26 = vcombine.low %v8741_v39, %v8745_v23  ;;  %v8781_v10 = vld [vmem:[#allocation14 + $0x388] sm:$0xff] }
 0x8f5   :  { %9446 = vmatprep.subr.bf16.mxu0 %v11118_v46  ;;  %9489 = vmatprep.subr.bf16.mxu1 %v11120_v34  ;;  %v11158_v46 = vcombine.high %v8748_v50, %v8752_v21  ;;  %v11160_v34 = vcombine.high %v8749_v45, %v8753_v9  ;;  %v8785_v31 = vld [vmem:[#allocation14 + $0x3a8] sm:$0xff] }
 0x8f8   :  { %9447 = vmatpush1.bf16.msra.mxu0 %v11117_v7  ;;  %9490 = vmatpush1.bf16.msra.mxu1 %v11119_v38  ;;  %v11157_v7 = vcombine.low %v8748_v50, %v8752_v21  ;;  %v11159_v38 = vcombine.low %v8749_v45, %v8753_v9  ;;  %v8789_v50 = vld [vmem:[#allocation14 + $0x3c8] sm:$0xff] }
 0x8f9   :  { %9448 = vmatprep.subr.bf16.mxu0 %v11126_v63  ;;  %9491 = vmatprep.subr.bf16.mxu1 %v11128_v4  ;;  %v11166_v63 = vcombine.high %v8756_v5, %v8760_v8  ;;  %v11168_v4 = vcombine.high %v8757_v44, %v8761_v19  ;;  %v8793_v21 = vld [vmem:[#allocation14 + $0x3e8] sm:$0xff] }
 0x8fc   :  { %9449 = vmatpush1.bf16.msra.mxu0 %v11125_v28  ;;  %9492 = vmatpush1.bf16.msra.mxu1 %v11127_v36  ;;  %v11165_v28 = vcombine.low %v8756_v5, %v8760_v8  ;;  %v11167_v36 = vcombine.low %v8757_v44, %v8761_v19  ;;  %v13134_v5 = vld [vmem:[#allocation14 + $0x10] sm:$0xff]  ;;  %v13138_v44 = vld [vmem:[#allocation14 + $0x18] sm:$0xff] }
 0x8fd   :  { %9450 = vmatprep.subr.bf16.mxu0 %v11134_v1  ;;  %9493 = vmatprep.subr.bf16.mxu1 %v11136_v33  ;;  %v11173_v1 = vcombine.low %v8764_v49, %v8768_v29  ;;  %v8776_v33 = vld [vmem:[#allocation14 + $0x360] sm:$0xff]  ;;  %v13136_v8 = vld [vmem:[#allocation14 + $0x30] sm:$0xff] }
 0x8fe   :  { %v11082_v19 = vcombine.high %v13134_v5, %v13136_v8  ;;  %v13550_v49 = vld [vmem:[#allocation42_spill] sm:$0xff] }
 0x8ff   :  { %v8520_v29 = vunpack.c.l.bf16 %v13550_v49 }
 0x900   :  { %9451 = vmatpush1.bf16.msra.mxu0 %v11133_v47  ;;  %9494 = vmatpush1.bf16.msra.mxu1 %v11135_v27  ;;  %v8769_v47 = vld [vmem:[#allocation14 + $0x328] sm:$0xff]  ;;  %v8772_v27 = vld [vmem:[#allocation14 + $0x340] sm:$0xff] }
 0x901   :  { %9452 = vmatprep.subr.bf16.mxu0 %v11142_v37  ;;  %9495 = vmatprep.subr.bf16.mxu1 %v11144_v24  ;;  %v11175_v32 = vcombine.low %v8765_v58, %v8769_v47  ;;  %v11176_v41 = vcombine.high %v8765_v58, %v8769_v47  ;;  %v11182_v61 = vcombine.high %v8772_v27, %v8776_v33  ;;  %v8773_v37 = vld [vmem:[#allocation14 + $0x348] sm:$0xff]  ;;  %v8784_v24 = vld [vmem:[#allocation14 + $0x3a0] sm:$0xff]  ;;  %v8524_v58 = vunpack.c.h.bf16 %v13550_v49 }
 0x902   :  { %v11181_v39 = vcombine.low %v8772_v27, %v8776_v33 }
 0x904   :  { %9453 = vmatpush1.bf16.msra.mxu0 %v11141_v16  ;;  %9496 = vmatpush1.bf16.msra.mxu1 %v11143_v30  ;;  %v8780_v16 = vld [vmem:[#allocation14 + $0x380] sm:$0xff]  ;;  %v11184_v30 = vcombine.high %v8773_v37, %v8777_v17 }
 0x905   :  { %9454 = vmatprep.subr.bf16.mxu0 %v11150_v54  ;;  %9497 = vmatprep.subr.bf16.mxu1 %v11152_v60  ;;  %v11183_v54 = vcombine.low %v8773_v37, %v8777_v17  ;;  %v11190_v23 = vcombine.high %v8780_v16, %v8784_v24  ;;  %v8792_v60 = vld [vmem:[#allocation14 + $0x3e0] sm:$0xff]  ;;  %v11189_v45 = vcombine.low %v8780_v16, %v8784_v24  ;;  %v13553_v24 = vld [vmem:[#allocation45_spill] sm:$0xff] }
 0x908   :  { %9455 = vmatpush1.bf16.msra.mxu0 %v11149_v53  ;;  %9498 = vmatpush1.bf16.msra.mxu1 %v11151_v26  ;;  %v11192_v53 = vcombine.high %v8781_v10, %v8785_v31  ;;  %v8788_v26 = vld [vmem:[#allocation14 + $0x3c0] sm:$0xff] }
 0x909   :  { %9456 = vmatprep.subr.bf16.mxu0 %v11158_v46  ;;  %9499 = vmatprep.subr.bf16.mxu1 %v11160_v34  ;;  %v11191_v46 = vcombine.low %v8781_v10, %v8785_v31  ;;  %v11198_v9 = vcombine.high %v8788_v26, %v8792_v60  ;;  %v11199_v34 = vcombine.low %v8789_v50, %v8793_v21  ;;  %v8523_v10 = vunpack.c.l.bf16 %v13553_v24 }
 0x90a   :  { %v8527_v31 = vunpack.c.h.bf16 %v13553_v24 }
 0x90c   :  { %9457 = vmatpush1.bf16.msra.mxu0 %v11157_v7  ;;  %9500 = vmatpush1.bf16.msra.mxu1 %v11159_v38  ;;  %v11200_v7 = vcombine.high %v8789_v50, %v8793_v21  ;;  %v11197_v38 = vcombine.low %v8788_v26, %v8792_v60 }
 0x90d   :  { %9458 = vmatprep.subr.bf16.mxu0 %v11166_v63  ;;  %9501 = vmatprep.subr.bf16.mxu1 %v11168_v4  ;;  %v11081_v63 = vcombine.low %v13134_v5, %v13136_v8 }
 0x910   :  { %9459 = vmatpush1.bf16.msra.mxu0 %v11165_v28  ;;  %9502 = vmatpush1.bf16.msra.mxu1 %v11167_v36  ;;  %v13144_v28 = vld [vmem:[#allocation14 + $0x38] sm:$0xff] }
 0x911   :  { %9460 = vmatprep.subr.bf16.mxu0 %v11174_v12  ;;  %9503 = vmatprep.subr.bf16.mxu1 %v11176_v41  ;;  %v11083_v36 = vcombine.low %v13138_v44, %v13144_v28  ;;  %v11084_v4 = vcombine.high %v13138_v44, %v13144_v28  ;;  %v8702_v28 = vld [vmem:[#allocation14 + $0x110] sm:$0xff] }
 0x914   :  { %9461 = vmatpush1.bf16.msra.mxu0 %v11173_v1  ;;  %9504 = vmatpush1.bf16.msra.mxu1 %v11175_v32  ;;  %v13551_v1 = vld [vmem:[#allocation43_spill] sm:$0xff]  ;;  %v13552_v32 = vld [vmem:[#allocation44_spill] sm:$0xff] }
 0x915   :  { %9462 = vmatprep.subr.bf16.mxu0 %v11182_v61  ;;  %9505 = vmatprep.subr.bf16.mxu1 %v11184_v30  ;;  %v8521_v12 = vunpack.c.l.bf16 %v13551_v1  ;;  %v8525_v47 = vunpack.c.h.bf16 %v13551_v1  ;;  %v8522_v41 = vunpack.c.l.bf16 %v13552_v32  ;;  %v8526_v61 = vunpack.c.h.bf16 %v13552_v32 }
 0x918   :  { %9463 = vmatpush1.bf16.msra.mxu0 %v11181_v39  ;;  %9506 = vmatpush1.bf16.msra.mxu1 %v11183_v54 }
 0x919   :  { %9464 = vmatprep.subr.bf16.mxu0 %v11190_v23  ;;  %9507 = vmatprep.subr.bf16.mxu1 %v11192_v53 }
 0x91c   :  { %9465 = vmatpush1.bf16.msra.mxu0 %v11189_v45  ;;  %9508 = vmatpush1.bf16.msra.mxu1 %v11191_v46 }
 0x91d   :  { %9466 = vmatprep.subr.bf16.mxu0 %v11198_v9  ;;  %9509 = vmatprep.subr.bf16.mxu1 %v11200_v7 }
 0x920   :  { %9467 = vmatpush1.bf16.msra.mxu0 %v11197_v38  ;;  %9510 = vmatpush1.bf16.msra.mxu1 %v11199_v34 }
 0x921   :  { %9522 = vmatprep.subr.bf16.mxu0 %v11082_v19  ;;  %9565 = vmatprep.subr.bf16.mxu1 %v11084_v4 }
 0x976   :  { %v8376_v27 = vpop.f32.mrb[112].mxu0  ;;  %v8419_v33 = vpop.f32.mrb[112].mxu1 }
 0x977   :  { %v8377_v37 = vadd.f32 %v8376_v27, %v13509_v13  ;;  %v8420_v17 = vadd.f32 %v8419_v33, %v12516_v48  ;;  %v8378_v16 = vpop.f32.mrb[113].mxu0  ;;  %v8421_v30 = vpop.f32.mrb[113].mxu1 }
 0x978   :  { %v8379_v39 = vadd.f32 %v8378_v16, %v13511_v3  ;;  %v8422_v54 = vadd.f32 %v8421_v30, %v13512_v55  ;;  %v8380_v23 = vpop.f32.mrb[114].mxu0  ;;  %v8423_v53 = vpop.f32.mrb[114].mxu1 }
 0x979   :  { %v8528_v26 = vadd.f32 %v8520_v29, %v8377_v37  ;;  %v8530_v60 = vadd.f32 %v8522_v41, %v8420_v17  ;;  %v8381_v50 = vadd.f32 %v8380_v23, %v13509_v13  ;;  %v8424_v21 = vadd.f32 %v8423_v53, %v12516_v48  ;;  %v8382_v45 = vpop.f32.mrb[115].mxu0  ;;  %v8425_v46 = vpop.f32.mrb[115].mxu1 }
 0x97a   :  { %v8529_v9 = vadd.f32 %v8521_v12, %v8379_v39  ;;  %v8531_v7 = vadd.f32 %v8523_v10, %v8422_v54  ;;  %v8383_v38 = vadd.f32 %v8382_v45, %v13511_v3  ;;  %v8426_v34 = vadd.f32 %v8425_v46, %v13512_v55 }
 0x97b   :  { %v11065_v19 = vmul.f32 -1.442695, %v8528_v26  ;;  %v8532_v4 = vadd.f32 %v8524_v58, %v8381_v50  ;;  %v8534_v49 = vadd.f32 %v8526_v61, %v8424_v21 }
 0x97c   :  { %v11067_v1 = vmul.f32 -1.442695, %v8529_v9  ;;  %v8533_v27 = vadd.f32 %v8525_v47, %v8383_v38  ;;  %v8535_v33 = vadd.f32 %v8527_v31, %v8426_v34  ;;  %v11069_v41 = vmul.f32 -1.442695, %v8531_v7 }
 0x97d   :  { %11723 = vpow2.f32 %v11065_v19  ;;  %v11066_v29 = vmul.f32 -1.442695, %v8532_v4 }
 0x97e   :  { %11725 = vpow2.f32 %v11067_v1  ;;  %v11068_v32 = vmul.f32 -1.442695, %v8533_v27  ;;  %v11070_v16 = vmul.f32 -1.442695, %v8535_v33 }
 0x97f   :  { %11727 = vpow2.f32 %v11066_v29 }
 0x980   :  { %11729 = vpow2.f32 %v11068_v32  ;;  %v13554_v32 = vld [vmem:[#allocation54_spill] sm:$0xff] }
 0x981   :  { %11731 = vtanh.f32 %v8530_v60 }
 0x982   :  { %11733 = vpow2.f32 %v11069_v41  ;;  %v8542_v41 = vunpack.c.l.bf16 %v13554_v32 }
 0x983   :  { %11735 = vtanh.f32 %v8534_v49 }
 0x987   :  { %v11724_v37 = vpop.eup %11723 }
 0x988   :  { %v11726_v12 = vpop.eup %11725  ;;  %v8564_v17 = vadd.f32 1.0, %v11724_v37  ;;  %v8546_v37 = vunpack.c.h.bf16 %v13554_v32 }
 0x989   :  { %v8576_v30 = vadd.f32 1.0, %v11726_v12  ;;  %v11728_v58 = vpop.eup %11727  ;;  %v13555_v12 = vld [vmem:[#allocation55_spill] sm:$0xff] }
 0x98a   :  { %11737 = vrcp.f32 %v8564_v17  ;;  %v8565_v47 = vadd.f32 1.0, %v11728_v58  ;;  %v11730_v61 = vpop.eup %11729  ;;  %v8543_v17 = vunpack.c.l.bf16 %v13555_v12 }
 0x98b   :  { %11739 = vrcp.f32 %v8576_v30  ;;  %v8577_v24 = vadd.f32 1.0, %v11730_v61  ;;  %v11732_v10 = vpop.eup %11731  ;;  %v13557_v61 = vld [vmem:[#allocation57_spill] sm:$0xff] }
 0x98c   :  { %11741 = vpow2.f32 %v11070_v16  ;;  %v11734_v31 = vpop.eup %11733  ;;  %v8547_v16 = vunpack.c.h.bf16 %v13555_v12 }
 0x98d   :  { %11743 = vrcp.f32 %v8565_v47  ;;  %v11736_v39 = vpop.eup %11735  ;;  %v8590_v26 = vadd.f32 1.0, %v11734_v31 }
 0x98e   :  { %11745 = vrcp.f32 %v8577_v24  ;;  %v8545_v24 = vunpack.c.l.bf16 %v13557_v61 }
 0x98f   :  { %11747 = vrcp.f32 %v8590_v26 }
 0x994   :  { %v11738_v54 = vpop.eup %11737 }
 0x995   :  { %v11740_v23 = vpop.eup %11739  ;;  %v8598_v53 = vmul.f32 %v11738_v54, %v11732_v10  ;;  %v8549_v10 = vunpack.c.h.bf16 %v13557_v61 }
 0x996   :  { %v11742_v60 = vpop.eup %11741  ;;  %v8596_v50 = vmul.f32 %v11740_v23, %v13071_v6 }
 0x997   :  { %v11744_v21 = vpop.eup %11743  ;;  %v8591_v7 = vadd.f32 1.0, %v11742_v60 }
 0x998   :  { %v13167_v45 = vadd.f32 %v8598_v53, %v8596_v50  ;;  %v8599_v46 = vmul.f32 %v11744_v21, %v11736_v39  ;;  %v11746_v9 = vpop.eup %11745 }
 0x999   :  { %v8597_v38 = vmul.f32 %v11746_v9, %v13075_v25  ;;  %v11748_v19 = vpop.eup %11747 }
 0x99a   :  { %11749 = vtanh.f32 %v13167_v45 }
 0x99b   :  { %v13171_v34 = vadd.f32 %v8599_v46, %v8597_v38  ;;  %11751 = vrcp.f32 %v8591_v7 }
 0x99d   :  { %11753 = vtanh.f32 %v13171_v34 }
 0x9a4   :  { %v11750_v4 = vpop.eup %11749 }
 0x9a5   :  { %v8604_v49 = vmul.f32 %v11750_v4, %v11748_v19  ;;  %v11752_v6 = vpop.eup %11751 }
 0x9a7   :  { %v13177_v1 = vmax.f32 %v7562_v51, %v8604_v49  ;;  %v11754_v27 = vpop.eup %11753  ;;  %v13556_v51 = vld [vmem:[#allocation56_spill] sm:$0xff] }
 0x9a8   :  { %v8605_v33 = vmul.f32 %v11754_v27, %v11752_v6  ;;  %v8544_v30 = vunpack.c.l.bf16 %v13556_v51  ;;  %v8548_v58 = vunpack.c.h.bf16 %v13556_v51 }
 0x9aa   :  { %v13179_v29 = vpack.c.bf16 %v8605_v33, %v8604_v49  ;;  %v13184_v25 = vmax.f32 %v7563_v62, %v8605_v33 }
 0x9b6   :  { %v8462_v0 = vpop.f32.mrb[116].mxu0  ;;  %v8505_v56 = vpop.f32.mrb[116].mxu1 }
 0x9b7   :  { %v8463_v47 = vadd.f32 %v8462_v0, %v13516_v59  ;;  %v8506_v2 = vadd.f32 %v8505_v56, %v12556_v11  ;;  %v8464_v18 = vpop.f32.mrb[117].mxu0  ;;  %v8507_v62 = vpop.f32.mrb[117].mxu1 }
 0x9b8   :  { %v8465_v31 = vadd.f32 %v8464_v18, %v12559_v42  ;;  %v8508_v39 = vadd.f32 %v8507_v62, %v12562_v40  ;;  %v8466_v54 = vpop.f32.mrb[118].mxu0  ;;  %v8509_v23 = vpop.f32.mrb[118].mxu1 }
 0x9b9   :  { %v8550_v53 = vadd.f32 %v8542_v41, %v8463_v47  ;;  %v8552_v26 = vadd.f32 %v8544_v30, %v8506_v2  ;;  %v8467_v60 = vadd.f32 %v8466_v54, %v13516_v59  ;;  %v8510_v50 = vadd.f32 %v8509_v23, %v12556_v11  ;;  %v8468_v21 = vpop.f32.mrb[119].mxu0  ;;  %v8511_v46 = vpop.f32.mrb[119].mxu1 }
 0x9ba   :  { %v8551_v9 = vadd.f32 %v8543_v17, %v8465_v31  ;;  %v8553_v7 = vadd.f32 %v8545_v24, %v8508_v39  ;;  %v8469_v38 = vadd.f32 %v8468_v21, %v12559_v42  ;;  %v8512_v19 = vadd.f32 %v8511_v46, %v12562_v40 }
 0x9bb   :  { %v11071_v4 = vmul.f32 -1.442695, %v8550_v53  ;;  %v8554_v49 = vadd.f32 %v8546_v37, %v8467_v60  ;;  %v8556_v6 = vadd.f32 %v8548_v58, %v8510_v50 }
 0x9bc   :  { %v11073_v27 = vmul.f32 -1.442695, %v8551_v9  ;;  %v8555_v33 = vadd.f32 %v8547_v16, %v8469_v38  ;;  %v8557_v32 = vadd.f32 %v8549_v10, %v8512_v19  ;;  %v11075_v0 = vmul.f32 -1.442695, %v8553_v7 }
 0x9bd   :  { %11755 = vpow2.f32 %v11071_v4  ;;  %v11072_v41 = vmul.f32 -1.442695, %v8554_v49 }
 0x9be   :  { %11757 = vpow2.f32 %v11073_v27  ;;  %v11074_v12 = vmul.f32 -1.442695, %v8555_v33  ;;  %v11076_v30 = vmul.f32 -1.442695, %v8557_v32  ;;  %v8678_v27 = vld [vmem:[#allocation14 + $0x50] sm:$0xff]  ;;  %v8679_v33 = vld [vmem:[#allocation14 + $0x58] sm:$0xff] }
 0x9bf   :  { %11759 = vpow2.f32 %v11072_v41  ;;  %v8683_v32 = vld [vmem:[#allocation14 + $0x78] sm:$0xff] }
 0x9c0   :  { %11761 = vpow2.f32 %v11074_v12  ;;  %v11091_v22 = vcombine.low %v8679_v33, %v8683_v32 }
 0x9c1   :  { %11763 = vtanh.f32 %v8552_v26 }
 0x9c2   :  { %11765 = vpow2.f32 %v11075_v0  ;;  %v8686_v0 = vld [vmem:[#allocation14 + $0x90] sm:$0xff] }
 0x9c3   :  { %11767 = vtanh.f32 %v8556_v6  ;;  %v11097_v5 = vcombine.low %v8686_v0, %v8690_v43 }
 0x9c7   :  { %v11756_v56 = vpop.eup %11755 }
 0x9c8   :  { %v11758_v17 = vpop.eup %11757  ;;  %v8612_v51 = vadd.f32 1.0, %v11756_v56 }
 0x9c9   :  { %v8624_v47 = vadd.f32 1.0, %v11758_v17  ;;  %v11760_v37 = vpop.eup %11759  ;;  %v11092_v17 = vcombine.high %v8679_v33, %v8683_v32  ;;  %v8727_v33 = vld [vmem:[#allocation14 + $0x1d8] sm:$0xff] }
 0x9ca   :  { %11769 = vrcp.f32 %v8612_v51  ;;  %v8613_v16 = vadd.f32 1.0, %v11760_v37  ;;  %v11762_v58 = vpop.eup %11761  ;;  %v8695_v37 = vld [vmem:[#allocation14 + $0xd8] sm:$0xff] }
 0x9cb   :  { %11771 = vrcp.f32 %v8624_v47  ;;  %v8625_v2 = vadd.f32 1.0, %v11762_v58  ;;  %v11764_v18 = vpop.eup %11763  ;;  %v8698_v47 = vld [vmem:[#allocation14 + $0xf0] sm:$0xff]  ;;  %v8703_v58 = vld [vmem:[#allocation14 + $0x118] sm:$0xff] }
 0x9cc   :  { %11773 = vpow2.f32 %v11076_v30  ;;  %v11766_v62 = vpop.eup %11765  ;;  %v8694_v30 = vld [vmem:[#allocation14 + $0xd0] sm:$0xff]  ;;  %v8731_v32 = vld [vmem:[#allocation14 + $0x1f8] sm:$0xff] }
 0x9cd   :  { %11775 = vrcp.f32 %v8613_v16  ;;  %v11768_v61 = vpop.eup %11767  ;;  %v8638_v39 = vadd.f32 1.0, %v11766_v62  ;;  %v8699_v16 = vld [vmem:[#allocation14 + $0xf8] sm:$0xff]  ;;  %v11106_v44 = vcombine.high %v8694_v30, %v8698_v47 }
 0x9ce   :  { %11777 = vrcp.f32 %v8625_v2  ;;  %v8707_v2 = vld [vmem:[#allocation14 + $0x138] sm:$0xff]  ;;  %v11107_v62 = vcombine.low %v8695_v37, %v8699_v16 }
 0x9cf   :  { %11779 = vrcp.f32 %v8638_v39  ;;  %v8711_v39 = vld [vmem:[#allocation14 + $0x158] sm:$0xff] }
 0x9d4   :  { %v11770_v24 = vpop.eup %11769 }
 0x9d5   :  { %v11772_v10 = vpop.eup %11771  ;;  %v8646_v31 = vmul.f32 %v11770_v24, %v11764_v18  ;;  %v11105_v18 = vcombine.low %v8694_v30, %v8698_v47  ;;  %v11116_v24 = vcombine.high %v8703_v58, %v8707_v2  ;;  %v8742_v47 = vld [vmem:[#allocation14 + $0x250] sm:$0xff] }
 0x9d6   :  { %v11774_v54 = vpop.eup %11773  ;;  %v8644_v23 = vmul.f32 %v11772_v10, %v13107_v15  ;;  %v8710_v10 = vld [vmem:[#allocation14 + $0x150] sm:$0xff] }
 0x9d7   :  { %v11776_v53 = vpop.eup %11775  ;;  %v8639_v21 = vadd.f32 1.0, %v11774_v54  ;;  %v8715_v54 = vld [vmem:[#allocation14 + $0x178] sm:$0xff] }
 0x9d8   :  { %v13203_v26 = vadd.f32 %v8646_v31, %v8644_v23  ;;  %v8647_v60 = vmul.f32 %v11776_v53, %v11768_v61  ;;  %v11778_v50 = vpop.eup %11777  ;;  %v8714_v31 = vld [vmem:[#allocation14 + $0x170] sm:$0xff]  ;;  %v11115_v53 = vcombine.low %v8703_v58, %v8707_v2  ;;  %v8751_v2 = vld [vmem:[#allocation14 + $0x298] sm:$0xff] }
 0x9d9   :  { %v8645_v46 = vmul.f32 %v11778_v50, %v13111_v35  ;;  %v11780_v7 = vpop.eup %11779  ;;  %v8682_v35 = vld [vmem:[#allocation14 + $0x70] sm:$0xff]  ;;  %v11124_v50 = vcombine.high %v8711_v39, %v8715_v54 }
 0x9da   :  { %11781 = vtanh.f32 %v13203_v26  ;;  %v11090_v56 = vcombine.high %v8678_v27, %v8682_v35  ;;  %v11089_v57 = vcombine.low %v8678_v27, %v8682_v35  ;;  %v8726_v27 = vld [vmem:[#allocation14 + $0x1d0] sm:$0xff] }
 0x9db   :  { %v13207_v9 = vadd.f32 %v8647_v60, %v8645_v46  ;;  %11783 = vrcp.f32 %v8639_v21  ;;  %v11122_v60 = vcombine.high %v8710_v10, %v8714_v31  ;;  %v8718_v21 = vld [vmem:[#allocation14 + $0x190] sm:$0xff] }
 0x9dc   :  { %v8722_v46 = vld [vmem:[#allocation14 + $0x1b0] sm:$0xff] }
 0x9dd   :  { %11785 = vtanh.f32 %v13207_v9  ;;  %v8730_v35 = vld [vmem:[#allocation14 + $0x1f0] sm:$0xff] }
 0x9de   :  { %v8754_v58 = vld [vmem:[#allocation14 + $0x2b0] sm:$0xff] }
 0x9e4   :  { %v11782_v38 = vpop.eup %11781 }
 0x9e5   :  { %v8652_v19 = vmul.f32 %v11782_v38, %v11780_v7  ;;  %v11784_v15 = vpop.eup %11783  ;;  %v8719_v7 = vld [vmem:[#allocation14 + $0x198] sm:$0xff] }
 0x9e6   :  { %v8723_v38 = vld [vmem:[#allocation14 + $0x1b8] sm:$0xff] }
 0x9e7   :  { %v13213_v4 = vmax.f32 %v7568_v20, %v8652_v19  ;;  %v11786_v49 = vpop.eup %11785  ;;  %v8691_v20 = vld [vmem:[#allocation14 + $0xb8] sm:$0xff] }
 0x9e8   :  { %v8653_v6 = vmul.f32 %v11786_v49, %v11784_v15  ;;  %v11100_v51 = vcombine.high %v8687_v52, %v8691_v20  ;;  %v11099_v8 = vcombine.low %v8687_v52, %v8691_v20  ;;  %v11123_v15 = vcombine.low %v8711_v39, %v8715_v54  ;;  %v8738_v52 = vld [vmem:[#allocation14 + $0x230] sm:$0xff]  ;;  %v8735_v20 = vld [vmem:[#allocation14 + $0x218] sm:$0xff] }
 0x9e9   :  { %v11130_v49 = vcombine.high %v8718_v21, %v8722_v46  ;;  %v8762_v39 = vld [vmem:[#allocation14 + $0x2f0] sm:$0xff]  ;;  %v8759_v54 = vld [vmem:[#allocation14 + $0x2d8] sm:$0xff] }
 0x9ea   :  { %v8667_v41 = vpack.c.bf16 %v8653_v6, %v8652_v19  ;;  %v13218_v12 = vmax.f32 %v7569_v14, %v8653_v6  ;;  %v11098_v14 = vcombine.high %v8686_v0, %v8690_v43  ;;  %v11121_v19 = vcombine.low %v8710_v10, %v8714_v31  ;;  %v8734_v43 = vld [vmem:[#allocation14 + $0x210] sm:$0xff] }
 0x9eb   :  { %v11132_v6 = vcombine.high %v8719_v7, %v8723_v38  ;;  %v11131_v0 = vcombine.low %v8719_v7, %v8723_v38  ;;  %v8758_v31 = vld [vmem:[#allocation14 + $0x2d0] sm:$0xff]  ;;  %v8767_v38 = vld [vmem:[#allocation14 + $0x318] sm:$0xff] }
 0x9ec   :  { %9468 = vmatprep.mubr.bf16.mxu0 %v8667_v41  ;;  %9511 = vmatprep.mubr.bf16.mxu1 %v8667_v41  ;;  %v8770_v7 = vld [vmem:[#allocation14 + $0x330] sm:$0xff] }
 0x9ed   :  { %9469 = vmatmul.mubr.bf16.vlgmr.msra.gmra.mrb[120].mxu0 %v13179_v29  ;;  %9512 = vmatmul.mubr.bf16.vlgmr.msra.gmra.mrb[120].mxu1 %v13179_v29 }
 0x9ee   :  { %9523 = vmatpush1.bf16.msra.mxu0 %v11081_v63  ;;  %9566 = vmatpush1.bf16.msra.mxu1 %v11083_v36  ;;  %v11108_v63 = vcombine.high %v8695_v37, %v8699_v16  ;;  %v8706_v36 = vld [vmem:[#allocation14 + $0x130] sm:$0xff]  ;;  %v8743_v16 = vld [vmem:[#allocation14 + $0x258] sm:$0xff] }
 0x9ef   :  { %9554 = vmatprep.mubr.bf16.mxu0 %v8667_v41  ;;  %9597 = vmatprep.mubr.bf16.mxu1 %v8667_v41  ;;  %v11114_v61 = vcombine.high %v8702_v28, %v8706_v36  ;;  %v11113_v23 = vcombine.low %v8702_v28, %v8706_v36  ;;  %v11129_v41 = vcombine.low %v8718_v21, %v8722_v46  ;;  %v8746_v37 = vld [vmem:[#allocation14 + $0x270] sm:$0xff] }
 0x9f0   :  { %9524 = vmatprep.subr.bf16.mxu0 %v11090_v56  ;;  %9567 = vmatprep.subr.bf16.mxu1 %v11092_v17  ;;  %v11138_v56 = vcombine.high %v8726_v27, %v8730_v35  ;;  %v11140_v17 = vcombine.high %v8727_v33, %v8731_v32  ;;  %v8750_v36 = vld [vmem:[#allocation14 + $0x290] sm:$0xff] }
 0x9f1   :  { %v8766_v46 = vld [vmem:[#allocation14 + $0x310] sm:$0xff] }
 0x9f2   :  { %9525 = vmatpush1.bf16.msra.mxu0 %v11089_v57  ;;  %9568 = vmatpush1.bf16.msra.mxu1 %v11091_v22  ;;  %v8739_v57 = vld [vmem:[#allocation14 + $0x238] sm:$0xff]  ;;  %v11137_v22 = vcombine.low %v8726_v27, %v8730_v35  ;;  %v8774_v35 = vld [vmem:[#allocation14 + $0x350] sm:$0xff] }
 0x9f3   :  { %9526 = vmatprep.subr.bf16.mxu0 %v11098_v14  ;;  %9569 = vmatprep.subr.bf16.mxu1 %v11100_v51  ;;  %v11139_v14 = vcombine.low %v8727_v33, %v8731_v32  ;;  %v11146_v51 = vcombine.high %v8734_v43, %v8738_v52  ;;  %v11148_v30 = vcombine.high %v8735_v20, %v8739_v57  ;;  %v8778_v33 = vld [vmem:[#allocation14 + $0x370] sm:$0xff]  ;;  %v8775_v32 = vld [vmem:[#allocation14 + $0x358] sm:$0xff] }
 0x9f6   :  { %9527 = vmatpush1.bf16.msra.mxu0 %v11097_v5  ;;  %9570 = vmatpush1.bf16.msra.mxu1 %v11099_v8  ;;  %v8747_v5 = vld [vmem:[#allocation14 + $0x278] sm:$0xff]  ;;  %v11145_v8 = vcombine.low %v8734_v43, %v8738_v52  ;;  %v8782_v52 = vld [vmem:[#allocation14 + $0x390] sm:$0xff] }
 0x9f7   :  { %9528 = vmatprep.subr.bf16.mxu0 %v11106_v44  ;;  %9571 = vmatprep.subr.bf16.mxu1 %v11108_v63  ;;  %v11147_v44 = vcombine.low %v8735_v20, %v8739_v57  ;;  %v11154_v63 = vcombine.high %v8742_v47, %v8746_v37  ;;  %v11156_v28 = vcombine.high %v8743_v16, %v8747_v5  ;;  %v8786_v20 = vld [vmem:[#allocation14 + $0x3b0] sm:$0xff]  ;;  %v8783_v57 = vld [vmem:[#allocation14 + $0x398] sm:$0xff] }
 0x9fa   :  { %9529 = vmatpush1.bf16.msra.mxu0 %v11105_v18  ;;  %9572 = vmatpush1.bf16.msra.mxu1 %v11107_v62  ;;  %v8755_v18 = vld [vmem:[#allocation14 + $0x2b8] sm:$0xff]  ;;  %v11153_v62 = vcombine.low %v8742_v47, %v8746_v37  ;;  %v8790_v37 = vld [vmem:[#allocation14 + $0x3d0] sm:$0xff] }
 0x9fb   :  { %9530 = vmatprep.subr.bf16.mxu0 %v11114_v61  ;;  %9573 = vmatprep.subr.bf16.mxu1 %v11116_v24  ;;  %v11155_v61 = vcombine.low %v8743_v16, %v8747_v5  ;;  %v11162_v24 = vcombine.high %v8750_v36, %v8754_v58  ;;  %v11164_v10 = vcombine.high %v8751_v2, %v8755_v18  ;;  %v8794_v16 = vld [vmem:[#allocation14 + $0x3f0] sm:$0xff]  ;;  %v8791_v5 = vld [vmem:[#allocation14 + $0x3d8] sm:$0xff] }
 0x9fe   :  { %9531 = vmatpush1.bf16.msra.mxu0 %v11113_v23  ;;  %9574 = vmatpush1.bf16.msra.mxu1 %v11115_v53  ;;  %v8763_v23 = vld [vmem:[#allocation14 + $0x2f8] sm:$0xff]  ;;  %v11161_v53 = vcombine.low %v8750_v36, %v8754_v58  ;;  %v11201_v58 = vcombine.low %v8790_v37, %v8794_v16 }
 0x9ff   :  { %9532 = vmatprep.subr.bf16.mxu0 %v11122_v60  ;;  %9575 = vmatprep.subr.bf16.mxu1 %v11124_v50  ;;  %v11163_v60 = vcombine.low %v8751_v2, %v8755_v18  ;;  %v11170_v50 = vcombine.high %v8758_v31, %v8762_v39  ;;  %v11172_v21 = vcombine.high %v8759_v54, %v8763_v23  ;;  %v11323_v18 = vld [vmem:[#allocation16] sm:$0xff]  }
 0xa02   :  { %9533 = vmatpush1.bf16.msra.mxu0 %v11121_v19  ;;  %9576 = vmatpush1.bf16.msra.mxu1 %v11123_v15  ;;  %v8771_v19 = vld [vmem:[#allocation14 + $0x338] sm:$0xff]  ;;  %v11169_v15 = vcombine.low %v8758_v31, %v8762_v39  ;;  %v11327_v31 = vld [vmem:[#allocation16 + $0x20] sm:$0xff]   ;;  %v11329_v39 = vld [vmem:[#allocation16 + $0x30] sm:$0xff]  }
 0xa03   :  { %9534 = vmatprep.subr.bf16.mxu0 %v11130_v49  ;;  %9577 = vmatprep.subr.bf16.mxu1 %v11132_v6  ;;  %v11171_v49 = vcombine.low %v8759_v54, %v8763_v23  ;;  %v11178_v6 = vcombine.high %v8766_v46, %v8770_v7  ;;  %v11180_v27 = vcombine.high %v8767_v38, %v8771_v19  ;;  %v11330_v54 = vld [vmem:[#allocation16 + $0x38] sm:$0xff]   ;;  %v11331_v23 = vld [vmem:[#allocation16 + $0x40] sm:$0xff]  }
 0xa06   :  { %9535 = vmatpush1.bf16.msra.mxu0 %v11129_v41  ;;  %9578 = vmatpush1.bf16.msra.mxu1 %v11131_v0  ;;  %v8779_v41 = vld [vmem:[#allocation14 + $0x378] sm:$0xff]  ;;  %v11177_v0 = vcombine.low %v8766_v46, %v8770_v7  ;;  %v11336_v46 = vld [vmem:[#allocation16 + $0x68] sm:$0xff]   ;;  %v11337_v7 = vld [vmem:[#allocation16 + $0x70] sm:$0xff]  }
 0xa07   :  { %9536 = vmatprep.subr.bf16.mxu0 %v11138_v56  ;;  %9579 = vmatprep.subr.bf16.mxu1 %v11140_v17  ;;  %v11179_v56 = vcombine.low %v8767_v38, %v8771_v19  ;;  %v11186_v17 = vcombine.high %v8774_v35, %v8778_v33  ;;  %v11188_v43 = vcombine.high %v8775_v32, %v8779_v41  ;;  %v11338_v38 = vld [vmem:[#allocation16 + $0x78] sm:$0xff]   ;;  %v13558_v19 = vld [vmem:[#allocation46_spill] sm:$0xff] }
 0xa0a   :  { %9537 = vmatpush1.bf16.msra.mxu0 %v11137_v22  ;;  %9580 = vmatpush1.bf16.msra.mxu1 %v11139_v14  ;;  %v8787_v22 = vld [vmem:[#allocation14 + $0x3b8] sm:$0xff]  ;;  %v11185_v14 = vcombine.low %v8774_v35, %v8778_v33 }
 0xa0b   :  { %9538 = vmatprep.subr.bf16.mxu0 %v11146_v51  ;;  %9581 = vmatprep.subr.bf16.mxu1 %v11148_v30  ;;  %v11187_v51 = vcombine.low %v8775_v32, %v8779_v41  ;;  %v11194_v30 = vcombine.high %v8782_v52, %v8786_v20  ;;  %v11196_v47 = vcombine.high %v8783_v57, %v8787_v22  ;;  %v13560_v41 = vld [vmem:[#allocation48_spill] sm:$0xff] }
 0xa0e   :  { %9539 = vmatpush1.bf16.msra.mxu0 %v11145_v8  ;;  %9582 = vmatpush1.bf16.msra.mxu1 %v11147_v44  ;;  %v8795_v8 = vld [vmem:[#allocation14 + $0x3f8] sm:$0xff]  ;;  %v11193_v44 = vcombine.low %v8782_v52, %v8786_v20 }
 0xa0f   :  { %9540 = vmatprep.subr.bf16.mxu0 %v11154_v63  ;;  %9583 = vmatprep.subr.bf16.mxu1 %v11156_v28  ;;  %v11195_v63 = vcombine.low %v8783_v57, %v8787_v22  ;;  %v11202_v28 = vcombine.high %v8790_v37, %v8794_v16  ;;  %v11204_v36 = vcombine.high %v8791_v5, %v8795_v8  ;;  %v13561_v57 = vld [vmem:[#allocation49_spill] sm:$0xff] }
 0xa10   :  { %v11203_v2 = vcombine.low %v8791_v5, %v8795_v8  ;;  %v9617_v22 = vunpack.c.l.bf16 %v13561_v57 }
 0xa12   :  { %9541 = vmatpush1.bf16.msra.mxu0 %v11153_v62  ;;  %9584 = vmatpush1.bf16.msra.mxu1 %v11155_v61  ;;  %v12001_v62 = vmov 0.0   ;;  %v11324_v61 = vld [vmem:[#allocation16 + $0x8] sm:$0xff]  }
 0xa13   :  { %9542 = vmatprep.subr.bf16.mxu0 %v11162_v24  ;;  %9585 = vmatprep.subr.bf16.mxu1 %v11164_v10  ;;  %v11325_v24 = vld [vmem:[#allocation16 + $0x10] sm:$0xff]   ;;  %v11326_v10 = vld [vmem:[#allocation16 + $0x18] sm:$0xff]  }
 0xa16   :  { %9543 = vmatpush1.bf16.msra.mxu0 %v11161_v53  ;;  %9586 = vmatpush1.bf16.msra.mxu1 %v11163_v60  ;;  %v11332_v53 = vld [vmem:[#allocation16 + $0x48] sm:$0xff]   ;;  %v11333_v60 = vld [vmem:[#allocation16 + $0x50] sm:$0xff]  }
 0xa17   :  { %9544 = vmatprep.subr.bf16.mxu0 %v11170_v50  ;;  %9587 = vmatprep.subr.bf16.mxu1 %v11172_v21  ;;  %v11334_v50 = vld [vmem:[#allocation16 + $0x58] sm:$0xff]   ;;  %v11335_v21 = vld [vmem:[#allocation16 + $0x60] sm:$0xff]  }
 0xa1a   :  { %9545 = vmatpush1.bf16.msra.mxu0 %v11169_v15  ;;  %9588 = vmatpush1.bf16.msra.mxu1 %v11171_v49  ;;  %v9614_v15 = vunpack.c.l.bf16 %v13558_v19  ;;  %v9618_v49 = vunpack.c.h.bf16 %v13558_v19 }
 0xa1b   :  { %9546 = vmatprep.subr.bf16.mxu0 %v11178_v6  ;;  %9589 = vmatprep.subr.bf16.mxu1 %v11180_v27  ;;  %v13559_v6 = vld [vmem:[#allocation47_spill] sm:$0xff] }
 0xa1c   :  { %v9615_v27 = vunpack.c.l.bf16 %v13559_v6  ;;  %v9619_v35 = vunpack.c.h.bf16 %v13559_v6 }
 0xa1e   :  { %9547 = vmatpush1.bf16.msra.mxu0 %v11177_v0  ;;  %9590 = vmatpush1.bf16.msra.mxu1 %v11179_v56  ;;  %v9616_v0 = vunpack.c.l.bf16 %v13560_v41  ;;  %v9620_v56 = vunpack.c.h.bf16 %v13560_v41 }
 0xa1f   :  { %9548 = vmatprep.subr.bf16.mxu0 %v11186_v17  ;;  %9591 = vmatprep.subr.bf16.mxu1 %v11188_v43 }
 0xa22   :  { %9549 = vmatpush1.bf16.msra.mxu0 %v11185_v14  ;;  %9592 = vmatpush1.bf16.msra.mxu1 %v11187_v51  ;;  %v9621_v14 = vunpack.c.h.bf16 %v13561_v57 }
 0xa23   :  { %9550 = vmatprep.subr.bf16.mxu0 %v11194_v30  ;;  %9593 = vmatprep.subr.bf16.mxu1 %v11196_v47 }
 0xa26   :  { %9551 = vmatpush1.bf16.msra.mxu0 %v11193_v44  ;;  %9594 = vmatpush1.bf16.msra.mxu1 %v11195_v63 }
 0xa27   :  { %9552 = vmatprep.subr.bf16.mxu0 %v11202_v28  ;;  %9595 = vmatprep.subr.bf16.mxu1 %v11204_v36 }
 0xa2a   :  { %9553 = vmatpush1.bf16.msra.mxu0 %v11201_v58  ;;  %9596 = vmatpush1.bf16.msra.mxu1 %v11203_v2 }
 0xa2b   :  { %11272 = vmatprep.subr.bf16.mxu1 %v12001_v62  ;;  %11252 = vmatprep.subr.bf16.mxu0 %v12001_v62 }
 0xa2d   :  { %9555 = vmatmul.mubr.bf16.vlgmr.msra.gmra.mrb[124].mxu0 %v13179_v29  ;;  %9598 = vmatmul.mubr.bf16.vlgmr.msra.gmra.mrb[124].mxu1 %v13179_v29  ;;  %v11328_v29 = vld [vmem:[#allocation16 + $0x28] sm:$0xff]  }
 0xa2e   :  { %11273 = vmatpush3.bf16.msra.mxu1 %v11323_v18  ;;  %11288 = vmatprep.mubr.msk.bf16.mxu1 %vm12002_vm1, %v12001_v62 }
 0xa2f   :  { %11274 = vmatprep.subr.bf16.mxu1 %v12001_v62  ;;  %11268 = vmatprep.mubr.msk.bf16.mxu0 %vm12002_vm1, %v12001_v62 }
 0xa30   :  { %11253 = vmatpush3.bf16.msra.mxu0 %v11331_v23 }
 0xa31   :  { %11254 = vmatprep.subr.bf16.mxu0 %v12001_v62 }
 0xa32   :  { %11275 = vmatpush3.bf16.msra.mxu1 %v11324_v61 }
 0xa33   :  { %11276 = vmatprep.subr.bf16.mxu1 %v12001_v62 }
 0xa34   :  { %11255 = vmatpush3.bf16.msra.mxu0 %v11332_v53 }
 0xa35   :  { %11256 = vmatprep.subr.bf16.mxu0 %v12001_v62 }
 0xa36   :  { %11277 = vmatpush3.bf16.msra.mxu1 %v11325_v24 }
 0xa37   :  { %11278 = vmatprep.subr.bf16.mxu1 %v12001_v62 }
 0xa38   :  { %11257 = vmatpush3.bf16.msra.mxu0 %v11333_v60 }
 0xa39   :  { %11258 = vmatprep.subr.bf16.mxu0 %v12001_v62 }
 0xa3a   :  { %11279 = vmatpush3.bf16.msra.mxu1 %v11326_v10 }
 0xa3b   :  { %11280 = vmatprep.subr.bf16.mxu1 %v12001_v62 }
 0xa3c   :  { %11259 = vmatpush3.bf16.msra.mxu0 %v11334_v50 }
 0xa3d   :  { %11260 = vmatprep.subr.bf16.mxu0 %v12001_v62 }
 0xa3e   :  { %11281 = vmatpush3.bf16.msra.mxu1 %v11327_v31 }
 0xa3f   :  { %11282 = vmatprep.subr.bf16.mxu1 %v12001_v62 }
 0xa40   :  { %11261 = vmatpush3.bf16.msra.mxu0 %v11335_v21 }
 0xa41   :  { %11262 = vmatprep.subr.bf16.mxu0 %v12001_v62 }
 0xa42   :  { %11283 = vmatpush3.bf16.msra.mxu1 %v11328_v29 }
 0xa43   :  { %11284 = vmatprep.subr.bf16.mxu1 %v12001_v62 }
 0xa44   :  { %11263 = vmatpush3.bf16.msra.mxu0 %v11336_v46 }
 0xa45   :  { %11264 = vmatprep.subr.bf16.mxu0 %v12001_v62 }
 0xa46   :  { %11285 = vmatpush3.bf16.msra.mxu1 %v11329_v39 }
 0xa47   :  { %11286 = vmatprep.subr.bf16.mxu1 %v12001_v62 }
 0xa48   :  { %11265 = vmatpush3.bf16.msra.mxu0 %v11337_v7 }
 0xa49   :  { %11266 = vmatprep.subr.bf16.mxu0 %v12001_v62 }
 0xa4a   :  { %11287 = vmatpush3.bf16.msra.mxu1 %v11330_v54 }
 0xa4c   :  { %11267 = vmatpush3.bf16.msra.mxu0 %v11338_v38 }
 0xac0   :  { %v9470_v33 = vpop.f32.mrb[120].mxu0  ;;  %v9513_v32 = vpop.f32.mrb[120].mxu1 }
 0xac1   :  { %v9471_v17 = vadd.f32 %v9470_v33, %v13509_v13  ;;  %v9514_v43 = vadd.f32 %v9513_v32, %v12516_v48  ;;  %v9472_v52 = vpop.f32.mrb[121].mxu0  ;;  %v9515_v20 = vpop.f32.mrb[121].mxu1 }
 0xac2   :  { %v9473_v51 = vadd.f32 %v9472_v52, %v13511_v3  ;;  %v9516_v30 = vadd.f32 %v9515_v20, %v13512_v55  ;;  %v9474_v47 = vpop.f32.mrb[122].mxu0  ;;  %v9517_v37 = vpop.f32.mrb[122].mxu1 }
 0xac3   :  { %v9622_v16 = vadd.f32 %v9614_v15, %v9471_v17  ;;  %v9624_v5 = vadd.f32 %v9616_v0, %v9514_v43  ;;  %v9475_v8 = vadd.f32 %v9474_v47, %v13509_v13  ;;  %v9518_v44 = vadd.f32 %v9517_v37, %v12516_v48  ;;  %v9476_v63 = vpop.f32.mrb[123].mxu0  ;;  %v9519_v28 = vpop.f32.mrb[123].mxu1 }
 0xac4   :  { %v9623_v36 = vadd.f32 %v9615_v27, %v9473_v51  ;;  %v9625_v58 = vadd.f32 %v9617_v22, %v9516_v30  ;;  %v9477_v2 = vadd.f32 %v9476_v63, %v13511_v3  ;;  %v9520_v18 = vadd.f32 %v9519_v28, %v13512_v55 }
 0xac5   :  { %v11205_v62 = vmul.f32 -1.442695, %v9622_v16  ;;  %v9626_v61 = vadd.f32 %v9618_v49, %v9475_v8  ;;  %v9628_v24 = vadd.f32 %v9620_v56, %v9518_v44  ;;  %v13562_v16 = vld [vmem:[#allocation50_spill] sm:$0xff] }
 0xac6   :  { %v11207_v10 = vmul.f32 -1.442695, %v9623_v36  ;;  %v9627_v31 = vadd.f32 %v9619_v35, %v9477_v2  ;;  %v9629_v29 = vadd.f32 %v9621_v14, %v9520_v18  ;;  %v11209_v48 = vmul.f32 -1.442695, %v9625_v58  ;;  %v13564_v58 = vld [vmem:[#allocation52_spill] sm:$0xff] }
 0xac7   :  { %11787 = vpow2.f32 %v11205_v62  ;;  %v11206_v39 = vmul.f32 -1.442695, %v9626_v61  ;;  %v9640_v8 = vunpack.c.h.bf16 %v13562_v16  ;;  %v9638_v2 = vunpack.c.l.bf16 %v13564_v58 }
 0xac8   :  { %11789 = vpow2.f32 %v11207_v10  ;;  %v11208_v13 = vmul.f32 -1.442695, %v9627_v31  ;;  %v11210_v3 = vmul.f32 -1.442695, %v9629_v29 }
 0xac9   :  { %11791 = vpow2.f32 %v11206_v39 }
 0xaca   :  { %11793 = vpow2.f32 %v11208_v13 }
 0xacb   :  { %11795 = vtanh.f32 %v9624_v5  ;;  %v9636_v5 = vunpack.c.l.bf16 %v13562_v16 }
 0xacc   :  { %11797 = vpow2.f32 %v11209_v48 }
 0xacd   :  { %11799 = vtanh.f32 %v9628_v24  ;;  %v13565_v24 = vld [vmem:[#allocation53_spill] sm:$0xff] }
 0xace   :  { %v9639_v10 = vunpack.c.l.bf16 %v13565_v24  ;;  %v9643_v31 = vunpack.c.h.bf16 %v13565_v24 }
 0xad1   :  { %v11788_v54 = vpop.eup %11787 }
 0xad2   :  { %v11790_v23 = vpop.eup %11789  ;;  %v9658_v53 = vadd.f32 1.0, %v11788_v54 }
 0xad3   :  { %v9670_v55 = vadd.f32 1.0, %v11790_v23  ;;  %v11792_v60 = vpop.eup %11791 }
 0xad4   :  { %11801 = vrcp.f32 %v9658_v53  ;;  %v9659_v50 = vadd.f32 1.0, %v11792_v60  ;;  %v11794_v21 = vpop.eup %11793 }
 0xad5   :  { %11803 = vrcp.f32 %v9670_v55  ;;  %v9671_v46 = vadd.f32 1.0, %v11794_v21  ;;  %v11796_v7 = vpop.eup %11795 }
 0xad6   :  { %11805 = vpow2.f32 %v11210_v3  ;;  %v11798_v38 = vpop.eup %11797 }
 0xad7   :  { %11807 = vrcp.f32 %v9659_v50  ;;  %v11800_v19 = vpop.eup %11799  ;;  %v9684_v27 = vadd.f32 1.0, %v11798_v38 }
 0xad8   :  { %11809 = vrcp.f32 %v9671_v46 }
 0xad9   :  { %11811 = vrcp.f32 %v9684_v27 }
 0xade   :  { %v11802_v15 = vpop.eup %11801 }
 0xadf   :  { %v11804_v49 = vpop.eup %11803  ;;  %v9692_v6 = vmul.f32 %v11802_v15, %v11796_v7 }
 0xae0   :  { %v11806_v35 = vpop.eup %11805  ;;  %v9690_v33 = vmul.f32 %v11804_v49, %v13167_v45 }
 0xae1   :  { %v11808_v32 = vpop.eup %11807  ;;  %v9685_v17 = vadd.f32 1.0, %v11806_v35 }
 0xae2   :  { %v9694_v41 = vadd.f32 %v9692_v6, %v9690_v33  ;;  %v9693_v0 = vmul.f32 %v11808_v32, %v11800_v19  ;;  %v11810_v56 = vpop.eup %11809 }
 0xae3   :  { %v9691_v43 = vmul.f32 %v11810_v56, %v13171_v34  ;;  %v11812_v20 = vpop.eup %11811  ;;  %v13563_v34 = vld [vmem:[#allocation51_spill] sm:$0xff] }
 0xae4   :  { %11813 = vtanh.f32 %v9694_v41  ;;  %v9637_v44 = vunpack.c.l.bf16 %v13563_v34  ;;  %v9641_v63 = vunpack.c.h.bf16 %v13563_v34 }
 0xae5   :  { %v9695_v52 = vadd.f32 %v9693_v0, %v9691_v43  ;;  %11815 = vrcp.f32 %v9685_v17 }
 0xae7   :  { %11817 = vtanh.f32 %v9695_v52 }
 0xaee   :  { %v11814_v57 = vpop.eup %11813 }
 0xaef   :  { %v9698_v22 = vmul.f32 %v11814_v57, %v11812_v20  ;;  %v11816_v14 = vpop.eup %11815 }
 0xaf1   :  { %v9750_v51 = vmax.f32 %v13177_v1, %v9698_v22  ;;  %v11818_v30 = vpop.eup %11817  ;;  %v9642_v1 = vunpack.c.h.bf16 %v13564_v58 }
 0xaf2   :  { %v9699_v45 = vmul.f32 %v11818_v30, %v11816_v14 }
 0xaf4   :  { %v9751_v47 = vmax.f32 %v13184_v25, %v9699_v45 }
 0xaf6   :  { %v9773_v37 = vpack.c.bf16 %v9751_v47, %v9750_v51 }
 0xaf8   :  { %11289 = vmatmul.mubr.bf16.vlgmr.msra.gmra.mrb[128].mxu1 %v9773_v37 }
 0xb00   :  { %v9556_v28 = vpop.f32.mrb[124].mxu0  ;;  %v9599_v36 = vpop.f32.mrb[124].mxu1 }
 0xb01   :  { %v9557_v18 = vadd.f32 %v9556_v28, %v13516_v59  ;;  %v9600_v25 = vadd.f32 %v9599_v36, %v12556_v11  ;;  %v9558_v62 = vpop.f32.mrb[125].mxu0  ;;  %v9601_v61 = vpop.f32.mrb[125].mxu1 }
 0xb02   :  { %v9559_v29 = vadd.f32 %v9558_v62, %v12559_v42  ;;  %v9602_v39 = vadd.f32 %v9601_v61, %v12562_v40  ;;  %v9560_v13 = vpop.f32.mrb[126].mxu0  ;;  %v9603_v48 = vpop.f32.mrb[126].mxu1 }
 0xb03   :  { %v9644_v54 = vadd.f32 %v9636_v5, %v9557_v18  ;;  %v9646_v23 = vadd.f32 %v9638_v2, %v9600_v25  ;;  %v9561_v53 = vadd.f32 %v9560_v13, %v13516_v59  ;;  %v9604_v3 = vadd.f32 %v9603_v48, %v12556_v11  ;;  %v9562_v55 = vpop.f32.mrb[127].mxu0  ;;  %v9605_v60 = vpop.f32.mrb[127].mxu1 }
 0xb04   :  { %v9645_v50 = vadd.f32 %v9637_v44, %v9559_v29  ;;  %v9647_v21 = vadd.f32 %v9639_v10, %v9602_v39  ;;  %v9563_v46 = vadd.f32 %v9562_v55, %v12559_v42  ;;  %v9606_v7 = vadd.f32 %v9605_v60, %v12562_v40  ;;  %v11233_v29 = vld [vmem:[%s13291_s6] ss:$0 sm:$0xff] }
 0xb05   :  { %v11211_v38 = vmul.f32 -1.442695, %v9644_v54  ;;  %v9648_v19 = vadd.f32 %v9640_v8, %v9561_v53  ;;  %v9650_v15 = vadd.f32 %v9642_v1, %v9604_v3 }
 0xb06   :  { %v11213_v49 = vmul.f32 -1.442695, %v9645_v50  ;;  %v9649_v6 = vadd.f32 %v9641_v63, %v9563_v46  ;;  %v9651_v27 = vadd.f32 %v9643_v31, %v9606_v7  ;;  %v11215_v11 = vmul.f32 -1.442695, %v9647_v21 }
 0xb07   :  { %11819 = vpow2.f32 %v11211_v38  ;;  %v11212_v35 = vmul.f32 -1.442695, %v9648_v19 }
 0xb08   :  { %11821 = vpow2.f32 %v11213_v49  ;;  %v11214_v59 = vmul.f32 -1.442695, %v9649_v6  ;;  %v11216_v42 = vmul.f32 -1.442695, %v9651_v27 }
 0xb09   :  { %11823 = vpow2.f32 %v11212_v35 }
 0xb0a   :  { %11825 = vpow2.f32 %v11214_v59 }
 0xb0b   :  { %11827 = vtanh.f32 %v9646_v23 }
 0xb0c   :  { %11829 = vpow2.f32 %v11215_v11 }
 0xb0d   :  { %11831 = vtanh.f32 %v9650_v15 }
 0xb11   :  { %v11820_v33 = vpop.eup %11819 }
 0xb12   :  { %v11822_v32 = vpop.eup %11821  ;;  %v9706_v41 = vadd.f32 1.0, %v11820_v33 }
 0xb13   :  { %v9718_v40 = vadd.f32 1.0, %v11822_v32  ;;  %v11824_v0 = vpop.eup %11823 }
 0xb14   :  { %11833 = vrcp.f32 %v9706_v41  ;;  %v9707_v56 = vadd.f32 1.0, %v11824_v0  ;;  %v11826_v17 = vpop.eup %11825 }
 0xb15   :  { %11835 = vrcp.f32 %v9718_v40  ;;  %v9719_v43 = vadd.f32 1.0, %v11826_v17  ;;  %v11828_v52 = vpop.eup %11827 }
 0xb16   :  { %11837 = vpow2.f32 %v11216_v42  ;;  %v11830_v20 = vpop.eup %11829 }
 0xb17   :  { %11839 = vrcp.f32 %v9707_v56  ;;  %v11832_v57 = vpop.eup %11831  ;;  %v9732_v30 = vadd.f32 1.0, %v11830_v20 }
 0xb18   :  { %11841 = vrcp.f32 %v9719_v43 }
 0xb19   :  { %11843 = vrcp.f32 %v9732_v30 }
 0xb1e   :  { %v11834_v22 = vpop.eup %11833 }
 0xb1f   :  { %v11836_v14 = vpop.eup %11835  ;;  %v9740_v51 = vmul.f32 %v11834_v22, %v11828_v52 }
 0xb20   :  { %v11838_v45 = vpop.eup %11837  ;;  %v9738_v47 = vmul.f32 %v11836_v14, %v13203_v26 }
 0xb21   :  { %v11840_v37 = vpop.eup %11839  ;;  %v9733_v34 = vadd.f32 1.0, %v11838_v45 }
 0xb22   :  { %v9742_v16 = vadd.f32 %v9740_v51, %v9738_v47  ;;  %v9741_v5 = vmul.f32 %v11840_v37, %v11832_v57  ;;  %v11842_v8 = vpop.eup %11841 }
 0xb23   :  { %v9739_v44 = vmul.f32 %v11842_v8, %v13207_v9  ;;  %v11844_v28 = vpop.eup %11843 }
 0xb24   :  { %11845 = vtanh.f32 %v9742_v16 }
 0xb25   :  { %v9743_v63 = vadd.f32 %v9741_v5, %v9739_v44  ;;  %11847 = vrcp.f32 %v9733_v34 }
 0xb27   :  { %11849 = vtanh.f32 %v9743_v63 }
 0xb2e   :  { %v11846_v36 = vpop.eup %11845 }
 0xb2f   :  { %v9746_v58 = vmul.f32 %v11846_v36, %v11844_v28  ;;  %v11848_v2 = vpop.eup %11847 }
 0xb31   :  { %v9756_v1 = vmax.f32 %v13213_v4, %v9746_v58  ;;  %v11850_v18 = vpop.eup %11849 }
 0xb32   :  { %v9747_v26 = vmul.f32 %v11850_v18, %v11848_v2 }
 0xb34   :  { %v9757_v25 = vmax.f32 %v13218_v12, %v9747_v26 }
 0xb36   :  { %v9792_v62 = vpack.c.bf16 %v9757_v25, %v9756_v1 }
 0xb38   :  { %11269 = vmatmul.mubr.bf16.vlgmr.msra.gmra.mrb[128].mxu0 %v9792_v62 }
 0xbcb   :  { %v9980_v61 = vpop.f32.mrb[128].mxu1 }
 0xbcc   :  { %v11290_v24 = vpop.f32.mrb[129].mxu1 }
 0xbcd   :  { %v9983_v10 = vpop.f32.mrb[130].mxu1 }
 0xbce   :  { %v11291_v31 = vpop.f32.mrb[131].mxu1 }
 0xc0b   :  { %v9891_v9 = vpop.f32.mrb[128].mxu0 }
 0xc0c   :  { %v9981_v39 = vadd.f32 %v9980_v61, %v9891_v9  ;;  %v11270_v13 = vpop.f32.mrb[129].mxu0 }
 0xc0d   :  { %v9894_v48 = vpop.f32.mrb[130].mxu0 }
 0xc0e   :  { %v9994_v4 = vadd.f32 %v11233_v29, %v9981_v39  ;;  %v9984_v54 = vadd.f32 %v9983_v10, %v9894_v48  ;;  %v11271_v23 = vpop.f32.mrb[131].mxu0 }
 0xc10   :  { %9996 = vst [vmem:[#allocation17] sm:$0xff] %v9994_v4  ;;  %v9995_v12 = vadd.f32 %v11233_v29, %v9984_v54 }
 0xc12   :  { %9997 = vst [vmem:[#allocation17 + $0x8] sm:$0xff] %v9995_v12 }
 0xc13   :  { %11972 = shalt.err (!%p11969_p2)
}
 0xc14   :  { %s11973_s22 = scalar_lea.hbm %s13292_s7, 256 }
 0xc15   :  { %p11974_p3 = scmp.ne.s32.totalorder %s13292_s7, %s11973_s22  ;;  %p11977_p4 = scmp.lt.u32.totalorder %s11973_s22, %s13292_s7 }
 0xc17   :  { %p11979_p5 = pnand %p11977_p4, %p11974_p3 }
 0xc19   :  { %11982 = shalt.err (!%p11979_p5)
}
 0xc1a   :  { %s12004_s28 = smov 128   ;;  %s12005_s29 = smov 8  }
 0xc1b   :  { %10009 = dma.vmem_to_hbm [thread:$0]  %s10004_s19, 256, %s13292_s7, [#allocation10], %s12004_s28, %s12004_s28, %s12005_s29  }
 0xc1c   :  { %11989 = dma.done.wait [#allocation10], 256  }
 0xc1d   :  { %11990 = vsyncadd [#allocation10], 4294967040 }
 0xc1e   :  { %10013 = vsyncpa [#allocation9], 1 }
 0xc1f   :  { %10014 = vsyncpa [#allocation12], 1 }
 0xc20   :  { %10015 = vsyncpa [#allocation15], 1 }
 0xc21   :  { %10016 = vsyncpa [#allocation10], 1 }

</bundles_post_ra>
